<compile_context>
chip_gen: v5e
topology: v5e:2x2
jax: 0.10.0
libtpu: 0.0.40
codegen_flags: <defaults>
</compile_context>

<pallas_src>
import math

import numpy as np
import jax
import jax.numpy as jnp
from jax.experimental import pallas as pl
from jax.experimental.pallas import tpu as pltpu

F32 = jnp.float32
BF16 = jnp.bfloat16
NUM_SCALES = 3           # MSGMSLoss default number of scales
SMOOTH_K = 21            # mean_smoothing kernel size (RIAD default)
GMS_C = 0.0026
BN_EPS = 1e-5
BN_SCALE = 1.0 / math.sqrt(1.0 + BN_EPS)   # eval-mode BatchNorm w/ default stats


# --------------------------------------------------------------------------- #
# pallas helpers
# --------------------------------------------------------------------------- #
def _lead_spec(shape):
    """Block over the leading axis, full extent on the remaining dims."""
    rest = tuple(shape[1:])
    zeros = (0,) * len(rest)
    return pl.BlockSpec((1,) + rest, lambda i: (i,) + zeros)


def _rowwise_call(kernel, out_struct, *inputs):
    """Grid over the (shared) leading axis; blocks are pipelined per row."""
    n = inputs[0].shape[0]
    return pl.pallas_call(
        kernel,
        grid=(n,),
        in_specs=[_lead_spec(x.shape) for x in inputs],
        out_specs=_lead_spec(out_struct.shape),
        out_shape=out_struct,
        compiler_params=pltpu.CompilerParams(dimension_semantics=("parallel",)),
    )(*inputs)


# --------------------------------------------------------------------------- #
# Pallas kernels
# --------------------------------------------------------------------------- #
def _make_conv_kernel(offsets, m_out, relu):
    """Shift-and-matmul 'same' convolution on a flattened padded image.

    x_ref: (1, Cin, Hp*Wp + K-1) bf16 flat padded activation
    w_ref: (K*K, Cout, Cin) bf16 per-tap weights
    b_ref: (Cout, 1) f32
    o_ref: (1, Cout, H*Wp) — flat rows of width Wp (junk in last K-1 columns,
           cropped by the caller).
    """
    def kernel(x_ref, w_ref, b_ref, o_ref):
        acc = None
        for t, off in enumerate(offsets):
            xs = x_ref[0, :, off:off + m_out]                 # (Cin, M) bf16
            part = jnp.dot(w_ref[t], xs, preferred_element_type=jnp.float32)
            acc = part if acc is None else acc + part
        acc = acc + b_ref[...]
        if relu:
            acc = jnp.maximum(acc, 0.0)
        o_ref[0] = acc.astype(o_ref.dtype)
    return kernel


def _target_kernel(img_ref, m_ref, o_ref):
    m = m_ref[...]                               # (1,1,H,W)
    o_ref[...] = img_ref[...] * m - (1.0 - m)


def _patched_kernel(noise_ref, t_ref, m_ref, o_ref):
    # TODO(synk): exact colour-inpainting fill of PatchedInputs is not given;
    # masked pixels take precomputed uniform noise in [-1,1] (zeros if blackout).
    t = t_ref[...]                               # (1,C,H,W)
    m = m_ref[...]                               # (1,H,W)
    o_ref[...] = (t * m + noise_ref[...] * (1.0 - m)).astype(o_ref.dtype)


def _combine_kernel(out_in_ref, invm_ref, fg_ref, o_ref):
    # grid = (K, B, S); accumulate over the disjoint-set axis s (last, arbitrary)
    s = pl.program_id(2)
    contrib = out_in_ref[...] * invm_ref[...]    # (1,C,H,W) * (1,H,W)

    @pl.when(s == 0)
    def _():
        o_ref[...] = contrib

    @pl.when(s > 0)
    def _():
        o_ref[...] = o_ref[...] + contrib

    @pl.when(s == pl.num_programs(2) - 1)
    def _():
        fg = fg_ref[...]                         # (1,1,H,W)
        o_ref[...] = o_ref[...] * fg - (1.0 - fg)


def _denorm_kernel(x_ref, o_ref):
    # TODO(synk): denormalise source not provided; assumed [-1,1] -> [0,1].
    o_ref[...] = x_ref[...] * 0.5 + 0.5


def _colour_kernel(t_ref, x_ref, o_ref):
    # TODO(synk): exact ColourLoss definition unavailable; per-pixel mean
    # absolute colour difference used as the colour map.
    o_ref[...] = jnp.mean(jnp.abs(t_ref[...] - x_ref[...]), axis=1, keepdims=True)


def _gms_kernel(x1_ref, x2_ref, o_ref):
    H, W = o_ref.shape[2], o_ref.shape[3]

    def grad_mag(x):                             # x: (1, C, H+2, W+2)
        # Separable Prewitt: 3-row vertical sum then horizontal diff (gx),
        # 3-col horizontal sum then vertical diff (gy).
        vsum = x[:, :, 0:H, :] + x[:, :, 1:H + 1, :] + x[:, :, 2:H + 2, :]
        gx = (vsum[:, :, :, 0:W] - vsum[:, :, :, 2:W + 2]) * (1.0 / 3.0)
        hsum = x[:, :, :, 0:W] + x[:, :, :, 1:W + 1] + x[:, :, :, 2:W + 2]
        gy = (hsum[:, :, 0:H, :] - hsum[:, :, 2:H + 2, :]) * (1.0 / 3.0)
        return jnp.sqrt(gx * gx + gy * gy + 1e-12)

    g1 = grad_mag(x1_ref[...])
    g2 = grad_mag(x2_ref[...])
    o_ref[...] = (2.0 * g1 * g2 + GMS_C) / (g1 * g1 + g2 * g2 + GMS_C)


def _msgms_residual_kernel(x_ref, o_ref):
    o_ref[...] = jnp.mean(1.0 - x_ref[...] / float(NUM_SCALES),
                          axis=1, keepdims=True)


def _make_mean_smooth_kernel(k):
    inv = 1.0 / float(k * k)

    def kernel(x_ref, av_ref, ah_ref, o_ref):
        # Separable box filter as two banded MXU matmuls instead of 2*(k-1)
        # shifted adds (which each force an XLU relayout of the full map).
        x2d = x_ref[0, 0]                                            # (Hp, Wp)
        tmp = jnp.dot(av_ref[...], x2d, preferred_element_type=jnp.float32)
        out = jnp.dot(tmp, ah_ref[...], preferred_element_type=jnp.float32)
        o_ref[0, 0] = out * inv
    return kernel


# --------------------------------------------------------------------------- #
# conv2d: no HBM im2col — in-VMEM lane-shifted taps + MXU matmul accumulation
# --------------------------------------------------------------------------- #
def conv2d(x, w, b, *, relu=False, out_dtype=F32):
    """'same' convolution, NCHW in / NCHW out.  bf16 MXU matmuls, f32 acc."""
    N, Cin, H, W = x.shape
    K = w.shape[0]
    Cout = w.shape[-1]
    pad = (K - 1) // 2
    Hp, Wp = H + 2 * pad, W + 2 * pad

    xp = jnp.pad(x, ((0, 0), (0, 0), (pad, pad), (pad, pad))) if pad else x
    x_flat = xp.reshape(N, Cin, Hp * Wp)
    if K > 1:                       # room so the largest tap offset stays in-bounds
        x_flat = jnp.pad(x_flat, ((0, 0), (0, 0), (0, K - 1)))
    x_flat = x_flat.astype(BF16)
    L = x_flat.shape[-1]

    w_taps = jnp.transpose(w, (0, 1, 3, 2)).reshape(K * K, Cout, Cin).astype(BF16)
    b2 = b.reshape(Cout, 1).astype(F32)

    M = H * Wp                      # flat output: H rows of width Wp
    offsets = tuple(kh * Wp + kw for kh in range(K) for kw in range(K))

    out_flat = pl.pallas_call(
        _make_conv_kernel(offsets, M, relu),
        grid=(N,),
        in_specs=[
            pl.BlockSpec((1, Cin, L), lambda n: (n, 0, 0)),
            pl.BlockSpec((K * K, Cout, Cin), lambda n: (0, 0, 0)),
            pl.BlockSpec((Cout, 1), lambda n: (0, 0)),
        ],
        out_specs=pl.BlockSpec((1, Cout, M), lambda n: (n, 0, 0)),
        out_shape=jax.ShapeDtypeStruct((N, Cout, M), out_dtype),
        compiler_params=pltpu.CompilerParams(dimension_semantics=("parallel",)),
    )(x_flat, w_taps, b2)

    out = out_flat.reshape(N, Cout, H, Wp)
    return out[:, :, :, :W] if pad else out


# --------------------------------------------------------------------------- #
# UNet (reconstructed; eval mode, BatchNorm folded, bf16 activations)
# --------------------------------------------------------------------------- #
def _conv_init(key, k, cin, cout, bn=False):
    fan_in = k * k * cin
    w = jax.random.normal(key, (k, k, cin, cout), F32) * math.sqrt(2.0 / fan_in)
    b = jnp.zeros((cout,), F32)
    if bn:  # fold eval-mode BatchNorm (default running stats) into the conv
        w = w * BN_SCALE
        b = b * BN_SCALE
    return w, b


def init_unet_params(key, c_in, base=8):
    ks = jax.random.split(key, 11)

    def dc(k1, k2, cin, cout):
        return (_conv_init(k1, 3, cin, cout, bn=True),
                _conv_init(k2, 3, cout, cout, bn=True))

    # TODO(synk): exact UNet width/depth is not given in the module; a standard
    # 2-down/2-up UNet with a small base width is used here.
    return {
        'inc':   dc(ks[0], ks[1], c_in, base),
        'down1': dc(ks[2], ks[3], base, base * 2),
        'down2': dc(ks[4], ks[5], base * 2, base * 4),
        'up1':   dc(ks[6], ks[7], base * 4 + base * 2, base * 2),
        'up2':   dc(ks[8], ks[9], base * 2 + base, base),
        'outc':  _conv_init(ks[10], 1, base, c_in, bn=False),
    }


def double_conv(x, dc_params):
    (w1, b1), (w2, b2) = dc_params
    h = conv2d(x, w1, b1, relu=True, out_dtype=BF16)
    return conv2d(h, w2, b2, relu=True, out_dtype=BF16)


def maxpool2(x):
    N, C, H, W = x.shape
    return x.reshape(N, C, H // 2, 2, W // 2, 2).max(axis=(3, 5))


def upsample2(x):
    # TODO(synk): reference UNet likely uses align_corners=True bilinear upsample.
    N, C, H, W = x.shape
    return jax.image.resize(x, (N, C, 2 * H, 2 * W), method='bilinear')


def unet_forward(params, x):
    x1 = double_conv(x, params['inc'])
    x2 = double_conv(maxpool2(x1), params['down1'])
    x3 = double_conv(maxpool2(x2), params['down2'])
    u = double_conv(jnp.concatenate([x2, upsample2(x3)], axis=1), params['up1'])
    u = double_conv(jnp.concatenate([x1, upsample2(u)], axis=1), params['up2'])
    w, b = params['outc']
    return conv2d(u, w, b, relu=False, out_dtype=F32)


# --------------------------------------------------------------------------- #
# MSGMS map, mean smoothing, mask generation, padding
# --------------------------------------------------------------------------- #
def avg_pool2(x):
    N, C, H, W = x.shape
    return x.reshape(N, C, H // 2, 2, W // 2, 2).mean(axis=(3, 5))


def gms_map(a, b):
    ap = jnp.pad(a, ((0, 0), (0, 0), (1, 1), (1, 1)))
    bp = jnp.pad(b, ((0, 0), (0, 0), (1, 1), (1, 1)))
    return _rowwise_call(_gms_kernel, jax.ShapeDtypeStruct(a.shape, F32), ap, bp)


def msgms_map(a, b):
    N, C, H, W = a.shape
    total = None
    x1, x2 = a, b
    for scale in range(NUM_SCALES):
        if scale > 0:
            x1 = avg_pool2(x1)
            x2 = avg_pool2(x2)
        g = gms_map(x1, x2)
        if scale > 0:
            g = jax.image.resize(g, (N, C, H, W), method='bilinear')
        total = g if total is None else total + g
    return _rowwise_call(_msgms_residual_kernel,
                         jax.ShapeDtypeStruct((N, 1, H, W), F32), total)


def _band_matrix(rows, cols, k):
    m = np.zeros((rows, cols), np.float32)
    for i in range(rows):
        m[i, i:i + k] = 1.0
    return m


def mean_smoothing(amap, k=SMOOTH_K):
    B, _, H, W = amap.shape
    p = k // 2
    Hp, Wp = H + 2 * p, W + 2 * p
    xp = jnp.pad(amap, ((0, 0), (0, 0), (p, p), (p, p)))
    av = jnp.asarray(_band_matrix(H, Hp, k))            # (H, Hp)
    ah = jnp.asarray(_band_matrix(W, Wp, k).T)          # (Wp, W)
    return pl.pallas_call(
        _make_mean_smooth_kernel(k),
        grid=(B,),
        in_specs=[
            pl.BlockSpec((1, 1, Hp, Wp), lambda i: (i, 0, 0, 0)),
            pl.BlockSpec((H, Hp), lambda i: (0, 0)),
            pl.BlockSpec((Wp, W), lambda i: (0, 0)),
        ],
        out_specs=pl.BlockSpec((1, 1, H, W), lambda i: (i, 0, 0, 0)),
        out_shape=jax.ShapeDtypeStruct((B, 1, H, W), F32),
        compiler_params=pltpu.CompilerParams(dimension_semantics=("parallel",)),
    )(xp, av, ah)


def make_disjoint_masks(k, img_size, num_sets, seed):
    """PatchMask: split k x k tiles into `num_sets` disjoint zeroed groups."""
    H, W = img_size
    gh, gw = math.ceil(H / k), math.ceil(W / k)
    num = gh * gw
    rng = np.random.RandomState(seed)
    perm = rng.permutation(num)
    masks = []
    for ids in np.array_split(perm, num_sets):
        flat = np.ones(num, np.float32)
        flat[ids] = 0.0
        m = flat.reshape(gh, gw)
        m = np.repeat(np.repeat(m, k, axis=0), k, axis=1)[:H, :W]
        masks.append(m)
    return np.stack(masks)                       # (S, H, W)


def pad_nextpow2(x):
    """Pad (NCHW) right/bottom with zeros to the next power-of-two square."""
    _, _, H, W = x.shape
    side = 2 ** int(math.ceil(math.log2(max(H, W))))
    return jnp.pad(x, ((0, 0), (0, 0), (0, side - H), (0, side - W)))


# --------------------------------------------------------------------------- #
# Model
# --------------------------------------------------------------------------- #
class AnomaleafPallas:
    """Pallas / JAX re-implementation of anomaleafModel.forward (inference)."""

    def __init__(self, input_size, num_input_channels=3, num_disjoint_sets=3,
                 k_values=(2, 4, 8, 16), blackout=False, unet_base=8, seed=42):
        self.input_size = tuple(input_size)
        self.num_sets = num_disjoint_sets
        self.k_list = list(k_values)
        self.blackout = blackout
        self.noise_seed = seed

        key = jax.random.PRNGKey(seed)
        self.params = init_unet_params(key, num_input_channels, base=unet_base)

        side = 2 ** int(math.ceil(math.log2(max(self.input_size))))
        masks_np = np.concatenate(
            [make_disjoint_masks(k, (side, side), num_disjoint_sets, seed=1000 + k)
             for k in self.k_list], axis=0)                       # (K*S, side, side)
        self.masks_all = jnp.asarray(masks_np, F32)
        self.inv_masks_all = jnp.asarray(1.0 - masks_np, F32)

        self._forward = jax.jit(self._forward_impl)

    def __call__(self, batch):
        return self._forward(batch['image'], batch['mask'])

    def _forward_impl(self, image_nchw, mask_nchw):
        image = pad_nextpow2(image_nchw.astype(F32))
        fg = pad_nextpow2(mask_nchw.astype(F32))
        B, C, H, W = image.shape
        S = self.num_sets
        Knum = len(self.k_list)
        P = Knum * S

        # target = image * fg - (1 - fg)
        target = _rowwise_call(_target_kernel,
                               jax.ShapeDtypeStruct(image.shape, F32), image, fg)

        # Colour-inpaint fill noise (generated outside the kernel: no TPU PRNG
        # primitives -> runs in interpret mode and on hardware alike).
        if self.blackout:
            noise = jnp.zeros((P, C, H, W), F32)
        else:
            noise = jax.random.uniform(jax.random.PRNGKey(self.noise_seed),
                                       (P, C, H, W), F32, -1.0, 1.0)

        # All (k, s) patched inputs built in one pipelined call, stacked on batch.
        # Emitted directly as bf16 (the UNet consumes bf16) -> half the HBM
        # write+read of the largest intermediate tensor.
        patched = pl.pallas_call(
            _patched_kernel,
            grid=(P, B),
            in_specs=[
                pl.BlockSpec((1, C, H, W), lambda p, b: (p, 0, 0, 0)),   # noise
                pl.BlockSpec((1, C, H, W), lambda p, b: (b, 0, 0, 0)),   # target
                pl.BlockSpec((1, H, W), lambda p, b: (p, 0, 0)),         # masks
            ],
            out_specs=pl.BlockSpec((1, C, H, W), lambda p, b: (p * B + b, 0, 0, 0)),
            out_shape=jax.ShapeDtypeStruct((P * B, C, H, W), BF16),
            compiler_params=pltpu.CompilerParams(
                dimension_semantics=("parallel", "parallel")),
        )(noise, target, self.masks_all)

        # One batched UNet pass over all K*S*B inpainting inputs.
        outs = unet_forward(self.params, patched)                 # (P*B, C, H, W) f32

        # Recombine disjoint sets per k:  sum_s out[k,s] * (1-mask[k,s]), then fg.
        combined = pl.pallas_call(
            _combine_kernel,
            grid=(Knum, B, S),
            in_specs=[
                pl.BlockSpec((1, C, H, W),
                             lambda k, b, s: (k * S * B + s * B + b, 0, 0, 0)),
                pl.BlockSpec((1, H, W), lambda k, b, s: (k * S + s, 0, 0)),
                pl.BlockSpec((1, 1, H, W), lambda k, b, s: (b, 0, 0, 0)),
            ],
            out_specs=pl.BlockSpec((1, C, H, W),
                                   lambda k, b, s: (k * B + b, 0, 0, 0)),
            out_shape=jax.ShapeDtypeStruct((Knum * B, C, H, W), F32),
            compiler_params=pltpu.CompilerParams(
                dimension_semantics=("parallel", "parallel", "arbitrary")),
        )(outs, self.inv_masks_all, fg)

        fake_all = _rowwise_call(_denorm_kernel,
                                 jax.ShapeDtypeStruct(combined.shape, F32), combined)
        fake = {k: fake_all[i * B:(i + 1) * B] for i, k in enumerate(self.k_list)}

        # MSGMS + colour maps, batched over all k at once.
        tgt_rep = jnp.broadcast_to(target[None], (Knum,) + target.shape)
        tgt_rep = tgt_rep.reshape((Knum * B, C, H, W))
        am_all = msgms_map(tgt_rep, combined)                     # (K*B, 1, H, W)
        cm_all = _rowwise_call(_colour_kernel,
                               jax.ShapeDtypeStruct((Knum * B, 1, H, W), F32),
                               tgt_rep, combined)
        anomaly_map = am_all.reshape(Knum, B, 1, H, W).sum(axis=0)
        colour_map = cm_all.reshape(Knum, B, 1, H, W).sum(axis=0)

        anomaly_map = mean_smoothing(anomaly_map)
        anomaly_score = jnp.max(anomaly_map.reshape(B, -1), axis=1)
        colour_map = mean_smoothing(colour_map) * (1.0 / float(Knum))
        colour_score = jnp.max(colour_map.reshape(B, -1), axis=1)
        real = _rowwise_call(_denorm_kernel,
                             jax.ShapeDtypeStruct(target.shape, F32), target)

        return {
            'real': real,
            'fake': fake,
            'anomaly_map': anomaly_map,
            'anomaly_score': anomaly_score,
            'colour_map': colour_map,
            'colour_score': colour_score,
        }


# --------------------------------------------------------------------------- #
if __name__ == "__main__":
    key = jax.random.PRNGKey(0)
    k_img, k_mask = jax.random.split(key)
    B, C, H, W = 2, 3, 16, 16
    image = jax.random.uniform(k_img, (B, C, H, W), F32, -1.0, 1.0)        # NCHW
    mask = (jax.random.uniform(k_mask, (B, 1, H, W), F32) > 0.2).astype(F32)

    model = AnomaleafPallas(input_size=(H, W), num_input_channels=C)
    out = model({'image': image, 'mask': mask})
    out = jax.block_until_ready(out)

    assert out['real'].shape == (B, C, H, W)
    assert out['fake'][2].shape == (B, C, H, W)
    assert out['anomaly_map'].shape == (B, 1, H, W)
    assert out['anomaly_score'].shape == (B,)
    assert out['colour_map'].shape == (B, 1, H, W)
    assert out['colour_score'].shape == (B,)
    assert all(bool(jnp.isfinite(v).all()) for v in
               (out['real'], out['anomaly_map'], out['anomaly_score'],
                out['colour_map'], out['colour_score']))
    print("KERNEL_OK")
</pallas_src>

<mosaic_0001>
module attributes {stable_mosaic.version = 11 : i64} {
  func.func @_target_kernel(%arg0: i32, %arg1: memref<1x3x16x16xf32, #tpu.memory_space<vmem>>, %arg2: memref<1x1x16x16xf32, #tpu.memory_space<vmem>>, %arg3: memref<1x3x16x16xf32, #tpu.memory_space<vmem>>) attributes {dimension_semantics = [#tpu.dimension_semantics<parallel>], iteration_bounds = array<i64: 2>, scalar_prefetch = 0 : i64, scratch_operands = 0 : i64, tpu.core_type = #tpu.core_type<tc>, window_params = [{transform_indices = @transform_0, window_bounds = array<i64: 1, 3, 16, 16>}, {transform_indices = @transform_1, window_bounds = array<i64: 1, 1, 16, 16>}, {transform_indices = @transform_2, window_bounds = array<i64: 1, 3, 16, 16>}]} {
    %c0 = arith.constant 0 : index
    %c0_0 = arith.constant 0 : index
    %c0_1 = arith.constant 0 : index
    %c0_2 = arith.constant 0 : index
    %0 = vector.load %arg2[%c0, %c0_0, %c0_1, %c0_2] : memref<1x1x16x16xf32, #tpu.memory_space<vmem>>, vector<1x1x16x16xf32>
    %c0_3 = arith.constant 0 : index
    %c0_4 = arith.constant 0 : index
    %c0_5 = arith.constant 0 : index
    %c0_6 = arith.constant 0 : index
    %1 = vector.load %arg1[%c0_3, %c0_4, %c0_5, %c0_6] : memref<1x3x16x16xf32, #tpu.memory_space<vmem>>, vector<1x3x16x16xf32>
    %2 = vector.broadcast %0 : vector<1x1x16x16xf32> to vector<1x3x16x16xf32>
    %3 = arith.mulf %1, %2 : vector<1x3x16x16xf32>
    %cst = arith.constant 1.000000e+00 : f32
    %4 = vector.broadcast %cst : f32 to vector<1x1x16x16xf32>
    %5 = arith.subf %4, %0 : vector<1x1x16x16xf32>
    %6 = vector.broadcast %5 : vector<1x1x16x16xf32> to vector<1x3x16x16xf32>
    %7 = arith.subf %3, %6 : vector<1x3x16x16xf32>
    %c0_7 = arith.constant 0 : index
    %c0_8 = arith.constant 0 : index
    %c0_9 = arith.constant 0 : index
    %c0_10 = arith.constant 0 : index
    %8 = vector.load %arg3[%c0_7, %c0_8, %c0_9, %c0_10] : memref<1x3x16x16xf32, #tpu.memory_space<vmem>>, vector<1x3x16x16xf32>
    tpu.vector_store %arg3[%c0_7, %c0_8, %c0_9, %c0_10], %7 {strides = array<i32>} : memref<1x3x16x16xf32, #tpu.memory_space<vmem>>, vector<1x3x16x16xf32>,
    return
  }
  func.func @transform_0(%arg0: i32) -> (i32, i32, i32, i32) {
    %c0_i32 = arith.constant 0 : i32
    %c0_i32_0 = arith.constant 0 : i32
    %c0_i32_1 = arith.constant 0 : i32
    %c0_i32_2 = arith.constant 0 : i32
    return %arg0, %c0_i32, %c0_i32_0, %c0_i32_1 : i32, i32, i32, i32
  }
  func.func @transform_1(%arg0: i32) -> (i32, i32, i32, i32) {
    %c0_i32 = arith.constant 0 : i32
    %c0_i32_0 = arith.constant 0 : i32
    %c0_i32_1 = arith.constant 0 : i32
    %c0_i32_2 = arith.constant 0 : i32
    return %arg0, %c0_i32, %c0_i32_0, %c0_i32_1 : i32, i32, i32, i32
  }
  func.func @transform_2(%arg0: i32) -> (i32, i32, i32, i32) {
    %c0_i32 = arith.constant 0 : i32
    %c0_i32_0 = arith.constant 0 : i32
    %c0_i32_1 = arith.constant 0 : i32
    %c0_i32_2 = arith.constant 0 : i32
    return %arg0, %c0_i32, %c0_i32_0, %c0_i32_1 : i32, i32, i32, i32
  }
}

module attributes {stable_mosaic.version = 11 : i64} {
  func.func @_patched_kernel(%arg0: i32, %arg1: i32, %arg2: memref<1x3x16x16xf32, #tpu.memory_space<vmem>>, %arg3: memref<1x3x16x16xf32, #tpu.memory_space<vmem>>, %arg4: memref<1x16x16xf32, #tpu.memory_space<vmem>>, %arg5: memref<1x3x16x16xbf16, #tpu.memory_space<vmem>>) attributes {dimension_semantics = [#tpu.dimension_semantics<parallel>, #tpu.dimension_semantics<parallel>], iteration_bounds = array<i64: 12, 2>, scalar_prefetch = 0 : i64, scratch_operands = 0 : i64, tpu.core_type = #tpu.core_type<tc>, window_params = [{transform_indices = @transform_0, window_bounds = array<i64: 1, 3, 16, 16>}, {transform_indices = @transform_1, window_bounds = array<i64: 1, 3, 16, 16>}, {transform_indices = @transform_2, window_bounds = array<i64: 1, 16, 16>}, {transform_indices = @transform_3, window_bounds = array<i64: 1, 3, 16, 16>}]} {
    %c0 = arith.constant 0 : index
    %c0_0 = arith.constant 0 : index
    %c0_1 = arith.constant 0 : index
    %c0_2 = arith.constant 0 : index
    %0 = vector.load %arg3[%c0, %c0_0, %c0_1, %c0_2] : memref<1x3x16x16xf32, #tpu.memory_space<vmem>>, vector<1x3x16x16xf32>
    %c0_3 = arith.constant 0 : index
    %c0_4 = arith.constant 0 : index
    %c0_5 = arith.constant 0 : index
    %1 = vector.load %arg4[%c0_3, %c0_4, %c0_5] : memref<1x16x16xf32, #tpu.memory_space<vmem>>, vector<1x16x16xf32>
    %2 = vector.shape_cast %1 : vector<1x16x16xf32> to vector<1x1x16x16xf32>
    %3 = vector.broadcast %2 : vector<1x1x16x16xf32> to vector<1x3x16x16xf32>
    %4 = arith.mulf %0, %3 : vector<1x3x16x16xf32>
    %c0_6 = arith.constant 0 : index
    %c0_7 = arith.constant 0 : index
    %c0_8 = arith.constant 0 : index
    %c0_9 = arith.constant 0 : index
    %5 = vector.load %arg2[%c0_6, %c0_7, %c0_8, %c0_9] : memref<1x3x16x16xf32, #tpu.memory_space<vmem>>, vector<1x3x16x16xf32>
    %cst = arith.constant 1.000000e+00 : f32
    %6 = vector.broadcast %cst : f32 to vector<1x16x16xf32>
    %7 = arith.subf %6, %1 : vector<1x16x16xf32>
    %8 = vector.shape_cast %7 : vector<1x16x16xf32> to vector<1x1x16x16xf32>
    %9 = vector.broadcast %8 : vector<1x1x16x16xf32> to vector<1x3x16x16xf32>
    %10 = arith.mulf %5, %9 : vector<1x3x16x16xf32>
    %11 = arith.addf %4, %10 : vector<1x3x16x16xf32>
    %12 = arith.truncf %11 : vector<1x3x16x16xf32> to vector<1x3x16x16xbf16>
    %c0_10 = arith.constant 0 : index
    %c0_11 = arith.constant 0 : index
    %c0_12 = arith.constant 0 : index
    %c0_13 = arith.constant 0 : index
    %13 = vector.load %arg5[%c0_10, %c0_11, %c0_12, %c0_13] : memref<1x3x16x16xbf16, #tpu.memory_space<vmem>>, vector<1x3x16x16xbf16>
    tpu.vector_store %arg5[%c0_10, %c0_11, %c0_12, %c0_13], %12 {strides = array<i32>} : memref<1x3x16x16xbf16, #tpu.memory_space<vmem>>, vector<1x3x16x16xbf16>,
    return
  }
  func.func @transform_0(%arg0: i32, %arg1: i32) -> (i32, i32, i32, i32) {
    %c0_i32 = arith.constant 0 : i32
    %c0_i32_0 = arith.constant 0 : i32
    %c0_i32_1 = arith.constant 0 : i32
    %c0_i32_2 = arith.constant 0 : i32
    return %arg0, %c0_i32, %c0_i32_0, %c0_i32_1 : i32, i32, i32, i32
  }
  func.func @transform_1(%arg0: i32, %arg1: i32) -> (i32, i32, i32, i32) {
    %c0_i32 = arith.constant 0 : i32
    %c0_i32_0 = arith.constant 0 : i32
    %c0_i32_1 = arith.constant 0 : i32
    %c0_i32_2 = arith.constant 0 : i32
    return %arg1, %c0_i32, %c0_i32_0, %c0_i32_1 : i32, i32, i32, i32
  }
  func.func @transform_2(%arg0: i32, %arg1: i32) -> (i32, i32, i32) {
    %c0_i32 = arith.constant 0 : i32
    %c0_i32_0 = arith.constant 0 : i32
    %c0_i32_1 = arith.constant 0 : i32
    return %arg0, %c0_i32, %c0_i32_0 : i32, i32, i32
  }
  func.func @transform_3(%arg0: i32, %arg1: i32) -> (i32, i32, i32, i32) {
    %c2_i32 = arith.constant 2 : i32
    %0 = arith.muli %arg0, %c2_i32 : i32
    %1 = arith.addi %0, %arg1 : i32
    %c0_i32 = arith.constant 0 : i32
    %c0_i32_0 = arith.constant 0 : i32
    %c0_i32_1 = arith.constant 0 : i32
    %c0_i32_2 = arith.constant 0 : i32
    return %1, %c0_i32, %c0_i32_0, %c0_i32_1 : i32, i32, i32, i32
  }
}

module attributes {stable_mosaic.version = 11 : i64} {
  func.func @kernel(%arg0: i32, %arg1: memref<1x3x326xbf16, #tpu.memory_space<vmem>>, %arg2: memref<9x8x3xbf16, #tpu.memory_space<vmem>>, %arg3: memref<8x1xf32, #tpu.memory_space<vmem>>, %arg4: memref<1x8x288xbf16, #tpu.memory_space<vmem>>) attributes {dimension_semantics = [#tpu.dimension_semantics<parallel>], iteration_bounds = array<i64: 24>, scalar_prefetch = 0 : i64, scratch_operands = 0 : i64, tpu.core_type = #tpu.core_type<tc>, window_params = [{transform_indices = @transform_0, window_bounds = array<i64: 1, 3, 326>}, {pipeline_mode = #tpu.pipeline_mode<synchronous>, transform_indices = @transform_1, window_bounds = array<i64: 9, 8, 3>}, {pipeline_mode = #tpu.pipeline_mode<synchronous>, transform_indices = @transform_2, window_bounds = array<i64: 8, 1>}, {transform_indices = @transform_3, window_bounds = array<i64: 1, 8, 288>}]} {
    %c0 = arith.constant 0 : index
    %c0_0 = arith.constant 0 : index
    %c0_1 = arith.constant 0 : index
    %0 = vector.load %arg1[%c0, %c0_0, %c0_1] : memref<1x3x326xbf16, #tpu.memory_space<vmem>>, vector<1x3x288xbf16>
    %1 = vector.shape_cast %0 : vector<1x3x288xbf16> to vector<3x288xbf16>
    %c0_2 = arith.constant 0 : index
    %c0_3 = arith.constant 0 : index
    %c0_4 = arith.constant 0 : index
    %2 = vector.load %arg2[%c0_2, %c0_3, %c0_4] : memref<9x8x3xbf16, #tpu.memory_space<vmem>>, vector<1x8x3xbf16>
    %3 = vector.shape_cast %2 : vector<1x8x3xbf16> to vector<8x3xbf16>
    %cst = arith.constant dense<0.000000e+00> : vector<8x288xf32>
    %4 = tpu.matmul %3, %1, %cst {dimension_numbers = #tpu.dot_dimension_numbers<[1], [0], [0], [1], [0, 0, 1, 1], [], []>} : vector<8x3xbf16>, vector<3x288xbf16>, vector<8x288xf32> -> vector<8x288xf32>
    %c0_5 = arith.constant 0 : index
    %c0_6 = arith.constant 0 : index
    %c1 = arith.constant 1 : index
    %5 = vector.load %arg1[%c0_5, %c0_6, %c1] : memref<1x3x326xbf16, #tpu.memory_space<vmem>>, vector<1x3x288xbf16>
    %6 = vector.shape_cast %5 : vector<1x3x288xbf16> to vector<3x288xbf16>
    %c1_7 = arith.constant 1 : index
    %c0_8 = arith.constant 0 : index
    %c0_9 = arith.constant 0 : index
    %7 = vector.load %arg2[%c1_7, %c0_8, %c0_9] : memref<9x8x3xbf16, #tpu.memory_space<vmem>>, vector<1x8x3xbf16>
    %8 = vector.shape_cast %7 : vector<1x8x3xbf16> to vector<8x3xbf16>
    %cst_10 = arith.constant dense<0.000000e+00> : vector<8x288xf32>
    %9 = tpu.matmul %8, %6, %cst_10 {dimension_numbers = #tpu.dot_dimension_numbers<[1], [0], [0], [1], [0, 0, 1, 1], [], []>} : vector<8x3xbf16>, vector<3x288xbf16>, vector<8x288xf32> -> vector<8x288xf32>
    %10 = arith.addf %4, %9 : vector<8x288xf32>
    %c0_11 = arith.constant 0 : index
    %c0_12 = arith.constant 0 : index
    %c2 = arith.constant 2 : index
    %11 = vector.load %arg1[%c0_11, %c0_12, %c2] : memref<1x3x326xbf16, #tpu.memory_space<vmem>>, vector<1x3x288xbf16>
    %12 = vector.shape_cast %11 : vector<1x3x288xbf16> to vector<3x288xbf16>
    %c2_13 = arith.constant 2 : index
    %c0_14 = arith.constant 0 : index
    %c0_15 = arith.constant 0 : index
    %13 = vector.load %arg2[%c2_13, %c0_14, %c0_15] : memref<9x8x3xbf16, #tpu.memory_space<vmem>>, vector<1x8x3xbf16>
    %14 = vector.shape_cast %13 : vector<1x8x3xbf16> to vector<8x3xbf16>
    %cst_16 = arith.constant dense<0.000000e+00> : vector<8x288xf32>
    %15 = tpu.matmul %14, %12, %cst_16 {dimension_numbers = #tpu.dot_dimension_numbers<[1], [0], [0], [1], [0, 0, 1, 1], [], []>} : vector<8x3xbf16>, vector<3x288xbf16>, vector<8x288xf32> -> vector<8x288xf32>
    %16 = arith.addf %10, %15 : vector<8x288xf32>
    %c0_17 = arith.constant 0 : index
    %c0_18 = arith.constant 0 : index
    %c18 = arith.constant 18 : index
    %17 = vector.load %arg1[%c0_17, %c0_18, %c18] : memref<1x3x326xbf16, #tpu.memory_space<vmem>>, vector<1x3x288xbf16>
    %18 = vector.shape_cast %17 : vector<1x3x288xbf16> to vector<3x288xbf16>
    %c3 = arith.constant 3 : index
    %c0_19 = arith.constant 0 : index
    %c0_20 = arith.constant 0 : index
    %19 = vector.load %arg2[%c3, %c0_19, %c0_20] : memref<9x8x3xbf16, #tpu.memory_space<vmem>>, vector<1x8x3xbf16>
    %20 = vector.shape_cast %19 : vector<1x8x3xbf16> to vector<8x3xbf16>
    %cst_21 = arith.constant dense<0.000000e+00> : vector<8x288xf32>
    %21 = tpu.matmul %20, %18, %cst_21 {dimension_numbers = #tpu.dot_dimension_numbers<[1], [0], [0], [1], [0, 0, 1, 1], [], []>} : vector<8x3xbf16>, vector<3x288xbf16>, vector<8x288xf32> -> vector<8x288xf32>
    %22 = arith.addf %16, %21 : vector<8x288xf32>
    %c0_22 = arith.constant 0 : index
    %c0_23 = arith.constant 0 : index
    %c19 = arith.constant 19 : index
    %23 = vector.load %arg1[%c0_22, %c0_23, %c19] : memref<1x3x326xbf16, #tpu.memory_space<vmem>>, vector<1x3x288xbf16>
    %24 = vector.shape_cast %23 : vector<1x3x288xbf16> to vector<3x288xbf16>
    %c4 = arith.constant 4 : index
    %c0_24 = arith.constant 0 : index
    %c0_25 = arith.constant 0 : index
    %25 = vector.load %arg2[%c4, %c0_24, %c0_25] : memref<9x8x3xbf16, #tpu.memory_space<vmem>>, vector<1x8x3xbf16>
    %26 = vector.shape_cast %25 : vector<1x8x3xbf16> to vector<8x3xbf16>
    %cst_26 = arith.constant dense<0.000000e+00> : vector<8x288xf32>
    %27 = tpu.matmul %26, %24, %cst_26 {dimension_numbers = #tpu.dot_dimension_numbers<[1], [0], [0], [1], [0, 0, 1, 1], [], []>} : vector<8x3xbf16>, vector<3x288xbf16>, vector<8x288xf32> -> vector<8x288xf32>
    %28 = arith.addf %22, %27 : vector<8x288xf32>
    %c0_27 = arith.constant 0 : index
    %c0_28 = arith.constant 0 : index
    %c20 = arith.constant 20 : index
    %29 = vector.load %arg1[%c0_27, %c0_28, %c20] : memref<1x3x326xbf16, #tpu.memory_space<vmem>>, vector<1x3x288xbf16>
    %30 = vector.shape_cast %29 : vector<1x3x288xbf16> to vector<3x288xbf16>
    %c5 = arith.constant 5 : index
    %c0_29 = arith.constant 0 : index
    %c0_30 = arith.constant 0 : index
    %31 = vector.load %arg2[%c5, %c0_29, %c0_30] : memref<9x8x3xbf16, #tpu.memory_space<vmem>>, vector<1x8x3xbf16>
    %32 = vector.shape_cast %31 : vector<1x8x3xbf16> to vector<8x3xbf16>
    %cst_31 = arith.constant dense<0.000000e+00> : vector<8x288xf32>
    %33 = tpu.matmul %32, %30, %cst_31 {dimension_numbers = #tpu.dot_dimension_numbers<[1], [0], [0], [1], [0, 0, 1, 1], [], []>} : vector<8x3xbf16>, vector<3x288xbf16>, vector<8x288xf32> -> vector<8x288xf32>
    %34 = arith.addf %28, %33 : vector<8x288xf32>
    %c0_32 = arith.constant 0 : index
    %c0_33 = arith.constant 0 : index
    %c36 = arith.constant 36 : index
    %35 = vector.load %arg1[%c0_32, %c0_33, %c36] : memref<1x3x326xbf16, #tpu.memory_space<vmem>>, vector<1x3x288xbf16>
    %36 = vector.shape_cast %35 : vector<1x3x288xbf16> to vector<3x288xbf16>
    %c6 = arith.constant 6 : index
    %c0_34 = arith.constant 0 : index
    %c0_35 = arith.constant 0 : index
    %37 = vector.load %arg2[%c6, %c0_34, %c0_35] : memref<9x8x3xbf16, #tpu.memory_space<vmem>>, vector<1x8x3xbf16>
    %38 = vector.shape_cast %37 : vector<1x8x3xbf16> to vector<8x3xbf16>
    %cst_36 = arith.constant dense<0.000000e+00> : vector<8x288xf32>
    %39 = tpu.matmul %38, %36, %cst_36 {dimension_numbers = #tpu.dot_dimension_numbers<[1], [0], [0], [1], [0, 0, 1, 1], [], []>} : vector<8x3xbf16>, vector<3x288xbf16>, vector<8x288xf32> -> vector<8x288xf32>
    %40 = arith.addf %34, %39 : vector<8x288xf32>
    %c0_37 = arith.constant 0 : index
    %c0_38 = arith.constant 0 : index
    %c37 = arith.constant 37 : index
    %41 = vector.load %arg1[%c0_37, %c0_38, %c37] : memref<1x3x326xbf16, #tpu.memory_space<vmem>>, vector<1x3x288xbf16>
    %42 = vector.shape_cast %41 : vector<1x3x288xbf16> to vector<3x288xbf16>
    %c7 = arith.constant 7 : index
    %c0_39 = arith.constant 0 : index
    %c0_40 = arith.constant 0 : index
    %43 = vector.load %arg2[%c7, %c0_39, %c0_40] : memref<9x8x3xbf16, #tpu.memory_space<vmem>>, vector<1x8x3xbf16>
    %44 = vector.shape_cast %43 : vector<1x8x3xbf16> to vector<8x3xbf16>
    %cst_41 = arith.constant dense<0.000000e+00> : vector<8x288xf32>
    %45 = tpu.matmul %44, %42, %cst_41 {dimension_numbers = #tpu.dot_dimension_numbers<[1], [0], [0], [1], [0, 0, 1, 1], [], []>} : vector<8x3xbf16>, vector<3x288xbf16>, vector<8x288xf32> -> vector<8x288xf32>
    %46 = arith.addf %40, %45 : vector<8x288xf32>
    %c0_42 = arith.constant 0 : index
    %c0_43 = arith.constant 0 : index
    %c38 = arith.constant 38 : index
    %47 = vector.load %arg1[%c0_42, %c0_43, %c38] : memref<1x3x326xbf16, #tpu.memory_space<vmem>>, vector<1x3x288xbf16>
    %48 = vector.shape_cast %47 : vector<1x3x288xbf16> to vector<3x288xbf16>
    %c8 = arith.constant 8 : index
    %c0_44 = arith.constant 0 : index
    %c0_45 = arith.constant 0 : index
    %49 = vector.load %arg2[%c8, %c0_44, %c0_45] : memref<9x8x3xbf16, #tpu.memory_space<vmem>>, vector<1x8x3xbf16>
    %50 = vector.shape_cast %49 : vector<1x8x3xbf16> to vector<8x3xbf16>
    %cst_46 = arith.constant dense<0.000000e+00> : vector<8x288xf32>
    %51 = tpu.matmul %50, %48, %cst_46 {dimension_numbers = #tpu.dot_dimension_numbers<[1], [0], [0], [1], [0, 0, 1, 1], [], []>} : vector<8x3xbf16>, vector<3x288xbf16>, vector<8x288xf32> -> vector<8x288xf32>
    %52 = arith.addf %46, %51 : vector<8x288xf32>
    %c0_47 = arith.constant 0 : index
    %c0_48 = arith.constant 0 : index
    %53 = vector.load %arg3[%c0_47, %c0_48] : memref<8x1xf32, #tpu.memory_space<vmem>>, vector<8x1xf32>
    %54 = vector.broadcast %53 : vector<8x1xf32> to vector<8x288xf32>
    %55 = arith.addf %52, %54 : vector<8x288xf32>
    %cst_49 = arith.constant 0.000000e+00 : f32
    %56 = vector.broadcast %cst_49 : f32 to vector<8x288xf32>
    %57 = arith.maximumf %55, %56 : vector<8x288xf32>
    %58 = arith.truncf %57 : vector<8x288xf32> to vector<8x288xbf16>
    %c0_50 = arith.constant 0 : index
    %c0_51 = arith.constant 0 : index
    %c0_52 = arith.constant 0 : index
    %59 = vector.load %arg4[%c0_50, %c0_51, %c0_52] : memref<1x8x288xbf16, #tpu.memory_space<vmem>>, vector<1x8x288xbf16>
    %60 = vector.shape_cast %59 : vector<1x8x288xbf16> to vector<8x288xbf16>
    %61 = vector.shape_cast %58 : vector<8x288xbf16> to vector<1x8x288xbf16>
    tpu.vector_store %arg4[%c0_50, %c0_51, %c0_52], %61 {strides = array<i32>} : memref<1x8x288xbf16, #tpu.memory_space<vmem>>, vector<1x8x288xbf16>,
    return
  }
  func.func @transform_0(%arg0: i32) -> (i32, i32, i32) {
    %c0_i32 = arith.constant 0 : i32
    %c0_i32_0 = arith.constant 0 : i32
    %c0_i32_1 = arith.constant 0 : i32
    return %arg0, %c0_i32, %c0_i32_0 : i32, i32, i32
  }
  func.func @transform_1(%arg0: i32) -> (i32, i32, i32) {
    %c0_i32 = arith.constant 0 : i32
    %c0_i32_0 = arith.constant 0 : i32
    %c0_i32_1 = arith.constant 0 : i32
    %c0_i32_2 = arith.constant 0 : i32
    return %c0_i32, %c0_i32_0, %c0_i32_1 : i32, i32, i32
  }
  func.func @transform_2(%arg0: i32) -> (i32, i32) {
    %c0_i32 = arith.constant 0 : i32
    %c0_i32_0 = arith.constant 0 : i32
    %c0_i32_1 = arith.constant 0 : i32
    return %c0_i32, %c0_i32_0 : i32, i32
  }
  func.func @transform_3(%arg0: i32) -> (i32, i32, i32) {
    %c0_i32 = arith.constant 0 : i32
    %c0_i32_0 = arith.constant 0 : i32
    %c0_i32_1 = arith.constant 0 : i32
    return %arg0, %c0_i32, %c0_i32_0 : i32, i32, i32
  }
}

module attributes {stable_mosaic.version = 11 : i64} {
  func.func @kernel(%arg0: i32, %arg1: memref<1x8x326xbf16, #tpu.memory_space<vmem>>, %arg2: memref<9x8x8xbf16, #tpu.memory_space<vmem>>, %arg3: memref<8x1xf32, #tpu.memory_space<vmem>>, %arg4: memref<1x8x288xbf16, #tpu.memory_space<vmem>>) attributes {dimension_semantics = [#tpu.dimension_semantics<parallel>], iteration_bounds = array<i64: 24>, scalar_prefetch = 0 : i64, scratch_operands = 0 : i64, tpu.core_type = #tpu.core_type<tc>, window_params = [{transform_indices = @transform_0, window_bounds = array<i64: 1, 8, 326>}, {pipeline_mode = #tpu.pipeline_mode<synchronous>, transform_indices = @transform_1, window_bounds = array<i64: 9, 8, 8>}, {pipeline_mode = #tpu.pipeline_mode<synchronous>, transform_indices = @transform_2, window_bounds = array<i64: 8, 1>}, {transform_indices = @transform_3, window_bounds = array<i64: 1, 8, 288>}]} {
    %c0 = arith.constant 0 : index
    %c0_0 = arith.constant 0 : index
    %c0_1 = arith.constant 0 : index
    %0 = vector.load %arg1[%c0, %c0_0, %c0_1] : memref<1x8x326xbf16, #tpu.memory_space<vmem>>, vector<1x8x288xbf16>
    %1 = vector.shape_cast %0 : vector<1x8x288xbf16> to vector<8x288xbf16>
    %c0_2 = arith.constant 0 : index
    %c0_3 = arith.constant 0 : index
    %c0_4 = arith.constant 0 : index
    %2 = vector.load %arg2[%c0_2, %c0_3, %c0_4] : memref<9x8x8xbf16, #tpu.memory_space<vmem>>, vector<1x8x8xbf16>
    %3 = vector.shape_cast %2 : vector<1x8x8xbf16> to vector<8x8xbf16>
    %cst = arith.constant dense<0.000000e+00> : vector<8x288xf32>
    %4 = tpu.matmul %3, %1, %cst {dimension_numbers = #tpu.dot_dimension_numbers<[1], [0], [0], [1], [0, 0, 1, 1], [], []>} : vector<8x8xbf16>, vector<8x288xbf16>, vector<8x288xf32> -> vector<8x288xf32>
    %c0_5 = arith.constant 0 : index
    %c0_6 = arith.constant 0 : index
    %c1 = arith.constant 1 : index
    %5 = vector.load %arg1[%c0_5, %c0_6, %c1] : memref<1x8x326xbf16, #tpu.memory_space<vmem>>, vector<1x8x288xbf16>
    %6 = vector.shape_cast %5 : vector<1x8x288xbf16> to vector<8x288xbf16>
    %c1_7 = arith.constant 1 : index
    %c0_8 = arith.constant 0 : index
    %c0_9 = arith.constant 0 : index
    %7 = vector.load %arg2[%c1_7, %c0_8, %c0_9] : memref<9x8x8xbf16, #tpu.memory_space<vmem>>, vector<1x8x8xbf16>
    %8 = vector.shape_cast %7 : vector<1x8x8xbf16> to vector<8x8xbf16>
    %cst_10 = arith.constant dense<0.000000e+00> : vector<8x288xf32>
    %9 = tpu.matmul %8, %6, %cst_10 {dimension_numbers = #tpu.dot_dimension_numbers<[1], [0], [0], [1], [0, 0, 1, 1], [], []>} : vector<8x8xbf16>, vector<8x288xbf16>, vector<8x288xf32> -> vector<8x288xf32>
    %10 = arith.addf %4, %9 : vector<8x288xf32>
    %c0_11 = arith.constant 0 : index
    %c0_12 = arith.constant 0 : index
    %c2 = arith.constant 2 : index
    %11 = vector.load %arg1[%c0_11, %c0_12, %c2] : memref<1x8x326xbf16, #tpu.memory_space<vmem>>, vector<1x8x288xbf16>
    %12 = vector.shape_cast %11 : vector<1x8x288xbf16> to vector<8x288xbf16>
    %c2_13 = arith.constant 2 : index
    %c0_14 = arith.constant 0 : index
    %c0_15 = arith.constant 0 : index
    %13 = vector.load %arg2[%c2_13, %c0_14, %c0_15] : memref<9x8x8xbf16, #tpu.memory_space<vmem>>, vector<1x8x8xbf16>
    %14 = vector.shape_cast %13 : vector<1x8x8xbf16> to vector<8x8xbf16>
    %cst_16 = arith.constant dense<0.000000e+00> : vector<8x288xf32>
    %15 = tpu.matmul %14, %12, %cst_16 {dimension_numbers = #tpu.dot_dimension_numbers<[1], [0], [0], [1], [0, 0, 1, 1], [], []>} : vector<8x8xbf16>, vector<8x288xbf16>, vector<8x288xf32> -> vector<8x288xf32>
    %16 = arith.addf %10, %15 : vector<8x288xf32>
    %c0_17 = arith.constant 0 : index
    %c0_18 = arith.constant 0 : index
    %c18 = arith.constant 18 : index
    %17 = vector.load %arg1[%c0_17, %c0_18, %c18] : memref<1x8x326xbf16, #tpu.memory_space<vmem>>, vector<1x8x288xbf16>
    %18 = vector.shape_cast %17 : vector<1x8x288xbf16> to vector<8x288xbf16>
    %c3 = arith.constant 3 : index
    %c0_19 = arith.constant 0 : index
    %c0_20 = arith.constant 0 : index
    %19 = vector.load %arg2[%c3, %c0_19, %c0_20] : memref<9x8x8xbf16, #tpu.memory_space<vmem>>, vector<1x8x8xbf16>
    %20 = vector.shape_cast %19 : vector<1x8x8xbf16> to vector<8x8xbf16>
    %cst_21 = arith.constant dense<0.000000e+00> : vector<8x288xf32>
    %21 = tpu.matmul %20, %18, %cst_21 {dimension_numbers = #tpu.dot_dimension_numbers<[1], [0], [0], [1], [0, 0, 1, 1], [], []>} : vector<8x8xbf16>, vector<8x288xbf16>, vector<8x288xf32> -> vector<8x288xf32>
    %22 = arith.addf %16, %21 : vector<8x288xf32>
    %c0_22 = arith.constant 0 : index
    %c0_23 = arith.constant 0 : index
    %c19 = arith.constant 19 : index
    %23 = vector.load %arg1[%c0_22, %c0_23, %c19] : memref<1x8x326xbf16, #tpu.memory_space<vmem>>, vector<1x8x288xbf16>
    %24 = vector.shape_cast %23 : vector<1x8x288xbf16> to vector<8x288xbf16>
    %c4 = arith.constant 4 : index
    %c0_24 = arith.constant 0 : index
    %c0_25 = arith.constant 0 : index
    %25 = vector.load %arg2[%c4, %c0_24, %c0_25] : memref<9x8x8xbf16, #tpu.memory_space<vmem>>, vector<1x8x8xbf16>
    %26 = vector.shape_cast %25 : vector<1x8x8xbf16> to vector<8x8xbf16>
    %cst_26 = arith.constant dense<0.000000e+00> : vector<8x288xf32>
    %27 = tpu.matmul %26, %24, %cst_26 {dimension_numbers = #tpu.dot_dimension_numbers<[1], [0], [0], [1], [0, 0, 1, 1], [], []>} : vector<8x8xbf16>, vector<8x288xbf16>, vector<8x288xf32> -> vector<8x288xf32>
    %28 = arith.addf %22, %27 : vector<8x288xf32>
    %c0_27 = arith.constant 0 : index
    %c0_28 = arith.constant 0 : index
    %c20 = arith.constant 20 : index
    %29 = vector.load %arg1[%c0_27, %c0_28, %c20] : memref<1x8x326xbf16, #tpu.memory_space<vmem>>, vector<1x8x288xbf16>
    %30 = vector.shape_cast %29 : vector<1x8x288xbf16> to vector<8x288xbf16>
    %c5 = arith.constant 5 : index
    %c0_29 = arith.constant 0 : index
    %c0_30 = arith.constant 0 : index
    %31 = vector.load %arg2[%c5, %c0_29, %c0_30] : memref<9x8x8xbf16, #tpu.memory_space<vmem>>, vector<1x8x8xbf16>
    %32 = vector.shape_cast %31 : vector<1x8x8xbf16> to vector<8x8xbf16>
    %cst_31 = arith.constant dense<0.000000e+00> : vector<8x288xf32>
    %33 = tpu.matmul %32, %30, %cst_31 {dimension_numbers = #tpu.dot_dimension_numbers<[1], [0], [0], [1], [0, 0, 1, 1], [], []>} : vector<8x8xbf16>, vector<8x288xbf16>, vector<8x288xf32> -> vector<8x288xf32>
    %34 = arith.addf %28, %33 : vector<8x288xf32>
    %c0_32 = arith.constant 0 : index
    %c0_33 = arith.constant 0 : index
    %c36 = arith.constant 36 : index
    %35 = vector.load %arg1[%c0_32, %c0_33, %c36] : memref<1x8x326xbf16, #tpu.memory_space<vmem>>, vector<1x8x288xbf16>
    %36 = vector.shape_cast %35 : vector<1x8x288xbf16> to vector<8x288xbf16>
    %c6 = arith.constant 6 : index
    %c0_34 = arith.constant 0 : index
    %c0_35 = arith.constant 0 : index
    %37 = vector.load %arg2[%c6, %c0_34, %c0_35] : memref<9x8x8xbf16, #tpu.memory_space<vmem>>, vector<1x8x8xbf16>
    %38 = vector.shape_cast %37 : vector<1x8x8xbf16> to vector<8x8xbf16>
    %cst_36 = arith.constant dense<0.000000e+00> : vector<8x288xf32>
    %39 = tpu.matmul %38, %36, %cst_36 {dimension_numbers = #tpu.dot_dimension_numbers<[1], [0], [0], [1], [0, 0, 1, 1], [], []>} : vector<8x8xbf16>, vector<8x288xbf16>, vector<8x288xf32> -> vector<8x288xf32>
    %40 = arith.addf %34, %39 : vector<8x288xf32>
    %c0_37 = arith.constant 0 : index
    %c0_38 = arith.constant 0 : index
    %c37 = arith.constant 37 : index
    %41 = vector.load %arg1[%c0_37, %c0_38, %c37] : memref<1x8x326xbf16, #tpu.memory_space<vmem>>, vector<1x8x288xbf16>
    %42 = vector.shape_cast %41 : vector<1x8x288xbf16> to vector<8x288xbf16>
    %c7 = arith.constant 7 : index
    %c0_39 = arith.constant 0 : index
    %c0_40 = arith.constant 0 : index
    %43 = vector.load %arg2[%c7, %c0_39, %c0_40] : memref<9x8x8xbf16, #tpu.memory_space<vmem>>, vector<1x8x8xbf16>
    %44 = vector.shape_cast %43 : vector<1x8x8xbf16> to vector<8x8xbf16>
    %cst_41 = arith.constant dense<0.000000e+00> : vector<8x288xf32>
    %45 = tpu.matmul %44, %42, %cst_41 {dimension_numbers = #tpu.dot_dimension_numbers<[1], [0], [0], [1], [0, 0, 1, 1], [], []>} : vector<8x8xbf16>, vector<8x288xbf16>, vector<8x288xf32> -> vector<8x288xf32>
    %46 = arith.addf %40, %45 : vector<8x288xf32>
    %c0_42 = arith.constant 0 : index
    %c0_43 = arith.constant 0 : index
    %c38 = arith.constant 38 : index
    %47 = vector.load %arg1[%c0_42, %c0_43, %c38] : memref<1x8x326xbf16, #tpu.memory_space<vmem>>, vector<1x8x288xbf16>
    %48 = vector.shape_cast %47 : vector<1x8x288xbf16> to vector<8x288xbf16>
    %c8 = arith.constant 8 : index
    %c0_44 = arith.constant 0 : index
    %c0_45 = arith.constant 0 : index
    %49 = vector.load %arg2[%c8, %c0_44, %c0_45] : memref<9x8x8xbf16, #tpu.memory_space<vmem>>, vector<1x8x8xbf16>
    %50 = vector.shape_cast %49 : vector<1x8x8xbf16> to vector<8x8xbf16>
    %cst_46 = arith.constant dense<0.000000e+00> : vector<8x288xf32>
    %51 = tpu.matmul %50, %48, %cst_46 {dimension_numbers = #tpu.dot_dimension_numbers<[1], [0], [0], [1], [0, 0, 1, 1], [], []>} : vector<8x8xbf16>, vector<8x288xbf16>, vector<8x288xf32> -> vector<8x288xf32>
    %52 = arith.addf %46, %51 : vector<8x288xf32>
    %c0_47 = arith.constant 0 : index
    %c0_48 = arith.constant 0 : index
    %53 = vector.load %arg3[%c0_47, %c0_48] : memref<8x1xf32, #tpu.memory_space<vmem>>, vector<8x1xf32>
    %54 = vector.broadcast %53 : vector<8x1xf32> to vector<8x288xf32>
    %55 = arith.addf %52, %54 : vector<8x288xf32>
    %cst_49 = arith.constant 0.000000e+00 : f32
    %56 = vector.broadcast %cst_49 : f32 to vector<8x288xf32>
    %57 = arith.maximumf %55, %56 : vector<8x288xf32>
    %58 = arith.truncf %57 : vector<8x288xf32> to vector<8x288xbf16>
    %c0_50 = arith.constant 0 : index
    %c0_51 = arith.constant 0 : index
    %c0_52 = arith.constant 0 : index
    %59 = vector.load %arg4[%c0_50, %c0_51, %c0_52] : memref<1x8x288xbf16, #tpu.memory_space<vmem>>, vector<1x8x288xbf16>
    %60 = vector.shape_cast %59 : vector<1x8x288xbf16> to vector<8x288xbf16>
    %61 = vector.shape_cast %58 : vector<8x288xbf16> to vector<1x8x288xbf16>
    tpu.vector_store %arg4[%c0_50, %c0_51, %c0_52], %61 {strides = array<i32>} : memref<1x8x288xbf16, #tpu.memory_space<vmem>>, vector<1x8x288xbf16>,
    return
  }
  func.func @transform_0(%arg0: i32) -> (i32, i32, i32) {
    %c0_i32 = arith.constant 0 : i32
    %c0_i32_0 = arith.constant 0 : i32
    %c0_i32_1 = arith.constant 0 : i32
    return %arg0, %c0_i32, %c0_i32_0 : i32, i32, i32
  }
  func.func @transform_1(%arg0: i32) -> (i32, i32, i32) {
    %c0_i32 = arith.constant 0 : i32
    %c0_i32_0 = arith.constant 0 : i32
    %c0_i32_1 = arith.constant 0 : i32
    %c0_i32_2 = arith.constant 0 : i32
    return %c0_i32, %c0_i32_0, %c0_i32_1 : i32, i32, i32
  }
  func.func @transform_2(%arg0: i32) -> (i32, i32) {
    %c0_i32 = arith.constant 0 : i32
    %c0_i32_0 = arith.constant 0 : i32
    %c0_i32_1 = arith.constant 0 : i32
    return %c0_i32, %c0_i32_0 : i32, i32
  }
  func.func @transform_3(%arg0: i32) -> (i32, i32, i32) {
    %c0_i32 = arith.constant 0 : i32
    %c0_i32_0 = arith.constant 0 : i32
    %c0_i32_1 = arith.constant 0 : i32
    return %arg0, %c0_i32, %c0_i32_0 : i32, i32, i32
  }
}

module attributes {stable_mosaic.version = 11 : i64} {
  func.func @kernel(%arg0: i32, %arg1: memref<1x8x102xbf16, #tpu.memory_space<vmem>>, %arg2: memref<9x16x8xbf16, #tpu.memory_space<vmem>>, %arg3: memref<16x1xf32, #tpu.memory_space<vmem>>, %arg4: memref<1x16x80xbf16, #tpu.memory_space<vmem>>) attributes {dimension_semantics = [#tpu.dimension_semantics<parallel>], iteration_bounds = array<i64: 24>, scalar_prefetch = 0 : i64, scratch_operands = 0 : i64, tpu.core_type = #tpu.core_type<tc>, window_params = [{transform_indices = @transform_0, window_bounds = array<i64: 1, 8, 102>}, {pipeline_mode = #tpu.pipeline_mode<synchronous>, transform_indices = @transform_1, window_bounds = array<i64: 9, 16, 8>}, {pipeline_mode = #tpu.pipeline_mode<synchronous>, transform_indices = @transform_2, window_bounds = array<i64: 16, 1>}, {transform_indices = @transform_3, window_bounds = array<i64: 1, 16, 80>}]} {
    %c0 = arith.constant 0 : index
    %c0_0 = arith.constant 0 : index
    %c0_1 = arith.constant 0 : index
    %0 = vector.load %arg1[%c0, %c0_0, %c0_1] : memref<1x8x102xbf16, #tpu.memory_space<vmem>>, vector<1x8x80xbf16>
    %1 = vector.shape_cast %0 : vector<1x8x80xbf16> to vector<8x80xbf16>
    %c0_2 = arith.constant 0 : index
    %c0_3 = arith.constant 0 : index
    %c0_4 = arith.constant 0 : index
    %2 = vector.load %arg2[%c0_2, %c0_3, %c0_4] : memref<9x16x8xbf16, #tpu.memory_space<vmem>>, vector<1x16x8xbf16>
    %3 = vector.shape_cast %2 : vector<1x16x8xbf16> to vector<16x8xbf16>
    %cst = arith.constant dense<0.000000e+00> : vector<16x80xf32>
    %4 = tpu.matmul %3, %1, %cst {dimension_numbers = #tpu.dot_dimension_numbers<[1], [0], [0], [1], [0, 0, 1, 1], [], []>} : vector<16x8xbf16>, vector<8x80xbf16>, vector<16x80xf32> -> vector<16x80xf32>
    %c0_5 = arith.constant 0 : index
    %c0_6 = arith.constant 0 : index
    %c1 = arith.constant 1 : index
    %5 = vector.load %arg1[%c0_5, %c0_6, %c1] : memref<1x8x102xbf16, #tpu.memory_space<vmem>>, vector<1x8x80xbf16>
    %6 = vector.shape_cast %5 : vector<1x8x80xbf16> to vector<8x80xbf16>
    %c1_7 = arith.constant 1 : index
    %c0_8 = arith.constant 0 : index
    %c0_9 = arith.constant 0 : index
    %7 = vector.load %arg2[%c1_7, %c0_8, %c0_9] : memref<9x16x8xbf16, #tpu.memory_space<vmem>>, vector<1x16x8xbf16>
    %8 = vector.shape_cast %7 : vector<1x16x8xbf16> to vector<16x8xbf16>
    %cst_10 = arith.constant dense<0.000000e+00> : vector<16x80xf32>
    %9 = tpu.matmul %8, %6, %cst_10 {dimension_numbers = #tpu.dot_dimension_numbers<[1], [0], [0], [1], [0, 0, 1, 1], [], []>} : vector<16x8xbf16>, vector<8x80xbf16>, vector<16x80xf32> -> vector<16x80xf32>
    %10 = arith.addf %4, %9 : vector<16x80xf32>
    %c0_11 = arith.constant 0 : index
    %c0_12 = arith.constant 0 : index
    %c2 = arith.constant 2 : index
    %11 = vector.load %arg1[%c0_11, %c0_12, %c2] : memref<1x8x102xbf16, #tpu.memory_space<vmem>>, vector<1x8x80xbf16>
    %12 = vector.shape_cast %11 : vector<1x8x80xbf16> to vector<8x80xbf16>
    %c2_13 = arith.constant 2 : index
    %c0_14 = arith.constant 0 : index
    %c0_15 = arith.constant 0 : index
    %13 = vector.load %arg2[%c2_13, %c0_14, %c0_15] : memref<9x16x8xbf16, #tpu.memory_space<vmem>>, vector<1x16x8xbf16>
    %14 = vector.shape_cast %13 : vector<1x16x8xbf16> to vector<16x8xbf16>
    %cst_16 = arith.constant dense<0.000000e+00> : vector<16x80xf32>
    %15 = tpu.matmul %14, %12, %cst_16 {dimension_numbers = #tpu.dot_dimension_numbers<[1], [0], [0], [1], [0, 0, 1, 1], [], []>} : vector<16x8xbf16>, vector<8x80xbf16>, vector<16x80xf32> -> vector<16x80xf32>
    %16 = arith.addf %10, %15 : vector<16x80xf32>
    %c0_17 = arith.constant 0 : index
    %c0_18 = arith.constant 0 : index
    %c10 = arith.constant 10 : index
    %17 = vector.load %arg1[%c0_17, %c0_18, %c10] : memref<1x8x102xbf16, #tpu.memory_space<vmem>>, vector<1x8x80xbf16>
    %18 = vector.shape_cast %17 : vector<1x8x80xbf16> to vector<8x80xbf16>
    %c3 = arith.constant 3 : index
    %c0_19 = arith.constant 0 : index
    %c0_20 = arith.constant 0 : index
    %19 = vector.load %arg2[%c3, %c0_19, %c0_20] : memref<9x16x8xbf16, #tpu.memory_space<vmem>>, vector<1x16x8xbf16>
    %20 = vector.shape_cast %19 : vector<1x16x8xbf16> to vector<16x8xbf16>
    %cst_21 = arith.constant dense<0.000000e+00> : vector<16x80xf32>
    %21 = tpu.matmul %20, %18, %cst_21 {dimension_numbers = #tpu.dot_dimension_numbers<[1], [0], [0], [1], [0, 0, 1, 1], [], []>} : vector<16x8xbf16>, vector<8x80xbf16>, vector<16x80xf32> -> vector<16x80xf32>
    %22 = arith.addf %16, %21 : vector<16x80xf32>
    %c0_22 = arith.constant 0 : index
    %c0_23 = arith.constant 0 : index
    %c11 = arith.constant 11 : index
    %23 = vector.load %arg1[%c0_22, %c0_23, %c11] : memref<1x8x102xbf16, #tpu.memory_space<vmem>>, vector<1x8x80xbf16>
    %24 = vector.shape_cast %23 : vector<1x8x80xbf16> to vector<8x80xbf16>
    %c4 = arith.constant 4 : index
    %c0_24 = arith.constant 0 : index
    %c0_25 = arith.constant 0 : index
    %25 = vector.load %arg2[%c4, %c0_24, %c0_25] : memref<9x16x8xbf16, #tpu.memory_space<vmem>>, vector<1x16x8xbf16>
    %26 = vector.shape_cast %25 : vector<1x16x8xbf16> to vector<16x8xbf16>
    %cst_26 = arith.constant dense<0.000000e+00> : vector<16x80xf32>
    %27 = tpu.matmul %26, %24, %cst_26 {dimension_numbers = #tpu.dot_dimension_numbers<[1], [0], [0], [1], [0, 0, 1, 1], [], []>} : vector<16x8xbf16>, vector<8x80xbf16>, vector<16x80xf32> -> vector<16x80xf32>
    %28 = arith.addf %22, %27 : vector<16x80xf32>
    %c0_27 = arith.constant 0 : index
    %c0_28 = arith.constant 0 : index
    %c12 = arith.constant 12 : index
    %29 = vector.load %arg1[%c0_27, %c0_28, %c12] : memref<1x8x102xbf16, #tpu.memory_space<vmem>>, vector<1x8x80xbf16>
    %30 = vector.shape_cast %29 : vector<1x8x80xbf16> to vector<8x80xbf16>
    %c5 = arith.constant 5 : index
    %c0_29 = arith.constant 0 : index
    %c0_30 = arith.constant 0 : index
    %31 = vector.load %arg2[%c5, %c0_29, %c0_30] : memref<9x16x8xbf16, #tpu.memory_space<vmem>>, vector<1x16x8xbf16>
    %32 = vector.shape_cast %31 : vector<1x16x8xbf16> to vector<16x8xbf16>
    %cst_31 = arith.constant dense<0.000000e+00> : vector<16x80xf32>
    %33 = tpu.matmul %32, %30, %cst_31 {dimension_numbers = #tpu.dot_dimension_numbers<[1], [0], [0], [1], [0, 0, 1, 1], [], []>} : vector<16x8xbf16>, vector<8x80xbf16>, vector<16x80xf32> -> vector<16x80xf32>
    %34 = arith.addf %28, %33 : vector<16x80xf32>
    %c0_32 = arith.constant 0 : index
    %c0_33 = arith.constant 0 : index
    %c20 = arith.constant 20 : index
    %35 = vector.load %arg1[%c0_32, %c0_33, %c20] : memref<1x8x102xbf16, #tpu.memory_space<vmem>>, vector<1x8x80xbf16>
    %36 = vector.shape_cast %35 : vector<1x8x80xbf16> to vector<8x80xbf16>
    %c6 = arith.constant 6 : index
    %c0_34 = arith.constant 0 : index
    %c0_35 = arith.constant 0 : index
    %37 = vector.load %arg2[%c6, %c0_34, %c0_35] : memref<9x16x8xbf16, #tpu.memory_space<vmem>>, vector<1x16x8xbf16>
    %38 = vector.shape_cast %37 : vector<1x16x8xbf16> to vector<16x8xbf16>
    %cst_36 = arith.constant dense<0.000000e+00> : vector<16x80xf32>
    %39 = tpu.matmul %38, %36, %cst_36 {dimension_numbers = #tpu.dot_dimension_numbers<[1], [0], [0], [1], [0, 0, 1, 1], [], []>} : vector<16x8xbf16>, vector<8x80xbf16>, vector<16x80xf32> -> vector<16x80xf32>
    %40 = arith.addf %34, %39 : vector<16x80xf32>
    %c0_37 = arith.constant 0 : index
    %c0_38 = arith.constant 0 : index
    %c21 = arith.constant 21 : index
    %41 = vector.load %arg1[%c0_37, %c0_38, %c21] : memref<1x8x102xbf16, #tpu.memory_space<vmem>>, vector<1x8x80xbf16>
    %42 = vector.shape_cast %41 : vector<1x8x80xbf16> to vector<8x80xbf16>
    %c7 = arith.constant 7 : index
    %c0_39 = arith.constant 0 : index
    %c0_40 = arith.constant 0 : index
    %43 = vector.load %arg2[%c7, %c0_39, %c0_40] : memref<9x16x8xbf16, #tpu.memory_space<vmem>>, vector<1x16x8xbf16>
    %44 = vector.shape_cast %43 : vector<1x16x8xbf16> to vector<16x8xbf16>
    %cst_41 = arith.constant dense<0.000000e+00> : vector<16x80xf32>
    %45 = tpu.matmul %44, %42, %cst_41 {dimension_numbers = #tpu.dot_dimension_numbers<[1], [0], [0], [1], [0, 0, 1, 1], [], []>} : vector<16x8xbf16>, vector<8x80xbf16>, vector<16x80xf32> -> vector<16x80xf32>
    %46 = arith.addf %40, %45 : vector<16x80xf32>
    %c0_42 = arith.constant 0 : index
    %c0_43 = arith.constant 0 : index
    %c22 = arith.constant 22 : index
    %47 = vector.load %arg1[%c0_42, %c0_43, %c22] : memref<1x8x102xbf16, #tpu.memory_space<vmem>>, vector<1x8x80xbf16>
    %48 = vector.shape_cast %47 : vector<1x8x80xbf16> to vector<8x80xbf16>
    %c8 = arith.constant 8 : index
    %c0_44 = arith.constant 0 : index
    %c0_45 = arith.constant 0 : index
    %49 = vector.load %arg2[%c8, %c0_44, %c0_45] : memref<9x16x8xbf16, #tpu.memory_space<vmem>>, vector<1x16x8xbf16>
    %50 = vector.shape_cast %49 : vector<1x16x8xbf16> to vector<16x8xbf16>
    %cst_46 = arith.constant dense<0.000000e+00> : vector<16x80xf32>
    %51 = tpu.matmul %50, %48, %cst_46 {dimension_numbers = #tpu.dot_dimension_numbers<[1], [0], [0], [1], [0, 0, 1, 1], [], []>} : vector<16x8xbf16>, vector<8x80xbf16>, vector<16x80xf32> -> vector<16x80xf32>
    %52 = arith.addf %46, %51 : vector<16x80xf32>
    %c0_47 = arith.constant 0 : index
    %c0_48 = arith.constant 0 : index
    %53 = vector.load %arg3[%c0_47, %c0_48] : memref<16x1xf32, #tpu.memory_space<vmem>>, vector<16x1xf32>
    %54 = vector.broadcast %53 : vector<16x1xf32> to vector<16x80xf32>
    %55 = arith.addf %52, %54 : vector<16x80xf32>
    %cst_49 = arith.constant 0.000000e+00 : f32
    %56 = vector.broadcast %cst_49 : f32 to vector<16x80xf32>
    %57 = arith.maximumf %55, %56 : vector<16x80xf32>
    %58 = arith.truncf %57 : vector<16x80xf32> to vector<16x80xbf16>
    %c0_50 = arith.constant 0 : index
    %c0_51 = arith.constant 0 : index
    %c0_52 = arith.constant 0 : index
    %59 = vector.load %arg4[%c0_50, %c0_51, %c0_52] : memref<1x16x80xbf16, #tpu.memory_space<vmem>>, vector<1x16x80xbf16>
    %60 = vector.shape_cast %59 : vector<1x16x80xbf16> to vector<16x80xbf16>
    %61 = vector.shape_cast %58 : vector<16x80xbf16> to vector<1x16x80xbf16>
    tpu.vector_store %arg4[%c0_50, %c0_51, %c0_52], %61 {strides = array<i32>} : memref<1x16x80xbf16, #tpu.memory_space<vmem>>, vector<1x16x80xbf16>,
    return
  }
  func.func @transform_0(%arg0: i32) -> (i32, i32, i32) {
    %c0_i32 = arith.constant 0 : i32
    %c0_i32_0 = arith.constant 0 : i32
    %c0_i32_1 = arith.constant 0 : i32
    return %arg0, %c0_i32, %c0_i32_0 : i32, i32, i32
  }
  func.func @transform_1(%arg0: i32) -> (i32, i32, i32) {
    %c0_i32 = arith.constant 0 : i32
    %c0_i32_0 = arith.constant 0 : i32
    %c0_i32_1 = arith.constant 0 : i32
    %c0_i32_2 = arith.constant 0 : i32
    return %c0_i32, %c0_i32_0, %c0_i32_1 : i32, i32, i32
  }
  func.func @transform_2(%arg0: i32) -> (i32, i32) {
    %c0_i32 = arith.constant 0 : i32
    %c0_i32_0 = arith.constant 0 : i32
    %c0_i32_1 = arith.constant 0 : i32
    return %c0_i32, %c0_i32_0 : i32, i32
  }
  func.func @transform_3(%arg0: i32) -> (i32, i32, i32) {
    %c0_i32 = arith.constant 0 : i32
    %c0_i32_0 = arith.constant 0 : i32
    %c0_i32_1 = arith.constant 0 : i32
    return %arg0, %c0_i32, %c0_i32_0 : i32, i32, i32
  }
}

module attributes {stable_mosaic.version = 11 : i64} {
  func.func @kernel(%arg0: i32, %arg1: memref<1x16x102xbf16, #tpu.memory_space<vmem>>, %arg2: memref<9x16x16xbf16, #tpu.memory_space<vmem>>, %arg3: memref<16x1xf32, #tpu.memory_space<vmem>>, %arg4: memref<1x16x80xbf16, #tpu.memory_space<vmem>>) attributes {dimension_semantics = [#tpu.dimension_semantics<parallel>], iteration_bounds = array<i64: 24>, scalar_prefetch = 0 : i64, scratch_operands = 0 : i64, tpu.core_type = #tpu.core_type<tc>, window_params = [{transform_indices = @transform_0, window_bounds = array<i64: 1, 16, 102>}, {pipeline_mode = #tpu.pipeline_mode<synchronous>, transform_indices = @transform_1, window_bounds = array<i64: 9, 16, 16>}, {pipeline_mode = #tpu.pipeline_mode<synchronous>, transform_indices = @transform_2, window_bounds = array<i64: 16, 1>}, {transform_indices = @transform_3, window_bounds = array<i64: 1, 16, 80>}]} {
    %c0 = arith.constant 0 : index
    %c0_0 = arith.constant 0 : index
    %c0_1 = arith.constant 0 : index
    %0 = vector.load %arg1[%c0, %c0_0, %c0_1] : memref<1x16x102xbf16, #tpu.memory_space<vmem>>, vector<1x16x80xbf16>
    %1 = vector.shape_cast %0 : vector<1x16x80xbf16> to vector<16x80xbf16>
    %c0_2 = arith.constant 0 : index
    %c0_3 = arith.constant 0 : index
    %c0_4 = arith.constant 0 : index
    %2 = vector.load %arg2[%c0_2, %c0_3, %c0_4] : memref<9x16x16xbf16, #tpu.memory_space<vmem>>, vector<1x16x16xbf16>
    %3 = vector.shape_cast %2 : vector<1x16x16xbf16> to vector<16x16xbf16>
    %cst = arith.constant dense<0.000000e+00> : vector<16x80xf32>
    %4 = tpu.matmul %3, %1, %cst {dimension_numbers = #tpu.dot_dimension_numbers<[1], [0], [0], [1], [0, 0, 1, 1], [], []>} : vector<16x16xbf16>, vector<16x80xbf16>, vector<16x80xf32> -> vector<16x80xf32>
    %c0_5 = arith.constant 0 : index
    %c0_6 = arith.constant 0 : index
    %c1 = arith.constant 1 : index
    %5 = vector.load %arg1[%c0_5, %c0_6, %c1] : memref<1x16x102xbf16, #tpu.memory_space<vmem>>, vector<1x16x80xbf16>
    %6 = vector.shape_cast %5 : vector<1x16x80xbf16> to vector<16x80xbf16>
    %c1_7 = arith.constant 1 : index
    %c0_8 = arith.constant 0 : index
    %c0_9 = arith.constant 0 : index
    %7 = vector.load %arg2[%c1_7, %c0_8, %c0_9] : memref<9x16x16xbf16, #tpu.memory_space<vmem>>, vector<1x16x16xbf16>
    %8 = vector.shape_cast %7 : vector<1x16x16xbf16> to vector<16x16xbf16>
    %cst_10 = arith.constant dense<0.000000e+00> : vector<16x80xf32>
    %9 = tpu.matmul %8, %6, %cst_10 {dimension_numbers = #tpu.dot_dimension_numbers<[1], [0], [0], [1], [0, 0, 1, 1], [], []>} : vector<16x16xbf16>, vector<16x80xbf16>, vector<16x80xf32> -> vector<16x80xf32>
    %10 = arith.addf %4, %9 : vector<16x80xf32>
    %c0_11 = arith.constant 0 : index
    %c0_12 = arith.constant 0 : index
    %c2 = arith.constant 2 : index
    %11 = vector.load %arg1[%c0_11, %c0_12, %c2] : memref<1x16x102xbf16, #tpu.memory_space<vmem>>, vector<1x16x80xbf16>
    %12 = vector.shape_cast %11 : vector<1x16x80xbf16> to vector<16x80xbf16>
    %c2_13 = arith.constant 2 : index
    %c0_14 = arith.constant 0 : index
    %c0_15 = arith.constant 0 : index
    %13 = vector.load %arg2[%c2_13, %c0_14, %c0_15] : memref<9x16x16xbf16, #tpu.memory_space<vmem>>, vector<1x16x16xbf16>
    %14 = vector.shape_cast %13 : vector<1x16x16xbf16> to vector<16x16xbf16>
    %cst_16 = arith.constant dense<0.000000e+00> : vector<16x80xf32>
    %15 = tpu.matmul %14, %12, %cst_16 {dimension_numbers = #tpu.dot_dimension_numbers<[1], [0], [0], [1], [0, 0, 1, 1], [], []>} : vector<16x16xbf16>, vector<16x80xbf16>, vector<16x80xf32> -> vector<16x80xf32>
    %16 = arith.addf %10, %15 : vector<16x80xf32>
    %c0_17 = arith.constant 0 : index
    %c0_18 = arith.constant 0 : index
    %c10 = arith.constant 10 : index
    %17 = vector.load %arg1[%c0_17, %c0_18, %c10] : memref<1x16x102xbf16, #tpu.memory_space<vmem>>, vector<1x16x80xbf16>
    %18 = vector.shape_cast %17 : vector<1x16x80xbf16> to vector<16x80xbf16>
    %c3 = arith.constant 3 : index
    %c0_19 = arith.constant 0 : index
    %c0_20 = arith.constant 0 : index
    %19 = vector.load %arg2[%c3, %c0_19, %c0_20] : memref<9x16x16xbf16, #tpu.memory_space<vmem>>, vector<1x16x16xbf16>
    %20 = vector.shape_cast %19 : vector<1x16x16xbf16> to vector<16x16xbf16>
    %cst_21 = arith.constant dense<0.000000e+00> : vector<16x80xf32>
    %21 = tpu.matmul %20, %18, %cst_21 {dimension_numbers = #tpu.dot_dimension_numbers<[1], [0], [0], [1], [0, 0, 1, 1], [], []>} : vector<16x16xbf16>, vector<16x80xbf16>, vector<16x80xf32> -> vector<16x80xf32>
    %22 = arith.addf %16, %21 : vector<16x80xf32>
    %c0_22 = arith.constant 0 : index
    %c0_23 = arith.constant 0 : index
    %c11 = arith.constant 11 : index
    %23 = vector.load %arg1[%c0_22, %c0_23, %c11] : memref<1x16x102xbf16, #tpu.memory_space<vmem>>, vector<1x16x80xbf16>
    %24 = vector.shape_cast %23 : vector<1x16x80xbf16> to vector<16x80xbf16>
    %c4 = arith.constant 4 : index
    %c0_24 = arith.constant 0 : index
    %c0_25 = arith.constant 0 : index
    %25 = vector.load %arg2[%c4, %c0_24, %c0_25] : memref<9x16x16xbf16, #tpu.memory_space<vmem>>, vector<1x16x16xbf16>
    %26 = vector.shape_cast %25 : vector<1x16x16xbf16> to vector<16x16xbf16>
    %cst_26 = arith.constant dense<0.000000e+00> : vector<16x80xf32>
    %27 = tpu.matmul %26, %24, %cst_26 {dimension_numbers = #tpu.dot_dimension_numbers<[1], [0], [0], [1], [0, 0, 1, 1], [], []>} : vector<16x16xbf16>, vector<16x80xbf16>, vector<16x80xf32> -> vector<16x80xf32>
    %28 = arith.addf %22, %27 : vector<16x80xf32>
    %c0_27 = arith.constant 0 : index
    %c0_28 = arith.constant 0 : index
    %c12 = arith.constant 12 : index
    %29 = vector.load %arg1[%c0_27, %c0_28, %c12] : memref<1x16x102xbf16, #tpu.memory_space<vmem>>, vector<1x16x80xbf16>
    %30 = vector.shape_cast %29 : vector<1x16x80xbf16> to vector<16x80xbf16>
    %c5 = arith.constant 5 : index
    %c0_29 = arith.constant 0 : index
    %c0_30 = arith.constant 0 : index
    %31 = vector.load %arg2[%c5, %c0_29, %c0_30] : memref<9x16x16xbf16, #tpu.memory_space<vmem>>, vector<1x16x16xbf16>
    %32 = vector.shape_cast %31 : vector<1x16x16xbf16> to vector<16x16xbf16>
    %cst_31 = arith.constant dense<0.000000e+00> : vector<16x80xf32>
    %33 = tpu.matmul %32, %30, %cst_31 {dimension_numbers = #tpu.dot_dimension_numbers<[1], [0], [0], [1], [0, 0, 1, 1], [], []>} : vector<16x16xbf16>, vector<16x80xbf16>, vector<16x80xf32> -> vector<16x80xf32>
    %34 = arith.addf %28, %33 : vector<16x80xf32>
    %c0_32 = arith.constant 0 : index
    %c0_33 = arith.constant 0 : index
    %c20 = arith.constant 20 : index
    %35 = vector.load %arg1[%c0_32, %c0_33, %c20] : memref<1x16x102xbf16, #tpu.memory_space<vmem>>, vector<1x16x80xbf16>
    %36 = vector.shape_cast %35 : vector<1x16x80xbf16> to vector<16x80xbf16>
    %c6 = arith.constant 6 : index
    %c0_34 = arith.constant 0 : index
    %c0_35 = arith.constant 0 : index
    %37 = vector.load %arg2[%c6, %c0_34, %c0_35] : memref<9x16x16xbf16, #tpu.memory_space<vmem>>, vector<1x16x16xbf16>
    %38 = vector.shape_cast %37 : vector<1x16x16xbf16> to vector<16x16xbf16>
    %cst_36 = arith.constant dense<0.000000e+00> : vector<16x80xf32>
    %39 = tpu.matmul %38, %36, %cst_36 {dimension_numbers = #tpu.dot_dimension_numbers<[1], [0], [0], [1], [0, 0, 1, 1], [], []>} : vector<16x16xbf16>, vector<16x80xbf16>, vector<16x80xf32> -> vector<16x80xf32>
    %40 = arith.addf %34, %39 : vector<16x80xf32>
    %c0_37 = arith.constant 0 : index
    %c0_38 = arith.constant 0 : index
    %c21 = arith.constant 21 : index
    %41 = vector.load %arg1[%c0_37, %c0_38, %c21] : memref<1x16x102xbf16, #tpu.memory_space<vmem>>, vector<1x16x80xbf16>
    %42 = vector.shape_cast %41 : vector<1x16x80xbf16> to vector<16x80xbf16>
    %c7 = arith.constant 7 : index
    %c0_39 = arith.constant 0 : index
    %c0_40 = arith.constant 0 : index
    %43 = vector.load %arg2[%c7, %c0_39, %c0_40] : memref<9x16x16xbf16, #tpu.memory_space<vmem>>, vector<1x16x16xbf16>
    %44 = vector.shape_cast %43 : vector<1x16x16xbf16> to vector<16x16xbf16>
    %cst_41 = arith.constant dense<0.000000e+00> : vector<16x80xf32>
    %45 = tpu.matmul %44, %42, %cst_41 {dimension_numbers = #tpu.dot_dimension_numbers<[1], [0], [0], [1], [0, 0, 1, 1], [], []>} : vector<16x16xbf16>, vector<16x80xbf16>, vector<16x80xf32> -> vector<16x80xf32>
    %46 = arith.addf %40, %45 : vector<16x80xf32>
    %c0_42 = arith.constant 0 : index
    %c0_43 = arith.constant 0 : index
    %c22 = arith.constant 22 : index
    %47 = vector.load %arg1[%c0_42, %c0_43, %c22] : memref<1x16x102xbf16, #tpu.memory_space<vmem>>, vector<1x16x80xbf16>
    %48 = vector.shape_cast %47 : vector<1x16x80xbf16> to vector<16x80xbf16>
    %c8 = arith.constant 8 : index
    %c0_44 = arith.constant 0 : index
    %c0_45 = arith.constant 0 : index
    %49 = vector.load %arg2[%c8, %c0_44, %c0_45] : memref<9x16x16xbf16, #tpu.memory_space<vmem>>, vector<1x16x16xbf16>
    %50 = vector.shape_cast %49 : vector<1x16x16xbf16> to vector<16x16xbf16>
    %cst_46 = arith.constant dense<0.000000e+00> : vector<16x80xf32>
    %51 = tpu.matmul %50, %48, %cst_46 {dimension_numbers = #tpu.dot_dimension_numbers<[1], [0], [0], [1], [0, 0, 1, 1], [], []>} : vector<16x16xbf16>, vector<16x80xbf16>, vector<16x80xf32> -> vector<16x80xf32>
    %52 = arith.addf %46, %51 : vector<16x80xf32>
    %c0_47 = arith.constant 0 : index
    %c0_48 = arith.constant 0 : index
    %53 = vector.load %arg3[%c0_47, %c0_48] : memref<16x1xf32, #tpu.memory_space<vmem>>, vector<16x1xf32>
    %54 = vector.broadcast %53 : vector<16x1xf32> to vector<16x80xf32>
    %55 = arith.addf %52, %54 : vector<16x80xf32>
    %cst_49 = arith.constant 0.000000e+00 : f32
    %56 = vector.broadcast %cst_49 : f32 to vector<16x80xf32>
    %57 = arith.maximumf %55, %56 : vector<16x80xf32>
    %58 = arith.truncf %57 : vector<16x80xf32> to vector<16x80xbf16>
    %c0_50 = arith.constant 0 : index
    %c0_51 = arith.constant 0 : index
    %c0_52 = arith.constant 0 : index
    %59 = vector.load %arg4[%c0_50, %c0_51, %c0_52] : memref<1x16x80xbf16, #tpu.memory_space<vmem>>, vector<1x16x80xbf16>
    %60 = vector.shape_cast %59 : vector<1x16x80xbf16> to vector<16x80xbf16>
    %61 = vector.shape_cast %58 : vector<16x80xbf16> to vector<1x16x80xbf16>
    tpu.vector_store %arg4[%c0_50, %c0_51, %c0_52], %61 {strides = array<i32>} : memref<1x16x80xbf16, #tpu.memory_space<vmem>>, vector<1x16x80xbf16>,
    return
  }
  func.func @transform_0(%arg0: i32) -> (i32, i32, i32) {
    %c0_i32 = arith.constant 0 : i32
    %c0_i32_0 = arith.constant 0 : i32
    %c0_i32_1 = arith.constant 0 : i32
    return %arg0, %c0_i32, %c0_i32_0 : i32, i32, i32
  }
  func.func @transform_1(%arg0: i32) -> (i32, i32, i32) {
    %c0_i32 = arith.constant 0 : i32
    %c0_i32_0 = arith.constant 0 : i32
    %c0_i32_1 = arith.constant 0 : i32
    %c0_i32_2 = arith.constant 0 : i32
    return %c0_i32, %c0_i32_0, %c0_i32_1 : i32, i32, i32
  }
  func.func @transform_2(%arg0: i32) -> (i32, i32) {
    %c0_i32 = arith.constant 0 : i32
    %c0_i32_0 = arith.constant 0 : i32
    %c0_i32_1 = arith.constant 0 : i32
    return %c0_i32, %c0_i32_0 : i32, i32
  }
  func.func @transform_3(%arg0: i32) -> (i32, i32, i32) {
    %c0_i32 = arith.constant 0 : i32
    %c0_i32_0 = arith.constant 0 : i32
    %c0_i32_1 = arith.constant 0 : i32
    return %arg0, %c0_i32, %c0_i32_0 : i32, i32, i32
  }
}

module attributes {stable_mosaic.version = 11 : i64} {
  func.func @kernel(%arg0: i32, %arg1: memref<1x16x38xbf16, #tpu.memory_space<vmem>>, %arg2: memref<9x32x16xbf16, #tpu.memory_space<vmem>>, %arg3: memref<32x1xf32, #tpu.memory_space<vmem>>, %arg4: memref<1x32x24xbf16, #tpu.memory_space<vmem>>) attributes {dimension_semantics = [#tpu.dimension_semantics<parallel>], iteration_bounds = array<i64: 24>, scalar_prefetch = 0 : i64, scratch_operands = 0 : i64, tpu.core_type = #tpu.core_type<tc>, window_params = [{transform_indices = @transform_0, window_bounds = array<i64: 1, 16, 38>}, {pipeline_mode = #tpu.pipeline_mode<synchronous>, transform_indices = @transform_1, window_bounds = array<i64: 9, 32, 16>}, {pipeline_mode = #tpu.pipeline_mode<synchronous>, transform_indices = @transform_2, window_bounds = array<i64: 32, 1>}, {transform_indices = @transform_3, window_bounds = array<i64: 1, 32, 24>}]} {
    %c0 = arith.constant 0 : index
    %c0_0 = arith.constant 0 : index
    %c0_1 = arith.constant 0 : index
    %0 = vector.load %arg1[%c0, %c0_0, %c0_1] : memref<1x16x38xbf16, #tpu.memory_space<vmem>>, vector<1x16x24xbf16>
    %1 = vector.shape_cast %0 : vector<1x16x24xbf16> to vector<16x24xbf16>
    %c0_2 = arith.constant 0 : index
    %c0_3 = arith.constant 0 : index
    %c0_4 = arith.constant 0 : index
    %2 = vector.load %arg2[%c0_2, %c0_3, %c0_4] : memref<9x32x16xbf16, #tpu.memory_space<vmem>>, vector<1x32x16xbf16>
    %3 = vector.shape_cast %2 : vector<1x32x16xbf16> to vector<32x16xbf16>
    %cst = arith.constant dense<0.000000e+00> : vector<32x24xf32>
    %4 = tpu.matmul %3, %1, %cst {dimension_numbers = #tpu.dot_dimension_numbers<[1], [0], [0], [1], [0, 0, 1, 1], [], []>} : vector<32x16xbf16>, vector<16x24xbf16>, vector<32x24xf32> -> vector<32x24xf32>
    %c0_5 = arith.constant 0 : index
    %c0_6 = arith.constant 0 : index
    %c1 = arith.constant 1 : index
    %5 = vector.load %arg1[%c0_5, %c0_6, %c1] : memref<1x16x38xbf16, #tpu.memory_space<vmem>>, vector<1x16x24xbf16>
    %6 = vector.shape_cast %5 : vector<1x16x24xbf16> to vector<16x24xbf16>
    %c1_7 = arith.constant 1 : index
    %c0_8 = arith.constant 0 : index
    %c0_9 = arith.constant 0 : index
    %7 = vector.load %arg2[%c1_7, %c0_8, %c0_9] : memref<9x32x16xbf16, #tpu.memory_space<vmem>>, vector<1x32x16xbf16>
    %8 = vector.shape_cast %7 : vector<1x32x16xbf16> to vector<32x16xbf16>
    %cst_10 = arith.constant dense<0.000000e+00> : vector<32x24xf32>
    %9 = tpu.matmul %8, %6, %cst_10 {dimension_numbers = #tpu.dot_dimension_numbers<[1], [0], [0], [1], [0, 0, 1, 1], [], []>} : vector<32x16xbf16>, vector<16x24xbf16>, vector<32x24xf32> -> vector<32x24xf32>
    %10 = arith.addf %4, %9 : vector<32x24xf32>
    %c0_11 = arith.constant 0 : index
    %c0_12 = arith.constant 0 : index
    %c2 = arith.constant 2 : index
    %11 = vector.load %arg1[%c0_11, %c0_12, %c2] : memref<1x16x38xbf16, #tpu.memory_space<vmem>>, vector<1x16x24xbf16>
    %12 = vector.shape_cast %11 : vector<1x16x24xbf16> to vector<16x24xbf16>
    %c2_13 = arith.constant 2 : index
    %c0_14 = arith.constant 0 : index
    %c0_15 = arith.constant 0 : index
    %13 = vector.load %arg2[%c2_13, %c0_14, %c0_15] : memref<9x32x16xbf16, #tpu.memory_space<vmem>>, vector<1x32x16xbf16>
    %14 = vector.shape_cast %13 : vector<1x32x16xbf16> to vector<32x16xbf16>
    %cst_16 = arith.constant dense<0.000000e+00> : vector<32x24xf32>
    %15 = tpu.matmul %14, %12, %cst_16 {dimension_numbers = #tpu.dot_dimension_numbers<[1], [0], [0], [1], [0, 0, 1, 1], [], []>} : vector<32x16xbf16>, vector<16x24xbf16>, vector<32x24xf32> -> vector<32x24xf32>
    %16 = arith.addf %10, %15 : vector<32x24xf32>
    %c0_17 = arith.constant 0 : index
    %c0_18 = arith.constant 0 : index
    %c6 = arith.constant 6 : index
    %17 = vector.load %arg1[%c0_17, %c0_18, %c6] : memref<1x16x38xbf16, #tpu.memory_space<vmem>>, vector<1x16x24xbf16>
    %18 = vector.shape_cast %17 : vector<1x16x24xbf16> to vector<16x24xbf16>
    %c3 = arith.constant 3 : index
    %c0_19 = arith.constant 0 : index
    %c0_20 = arith.constant 0 : index
    %19 = vector.load %arg2[%c3, %c0_19, %c0_20] : memref<9x32x16xbf16, #tpu.memory_space<vmem>>, vector<1x32x16xbf16>
    %20 = vector.shape_cast %19 : vector<1x32x16xbf16> to vector<32x16xbf16>
    %cst_21 = arith.constant dense<0.000000e+00> : vector<32x24xf32>
    %21 = tpu.matmul %20, %18, %cst_21 {dimension_numbers = #tpu.dot_dimension_numbers<[1], [0], [0], [1], [0, 0, 1, 1], [], []>} : vector<32x16xbf16>, vector<16x24xbf16>, vector<32x24xf32> -> vector<32x24xf32>
    %22 = arith.addf %16, %21 : vector<32x24xf32>
    %c0_22 = arith.constant 0 : index
    %c0_23 = arith.constant 0 : index
    %c7 = arith.constant 7 : index
    %23 = vector.load %arg1[%c0_22, %c0_23, %c7] : memref<1x16x38xbf16, #tpu.memory_space<vmem>>, vector<1x16x24xbf16>
    %24 = vector.shape_cast %23 : vector<1x16x24xbf16> to vector<16x24xbf16>
    %c4 = arith.constant 4 : index
    %c0_24 = arith.constant 0 : index
    %c0_25 = arith.constant 0 : index
    %25 = vector.load %arg2[%c4, %c0_24, %c0_25] : memref<9x32x16xbf16, #tpu.memory_space<vmem>>, vector<1x32x16xbf16>
    %26 = vector.shape_cast %25 : vector<1x32x16xbf16> to vector<32x16xbf16>
    %cst_26 = arith.constant dense<0.000000e+00> : vector<32x24xf32>
    %27 = tpu.matmul %26, %24, %cst_26 {dimension_numbers = #tpu.dot_dimension_numbers<[1], [0], [0], [1], [0, 0, 1, 1], [], []>} : vector<32x16xbf16>, vector<16x24xbf16>, vector<32x24xf32> -> vector<32x24xf32>
    %28 = arith.addf %22, %27 : vector<32x24xf32>
    %c0_27 = arith.constant 0 : index
    %c0_28 = arith.constant 0 : index
    %c8 = arith.constant 8 : index
    %29 = vector.load %arg1[%c0_27, %c0_28, %c8] : memref<1x16x38xbf16, #tpu.memory_space<vmem>>, vector<1x16x24xbf16>
    %30 = vector.shape_cast %29 : vector<1x16x24xbf16> to vector<16x24xbf16>
    %c5 = arith.constant 5 : index
    %c0_29 = arith.constant 0 : index
    %c0_30 = arith.constant 0 : index
    %31 = vector.load %arg2[%c5, %c0_29, %c0_30] : memref<9x32x16xbf16, #tpu.memory_space<vmem>>, vector<1x32x16xbf16>
    %32 = vector.shape_cast %31 : vector<1x32x16xbf16> to vector<32x16xbf16>
    %cst_31 = arith.constant dense<0.000000e+00> : vector<32x24xf32>
    %33 = tpu.matmul %32, %30, %cst_31 {dimension_numbers = #tpu.dot_dimension_numbers<[1], [0], [0], [1], [0, 0, 1, 1], [], []>} : vector<32x16xbf16>, vector<16x24xbf16>, vector<32x24xf32> -> vector<32x24xf32>
    %34 = arith.addf %28, %33 : vector<32x24xf32>
    %c0_32 = arith.constant 0 : index
    %c0_33 = arith.constant 0 : index
    %c12 = arith.constant 12 : index
    %35 = vector.load %arg1[%c0_32, %c0_33, %c12] : memref<1x16x38xbf16, #tpu.memory_space<vmem>>, vector<1x16x24xbf16>
    %36 = vector.shape_cast %35 : vector<1x16x24xbf16> to vector<16x24xbf16>
    %c6_34 = arith.constant 6 : index
    %c0_35 = arith.constant 0 : index
    %c0_36 = arith.constant 0 : index
    %37 = vector.load %arg2[%c6_34, %c0_35, %c0_36] : memref<9x32x16xbf16, #tpu.memory_space<vmem>>, vector<1x32x16xbf16>
    %38 = vector.shape_cast %37 : vector<1x32x16xbf16> to vector<32x16xbf16>
    %cst_37 = arith.constant dense<0.000000e+00> : vector<32x24xf32>
    %39 = tpu.matmul %38, %36, %cst_37 {dimension_numbers = #tpu.dot_dimension_numbers<[1], [0], [0], [1], [0, 0, 1, 1], [], []>} : vector<32x16xbf16>, vector<16x24xbf16>, vector<32x24xf32> -> vector<32x24xf32>
    %40 = arith.addf %34, %39 : vector<32x24xf32>
    %c0_38 = arith.constant 0 : index
    %c0_39 = arith.constant 0 : index
    %c13 = arith.constant 13 : index
    %41 = vector.load %arg1[%c0_38, %c0_39, %c13] : memref<1x16x38xbf16, #tpu.memory_space<vmem>>, vector<1x16x24xbf16>
    %42 = vector.shape_cast %41 : vector<1x16x24xbf16> to vector<16x24xbf16>
    %c7_40 = arith.constant 7 : index
    %c0_41 = arith.constant 0 : index
    %c0_42 = arith.constant 0 : index
    %43 = vector.load %arg2[%c7_40, %c0_41, %c0_42] : memref<9x32x16xbf16, #tpu.memory_space<vmem>>, vector<1x32x16xbf16>
    %44 = vector.shape_cast %43 : vector<1x32x16xbf16> to vector<32x16xbf16>
    %cst_43 = arith.constant dense<0.000000e+00> : vector<32x24xf32>
    %45 = tpu.matmul %44, %42, %cst_43 {dimension_numbers = #tpu.dot_dimension_numbers<[1], [0], [0], [1], [0, 0, 1, 1], [], []>} : vector<32x16xbf16>, vector<16x24xbf16>, vector<32x24xf32> -> vector<32x24xf32>
    %46 = arith.addf %40, %45 : vector<32x24xf32>
    %c0_44 = arith.constant 0 : index
    %c0_45 = arith.constant 0 : index
    %c14 = arith.constant 14 : index
    %47 = vector.load %arg1[%c0_44, %c0_45, %c14] : memref<1x16x38xbf16, #tpu.memory_space<vmem>>, vector<1x16x24xbf16>
    %48 = vector.shape_cast %47 : vector<1x16x24xbf16> to vector<16x24xbf16>
    %c8_46 = arith.constant 8 : index
    %c0_47 = arith.constant 0 : index
    %c0_48 = arith.constant 0 : index
    %49 = vector.load %arg2[%c8_46, %c0_47, %c0_48] : memref<9x32x16xbf16, #tpu.memory_space<vmem>>, vector<1x32x16xbf16>
    %50 = vector.shape_cast %49 : vector<1x32x16xbf16> to vector<32x16xbf16>
    %cst_49 = arith.constant dense<0.000000e+00> : vector<32x24xf32>
    %51 = tpu.matmul %50, %48, %cst_49 {dimension_numbers = #tpu.dot_dimension_numbers<[1], [0], [0], [1], [0, 0, 1, 1], [], []>} : vector<32x16xbf16>, vector<16x24xbf16>, vector<32x24xf32> -> vector<32x24xf32>
    %52 = arith.addf %46, %51 : vector<32x24xf32>
    %c0_50 = arith.constant 0 : index
    %c0_51 = arith.constant 0 : index
    %53 = vector.load %arg3[%c0_50, %c0_51] : memref<32x1xf32, #tpu.memory_space<vmem>>, vector<32x1xf32>
    %54 = vector.broadcast %53 : vector<32x1xf32> to vector<32x24xf32>
    %55 = arith.addf %52, %54 : vector<32x24xf32>
    %cst_52 = arith.constant 0.000000e+00 : f32
    %56 = vector.broadcast %cst_52 : f32 to vector<32x24xf32>
    %57 = arith.maximumf %55, %56 : vector<32x24xf32>
    %58 = arith.truncf %57 : vector<32x24xf32> to vector<32x24xbf16>
    %c0_53 = arith.constant 0 : index
    %c0_54 = arith.constant 0 : index
    %c0_55 = arith.constant 0 : index
    %59 = vector.load %arg4[%c0_53, %c0_54, %c0_55] : memref<1x32x24xbf16, #tpu.memory_space<vmem>>, vector<1x32x24xbf16>
    %60 = vector.shape_cast %59 : vector<1x32x24xbf16> to vector<32x24xbf16>
    %61 = vector.shape_cast %58 : vector<32x24xbf16> to vector<1x32x24xbf16>
    tpu.vector_store %arg4[%c0_53, %c0_54, %c0_55], %61 {strides = array<i32>} : memref<1x32x24xbf16, #tpu.memory_space<vmem>>, vector<1x32x24xbf16>,
    return
  }
  func.func @transform_0(%arg0: i32) -> (i32, i32, i32) {
    %c0_i32 = arith.constant 0 : i32
    %c0_i32_0 = arith.constant 0 : i32
    %c0_i32_1 = arith.constant 0 : i32
    return %arg0, %c0_i32, %c0_i32_0 : i32, i32, i32
  }
  func.func @transform_1(%arg0: i32) -> (i32, i32, i32) {
    %c0_i32 = arith.constant 0 : i32
    %c0_i32_0 = arith.constant 0 : i32
    %c0_i32_1 = arith.constant 0 : i32
    %c0_i32_2 = arith.constant 0 : i32
    return %c0_i32, %c0_i32_0, %c0_i32_1 : i32, i32, i32
  }
  func.func @transform_2(%arg0: i32) -> (i32, i32) {
    %c0_i32 = arith.constant 0 : i32
    %c0_i32_0 = arith.constant 0 : i32
    %c0_i32_1 = arith.constant 0 : i32
    return %c0_i32, %c0_i32_0 : i32, i32
  }
  func.func @transform_3(%arg0: i32) -> (i32, i32, i32) {
    %c0_i32 = arith.constant 0 : i32
    %c0_i32_0 = arith.constant 0 : i32
    %c0_i32_1 = arith.constant 0 : i32
    return %arg0, %c0_i32, %c0_i32_0 : i32, i32, i32
  }
}

module attributes {stable_mosaic.version = 11 : i64} {
  func.func @kernel(%arg0: i32, %arg1: memref<1x32x38xbf16, #tpu.memory_space<vmem>>, %arg2: memref<9x32x32xbf16, #tpu.memory_space<vmem>>, %arg3: memref<32x1xf32, #tpu.memory_space<vmem>>, %arg4: memref<1x32x24xbf16, #tpu.memory_space<vmem>>) attributes {dimension_semantics = [#tpu.dimension_semantics<parallel>], iteration_bounds = array<i64: 24>, scalar_prefetch = 0 : i64, scratch_operands = 0 : i64, tpu.core_type = #tpu.core_type<tc>, window_params = [{transform_indices = @transform_0, window_bounds = array<i64: 1, 32, 38>}, {pipeline_mode = #tpu.pipeline_mode<synchronous>, transform_indices = @transform_1, window_bounds = array<i64: 9, 32, 32>}, {pipeline_mode = #tpu.pipeline_mode<synchronous>, transform_indices = @transform_2, window_bounds = array<i64: 32, 1>}, {transform_indices = @transform_3, window_bounds = array<i64: 1, 32, 24>}]} {
    %c0 = arith.constant 0 : index
    %c0_0 = arith.constant 0 : index
    %c0_1 = arith.constant 0 : index
    %0 = vector.load %arg1[%c0, %c0_0, %c0_1] : memref<1x32x38xbf16, #tpu.memory_space<vmem>>, vector<1x32x24xbf16>
    %1 = vector.shape_cast %0 : vector<1x32x24xbf16> to vector<32x24xbf16>
    %c0_2 = arith.constant 0 : index
    %c0_3 = arith.constant 0 : index
    %c0_4 = arith.constant 0 : index
    %2 = vector.load %arg2[%c0_2, %c0_3, %c0_4] : memref<9x32x32xbf16, #tpu.memory_space<vmem>>, vector<1x32x32xbf16>
    %3 = vector.shape_cast %2 : vector<1x32x32xbf16> to vector<32x32xbf16>
    %cst = arith.constant dense<0.000000e+00> : vector<32x24xf32>
    %4 = tpu.matmul %3, %1, %cst {dimension_numbers = #tpu.dot_dimension_numbers<[1], [0], [0], [1], [0, 0, 1, 1], [], []>} : vector<32x32xbf16>, vector<32x24xbf16>, vector<32x24xf32> -> vector<32x24xf32>
    %c0_5 = arith.constant 0 : index
    %c0_6 = arith.constant 0 : index
    %c1 = arith.constant 1 : index
    %5 = vector.load %arg1[%c0_5, %c0_6, %c1] : memref<1x32x38xbf16, #tpu.memory_space<vmem>>, vector<1x32x24xbf16>
    %6 = vector.shape_cast %5 : vector<1x32x24xbf16> to vector<32x24xbf16>
    %c1_7 = arith.constant 1 : index
    %c0_8 = arith.constant 0 : index
    %c0_9 = arith.constant 0 : index
    %7 = vector.load %arg2[%c1_7, %c0_8, %c0_9] : memref<9x32x32xbf16, #tpu.memory_space<vmem>>, vector<1x32x32xbf16>
    %8 = vector.shape_cast %7 : vector<1x32x32xbf16> to vector<32x32xbf16>
    %cst_10 = arith.constant dense<0.000000e+00> : vector<32x24xf32>
    %9 = tpu.matmul %8, %6, %cst_10 {dimension_numbers = #tpu.dot_dimension_numbers<[1], [0], [0], [1], [0, 0, 1, 1], [], []>} : vector<32x32xbf16>, vector<32x24xbf16>, vector<32x24xf32> -> vector<32x24xf32>
    %10 = arith.addf %4, %9 : vector<32x24xf32>
    %c0_11 = arith.constant 0 : index
    %c0_12 = arith.constant 0 : index
    %c2 = arith.constant 2 : index
    %11 = vector.load %arg1[%c0_11, %c0_12, %c2] : memref<1x32x38xbf16, #tpu.memory_space<vmem>>, vector<1x32x24xbf16>
    %12 = vector.shape_cast %11 : vector<1x32x24xbf16> to vector<32x24xbf16>
    %c2_13 = arith.constant 2 : index
    %c0_14 = arith.constant 0 : index
    %c0_15 = arith.constant 0 : index
    %13 = vector.load %arg2[%c2_13, %c0_14, %c0_15] : memref<9x32x32xbf16, #tpu.memory_space<vmem>>, vector<1x32x32xbf16>
    %14 = vector.shape_cast %13 : vector<1x32x32xbf16> to vector<32x32xbf16>
    %cst_16 = arith.constant dense<0.000000e+00> : vector<32x24xf32>
    %15 = tpu.matmul %14, %12, %cst_16 {dimension_numbers = #tpu.dot_dimension_numbers<[1], [0], [0], [1], [0, 0, 1, 1], [], []>} : vector<32x32xbf16>, vector<32x24xbf16>, vector<32x24xf32> -> vector<32x24xf32>
    %16 = arith.addf %10, %15 : vector<32x24xf32>
    %c0_17 = arith.constant 0 : index
    %c0_18 = arith.constant 0 : index
    %c6 = arith.constant 6 : index
    %17 = vector.load %arg1[%c0_17, %c0_18, %c6] : memref<1x32x38xbf16, #tpu.memory_space<vmem>>, vector<1x32x24xbf16>
    %18 = vector.shape_cast %17 : vector<1x32x24xbf16> to vector<32x24xbf16>
    %c3 = arith.constant 3 : index
    %c0_19 = arith.constant 0 : index
    %c0_20 = arith.constant 0 : index
    %19 = vector.load %arg2[%c3, %c0_19, %c0_20] : memref<9x32x32xbf16, #tpu.memory_space<vmem>>, vector<1x32x32xbf16>
    %20 = vector.shape_cast %19 : vector<1x32x32xbf16> to vector<32x32xbf16>
    %cst_21 = arith.constant dense<0.000000e+00> : vector<32x24xf32>
    %21 = tpu.matmul %20, %18, %cst_21 {dimension_numbers = #tpu.dot_dimension_numbers<[1], [0], [0], [1], [0, 0, 1, 1], [], []>} : vector<32x32xbf16>, vector<32x24xbf16>, vector<32x24xf32> -> vector<32x24xf32>
    %22 = arith.addf %16, %21 : vector<32x24xf32>
    %c0_22 = arith.constant 0 : index
    %c0_23 = arith.constant 0 : index
    %c7 = arith.constant 7 : index
    %23 = vector.load %arg1[%c0_22, %c0_23, %c7] : memref<1x32x38xbf16, #tpu.memory_space<vmem>>, vector<1x32x24xbf16>
    %24 = vector.shape_cast %23 : vector<1x32x24xbf16> to vector<32x24xbf16>
    %c4 = arith.constant 4 : index
    %c0_24 = arith.constant 0 : index
    %c0_25 = arith.constant 0 : index
    %25 = vector.load %arg2[%c4, %c0_24, %c0_25] : memref<9x32x32xbf16, #tpu.memory_space<vmem>>, vector<1x32x32xbf16>
    %26 = vector.shape_cast %25 : vector<1x32x32xbf16> to vector<32x32xbf16>
    %cst_26 = arith.constant dense<0.000000e+00> : vector<32x24xf32>
    %27 = tpu.matmul %26, %24, %cst_26 {dimension_numbers = #tpu.dot_dimension_numbers<[1], [0], [0], [1], [0, 0, 1, 1], [], []>} : vector<32x32xbf16>, vector<32x24xbf16>, vector<32x24xf32> -> vector<32x24xf32>
    %28 = arith.addf %22, %27 : vector<32x24xf32>
    %c0_27 = arith.constant 0 : index
    %c0_28 = arith.constant 0 : index
    %c8 = arith.constant 8 : index
    %29 = vector.load %arg1[%c0_27, %c0_28, %c8] : memref<1x32x38xbf16, #tpu.memory_space<vmem>>, vector<1x32x24xbf16>
    %30 = vector.shape_cast %29 : vector<1x32x24xbf16> to vector<32x24xbf16>
    %c5 = arith.constant 5 : index
    %c0_29 = arith.constant 0 : index
    %c0_30 = arith.constant 0 : index
    %31 = vector.load %arg2[%c5, %c0_29, %c0_30] : memref<9x32x32xbf16, #tpu.memory_space<vmem>>, vector<1x32x32xbf16>
    %32 = vector.shape_cast %31 : vector<1x32x32xbf16> to vector<32x32xbf16>
    %cst_31 = arith.constant dense<0.000000e+00> : vector<32x24xf32>
    %33 = tpu.matmul %32, %30, %cst_31 {dimension_numbers = #tpu.dot_dimension_numbers<[1], [0], [0], [1], [0, 0, 1, 1], [], []>} : vector<32x32xbf16>, vector<32x24xbf16>, vector<32x24xf32> -> vector<32x24xf32>
    %34 = arith.addf %28, %33 : vector<32x24xf32>
    %c0_32 = arith.constant 0 : index
    %c0_33 = arith.constant 0 : index
    %c12 = arith.constant 12 : index
    %35 = vector.load %arg1[%c0_32, %c0_33, %c12] : memref<1x32x38xbf16, #tpu.memory_space<vmem>>, vector<1x32x24xbf16>
    %36 = vector.shape_cast %35 : vector<1x32x24xbf16> to vector<32x24xbf16>
    %c6_34 = arith.constant 6 : index
    %c0_35 = arith.constant 0 : index
    %c0_36 = arith.constant 0 : index
    %37 = vector.load %arg2[%c6_34, %c0_35, %c0_36] : memref<9x32x32xbf16, #tpu.memory_space<vmem>>, vector<1x32x32xbf16>
    %38 = vector.shape_cast %37 : vector<1x32x32xbf16> to vector<32x32xbf16>
    %cst_37 = arith.constant dense<0.000000e+00> : vector<32x24xf32>
    %39 = tpu.matmul %38, %36, %cst_37 {dimension_numbers = #tpu.dot_dimension_numbers<[1], [0], [0], [1], [0, 0, 1, 1], [], []>} : vector<32x32xbf16>, vector<32x24xbf16>, vector<32x24xf32> -> vector<32x24xf32>
    %40 = arith.addf %34, %39 : vector<32x24xf32>
    %c0_38 = arith.constant 0 : index
    %c0_39 = arith.constant 0 : index
    %c13 = arith.constant 13 : index
    %41 = vector.load %arg1[%c0_38, %c0_39, %c13] : memref<1x32x38xbf16, #tpu.memory_space<vmem>>, vector<1x32x24xbf16>
    %42 = vector.shape_cast %41 : vector<1x32x24xbf16> to vector<32x24xbf16>
    %c7_40 = arith.constant 7 : index
    %c0_41 = arith.constant 0 : index
    %c0_42 = arith.constant 0 : index
    %43 = vector.load %arg2[%c7_40, %c0_41, %c0_42] : memref<9x32x32xbf16, #tpu.memory_space<vmem>>, vector<1x32x32xbf16>
    %44 = vector.shape_cast %43 : vector<1x32x32xbf16> to vector<32x32xbf16>
    %cst_43 = arith.constant dense<0.000000e+00> : vector<32x24xf32>
    %45 = tpu.matmul %44, %42, %cst_43 {dimension_numbers = #tpu.dot_dimension_numbers<[1], [0], [0], [1], [0, 0, 1, 1], [], []>} : vector<32x32xbf16>, vector<32x24xbf16>, vector<32x24xf32> -> vector<32x24xf32>
    %46 = arith.addf %40, %45 : vector<32x24xf32>
    %c0_44 = arith.constant 0 : index
    %c0_45 = arith.constant 0 : index
    %c14 = arith.constant 14 : index
    %47 = vector.load %arg1[%c0_44, %c0_45, %c14] : memref<1x32x38xbf16, #tpu.memory_space<vmem>>, vector<1x32x24xbf16>
    %48 = vector.shape_cast %47 : vector<1x32x24xbf16> to vector<32x24xbf16>
    %c8_46 = arith.constant 8 : index
    %c0_47 = arith.constant 0 : index
    %c0_48 = arith.constant 0 : index
    %49 = vector.load %arg2[%c8_46, %c0_47, %c0_48] : memref<9x32x32xbf16, #tpu.memory_space<vmem>>, vector<1x32x32xbf16>
    %50 = vector.shape_cast %49 : vector<1x32x32xbf16> to vector<32x32xbf16>
    %cst_49 = arith.constant dense<0.000000e+00> : vector<32x24xf32>
    %51 = tpu.matmul %50, %48, %cst_49 {dimension_numbers = #tpu.dot_dimension_numbers<[1], [0], [0], [1], [0, 0, 1, 1], [], []>} : vector<32x32xbf16>, vector<32x24xbf16>, vector<32x24xf32> -> vector<32x24xf32>
    %52 = arith.addf %46, %51 : vector<32x24xf32>
    %c0_50 = arith.constant 0 : index
    %c0_51 = arith.constant 0 : index
    %53 = vector.load %arg3[%c0_50, %c0_51] : memref<32x1xf32, #tpu.memory_space<vmem>>, vector<32x1xf32>
    %54 = vector.broadcast %53 : vector<32x1xf32> to vector<32x24xf32>
    %55 = arith.addf %52, %54 : vector<32x24xf32>
    %cst_52 = arith.constant 0.000000e+00 : f32
    %56 = vector.broadcast %cst_52 : f32 to vector<32x24xf32>
    %57 = arith.maximumf %55, %56 : vector<32x24xf32>
    %58 = arith.truncf %57 : vector<32x24xf32> to vector<32x24xbf16>
    %c0_53 = arith.constant 0 : index
    %c0_54 = arith.constant 0 : index
    %c0_55 = arith.constant 0 : index
    %59 = vector.load %arg4[%c0_53, %c0_54, %c0_55] : memref<1x32x24xbf16, #tpu.memory_space<vmem>>, vector<1x32x24xbf16>
    %60 = vector.shape_cast %59 : vector<1x32x24xbf16> to vector<32x24xbf16>
    %61 = vector.shape_cast %58 : vector<32x24xbf16> to vector<1x32x24xbf16>
    tpu.vector_store %arg4[%c0_53, %c0_54, %c0_55], %61 {strides = array<i32>} : memref<1x32x24xbf16, #tpu.memory_space<vmem>>, vector<1x32x24xbf16>,
    return
  }
  func.func @transform_0(%arg0: i32) -> (i32, i32, i32) {
    %c0_i32 = arith.constant 0 : i32
    %c0_i32_0 = arith.constant 0 : i32
    %c0_i32_1 = arith.constant 0 : i32
    return %arg0, %c0_i32, %c0_i32_0 : i32, i32, i32
  }
  func.func @transform_1(%arg0: i32) -> (i32, i32, i32) {
    %c0_i32 = arith.constant 0 : i32
    %c0_i32_0 = arith.constant 0 : i32
    %c0_i32_1 = arith.constant 0 : i32
    %c0_i32_2 = arith.constant 0 : i32
    return %c0_i32, %c0_i32_0, %c0_i32_1 : i32, i32, i32
  }
  func.func @transform_2(%arg0: i32) -> (i32, i32) {
    %c0_i32 = arith.constant 0 : i32
    %c0_i32_0 = arith.constant 0 : i32
    %c0_i32_1 = arith.constant 0 : i32
    return %c0_i32, %c0_i32_0 : i32, i32
  }
  func.func @transform_3(%arg0: i32) -> (i32, i32, i32) {
    %c0_i32 = arith.constant 0 : i32
    %c0_i32_0 = arith.constant 0 : i32
    %c0_i32_1 = arith.constant 0 : i32
    return %arg0, %c0_i32, %c0_i32_0 : i32, i32, i32
  }
}

module attributes {stable_mosaic.version = 11 : i64} {
  func.func @kernel(%arg0: i32, %arg1: memref<1x48x102xbf16, #tpu.memory_space<vmem>>, %arg2: memref<9x16x48xbf16, #tpu.memory_space<vmem>>, %arg3: memref<16x1xf32, #tpu.memory_space<vmem>>, %arg4: memref<1x16x80xbf16, #tpu.memory_space<vmem>>) attributes {dimension_semantics = [#tpu.dimension_semantics<parallel>], iteration_bounds = array<i64: 24>, scalar_prefetch = 0 : i64, scratch_operands = 0 : i64, tpu.core_type = #tpu.core_type<tc>, window_params = [{transform_indices = @transform_0, window_bounds = array<i64: 1, 48, 102>}, {pipeline_mode = #tpu.pipeline_mode<synchronous>, transform_indices = @transform_1, window_bounds = array<i64: 9, 16, 48>}, {pipeline_mode = #tpu.pipeline_mode<synchronous>, transform_indices = @transform_2, window_bounds = array<i64: 16, 1>}, {transform_indices = @transform_3, window_bounds = array<i64: 1, 16, 80>}]} {
    %c0 = arith.constant 0 : index
    %c0_0 = arith.constant 0 : index
    %c0_1 = arith.constant 0 : index
    %0 = vector.load %arg1[%c0, %c0_0, %c0_1] : memref<1x48x102xbf16, #tpu.memory_space<vmem>>, vector<1x48x80xbf16>
    %1 = vector.shape_cast %0 : vector<1x48x80xbf16> to vector<48x80xbf16>
    %c0_2 = arith.constant 0 : index
    %c0_3 = arith.constant 0 : index
    %c0_4 = arith.constant 0 : index
    %2 = vector.load %arg2[%c0_2, %c0_3, %c0_4] : memref<9x16x48xbf16, #tpu.memory_space<vmem>>, vector<1x16x48xbf16>
    %3 = vector.shape_cast %2 : vector<1x16x48xbf16> to vector<16x48xbf16>
    %cst = arith.constant dense<0.000000e+00> : vector<16x80xf32>
    %4 = tpu.matmul %3, %1, %cst {dimension_numbers = #tpu.dot_dimension_numbers<[1], [0], [0], [1], [0, 0, 1, 1], [], []>} : vector<16x48xbf16>, vector<48x80xbf16>, vector<16x80xf32> -> vector<16x80xf32>
    %c0_5 = arith.constant 0 : index
    %c0_6 = arith.constant 0 : index
    %c1 = arith.constant 1 : index
    %5 = vector.load %arg1[%c0_5, %c0_6, %c1] : memref<1x48x102xbf16, #tpu.memory_space<vmem>>, vector<1x48x80xbf16>
    %6 = vector.shape_cast %5 : vector<1x48x80xbf16> to vector<48x80xbf16>
    %c1_7 = arith.constant 1 : index
    %c0_8 = arith.constant 0 : index
    %c0_9 = arith.constant 0 : index
    %7 = vector.load %arg2[%c1_7, %c0_8, %c0_9] : memref<9x16x48xbf16, #tpu.memory_space<vmem>>, vector<1x16x48xbf16>
    %8 = vector.shape_cast %7 : vector<1x16x48xbf16> to vector<16x48xbf16>
    %cst_10 = arith.constant dense<0.000000e+00> : vector<16x80xf32>
    %9 = tpu.matmul %8, %6, %cst_10 {dimension_numbers = #tpu.dot_dimension_numbers<[1], [0], [0], [1], [0, 0, 1, 1], [], []>} : vector<16x48xbf16>, vector<48x80xbf16>, vector<16x80xf32> -> vector<16x80xf32>
    %10 = arith.addf %4, %9 : vector<16x80xf32>
    %c0_11 = arith.constant 0 : index
    %c0_12 = arith.constant 0 : index
    %c2 = arith.constant 2 : index
    %11 = vector.load %arg1[%c0_11, %c0_12, %c2] : memref<1x48x102xbf16, #tpu.memory_space<vmem>>, vector<1x48x80xbf16>
    %12 = vector.shape_cast %11 : vector<1x48x80xbf16> to vector<48x80xbf16>
    %c2_13 = arith.constant 2 : index
    %c0_14 = arith.constant 0 : index
    %c0_15 = arith.constant 0 : index
    %13 = vector.load %arg2[%c2_13, %c0_14, %c0_15] : memref<9x16x48xbf16, #tpu.memory_space<vmem>>, vector<1x16x48xbf16>
    %14 = vector.shape_cast %13 : vector<1x16x48xbf16> to vector<16x48xbf16>
    %cst_16 = arith.constant dense<0.000000e+00> : vector<16x80xf32>
    %15 = tpu.matmul %14, %12, %cst_16 {dimension_numbers = #tpu.dot_dimension_numbers<[1], [0], [0], [1], [0, 0, 1, 1], [], []>} : vector<16x48xbf16>, vector<48x80xbf16>, vector<16x80xf32> -> vector<16x80xf32>
    %16 = arith.addf %10, %15 : vector<16x80xf32>
    %c0_17 = arith.constant 0 : index
    %c0_18 = arith.constant 0 : index
    %c10 = arith.constant 10 : index
    %17 = vector.load %arg1[%c0_17, %c0_18, %c10] : memref<1x48x102xbf16, #tpu.memory_space<vmem>>, vector<1x48x80xbf16>
    %18 = vector.shape_cast %17 : vector<1x48x80xbf16> to vector<48x80xbf16>
    %c3 = arith.constant 3 : index
    %c0_19 = arith.constant 0 : index
    %c0_20 = arith.constant 0 : index
    %19 = vector.load %arg2[%c3, %c0_19, %c0_20] : memref<9x16x48xbf16, #tpu.memory_space<vmem>>, vector<1x16x48xbf16>
    %20 = vector.shape_cast %19 : vector<1x16x48xbf16> to vector<16x48xbf16>
    %cst_21 = arith.constant dense<0.000000e+00> : vector<16x80xf32>
    %21 = tpu.matmul %20, %18, %cst_21 {dimension_numbers = #tpu.dot_dimension_numbers<[1], [0], [0], [1], [0, 0, 1, 1], [], []>} : vector<16x48xbf16>, vector<48x80xbf16>, vector<16x80xf32> -> vector<16x80xf32>
    %22 = arith.addf %16, %21 : vector<16x80xf32>
    %c0_22 = arith.constant 0 : index
    %c0_23 = arith.constant 0 : index
    %c11 = arith.constant 11 : index
    %23 = vector.load %arg1[%c0_22, %c0_23, %c11] : memref<1x48x102xbf16, #tpu.memory_space<vmem>>, vector<1x48x80xbf16>
    %24 = vector.shape_cast %23 : vector<1x48x80xbf16> to vector<48x80xbf16>
    %c4 = arith.constant 4 : index
    %c0_24 = arith.constant 0 : index
    %c0_25 = arith.constant 0 : index
    %25 = vector.load %arg2[%c4, %c0_24, %c0_25] : memref<9x16x48xbf16, #tpu.memory_space<vmem>>, vector<1x16x48xbf16>
    %26 = vector.shape_cast %25 : vector<1x16x48xbf16> to vector<16x48xbf16>
    %cst_26 = arith.constant dense<0.000000e+00> : vector<16x80xf32>
    %27 = tpu.matmul %26, %24, %cst_26 {dimension_numbers = #tpu.dot_dimension_numbers<[1], [0], [0], [1], [0, 0, 1, 1], [], []>} : vector<16x48xbf16>, vector<48x80xbf16>, vector<16x80xf32> -> vector<16x80xf32>
    %28 = arith.addf %22, %27 : vector<16x80xf32>
    %c0_27 = arith.constant 0 : index
    %c0_28 = arith.constant 0 : index
    %c12 = arith.constant 12 : index
    %29 = vector.load %arg1[%c0_27, %c0_28, %c12] : memref<1x48x102xbf16, #tpu.memory_space<vmem>>, vector<1x48x80xbf16>
    %30 = vector.shape_cast %29 : vector<1x48x80xbf16> to vector<48x80xbf16>
    %c5 = arith.constant 5 : index
    %c0_29 = arith.constant 0 : index
    %c0_30 = arith.constant 0 : index
    %31 = vector.load %arg2[%c5, %c0_29, %c0_30] : memref<9x16x48xbf16, #tpu.memory_space<vmem>>, vector<1x16x48xbf16>
    %32 = vector.shape_cast %31 : vector<1x16x48xbf16> to vector<16x48xbf16>
    %cst_31 = arith.constant dense<0.000000e+00> : vector<16x80xf32>
    %33 = tpu.matmul %32, %30, %cst_31 {dimension_numbers = #tpu.dot_dimension_numbers<[1], [0], [0], [1], [0, 0, 1, 1], [], []>} : vector<16x48xbf16>, vector<48x80xbf16>, vector<16x80xf32> -> vector<16x80xf32>
    %34 = arith.addf %28, %33 : vector<16x80xf32>
    %c0_32 = arith.constant 0 : index
    %c0_33 = arith.constant 0 : index
    %c20 = arith.constant 20 : index
    %35 = vector.load %arg1[%c0_32, %c0_33, %c20] : memref<1x48x102xbf16, #tpu.memory_space<vmem>>, vector<1x48x80xbf16>
    %36 = vector.shape_cast %35 : vector<1x48x80xbf16> to vector<48x80xbf16>
    %c6 = arith.constant 6 : index
    %c0_34 = arith.constant 0 : index
    %c0_35 = arith.constant 0 : index
    %37 = vector.load %arg2[%c6, %c0_34, %c0_35] : memref<9x16x48xbf16, #tpu.memory_space<vmem>>, vector<1x16x48xbf16>
    %38 = vector.shape_cast %37 : vector<1x16x48xbf16> to vector<16x48xbf16>
    %cst_36 = arith.constant dense<0.000000e+00> : vector<16x80xf32>
    %39 = tpu.matmul %38, %36, %cst_36 {dimension_numbers = #tpu.dot_dimension_numbers<[1], [0], [0], [1], [0, 0, 1, 1], [], []>} : vector<16x48xbf16>, vector<48x80xbf16>, vector<16x80xf32> -> vector<16x80xf32>
    %40 = arith.addf %34, %39 : vector<16x80xf32>
    %c0_37 = arith.constant 0 : index
    %c0_38 = arith.constant 0 : index
    %c21 = arith.constant 21 : index
    %41 = vector.load %arg1[%c0_37, %c0_38, %c21] : memref<1x48x102xbf16, #tpu.memory_space<vmem>>, vector<1x48x80xbf16>
    %42 = vector.shape_cast %41 : vector<1x48x80xbf16> to vector<48x80xbf16>
    %c7 = arith.constant 7 : index
    %c0_39 = arith.constant 0 : index
    %c0_40 = arith.constant 0 : index
    %43 = vector.load %arg2[%c7, %c0_39, %c0_40] : memref<9x16x48xbf16, #tpu.memory_space<vmem>>, vector<1x16x48xbf16>
    %44 = vector.shape_cast %43 : vector<1x16x48xbf16> to vector<16x48xbf16>
    %cst_41 = arith.constant dense<0.000000e+00> : vector<16x80xf32>
    %45 = tpu.matmul %44, %42, %cst_41 {dimension_numbers = #tpu.dot_dimension_numbers<[1], [0], [0], [1], [0, 0, 1, 1], [], []>} : vector<16x48xbf16>, vector<48x80xbf16>, vector<16x80xf32> -> vector<16x80xf32>
    %46 = arith.addf %40, %45 : vector<16x80xf32>
    %c0_42 = arith.constant 0 : index
    %c0_43 = arith.constant 0 : index
    %c22 = arith.constant 22 : index
    %47 = vector.load %arg1[%c0_42, %c0_43, %c22] : memref<1x48x102xbf16, #tpu.memory_space<vmem>>, vector<1x48x80xbf16>
    %48 = vector.shape_cast %47 : vector<1x48x80xbf16> to vector<48x80xbf16>
    %c8 = arith.constant 8 : index
    %c0_44 = arith.constant 0 : index
    %c0_45 = arith.constant 0 : index
    %49 = vector.load %arg2[%c8, %c0_44, %c0_45] : memref<9x16x48xbf16, #tpu.memory_space<vmem>>, vector<1x16x48xbf16>
    %50 = vector.shape_cast %49 : vector<1x16x48xbf16> to vector<16x48xbf16>
    %cst_46 = arith.constant dense<0.000000e+00> : vector<16x80xf32>
    %51 = tpu.matmul %50, %48, %cst_46 {dimension_numbers = #tpu.dot_dimension_numbers<[1], [0], [0], [1], [0, 0, 1, 1], [], []>} : vector<16x48xbf16>, vector<48x80xbf16>, vector<16x80xf32> -> vector<16x80xf32>
    %52 = arith.addf %46, %51 : vector<16x80xf32>
    %c0_47 = arith.constant 0 : index
    %c0_48 = arith.constant 0 : index
    %53 = vector.load %arg3[%c0_47, %c0_48] : memref<16x1xf32, #tpu.memory_space<vmem>>, vector<16x1xf32>
    %54 = vector.broadcast %53 : vector<16x1xf32> to vector<16x80xf32>
    %55 = arith.addf %52, %54 : vector<16x80xf32>
    %cst_49 = arith.constant 0.000000e+00 : f32
    %56 = vector.broadcast %cst_49 : f32 to vector<16x80xf32>
    %57 = arith.maximumf %55, %56 : vector<16x80xf32>
    %58 = arith.truncf %57 : vector<16x80xf32> to vector<16x80xbf16>
    %c0_50 = arith.constant 0 : index
    %c0_51 = arith.constant 0 : index
    %c0_52 = arith.constant 0 : index
    %59 = vector.load %arg4[%c0_50, %c0_51, %c0_52] : memref<1x16x80xbf16, #tpu.memory_space<vmem>>, vector<1x16x80xbf16>
    %60 = vector.shape_cast %59 : vector<1x16x80xbf16> to vector<16x80xbf16>
    %61 = vector.shape_cast %58 : vector<16x80xbf16> to vector<1x16x80xbf16>
    tpu.vector_store %arg4[%c0_50, %c0_51, %c0_52], %61 {strides = array<i32>} : memref<1x16x80xbf16, #tpu.memory_space<vmem>>, vector<1x16x80xbf16>,
    return
  }
  func.func @transform_0(%arg0: i32) -> (i32, i32, i32) {
    %c0_i32 = arith.constant 0 : i32
    %c0_i32_0 = arith.constant 0 : i32
    %c0_i32_1 = arith.constant 0 : i32
    return %arg0, %c0_i32, %c0_i32_0 : i32, i32, i32
  }
  func.func @transform_1(%arg0: i32) -> (i32, i32, i32) {
    %c0_i32 = arith.constant 0 : i32
    %c0_i32_0 = arith.constant 0 : i32
    %c0_i32_1 = arith.constant 0 : i32
    %c0_i32_2 = arith.constant 0 : i32
    return %c0_i32, %c0_i32_0, %c0_i32_1 : i32, i32, i32
  }
  func.func @transform_2(%arg0: i32) -> (i32, i32) {
    %c0_i32 = arith.constant 0 : i32
    %c0_i32_0 = arith.constant 0 : i32
    %c0_i32_1 = arith.constant 0 : i32
    return %c0_i32, %c0_i32_0 : i32, i32
  }
  func.func @transform_3(%arg0: i32) -> (i32, i32, i32) {
    %c0_i32 = arith.constant 0 : i32
    %c0_i32_0 = arith.constant 0 : i32
    %c0_i32_1 = arith.constant 0 : i32
    return %arg0, %c0_i32, %c0_i32_0 : i32, i32, i32
  }
}

module attributes {stable_mosaic.version = 11 : i64} {
  func.func @kernel(%arg0: i32, %arg1: memref<1x24x326xbf16, #tpu.memory_space<vmem>>, %arg2: memref<9x8x24xbf16, #tpu.memory_space<vmem>>, %arg3: memref<8x1xf32, #tpu.memory_space<vmem>>, %arg4: memref<1x8x288xbf16, #tpu.memory_space<vmem>>) attributes {dimension_semantics = [#tpu.dimension_semantics<parallel>], iteration_bounds = array<i64: 24>, scalar_prefetch = 0 : i64, scratch_operands = 0 : i64, tpu.core_type = #tpu.core_type<tc>, window_params = [{transform_indices = @transform_0, window_bounds = array<i64: 1, 24, 326>}, {pipeline_mode = #tpu.pipeline_mode<synchronous>, transform_indices = @transform_1, window_bounds = array<i64: 9, 8, 24>}, {pipeline_mode = #tpu.pipeline_mode<synchronous>, transform_indices = @transform_2, window_bounds = array<i64: 8, 1>}, {transform_indices = @transform_3, window_bounds = array<i64: 1, 8, 288>}]} {
    %c0 = arith.constant 0 : index
    %c0_0 = arith.constant 0 : index
    %c0_1 = arith.constant 0 : index
    %0 = vector.load %arg1[%c0, %c0_0, %c0_1] : memref<1x24x326xbf16, #tpu.memory_space<vmem>>, vector<1x24x288xbf16>
    %1 = vector.shape_cast %0 : vector<1x24x288xbf16> to vector<24x288xbf16>
    %c0_2 = arith.constant 0 : index
    %c0_3 = arith.constant 0 : index
    %c0_4 = arith.constant 0 : index
    %2 = vector.load %arg2[%c0_2, %c0_3, %c0_4] : memref<9x8x24xbf16, #tpu.memory_space<vmem>>, vector<1x8x24xbf16>
    %3 = vector.shape_cast %2 : vector<1x8x24xbf16> to vector<8x24xbf16>
    %cst = arith.constant dense<0.000000e+00> : vector<8x288xf32>
    %4 = tpu.matmul %3, %1, %cst {dimension_numbers = #tpu.dot_dimension_numbers<[1], [0], [0], [1], [0, 0, 1, 1], [], []>} : vector<8x24xbf16>, vector<24x288xbf16>, vector<8x288xf32> -> vector<8x288xf32>
    %c0_5 = arith.constant 0 : index
    %c0_6 = arith.constant 0 : index
    %c1 = arith.constant 1 : index
    %5 = vector.load %arg1[%c0_5, %c0_6, %c1] : memref<1x24x326xbf16, #tpu.memory_space<vmem>>, vector<1x24x288xbf16>
    %6 = vector.shape_cast %5 : vector<1x24x288xbf16> to vector<24x288xbf16>
    %c1_7 = arith.constant 1 : index
    %c0_8 = arith.constant 0 : index
    %c0_9 = arith.constant 0 : index
    %7 = vector.load %arg2[%c1_7, %c0_8, %c0_9] : memref<9x8x24xbf16, #tpu.memory_space<vmem>>, vector<1x8x24xbf16>
    %8 = vector.shape_cast %7 : vector<1x8x24xbf16> to vector<8x24xbf16>
    %cst_10 = arith.constant dense<0.000000e+00> : vector<8x288xf32>
    %9 = tpu.matmul %8, %6, %cst_10 {dimension_numbers = #tpu.dot_dimension_numbers<[1], [0], [0], [1], [0, 0, 1, 1], [], []>} : vector<8x24xbf16>, vector<24x288xbf16>, vector<8x288xf32> -> vector<8x288xf32>
    %10 = arith.addf %4, %9 : vector<8x288xf32>
    %c0_11 = arith.constant 0 : index
    %c0_12 = arith.constant 0 : index
    %c2 = arith.constant 2 : index
    %11 = vector.load %arg1[%c0_11, %c0_12, %c2] : memref<1x24x326xbf16, #tpu.memory_space<vmem>>, vector<1x24x288xbf16>
    %12 = vector.shape_cast %11 : vector<1x24x288xbf16> to vector<24x288xbf16>
    %c2_13 = arith.constant 2 : index
    %c0_14 = arith.constant 0 : index
    %c0_15 = arith.constant 0 : index
    %13 = vector.load %arg2[%c2_13, %c0_14, %c0_15] : memref<9x8x24xbf16, #tpu.memory_space<vmem>>, vector<1x8x24xbf16>
    %14 = vector.shape_cast %13 : vector<1x8x24xbf16> to vector<8x24xbf16>
    %cst_16 = arith.constant dense<0.000000e+00> : vector<8x288xf32>
    %15 = tpu.matmul %14, %12, %cst_16 {dimension_numbers = #tpu.dot_dimension_numbers<[1], [0], [0], [1], [0, 0, 1, 1], [], []>} : vector<8x24xbf16>, vector<24x288xbf16>, vector<8x288xf32> -> vector<8x288xf32>
    %16 = arith.addf %10, %15 : vector<8x288xf32>
    %c0_17 = arith.constant 0 : index
    %c0_18 = arith.constant 0 : index
    %c18 = arith.constant 18 : index
    %17 = vector.load %arg1[%c0_17, %c0_18, %c18] : memref<1x24x326xbf16, #tpu.memory_space<vmem>>, vector<1x24x288xbf16>
    %18 = vector.shape_cast %17 : vector<1x24x288xbf16> to vector<24x288xbf16>
    %c3 = arith.constant 3 : index
    %c0_19 = arith.constant 0 : index
    %c0_20 = arith.constant 0 : index
    %19 = vector.load %arg2[%c3, %c0_19, %c0_20] : memref<9x8x24xbf16, #tpu.memory_space<vmem>>, vector<1x8x24xbf16>
    %20 = vector.shape_cast %19 : vector<1x8x24xbf16> to vector<8x24xbf16>
    %cst_21 = arith.constant dense<0.000000e+00> : vector<8x288xf32>
    %21 = tpu.matmul %20, %18, %cst_21 {dimension_numbers = #tpu.dot_dimension_numbers<[1], [0], [0], [1], [0, 0, 1, 1], [], []>} : vector<8x24xbf16>, vector<24x288xbf16>, vector<8x288xf32> -> vector<8x288xf32>
    %22 = arith.addf %16, %21 : vector<8x288xf32>
    %c0_22 = arith.constant 0 : index
    %c0_23 = arith.constant 0 : index
    %c19 = arith.constant 19 : index
    %23 = vector.load %arg1[%c0_22, %c0_23, %c19] : memref<1x24x326xbf16, #tpu.memory_space<vmem>>, vector<1x24x288xbf16>
    %24 = vector.shape_cast %23 : vector<1x24x288xbf16> to vector<24x288xbf16>
    %c4 = arith.constant 4 : index
    %c0_24 = arith.constant 0 : index
    %c0_25 = arith.constant 0 : index
    %25 = vector.load %arg2[%c4, %c0_24, %c0_25] : memref<9x8x24xbf16, #tpu.memory_space<vmem>>, vector<1x8x24xbf16>
    %26 = vector.shape_cast %25 : vector<1x8x24xbf16> to vector<8x24xbf16>
    %cst_26 = arith.constant dense<0.000000e+00> : vector<8x288xf32>
    %27 = tpu.matmul %26, %24, %cst_26 {dimension_numbers = #tpu.dot_dimension_numbers<[1], [0], [0], [1], [0, 0, 1, 1], [], []>} : vector<8x24xbf16>, vector<24x288xbf16>, vector<8x288xf32> -> vector<8x288xf32>
    %28 = arith.addf %22, %27 : vector<8x288xf32>
    %c0_27 = arith.constant 0 : index
    %c0_28 = arith.constant 0 : index
    %c20 = arith.constant 20 : index
    %29 = vector.load %arg1[%c0_27, %c0_28, %c20] : memref<1x24x326xbf16, #tpu.memory_space<vmem>>, vector<1x24x288xbf16>
    %30 = vector.shape_cast %29 : vector<1x24x288xbf16> to vector<24x288xbf16>
    %c5 = arith.constant 5 : index
    %c0_29 = arith.constant 0 : index
    %c0_30 = arith.constant 0 : index
    %31 = vector.load %arg2[%c5, %c0_29, %c0_30] : memref<9x8x24xbf16, #tpu.memory_space<vmem>>, vector<1x8x24xbf16>
    %32 = vector.shape_cast %31 : vector<1x8x24xbf16> to vector<8x24xbf16>
    %cst_31 = arith.constant dense<0.000000e+00> : vector<8x288xf32>
    %33 = tpu.matmul %32, %30, %cst_31 {dimension_numbers = #tpu.dot_dimension_numbers<[1], [0], [0], [1], [0, 0, 1, 1], [], []>} : vector<8x24xbf16>, vector<24x288xbf16>, vector<8x288xf32> -> vector<8x288xf32>
    %34 = arith.addf %28, %33 : vector<8x288xf32>
    %c0_32 = arith.constant 0 : index
    %c0_33 = arith.constant 0 : index
    %c36 = arith.constant 36 : index
    %35 = vector.load %arg1[%c0_32, %c0_33, %c36] : memref<1x24x326xbf16, #tpu.memory_space<vmem>>, vector<1x24x288xbf16>
    %36 = vector.shape_cast %35 : vector<1x24x288xbf16> to vector<24x288xbf16>
    %c6 = arith.constant 6 : index
    %c0_34 = arith.constant 0 : index
    %c0_35 = arith.constant 0 : index
    %37 = vector.load %arg2[%c6, %c0_34, %c0_35] : memref<9x8x24xbf16, #tpu.memory_space<vmem>>, vector<1x8x24xbf16>
    %38 = vector.shape_cast %37 : vector<1x8x24xbf16> to vector<8x24xbf16>
    %cst_36 = arith.constant dense<0.000000e+00> : vector<8x288xf32>
    %39 = tpu.matmul %38, %36, %cst_36 {dimension_numbers = #tpu.dot_dimension_numbers<[1], [0], [0], [1], [0, 0, 1, 1], [], []>} : vector<8x24xbf16>, vector<24x288xbf16>, vector<8x288xf32> -> vector<8x288xf32>
    %40 = arith.addf %34, %39 : vector<8x288xf32>
    %c0_37 = arith.constant 0 : index
    %c0_38 = arith.constant 0 : index
    %c37 = arith.constant 37 : index
    %41 = vector.load %arg1[%c0_37, %c0_38, %c37] : memref<1x24x326xbf16, #tpu.memory_space<vmem>>, vector<1x24x288xbf16>
    %42 = vector.shape_cast %41 : vector<1x24x288xbf16> to vector<24x288xbf16>
    %c7 = arith.constant 7 : index
    %c0_39 = arith.constant 0 : index
    %c0_40 = arith.constant 0 : index
    %43 = vector.load %arg2[%c7, %c0_39, %c0_40] : memref<9x8x24xbf16, #tpu.memory_space<vmem>>, vector<1x8x24xbf16>
    %44 = vector.shape_cast %43 : vector<1x8x24xbf16> to vector<8x24xbf16>
    %cst_41 = arith.constant dense<0.000000e+00> : vector<8x288xf32>
    %45 = tpu.matmul %44, %42, %cst_41 {dimension_numbers = #tpu.dot_dimension_numbers<[1], [0], [0], [1], [0, 0, 1, 1], [], []>} : vector<8x24xbf16>, vector<24x288xbf16>, vector<8x288xf32> -> vector<8x288xf32>
    %46 = arith.addf %40, %45 : vector<8x288xf32>
    %c0_42 = arith.constant 0 : index
    %c0_43 = arith.constant 0 : index
    %c38 = arith.constant 38 : index
    %47 = vector.load %arg1[%c0_42, %c0_43, %c38] : memref<1x24x326xbf16, #tpu.memory_space<vmem>>, vector<1x24x288xbf16>
    %48 = vector.shape_cast %47 : vector<1x24x288xbf16> to vector<24x288xbf16>
    %c8 = arith.constant 8 : index
    %c0_44 = arith.constant 0 : index
    %c0_45 = arith.constant 0 : index
    %49 = vector.load %arg2[%c8, %c0_44, %c0_45] : memref<9x8x24xbf16, #tpu.memory_space<vmem>>, vector<1x8x24xbf16>
    %50 = vector.shape_cast %49 : vector<1x8x24xbf16> to vector<8x24xbf16>
    %cst_46 = arith.constant dense<0.000000e+00> : vector<8x288xf32>
    %51 = tpu.matmul %50, %48, %cst_46 {dimension_numbers = #tpu.dot_dimension_numbers<[1], [0], [0], [1], [0, 0, 1, 1], [], []>} : vector<8x24xbf16>, vector<24x288xbf16>, vector<8x288xf32> -> vector<8x288xf32>
    %52 = arith.addf %46, %51 : vector<8x288xf32>
    %c0_47 = arith.constant 0 : index
    %c0_48 = arith.constant 0 : index
    %53 = vector.load %arg3[%c0_47, %c0_48] : memref<8x1xf32, #tpu.memory_space<vmem>>, vector<8x1xf32>
    %54 = vector.broadcast %53 : vector<8x1xf32> to vector<8x288xf32>
    %55 = arith.addf %52, %54 : vector<8x288xf32>
    %cst_49 = arith.constant 0.000000e+00 : f32
    %56 = vector.broadcast %cst_49 : f32 to vector<8x288xf32>
    %57 = arith.maximumf %55, %56 : vector<8x288xf32>
    %58 = arith.truncf %57 : vector<8x288xf32> to vector<8x288xbf16>
    %c0_50 = arith.constant 0 : index
    %c0_51 = arith.constant 0 : index
    %c0_52 = arith.constant 0 : index
    %59 = vector.load %arg4[%c0_50, %c0_51, %c0_52] : memref<1x8x288xbf16, #tpu.memory_space<vmem>>, vector<1x8x288xbf16>
    %60 = vector.shape_cast %59 : vector<1x8x288xbf16> to vector<8x288xbf16>
    %61 = vector.shape_cast %58 : vector<8x288xbf16> to vector<1x8x288xbf16>
    tpu.vector_store %arg4[%c0_50, %c0_51, %c0_52], %61 {strides = array<i32>} : memref<1x8x288xbf16, #tpu.memory_space<vmem>>, vector<1x8x288xbf16>,
    return
  }
  func.func @transform_0(%arg0: i32) -> (i32, i32, i32) {
    %c0_i32 = arith.constant 0 : i32
    %c0_i32_0 = arith.constant 0 : i32
    %c0_i32_1 = arith.constant 0 : i32
    return %arg0, %c0_i32, %c0_i32_0 : i32, i32, i32
  }
  func.func @transform_1(%arg0: i32) -> (i32, i32, i32) {
    %c0_i32 = arith.constant 0 : i32
    %c0_i32_0 = arith.constant 0 : i32
    %c0_i32_1 = arith.constant 0 : i32
    %c0_i32_2 = arith.constant 0 : i32
    return %c0_i32, %c0_i32_0, %c0_i32_1 : i32, i32, i32
  }
  func.func @transform_2(%arg0: i32) -> (i32, i32) {
    %c0_i32 = arith.constant 0 : i32
    %c0_i32_0 = arith.constant 0 : i32
    %c0_i32_1 = arith.constant 0 : i32
    return %c0_i32, %c0_i32_0 : i32, i32
  }
  func.func @transform_3(%arg0: i32) -> (i32, i32, i32) {
    %c0_i32 = arith.constant 0 : i32
    %c0_i32_0 = arith.constant 0 : i32
    %c0_i32_1 = arith.constant 0 : i32
    return %arg0, %c0_i32, %c0_i32_0 : i32, i32, i32
  }
}

module attributes {stable_mosaic.version = 11 : i64} {
  func.func @kernel(%arg0: i32, %arg1: memref<1x8x256xbf16, #tpu.memory_space<vmem>>, %arg2: memref<1x3x8xbf16, #tpu.memory_space<vmem>>, %arg3: memref<3x1xf32, #tpu.memory_space<vmem>>, %arg4: memref<1x3x256xf32, #tpu.memory_space<vmem>>) attributes {dimension_semantics = [#tpu.dimension_semantics<parallel>], iteration_bounds = array<i64: 24>, scalar_prefetch = 0 : i64, scratch_operands = 0 : i64, tpu.core_type = #tpu.core_type<tc>, window_params = [{transform_indices = @transform_0, window_bounds = array<i64: 1, 8, 256>}, {pipeline_mode = #tpu.pipeline_mode<synchronous>, transform_indices = @transform_1, window_bounds = array<i64: 1, 3, 8>}, {pipeline_mode = #tpu.pipeline_mode<synchronous>, transform_indices = @transform_2, window_bounds = array<i64: 3, 1>}, {transform_indices = @transform_3, window_bounds = array<i64: 1, 3, 256>}]} {
    %c0 = arith.constant 0 : index
    %c0_0 = arith.constant 0 : index
    %c0_1 = arith.constant 0 : index
    %0 = vector.load %arg1[%c0, %c0_0, %c0_1] : memref<1x8x256xbf16, #tpu.memory_space<vmem>>, vector<1x8x256xbf16>
    %1 = vector.shape_cast %0 : vector<1x8x256xbf16> to vector<8x256xbf16>
    %c0_2 = arith.constant 0 : index
    %c0_3 = arith.constant 0 : index
    %c0_4 = arith.constant 0 : index
    %2 = vector.load %arg2[%c0_2, %c0_3, %c0_4] : memref<1x3x8xbf16, #tpu.memory_space<vmem>>, vector<1x3x8xbf16>
    %3 = vector.shape_cast %2 : vector<1x3x8xbf16> to vector<3x8xbf16>
    %cst = arith.constant dense<0.000000e+00> : vector<3x256xf32>
    %4 = tpu.matmul %3, %1, %cst {dimension_numbers = #tpu.dot_dimension_numbers<[1], [0], [0], [1], [0, 0, 1, 1], [], []>} : vector<3x8xbf16>, vector<8x256xbf16>, vector<3x256xf32> -> vector<3x256xf32>
    %c0_5 = arith.constant 0 : index
    %c0_6 = arith.constant 0 : index
    %5 = vector.load %arg3[%c0_5, %c0_6] : memref<3x1xf32, #tpu.memory_space<vmem>>, vector<3x1xf32>
    %6 = vector.broadcast %5 : vector<3x1xf32> to vector<3x256xf32>
    %7 = arith.addf %4, %6 : vector<3x256xf32>
    %c0_7 = arith.constant 0 : index
    %c0_8 = arith.constant 0 : index
    %c0_9 = arith.constant 0 : index
    %8 = vector.load %arg4[%c0_7, %c0_8, %c0_9] : memref<1x3x256xf32, #tpu.memory_space<vmem>>, vector<1x3x256xf32>
    %9 = vector.shape_cast %8 : vector<1x3x256xf32> to vector<3x256xf32>
    %10 = vector.shape_cast %7 : vector<3x256xf32> to vector<1x3x256xf32>
    tpu.vector_store %arg4[%c0_7, %c0_8, %c0_9], %10 {strides = array<i32>} : memref<1x3x256xf32, #tpu.memory_space<vmem>>, vector<1x3x256xf32>,
    return
  }
  func.func @transform_0(%arg0: i32) -> (i32, i32, i32) {
    %c0_i32 = arith.constant 0 : i32
    %c0_i32_0 = arith.constant 0 : i32
    %c0_i32_1 = arith.constant 0 : i32
    return %arg0, %c0_i32, %c0_i32_0 : i32, i32, i32
  }
  func.func @transform_1(%arg0: i32) -> (i32, i32, i32) {
    %c0_i32 = arith.constant 0 : i32
    %c0_i32_0 = arith.constant 0 : i32
    %c0_i32_1 = arith.constant 0 : i32
    %c0_i32_2 = arith.constant 0 : i32
    return %c0_i32, %c0_i32_0, %c0_i32_1 : i32, i32, i32
  }
  func.func @transform_2(%arg0: i32) -> (i32, i32) {
    %c0_i32 = arith.constant 0 : i32
    %c0_i32_0 = arith.constant 0 : i32
    %c0_i32_1 = arith.constant 0 : i32
    return %c0_i32, %c0_i32_0 : i32, i32
  }
  func.func @transform_3(%arg0: i32) -> (i32, i32, i32) {
    %c0_i32 = arith.constant 0 : i32
    %c0_i32_0 = arith.constant 0 : i32
    %c0_i32_1 = arith.constant 0 : i32
    return %arg0, %c0_i32, %c0_i32_0 : i32, i32, i32
  }
}

module attributes {stable_mosaic.version = 11 : i64} {
  func.func @_combine_kernel(%arg0: i32, %arg1: i32, %arg2: i32, %arg3: memref<1x3x16x16xf32, #tpu.memory_space<vmem>>, %arg4: memref<1x16x16xf32, #tpu.memory_space<vmem>>, %arg5: memref<1x1x16x16xf32, #tpu.memory_space<vmem>>, %arg6: memref<1x3x16x16xf32, #tpu.memory_space<vmem>>) attributes {dimension_semantics = [#tpu.dimension_semantics<parallel>, #tpu.dimension_semantics<parallel>, #tpu.dimension_semantics<arbitrary>], iteration_bounds = array<i64: 4, 2, 3>, scalar_prefetch = 0 : i64, scratch_operands = 0 : i64, tpu.core_type = #tpu.core_type<tc>, window_params = [{transform_indices = @transform_0, window_bounds = array<i64: 1, 3, 16, 16>}, {transform_indices = @transform_1, window_bounds = array<i64: 1, 16, 16>}, {transform_indices = @transform_2, window_bounds = array<i64: 1, 1, 16, 16>}, {transform_indices = @transform_3, window_bounds = array<i64: 1, 3, 16, 16>}]} {
    %c0 = arith.constant 0 : index
    %c0_0 = arith.constant 0 : index
    %c0_1 = arith.constant 0 : index
    %c0_2 = arith.constant 0 : index
    %0 = vector.load %arg3[%c0, %c0_0, %c0_1, %c0_2] : memref<1x3x16x16xf32, #tpu.memory_space<vmem>>, vector<1x3x16x16xf32>
    %c0_3 = arith.constant 0 : index
    %c0_4 = arith.constant 0 : index
    %c0_5 = arith.constant 0 : index
    %1 = vector.load %arg4[%c0_3, %c0_4, %c0_5] : memref<1x16x16xf32, #tpu.memory_space<vmem>>, vector<1x16x16xf32>
    %2 = vector.shape_cast %1 : vector<1x16x16xf32> to vector<1x1x16x16xf32>
    %3 = vector.broadcast %2 : vector<1x1x16x16xf32> to vector<1x3x16x16xf32>
    %4 = arith.mulf %0, %3 : vector<1x3x16x16xf32>
    %c0_i32 = arith.constant 0 : i32
    %5 = arith.cmpi eq, %arg2, %c0_i32 : i32
    %6 = arith.extui %5 : i1 to i32
    %c0_i32_6 = arith.constant 0 : i32
    %7 = arith.cmpi ne, %6, %c0_i32_6 : i32
    scf.if %7 {
      %c0_10 = arith.constant 0 : index
      %c0_11 = arith.constant 0 : index
      %c0_12 = arith.constant 0 : index
      %c0_13 = arith.constant 0 : index
      %14 = vector.load %arg6[%c0_10, %c0_11, %c0_12, %c0_13] : memref<1x3x16x16xf32, #tpu.memory_space<vmem>>, vector<1x3x16x16xf32>
      tpu.vector_store %arg6[%c0_10, %c0_11, %c0_12, %c0_13], %4 {strides = array<i32>} : memref<1x3x16x16xf32, #tpu.memory_space<vmem>>, vector<1x3x16x16xf32>,
    } else {
    }
    %c0_i32_7 = arith.constant 0 : i32
    %8 = arith.cmpi sgt, %arg2, %c0_i32_7 : i32
    %9 = arith.extui %8 : i1 to i32
    %c0_i32_8 = arith.constant 0 : i32
    %10 = arith.cmpi ne, %9, %c0_i32_8 : i32
    scf.if %10 {
      %c0_10 = arith.constant 0 : index
      %c0_11 = arith.constant 0 : index
      %c0_12 = arith.constant 0 : index
      %c0_13 = arith.constant 0 : index
      %14 = vector.load %arg6[%c0_10, %c0_11, %c0_12, %c0_13] : memref<1x3x16x16xf32, #tpu.memory_space<vmem>>, vector<1x3x16x16xf32>
      %15 = arith.addf %14, %4 : vector<1x3x16x16xf32>
      %c0_14 = arith.constant 0 : index
      %c0_15 = arith.constant 0 : index
      %c0_16 = arith.constant 0 : index
      %c0_17 = arith.constant 0 : index
      %16 = vector.load %arg6[%c0_14, %c0_15, %c0_16, %c0_17] : memref<1x3x16x16xf32, #tpu.memory_space<vmem>>, vector<1x3x16x16xf32>
      tpu.vector_store %arg6[%c0_14, %c0_15, %c0_16, %c0_17], %15 {strides = array<i32>} : memref<1x3x16x16xf32, #tpu.memory_space<vmem>>, vector<1x3x16x16xf32>,
    } else {
    }
    %c2_i32 = arith.constant 2 : i32
    %11 = arith.cmpi eq, %arg2, %c2_i32 : i32
    %12 = arith.extui %11 : i1 to i32
    %c0_i32_9 = arith.constant 0 : i32
    %13 = arith.cmpi ne, %12, %c0_i32_9 : i32
    scf.if %13 {
      %c0_10 = arith.constant 0 : index
      %c0_11 = arith.constant 0 : index
      %c0_12 = arith.constant 0 : index
      %c0_13 = arith.constant 0 : index
      %14 = vector.load %arg5[%c0_10, %c0_11, %c0_12, %c0_13] : memref<1x1x16x16xf32, #tpu.memory_space<vmem>>, vector<1x1x16x16xf32>
      %c0_14 = arith.constant 0 : index
      %c0_15 = arith.constant 0 : index
      %c0_16 = arith.constant 0 : index
      %c0_17 = arith.constant 0 : index
      %15 = vector.load %arg6[%c0_14, %c0_15, %c0_16, %c0_17] : memref<1x3x16x16xf32, #tpu.memory_space<vmem>>, vector<1x3x16x16xf32>
      %16 = vector.broadcast %14 : vector<1x1x16x16xf32> to vector<1x3x16x16xf32>
      %17 = arith.mulf %15, %16 : vector<1x3x16x16xf32>
      %cst = arith.constant 1.000000e+00 : f32
      %18 = vector.broadcast %cst : f32 to vector<1x1x16x16xf32>
      %19 = arith.subf %18, %14 : vector<1x1x16x16xf32>
      %20 = vector.broadcast %19 : vector<1x1x16x16xf32> to vector<1x3x16x16xf32>
      %21 = arith.subf %17, %20 : vector<1x3x16x16xf32>
      %c0_18 = arith.constant 0 : index
      %c0_19 = arith.constant 0 : index
      %c0_20 = arith.constant 0 : index
      %c0_21 = arith.constant 0 : index
      %22 = vector.load %arg6[%c0_18, %c0_19, %c0_20, %c0_21] : memref<1x3x16x16xf32, #tpu.memory_space<vmem>>, vector<1x3x16x16xf32>
      tpu.vector_store %arg6[%c0_18, %c0_19, %c0_20, %c0_21], %21 {strides = array<i32>} : memref<1x3x16x16xf32, #tpu.memory_space<vmem>>, vector<1x3x16x16xf32>,
    } else {
    }
    return
  }
  func.func @transform_0(%arg0: i32, %arg1: i32, %arg2: i32) -> (i32, i32, i32, i32) {
    %c3_i32 = arith.constant 3 : i32
    %0 = arith.muli %arg0, %c3_i32 : i32
    %c2_i32 = arith.constant 2 : i32
    %1 = arith.muli %0, %c2_i32 : i32
    %c2_i32_0 = arith.constant 2 : i32
    %2 = arith.muli %arg2, %c2_i32_0 : i32
    %3 = arith.addi %1, %2 : i32
    %4 = arith.addi %3, %arg1 : i32
    %c0_i32 = arith.constant 0 : i32
    %c0_i32_1 = arith.constant 0 : i32
    %c0_i32_2 = arith.constant 0 : i32
    %c0_i32_3 = arith.constant 0 : i32
    return %4, %c0_i32, %c0_i32_1, %c0_i32_2 : i32, i32, i32, i32
  }
  func.func @transform_1(%arg0: i32, %arg1: i32, %arg2: i32) -> (i32, i32, i32) {
    %c3_i32 = arith.constant 3 : i32
    %0 = arith.muli %arg0, %c3_i32 : i32
    %1 = arith.addi %0, %arg2 : i32
    %c0_i32 = arith.constant 0 : i32
    %c0_i32_0 = arith.constant 0 : i32
    %c0_i32_1 = arith.constant 0 : i32
    return %1, %c0_i32, %c0_i32_0 : i32, i32, i32
  }
  func.func @transform_2(%arg0: i32, %arg1: i32, %arg2: i32) -> (i32, i32, i32, i32) {
    %c0_i32 = arith.constant 0 : i32
    %c0_i32_0 = arith.constant 0 : i32
    %c0_i32_1 = arith.constant 0 : i32
    %c0_i32_2 = arith.constant 0 : i32
    return %arg1, %c0_i32, %c0_i32_0, %c0_i32_1 : i32, i32, i32, i32
  }
  func.func @transform_3(%arg0: i32, %arg1: i32, %arg2: i32) -> (i32, i32, i32, i32) {
    %c2_i32 = arith.constant 2 : i32
    %0 = arith.muli %arg0, %c2_i32 : i32
    %1 = arith.addi %0, %arg1 : i32
    %c0_i32 = arith.constant 0 : i32
    %c0_i32_0 = arith.constant 0 : i32
    %c0_i32_1 = arith.constant 0 : i32
    %c0_i32_2 = arith.constant 0 : i32
    return %1, %c0_i32, %c0_i32_0, %c0_i32_1 : i32, i32, i32, i32
  }
}

module attributes {stable_mosaic.version = 11 : i64} {
  func.func @_gms_kernel(%arg0: i32, %arg1: memref<1x3x10x10xf32, #tpu.memory_space<vmem>>, %arg2: memref<1x3x10x10xf32, #tpu.memory_space<vmem>>, %arg3: memref<1x3x8x8xf32, #tpu.memory_space<vmem>>) attributes {dimension_semantics = [#tpu.dimension_semantics<parallel>], iteration_bounds = array<i64: 8>, scalar_prefetch = 0 : i64, scratch_operands = 0 : i64, tpu.core_type = #tpu.core_type<tc>, window_params = [{transform_indices = @transform_0, window_bounds = array<i64: 1, 3, 10, 10>}, {transform_indices = @transform_1, window_bounds = array<i64: 1, 3, 10, 10>}, {transform_indices = @transform_2, window_bounds = array<i64: 1, 3, 8, 8>}]} {
    %c0 = arith.constant 0 : index
    %c0_0 = arith.constant 0 : index
    %c0_1 = arith.constant 0 : index
    %c0_2 = arith.constant 0 : index
    %0 = vector.load %arg1[%c0, %c0_0, %c0_1, %c0_2] : memref<1x3x10x10xf32, #tpu.memory_space<vmem>>, vector<1x3x10x10xf32>
    %1 = vector.extract_strided_slice %0 {offsets = [0, 0, 0, 0], sizes = [1, 3, 8, 10], strides = [1, 1, 1, 1]} : vector<1x3x10x10xf32> to vector<1x3x8x10xf32>
    %2 = vector.extract_strided_slice %0 {offsets = [0, 0, 1, 0], sizes = [1, 3, 8, 10], strides = [1, 1, 1, 1]} : vector<1x3x10x10xf32> to vector<1x3x8x10xf32>
    %3 = arith.addf %1, %2 : vector<1x3x8x10xf32>
    %4 = vector.extract_strided_slice %0 {offsets = [0, 0, 2, 0], sizes = [1, 3, 8, 10], strides = [1, 1, 1, 1]} : vector<1x3x10x10xf32> to vector<1x3x8x10xf32>
    %5 = arith.addf %3, %4 : vector<1x3x8x10xf32>
    %6 = vector.extract_strided_slice %5 {offsets = [0, 0, 0, 0], sizes = [1, 3, 8, 8], strides = [1, 1, 1, 1]} : vector<1x3x8x10xf32> to vector<1x3x8x8xf32>
    %7 = vector.extract_strided_slice %5 {offsets = [0, 0, 0, 2], sizes = [1, 3, 8, 8], strides = [1, 1, 1, 1]} : vector<1x3x8x10xf32> to vector<1x3x8x8xf32>
    %8 = arith.subf %6, %7 : vector<1x3x8x8xf32>
    %cst = arith.constant 0.333333343 : f32
    %9 = vector.broadcast %cst : f32 to vector<1x3x8x8xf32>
    %10 = arith.mulf %8, %9 : vector<1x3x8x8xf32>
    %11 = vector.extract_strided_slice %0 {offsets = [0, 0, 0, 0], sizes = [1, 3, 10, 8], strides = [1, 1, 1, 1]} : vector<1x3x10x10xf32> to vector<1x3x10x8xf32>
    %12 = vector.extract_strided_slice %0 {offsets = [0, 0, 0, 1], sizes = [1, 3, 10, 8], strides = [1, 1, 1, 1]} : vector<1x3x10x10xf32> to vector<1x3x10x8xf32>
    %13 = arith.addf %11, %12 : vector<1x3x10x8xf32>
    %14 = vector.extract_strided_slice %0 {offsets = [0, 0, 0, 2], sizes = [1, 3, 10, 8], strides = [1, 1, 1, 1]} : vector<1x3x10x10xf32> to vector<1x3x10x8xf32>
    %15 = arith.addf %13, %14 : vector<1x3x10x8xf32>
    %16 = vector.extract_strided_slice %15 {offsets = [0, 0, 0, 0], sizes = [1, 3, 8, 8], strides = [1, 1, 1, 1]} : vector<1x3x10x8xf32> to vector<1x3x8x8xf32>
    %17 = vector.extract_strided_slice %15 {offsets = [0, 0, 2, 0], sizes = [1, 3, 8, 8], strides = [1, 1, 1, 1]} : vector<1x3x10x8xf32> to vector<1x3x8x8xf32>
    %18 = arith.subf %16, %17 : vector<1x3x8x8xf32>
    %cst_3 = arith.constant 0.333333343 : f32
    %19 = vector.broadcast %cst_3 : f32 to vector<1x3x8x8xf32>
    %20 = arith.mulf %18, %19 : vector<1x3x8x8xf32>
    %21 = arith.mulf %10, %10 : vector<1x3x8x8xf32>
    %22 = arith.mulf %20, %20 : vector<1x3x8x8xf32>
    %23 = arith.addf %21, %22 : vector<1x3x8x8xf32>
    %cst_4 = arith.constant 9.99999996E-13 : f32
    %24 = vector.broadcast %cst_4 : f32 to vector<1x3x8x8xf32>
    %25 = arith.addf %23, %24 : vector<1x3x8x8xf32>
    %26 = math.sqrt %25 : vector<1x3x8x8xf32>
    %c0_5 = arith.constant 0 : index
    %c0_6 = arith.constant 0 : index
    %c0_7 = arith.constant 0 : index
    %c0_8 = arith.constant 0 : index
    %27 = vector.load %arg2[%c0_5, %c0_6, %c0_7, %c0_8] : memref<1x3x10x10xf32, #tpu.memory_space<vmem>>, vector<1x3x10x10xf32>
    %28 = vector.extract_strided_slice %27 {offsets = [0, 0, 0, 0], sizes = [1, 3, 8, 10], strides = [1, 1, 1, 1]} : vector<1x3x10x10xf32> to vector<1x3x8x10xf32>
    %29 = vector.extract_strided_slice %27 {offsets = [0, 0, 1, 0], sizes = [1, 3, 8, 10], strides = [1, 1, 1, 1]} : vector<1x3x10x10xf32> to vector<1x3x8x10xf32>
    %30 = arith.addf %28, %29 : vector<1x3x8x10xf32>
    %31 = vector.extract_strided_slice %27 {offsets = [0, 0, 2, 0], sizes = [1, 3, 8, 10], strides = [1, 1, 1, 1]} : vector<1x3x10x10xf32> to vector<1x3x8x10xf32>
    %32 = arith.addf %30, %31 : vector<1x3x8x10xf32>
    %33 = vector.extract_strided_slice %32 {offsets = [0, 0, 0, 0], sizes = [1, 3, 8, 8], strides = [1, 1, 1, 1]} : vector<1x3x8x10xf32> to vector<1x3x8x8xf32>
    %34 = vector.extract_strided_slice %32 {offsets = [0, 0, 0, 2], sizes = [1, 3, 8, 8], strides = [1, 1, 1, 1]} : vector<1x3x8x10xf32> to vector<1x3x8x8xf32>
    %35 = arith.subf %33, %34 : vector<1x3x8x8xf32>
    %cst_9 = arith.constant 0.333333343 : f32
    %36 = vector.broadcast %cst_9 : f32 to vector<1x3x8x8xf32>
    %37 = arith.mulf %35, %36 : vector<1x3x8x8xf32>
    %38 = vector.extract_strided_slice %27 {offsets = [0, 0, 0, 0], sizes = [1, 3, 10, 8], strides = [1, 1, 1, 1]} : vector<1x3x10x10xf32> to vector<1x3x10x8xf32>
    %39 = vector.extract_strided_slice %27 {offsets = [0, 0, 0, 1], sizes = [1, 3, 10, 8], strides = [1, 1, 1, 1]} : vector<1x3x10x10xf32> to vector<1x3x10x8xf32>
    %40 = arith.addf %38, %39 : vector<1x3x10x8xf32>
    %41 = vector.extract_strided_slice %27 {offsets = [0, 0, 0, 2], sizes = [1, 3, 10, 8], strides = [1, 1, 1, 1]} : vector<1x3x10x10xf32> to vector<1x3x10x8xf32>
    %42 = arith.addf %40, %41 : vector<1x3x10x8xf32>
    %43 = vector.extract_strided_slice %42 {offsets = [0, 0, 0, 0], sizes = [1, 3, 8, 8], strides = [1, 1, 1, 1]} : vector<1x3x10x8xf32> to vector<1x3x8x8xf32>
    %44 = vector.extract_strided_slice %42 {offsets = [0, 0, 2, 0], sizes = [1, 3, 8, 8], strides = [1, 1, 1, 1]} : vector<1x3x10x8xf32> to vector<1x3x8x8xf32>
    %45 = arith.subf %43, %44 : vector<1x3x8x8xf32>
    %cst_10 = arith.constant 0.333333343 : f32
    %46 = vector.broadcast %cst_10 : f32 to vector<1x3x8x8xf32>
    %47 = arith.mulf %45, %46 : vector<1x3x8x8xf32>
    %48 = arith.mulf %37, %37 : vector<1x3x8x8xf32>
    %49 = arith.mulf %47, %47 : vector<1x3x8x8xf32>
    %50 = arith.addf %48, %49 : vector<1x3x8x8xf32>
    %cst_11 = arith.constant 9.99999996E-13 : f32
    %51 = vector.broadcast %cst_11 : f32 to vector<1x3x8x8xf32>
    %52 = arith.addf %50, %51 : vector<1x3x8x8xf32>
    %53 = math.sqrt %52 : vector<1x3x8x8xf32>
    %cst_12 = arith.constant 2.000000e+00 : f32
    %54 = vector.broadcast %cst_12 : f32 to vector<1x3x8x8xf32>
    %55 = arith.mulf %54, %26 : vector<1x3x8x8xf32>
    %56 = arith.mulf %55, %53 : vector<1x3x8x8xf32>
    %cst_13 = arith.constant 2.600000e-03 : f32
    %57 = vector.broadcast %cst_13 : f32 to vector<1x3x8x8xf32>
    %58 = arith.addf %56, %57 : vector<1x3x8x8xf32>
    %59 = arith.mulf %26, %26 : vector<1x3x8x8xf32>
    %60 = arith.mulf %53, %53 : vector<1x3x8x8xf32>
    %61 = arith.addf %59, %60 : vector<1x3x8x8xf32>
    %cst_14 = arith.constant 2.600000e-03 : f32
    %62 = vector.broadcast %cst_14 : f32 to vector<1x3x8x8xf32>
    %63 = arith.addf %61, %62 : vector<1x3x8x8xf32>
    %64 = arith.divf %58, %63 : vector<1x3x8x8xf32>
    %c0_15 = arith.constant 0 : index
    %c0_16 = arith.constant 0 : index
    %c0_17 = arith.constant 0 : index
    %c0_18 = arith.constant 0 : index
    %65 = vector.load %arg3[%c0_15, %c0_16, %c0_17, %c0_18] : memref<1x3x8x8xf32, #tpu.memory_space<vmem>>, vector<1x3x8x8xf32>
    tpu.vector_store %arg3[%c0_15, %c0_16, %c0_17, %c0_18], %64 {strides = array<i32>} : memref<1x3x8x8xf32, #tpu.memory_space<vmem>>, vector<1x3x8x8xf32>,
    return
  }
  func.func @transform_0(%arg0: i32) -> (i32, i32, i32, i32) {
    %c0_i32 = arith.constant 0 : i32
    %c0_i32_0 = arith.constant 0 : i32
    %c0_i32_1 = arith.constant 0 : i32
    %c0_i32_2 = arith.constant 0 : i32
    return %arg0, %c0_i32, %c0_i32_0, %c0_i32_1 : i32, i32, i32, i32
  }
  func.func @transform_1(%arg0: i32) -> (i32, i32, i32, i32) {
    %c0_i32 = arith.constant 0 : i32
    %c0_i32_0 = arith.constant 0 : i32
    %c0_i32_1 = arith.constant 0 : i32
    %c0_i32_2 = arith.constant 0 : i32
    return %arg0, %c0_i32, %c0_i32_0, %c0_i32_1 : i32, i32, i32, i32
  }
  func.func @transform_2(%arg0: i32) -> (i32, i32, i32, i32) {
    %c0_i32 = arith.constant 0 : i32
    %c0_i32_0 = arith.constant 0 : i32
    %c0_i32_1 = arith.constant 0 : i32
    %c0_i32_2 = arith.constant 0 : i32
    return %arg0, %c0_i32, %c0_i32_0, %c0_i32_1 : i32, i32, i32, i32
  }
}

module attributes {stable_mosaic.version = 11 : i64} {
  func.func @_gms_kernel(%arg0: i32, %arg1: memref<1x3x6x6xf32, #tpu.memory_space<vmem>>, %arg2: memref<1x3x6x6xf32, #tpu.memory_space<vmem>>, %arg3: memref<1x3x4x4xf32, #tpu.memory_space<vmem>>) attributes {dimension_semantics = [#tpu.dimension_semantics<parallel>], iteration_bounds = array<i64: 8>, scalar_prefetch = 0 : i64, scratch_operands = 0 : i64, tpu.core_type = #tpu.core_type<tc>, window_params = [{transform_indices = @transform_0, window_bounds = array<i64: 1, 3, 6, 6>}, {transform_indices = @transform_1, window_bounds = array<i64: 1, 3, 6, 6>}, {transform_indices = @transform_2, window_bounds = array<i64: 1, 3, 4, 4>}]} {
    %c0 = arith.constant 0 : index
    %c0_0 = arith.constant 0 : index
    %c0_1 = arith.constant 0 : index
    %c0_2 = arith.constant 0 : index
    %0 = vector.load %arg1[%c0, %c0_0, %c0_1, %c0_2] : memref<1x3x6x6xf32, #tpu.memory_space<vmem>>, vector<1x3x6x6xf32>
    %1 = vector.extract_strided_slice %0 {offsets = [0, 0, 0, 0], sizes = [1, 3, 4, 6], strides = [1, 1, 1, 1]} : vector<1x3x6x6xf32> to vector<1x3x4x6xf32>
    %2 = vector.extract_strided_slice %0 {offsets = [0, 0, 1, 0], sizes = [1, 3, 4, 6], strides = [1, 1, 1, 1]} : vector<1x3x6x6xf32> to vector<1x3x4x6xf32>
    %3 = arith.addf %1, %2 : vector<1x3x4x6xf32>
    %4 = vector.extract_strided_slice %0 {offsets = [0, 0, 2, 0], sizes = [1, 3, 4, 6], strides = [1, 1, 1, 1]} : vector<1x3x6x6xf32> to vector<1x3x4x6xf32>
    %5 = arith.addf %3, %4 : vector<1x3x4x6xf32>
    %6 = vector.extract_strided_slice %5 {offsets = [0, 0, 0, 0], sizes = [1, 3, 4, 4], strides = [1, 1, 1, 1]} : vector<1x3x4x6xf32> to vector<1x3x4x4xf32>
    %7 = vector.extract_strided_slice %5 {offsets = [0, 0, 0, 2], sizes = [1, 3, 4, 4], strides = [1, 1, 1, 1]} : vector<1x3x4x6xf32> to vector<1x3x4x4xf32>
    %8 = arith.subf %6, %7 : vector<1x3x4x4xf32>
    %cst = arith.constant 0.333333343 : f32
    %9 = vector.broadcast %cst : f32 to vector<1x3x4x4xf32>
    %10 = arith.mulf %8, %9 : vector<1x3x4x4xf32>
    %11 = vector.extract_strided_slice %0 {offsets = [0, 0, 0, 0], sizes = [1, 3, 6, 4], strides = [1, 1, 1, 1]} : vector<1x3x6x6xf32> to vector<1x3x6x4xf32>
    %12 = vector.extract_strided_slice %0 {offsets = [0, 0, 0, 1], sizes = [1, 3, 6, 4], strides = [1, 1, 1, 1]} : vector<1x3x6x6xf32> to vector<1x3x6x4xf32>
    %13 = arith.addf %11, %12 : vector<1x3x6x4xf32>
    %14 = vector.extract_strided_slice %0 {offsets = [0, 0, 0, 2], sizes = [1, 3, 6, 4], strides = [1, 1, 1, 1]} : vector<1x3x6x6xf32> to vector<1x3x6x4xf32>
    %15 = arith.addf %13, %14 : vector<1x3x6x4xf32>
    %16 = vector.extract_strided_slice %15 {offsets = [0, 0, 0, 0], sizes = [1, 3, 4, 4], strides = [1, 1, 1, 1]} : vector<1x3x6x4xf32> to vector<1x3x4x4xf32>
    %17 = vector.extract_strided_slice %15 {offsets = [0, 0, 2, 0], sizes = [1, 3, 4, 4], strides = [1, 1, 1, 1]} : vector<1x3x6x4xf32> to vector<1x3x4x4xf32>
    %18 = arith.subf %16, %17 : vector<1x3x4x4xf32>
    %cst_3 = arith.constant 0.333333343 : f32
    %19 = vector.broadcast %cst_3 : f32 to vector<1x3x4x4xf32>
    %20 = arith.mulf %18, %19 : vector<1x3x4x4xf32>
    %21 = arith.mulf %10, %10 : vector<1x3x4x4xf32>
    %22 = arith.mulf %20, %20 : vector<1x3x4x4xf32>
    %23 = arith.addf %21, %22 : vector<1x3x4x4xf32>
    %cst_4 = arith.constant 9.99999996E-13 : f32
    %24 = vector.broadcast %cst_4 : f32 to vector<1x3x4x4xf32>
    %25 = arith.addf %23, %24 : vector<1x3x4x4xf32>
    %26 = math.sqrt %25 : vector<1x3x4x4xf32>
    %c0_5 = arith.constant 0 : index
    %c0_6 = arith.constant 0 : index
    %c0_7 = arith.constant 0 : index
    %c0_8 = arith.constant 0 : index
    %27 = vector.load %arg2[%c0_5, %c0_6, %c0_7, %c0_8] : memref<1x3x6x6xf32, #tpu.memory_space<vmem>>, vector<1x3x6x6xf32>
    %28 = vector.extract_strided_slice %27 {offsets = [0, 0, 0, 0], sizes = [1, 3, 4, 6], strides = [1, 1, 1, 1]} : vector<1x3x6x6xf32> to vector<1x3x4x6xf32>
    %29 = vector.extract_strided_slice %27 {offsets = [0, 0, 1, 0], sizes = [1, 3, 4, 6], strides = [1, 1, 1, 1]} : vector<1x3x6x6xf32> to vector<1x3x4x6xf32>
    %30 = arith.addf %28, %29 : vector<1x3x4x6xf32>
    %31 = vector.extract_strided_slice %27 {offsets = [0, 0, 2, 0], sizes = [1, 3, 4, 6], strides = [1, 1, 1, 1]} : vector<1x3x6x6xf32> to vector<1x3x4x6xf32>
    %32 = arith.addf %30, %31 : vector<1x3x4x6xf32>
    %33 = vector.extract_strided_slice %32 {offsets = [0, 0, 0, 0], sizes = [1, 3, 4, 4], strides = [1, 1, 1, 1]} : vector<1x3x4x6xf32> to vector<1x3x4x4xf32>
    %34 = vector.extract_strided_slice %32 {offsets = [0, 0, 0, 2], sizes = [1, 3, 4, 4], strides = [1, 1, 1, 1]} : vector<1x3x4x6xf32> to vector<1x3x4x4xf32>
    %35 = arith.subf %33, %34 : vector<1x3x4x4xf32>
    %cst_9 = arith.constant 0.333333343 : f32
    %36 = vector.broadcast %cst_9 : f32 to vector<1x3x4x4xf32>
    %37 = arith.mulf %35, %36 : vector<1x3x4x4xf32>
    %38 = vector.extract_strided_slice %27 {offsets = [0, 0, 0, 0], sizes = [1, 3, 6, 4], strides = [1, 1, 1, 1]} : vector<1x3x6x6xf32> to vector<1x3x6x4xf32>
    %39 = vector.extract_strided_slice %27 {offsets = [0, 0, 0, 1], sizes = [1, 3, 6, 4], strides = [1, 1, 1, 1]} : vector<1x3x6x6xf32> to vector<1x3x6x4xf32>
    %40 = arith.addf %38, %39 : vector<1x3x6x4xf32>
    %41 = vector.extract_strided_slice %27 {offsets = [0, 0, 0, 2], sizes = [1, 3, 6, 4], strides = [1, 1, 1, 1]} : vector<1x3x6x6xf32> to vector<1x3x6x4xf32>
    %42 = arith.addf %40, %41 : vector<1x3x6x4xf32>
    %43 = vector.extract_strided_slice %42 {offsets = [0, 0, 0, 0], sizes = [1, 3, 4, 4], strides = [1, 1, 1, 1]} : vector<1x3x6x4xf32> to vector<1x3x4x4xf32>
    %44 = vector.extract_strided_slice %42 {offsets = [0, 0, 2, 0], sizes = [1, 3, 4, 4], strides = [1, 1, 1, 1]} : vector<1x3x6x4xf32> to vector<1x3x4x4xf32>
    %45 = arith.subf %43, %44 : vector<1x3x4x4xf32>
    %cst_10 = arith.constant 0.333333343 : f32
    %46 = vector.broadcast %cst_10 : f32 to vector<1x3x4x4xf32>
    %47 = arith.mulf %45, %46 : vector<1x3x4x4xf32>
    %48 = arith.mulf %37, %37 : vector<1x3x4x4xf32>
    %49 = arith.mulf %47, %47 : vector<1x3x4x4xf32>
    %50 = arith.addf %48, %49 : vector<1x3x4x4xf32>
    %cst_11 = arith.constant 9.99999996E-13 : f32
    %51 = vector.broadcast %cst_11 : f32 to vector<1x3x4x4xf32>
    %52 = arith.addf %50, %51 : vector<1x3x4x4xf32>
    %53 = math.sqrt %52 : vector<1x3x4x4xf32>
    %cst_12 = arith.constant 2.000000e+00 : f32
    %54 = vector.broadcast %cst_12 : f32 to vector<1x3x4x4xf32>
    %55 = arith.mulf %54, %26 : vector<1x3x4x4xf32>
    %56 = arith.mulf %55, %53 : vector<1x3x4x4xf32>
    %cst_13 = arith.constant 2.600000e-03 : f32
    %57 = vector.broadcast %cst_13 : f32 to vector<1x3x4x4xf32>
    %58 = arith.addf %56, %57 : vector<1x3x4x4xf32>
    %59 = arith.mulf %26, %26 : vector<1x3x4x4xf32>
    %60 = arith.mulf %53, %53 : vector<1x3x4x4xf32>
    %61 = arith.addf %59, %60 : vector<1x3x4x4xf32>
    %cst_14 = arith.constant 2.600000e-03 : f32
    %62 = vector.broadcast %cst_14 : f32 to vector<1x3x4x4xf32>
    %63 = arith.addf %61, %62 : vector<1x3x4x4xf32>
    %64 = arith.divf %58, %63 : vector<1x3x4x4xf32>
    %c0_15 = arith.constant 0 : index
    %c0_16 = arith.constant 0 : index
    %c0_17 = arith.constant 0 : index
    %c0_18 = arith.constant 0 : index
    %65 = vector.load %arg3[%c0_15, %c0_16, %c0_17, %c0_18] : memref<1x3x4x4xf32, #tpu.memory_space<vmem>>, vector<1x3x4x4xf32>
    tpu.vector_store %arg3[%c0_15, %c0_16, %c0_17, %c0_18], %64 {strides = array<i32>} : memref<1x3x4x4xf32, #tpu.memory_space<vmem>>, vector<1x3x4x4xf32>,
    return
  }
  func.func @transform_0(%arg0: i32) -> (i32, i32, i32, i32) {
    %c0_i32 = arith.constant 0 : i32
    %c0_i32_0 = arith.constant 0 : i32
    %c0_i32_1 = arith.constant 0 : i32
    %c0_i32_2 = arith.constant 0 : i32
    return %arg0, %c0_i32, %c0_i32_0, %c0_i32_1 : i32, i32, i32, i32
  }
  func.func @transform_1(%arg0: i32) -> (i32, i32, i32, i32) {
    %c0_i32 = arith.constant 0 : i32
    %c0_i32_0 = arith.constant 0 : i32
    %c0_i32_1 = arith.constant 0 : i32
    %c0_i32_2 = arith.constant 0 : i32
    return %arg0, %c0_i32, %c0_i32_0, %c0_i32_1 : i32, i32, i32, i32
  }
  func.func @transform_2(%arg0: i32) -> (i32, i32, i32, i32) {
    %c0_i32 = arith.constant 0 : i32
    %c0_i32_0 = arith.constant 0 : i32
    %c0_i32_1 = arith.constant 0 : i32
    %c0_i32_2 = arith.constant 0 : i32
    return %arg0, %c0_i32, %c0_i32_0, %c0_i32_1 : i32, i32, i32, i32
  }
}

module attributes {stable_mosaic.version = 11 : i64} {
  func.func @_gms_kernel(%arg0: i32, %arg1: memref<1x3x18x18xf32, #tpu.memory_space<vmem>>, %arg2: memref<1x3x18x18xf32, #tpu.memory_space<vmem>>, %arg3: memref<1x3x16x16xf32, #tpu.memory_space<vmem>>) attributes {dimension_semantics = [#tpu.dimension_semantics<parallel>], iteration_bounds = array<i64: 8>, scalar_prefetch = 0 : i64, scratch_operands = 0 : i64, tpu.core_type = #tpu.core_type<tc>, window_params = [{transform_indices = @transform_0, window_bounds = array<i64: 1, 3, 18, 18>}, {transform_indices = @transform_1, window_bounds = array<i64: 1, 3, 18, 18>}, {transform_indices = @transform_2, window_bounds = array<i64: 1, 3, 16, 16>}]} {
    %c0 = arith.constant 0 : index
    %c0_0 = arith.constant 0 : index
    %c0_1 = arith.constant 0 : index
    %c0_2 = arith.constant 0 : index
    %0 = vector.load %arg1[%c0, %c0_0, %c0_1, %c0_2] : memref<1x3x18x18xf32, #tpu.memory_space<vmem>>, vector<1x3x18x18xf32>
    %1 = vector.extract_strided_slice %0 {offsets = [0, 0, 0, 0], sizes = [1, 3, 16, 18], strides = [1, 1, 1, 1]} : vector<1x3x18x18xf32> to vector<1x3x16x18xf32>
    %2 = vector.extract_strided_slice %0 {offsets = [0, 0, 1, 0], sizes = [1, 3, 16, 18], strides = [1, 1, 1, 1]} : vector<1x3x18x18xf32> to vector<1x3x16x18xf32>
    %3 = arith.addf %1, %2 : vector<1x3x16x18xf32>
    %4 = vector.extract_strided_slice %0 {offsets = [0, 0, 2, 0], sizes = [1, 3, 16, 18], strides = [1, 1, 1, 1]} : vector<1x3x18x18xf32> to vector<1x3x16x18xf32>
    %5 = arith.addf %3, %4 : vector<1x3x16x18xf32>
    %6 = vector.extract_strided_slice %5 {offsets = [0, 0, 0, 0], sizes = [1, 3, 16, 16], strides = [1, 1, 1, 1]} : vector<1x3x16x18xf32> to vector<1x3x16x16xf32>
    %7 = vector.extract_strided_slice %5 {offsets = [0, 0, 0, 2], sizes = [1, 3, 16, 16], strides = [1, 1, 1, 1]} : vector<1x3x16x18xf32> to vector<1x3x16x16xf32>
    %8 = arith.subf %6, %7 : vector<1x3x16x16xf32>
    %cst = arith.constant 0.333333343 : f32
    %9 = vector.broadcast %cst : f32 to vector<1x3x16x16xf32>
    %10 = arith.mulf %8, %9 : vector<1x3x16x16xf32>
    %11 = vector.extract_strided_slice %0 {offsets = [0, 0, 0, 0], sizes = [1, 3, 18, 16], strides = [1, 1, 1, 1]} : vector<1x3x18x18xf32> to vector<1x3x18x16xf32>
    %12 = vector.extract_strided_slice %0 {offsets = [0, 0, 0, 1], sizes = [1, 3, 18, 16], strides = [1, 1, 1, 1]} : vector<1x3x18x18xf32> to vector<1x3x18x16xf32>
    %13 = arith.addf %11, %12 : vector<1x3x18x16xf32>
    %14 = vector.extract_strided_slice %0 {offsets = [0, 0, 0, 2], sizes = [1, 3, 18, 16], strides = [1, 1, 1, 1]} : vector<1x3x18x18xf32> to vector<1x3x18x16xf32>
    %15 = arith.addf %13, %14 : vector<1x3x18x16xf32>
    %16 = vector.extract_strided_slice %15 {offsets = [0, 0, 0, 0], sizes = [1, 3, 16, 16], strides = [1, 1, 1, 1]} : vector<1x3x18x16xf32> to vector<1x3x16x16xf32>
    %17 = vector.extract_strided_slice %15 {offsets = [0, 0, 2, 0], sizes = [1, 3, 16, 16], strides = [1, 1, 1, 1]} : vector<1x3x18x16xf32> to vector<1x3x16x16xf32>
    %18 = arith.subf %16, %17 : vector<1x3x16x16xf32>
    %cst_3 = arith.constant 0.333333343 : f32
    %19 = vector.broadcast %cst_3 : f32 to vector<1x3x16x16xf32>
    %20 = arith.mulf %18, %19 : vector<1x3x16x16xf32>
    %21 = arith.mulf %10, %10 : vector<1x3x16x16xf32>
    %22 = arith.mulf %20, %20 : vector<1x3x16x16xf32>
    %23 = arith.addf %21, %22 : vector<1x3x16x16xf32>
    %cst_4 = arith.constant 9.99999996E-13 : f32
    %24 = vector.broadcast %cst_4 : f32 to vector<1x3x16x16xf32>
    %25 = arith.addf %23, %24 : vector<1x3x16x16xf32>
    %26 = math.sqrt %25 : vector<1x3x16x16xf32>
    %c0_5 = arith.constant 0 : index
    %c0_6 = arith.constant 0 : index
    %c0_7 = arith.constant 0 : index
    %c0_8 = arith.constant 0 : index
    %27 = vector.load %arg2[%c0_5, %c0_6, %c0_7, %c0_8] : memref<1x3x18x18xf32, #tpu.memory_space<vmem>>, vector<1x3x18x18xf32>
    %28 = vector.extract_strided_slice %27 {offsets = [0, 0, 0, 0], sizes = [1, 3, 16, 18], strides = [1, 1, 1, 1]} : vector<1x3x18x18xf32> to vector<1x3x16x18xf32>
    %29 = vector.extract_strided_slice %27 {offsets = [0, 0, 1, 0], sizes = [1, 3, 16, 18], strides = [1, 1, 1, 1]} : vector<1x3x18x18xf32> to vector<1x3x16x18xf32>
    %30 = arith.addf %28, %29 : vector<1x3x16x18xf32>
    %31 = vector.extract_strided_slice %27 {offsets = [0, 0, 2, 0], sizes = [1, 3, 16, 18], strides = [1, 1, 1, 1]} : vector<1x3x18x18xf32> to vector<1x3x16x18xf32>
    %32 = arith.addf %30, %31 : vector<1x3x16x18xf32>
    %33 = vector.extract_strided_slice %32 {offsets = [0, 0, 0, 0], sizes = [1, 3, 16, 16], strides = [1, 1, 1, 1]} : vector<1x3x16x18xf32> to vector<1x3x16x16xf32>
    %34 = vector.extract_strided_slice %32 {offsets = [0, 0, 0, 2], sizes = [1, 3, 16, 16], strides = [1, 1, 1, 1]} : vector<1x3x16x18xf32> to vector<1x3x16x16xf32>
    %35 = arith.subf %33, %34 : vector<1x3x16x16xf32>
    %cst_9 = arith.constant 0.333333343 : f32
    %36 = vector.broadcast %cst_9 : f32 to vector<1x3x16x16xf32>
    %37 = arith.mulf %35, %36 : vector<1x3x16x16xf32>
    %38 = vector.extract_strided_slice %27 {offsets = [0, 0, 0, 0], sizes = [1, 3, 18, 16], strides = [1, 1, 1, 1]} : vector<1x3x18x18xf32> to vector<1x3x18x16xf32>
    %39 = vector.extract_strided_slice %27 {offsets = [0, 0, 0, 1], sizes = [1, 3, 18, 16], strides = [1, 1, 1, 1]} : vector<1x3x18x18xf32> to vector<1x3x18x16xf32>
    %40 = arith.addf %38, %39 : vector<1x3x18x16xf32>
    %41 = vector.extract_strided_slice %27 {offsets = [0, 0, 0, 2], sizes = [1, 3, 18, 16], strides = [1, 1, 1, 1]} : vector<1x3x18x18xf32> to vector<1x3x18x16xf32>
    %42 = arith.addf %40, %41 : vector<1x3x18x16xf32>
    %43 = vector.extract_strided_slice %42 {offsets = [0, 0, 0, 0], sizes = [1, 3, 16, 16], strides = [1, 1, 1, 1]} : vector<1x3x18x16xf32> to vector<1x3x16x16xf32>
    %44 = vector.extract_strided_slice %42 {offsets = [0, 0, 2, 0], sizes = [1, 3, 16, 16], strides = [1, 1, 1, 1]} : vector<1x3x18x16xf32> to vector<1x3x16x16xf32>
    %45 = arith.subf %43, %44 : vector<1x3x16x16xf32>
    %cst_10 = arith.constant 0.333333343 : f32
    %46 = vector.broadcast %cst_10 : f32 to vector<1x3x16x16xf32>
    %47 = arith.mulf %45, %46 : vector<1x3x16x16xf32>
    %48 = arith.mulf %37, %37 : vector<1x3x16x16xf32>
    %49 = arith.mulf %47, %47 : vector<1x3x16x16xf32>
    %50 = arith.addf %48, %49 : vector<1x3x16x16xf32>
    %cst_11 = arith.constant 9.99999996E-13 : f32
    %51 = vector.broadcast %cst_11 : f32 to vector<1x3x16x16xf32>
    %52 = arith.addf %50, %51 : vector<1x3x16x16xf32>
    %53 = math.sqrt %52 : vector<1x3x16x16xf32>
    %cst_12 = arith.constant 2.000000e+00 : f32
    %54 = vector.broadcast %cst_12 : f32 to vector<1x3x16x16xf32>
    %55 = arith.mulf %54, %26 : vector<1x3x16x16xf32>
    %56 = arith.mulf %55, %53 : vector<1x3x16x16xf32>
    %cst_13 = arith.constant 2.600000e-03 : f32
    %57 = vector.broadcast %cst_13 : f32 to vector<1x3x16x16xf32>
    %58 = arith.addf %56, %57 : vector<1x3x16x16xf32>
    %59 = arith.mulf %26, %26 : vector<1x3x16x16xf32>
    %60 = arith.mulf %53, %53 : vector<1x3x16x16xf32>
    %61 = arith.addf %59, %60 : vector<1x3x16x16xf32>
    %cst_14 = arith.constant 2.600000e-03 : f32
    %62 = vector.broadcast %cst_14 : f32 to vector<1x3x16x16xf32>
    %63 = arith.addf %61, %62 : vector<1x3x16x16xf32>
    %64 = arith.divf %58, %63 : vector<1x3x16x16xf32>
    %c0_15 = arith.constant 0 : index
    %c0_16 = arith.constant 0 : index
    %c0_17 = arith.constant 0 : index
    %c0_18 = arith.constant 0 : index
    %65 = vector.load %arg3[%c0_15, %c0_16, %c0_17, %c0_18] : memref<1x3x16x16xf32, #tpu.memory_space<vmem>>, vector<1x3x16x16xf32>
    tpu.vector_store %arg3[%c0_15, %c0_16, %c0_17, %c0_18], %64 {strides = array<i32>} : memref<1x3x16x16xf32, #tpu.memory_space<vmem>>, vector<1x3x16x16xf32>,
    return
  }
  func.func @transform_0(%arg0: i32) -> (i32, i32, i32, i32) {
    %c0_i32 = arith.constant 0 : i32
    %c0_i32_0 = arith.constant 0 : i32
    %c0_i32_1 = arith.constant 0 : i32
    %c0_i32_2 = arith.constant 0 : i32
    return %arg0, %c0_i32, %c0_i32_0, %c0_i32_1 : i32, i32, i32, i32
  }
  func.func @transform_1(%arg0: i32) -> (i32, i32, i32, i32) {
    %c0_i32 = arith.constant 0 : i32
    %c0_i32_0 = arith.constant 0 : i32
    %c0_i32_1 = arith.constant 0 : i32
    %c0_i32_2 = arith.constant 0 : i32
    return %arg0, %c0_i32, %c0_i32_0, %c0_i32_1 : i32, i32, i32, i32
  }
  func.func @transform_2(%arg0: i32) -> (i32, i32, i32, i32) {
    %c0_i32 = arith.constant 0 : i32
    %c0_i32_0 = arith.constant 0 : i32
    %c0_i32_1 = arith.constant 0 : i32
    %c0_i32_2 = arith.constant 0 : i32
    return %arg0, %c0_i32, %c0_i32_0, %c0_i32_1 : i32, i32, i32, i32
  }
}

module attributes {stable_mosaic.version = 11 : i64} {
  func.func @_msgms_residual_kernel(%arg0: i32, %arg1: memref<1x3x16x16xf32, #tpu.memory_space<vmem>>, %arg2: memref<1x1x16x16xf32, #tpu.memory_space<vmem>>) attributes {dimension_semantics = [#tpu.dimension_semantics<parallel>], iteration_bounds = array<i64: 8>, scalar_prefetch = 0 : i64, scratch_operands = 0 : i64, tpu.core_type = #tpu.core_type<tc>, window_params = [{transform_indices = @transform_0, window_bounds = array<i64: 1, 3, 16, 16>}, {transform_indices = @transform_1, window_bounds = array<i64: 1, 1, 16, 16>}]} {
    %c0 = arith.constant 0 : index
    %c0_0 = arith.constant 0 : index
    %c0_1 = arith.constant 0 : index
    %c0_2 = arith.constant 0 : index
    %0 = vector.load %arg1[%c0, %c0_0, %c0_1, %c0_2] : memref<1x3x16x16xf32, #tpu.memory_space<vmem>>, vector<1x3x16x16xf32>
    %cst = arith.constant 3.000000e+00 : f32
    %1 = vector.broadcast %cst : f32 to vector<1x3x16x16xf32>
    %2 = arith.divf %0, %1 : vector<1x3x16x16xf32>
    %cst_3 = arith.constant 1.000000e+00 : f32
    %3 = vector.broadcast %cst_3 : f32 to vector<1x3x16x16xf32>
    %4 = arith.subf %3, %2 : vector<1x3x16x16xf32>
    %cst_4 = arith.constant dense<0.000000e+00> : vector<1x16x16xf32>
    %5 = vector.multi_reduction <add>, %4, %cst_4 [1] : vector<1x3x16x16xf32> to vector<1x16x16xf32>
    %6 = vector.shape_cast %5 : vector<1x16x16xf32> to vector<1x1x16x16xf32>
    %cst_5 = arith.constant 3.000000e+00 : f32
    %7 = vector.broadcast %cst_5 : f32 to vector<1x1x16x16xf32>
    %8 = arith.divf %6, %7 : vector<1x1x16x16xf32>
    %c0_6 = arith.constant 0 : index
    %c0_7 = arith.constant 0 : index
    %c0_8 = arith.constant 0 : index
    %c0_9 = arith.constant 0 : index
    %9 = vector.load %arg2[%c0_6, %c0_7, %c0_8, %c0_9] : memref<1x1x16x16xf32, #tpu.memory_space<vmem>>, vector<1x1x16x16xf32>
    tpu.vector_store %arg2[%c0_6, %c0_7, %c0_8, %c0_9], %8 {strides = array<i32>} : memref<1x1x16x16xf32, #tpu.memory_space<vmem>>, vector<1x1x16x16xf32>,
    return
  }
  func.func @transform_0(%arg0: i32) -> (i32, i32, i32, i32) {
    %c0_i32 = arith.constant 0 : i32
    %c0_i32_0 = arith.constant 0 : i32
    %c0_i32_1 = arith.constant 0 : i32
    %c0_i32_2 = arith.constant 0 : i32
    return %arg0, %c0_i32, %c0_i32_0, %c0_i32_1 : i32, i32, i32, i32
  }
  func.func @transform_1(%arg0: i32) -> (i32, i32, i32, i32) {
    %c0_i32 = arith.constant 0 : i32
    %c0_i32_0 = arith.constant 0 : i32
    %c0_i32_1 = arith.constant 0 : i32
    %c0_i32_2 = arith.constant 0 : i32
    return %arg0, %c0_i32, %c0_i32_0, %c0_i32_1 : i32, i32, i32, i32
  }
}

module attributes {stable_mosaic.version = 11 : i64} {
  func.func @kernel(%arg0: i32, %arg1: memref<1x1x36x36xf32, #tpu.memory_space<vmem>>, %arg2: memref<16x36xf32, #tpu.memory_space<vmem>>, %arg3: memref<36x16xf32, #tpu.memory_space<vmem>>, %arg4: memref<1x1x16x16xf32, #tpu.memory_space<vmem>>) attributes {dimension_semantics = [#tpu.dimension_semantics<parallel>], iteration_bounds = array<i64: 2>, scalar_prefetch = 0 : i64, scratch_operands = 0 : i64, tpu.core_type = #tpu.core_type<tc>, window_params = [{transform_indices = @transform_0, window_bounds = array<i64: 1, 1, 36, 36>}, {pipeline_mode = #tpu.pipeline_mode<synchronous>, transform_indices = @transform_1, window_bounds = array<i64: 16, 36>}, {pipeline_mode = #tpu.pipeline_mode<synchronous>, transform_indices = @transform_2, window_bounds = array<i64: 36, 16>}, {transform_indices = @transform_3, window_bounds = array<i64: 1, 1, 16, 16>}]} {
    %c0 = arith.constant 0 : index
    %c0_0 = arith.constant 0 : index
    %c0_1 = arith.constant 0 : index
    %c0_2 = arith.constant 0 : index
    %0 = vector.load %arg1[%c0, %c0_0, %c0_1, %c0_2] : memref<1x1x36x36xf32, #tpu.memory_space<vmem>>, vector<1x1x36x36xf32>
    %1 = vector.shape_cast %0 : vector<1x1x36x36xf32> to vector<36x36xf32>
    %c0_3 = arith.constant 0 : index
    %c0_4 = arith.constant 0 : index
    %2 = vector.load %arg2[%c0_3, %c0_4] : memref<16x36xf32, #tpu.memory_space<vmem>>, vector<16x36xf32>
    %cst = arith.constant dense<0.000000e+00> : vector<16x36xf32>
    %3 = tpu.matmul %2, %1, %cst {dimension_numbers = #tpu.dot_dimension_numbers<[1], [0], [0], [1], [0, 0, 1, 1], [], []>} : vector<16x36xf32>, vector<36x36xf32>, vector<16x36xf32> -> vector<16x36xf32>
    %c0_5 = arith.constant 0 : index
    %c0_6 = arith.constant 0 : index
    %4 = vector.load %arg3[%c0_5, %c0_6] : memref<36x16xf32, #tpu.memory_space<vmem>>, vector<36x16xf32>
    %cst_7 = arith.constant dense<0.000000e+00> : vector<16x16xf32>
    %5 = tpu.matmul %3, %4, %cst_7 {dimension_numbers = #tpu.dot_dimension_numbers<[1], [0], [0], [1], [0, 0, 1, 1], [], []>} : vector<16x36xf32>, vector<36x16xf32>, vector<16x16xf32> -> vector<16x16xf32>
    %cst_8 = arith.constant 0.00226757373 : f32
    %6 = vector.broadcast %cst_8 : f32 to vector<16x16xf32>
    %7 = arith.mulf %5, %6 : vector<16x16xf32>
    %c0_9 = arith.constant 0 : index
    %c0_10 = arith.constant 0 : index
    %c0_11 = arith.constant 0 : index
    %c0_12 = arith.constant 0 : index
    %8 = vector.load %arg4[%c0_9, %c0_10, %c0_11, %c0_12] : memref<1x1x16x16xf32, #tpu.memory_space<vmem>>, vector<1x1x16x16xf32>
    %9 = vector.shape_cast %8 : vector<1x1x16x16xf32> to vector<16x16xf32>
    %10 = vector.shape_cast %7 : vector<16x16xf32> to vector<1x1x16x16xf32>
    tpu.vector_store %arg4[%c0_9, %c0_10, %c0_11, %c0_12], %10 {strides = array<i32>} : memref<1x1x16x16xf32, #tpu.memory_space<vmem>>, vector<1x1x16x16xf32>,
    return
  }
  func.func @transform_0(%arg0: i32) -> (i32, i32, i32, i32) {
    %c0_i32 = arith.constant 0 : i32
    %c0_i32_0 = arith.constant 0 : i32
    %c0_i32_1 = arith.constant 0 : i32
    %c0_i32_2 = arith.constant 0 : i32
    return %arg0, %c0_i32, %c0_i32_0, %c0_i32_1 : i32, i32, i32, i32
  }
  func.func @transform_1(%arg0: i32) -> (i32, i32) {
    %c0_i32 = arith.constant 0 : i32
    %c0_i32_0 = arith.constant 0 : i32
    %c0_i32_1 = arith.constant 0 : i32
    return %c0_i32, %c0_i32_0 : i32, i32
  }
  func.func @transform_2(%arg0: i32) -> (i32, i32) {
    %c0_i32 = arith.constant 0 : i32
    %c0_i32_0 = arith.constant 0 : i32
    %c0_i32_1 = arith.constant 0 : i32
    return %c0_i32, %c0_i32_0 : i32, i32
  }
  func.func @transform_3(%arg0: i32) -> (i32, i32, i32, i32) {
    %c0_i32 = arith.constant 0 : i32
    %c0_i32_0 = arith.constant 0 : i32
    %c0_i32_1 = arith.constant 0 : i32
    %c0_i32_2 = arith.constant 0 : i32
    return %arg0, %c0_i32, %c0_i32_0, %c0_i32_1 : i32, i32, i32, i32
  }
}

module attributes {stable_mosaic.version = 11 : i64} {
  func.func @_colour_kernel(%arg0: i32, %arg1: memref<1x3x16x16xf32, #tpu.memory_space<vmem>>, %arg2: memref<1x3x16x16xf32, #tpu.memory_space<vmem>>, %arg3: memref<1x1x16x16xf32, #tpu.memory_space<vmem>>) attributes {dimension_semantics = [#tpu.dimension_semantics<parallel>], iteration_bounds = array<i64: 8>, scalar_prefetch = 0 : i64, scratch_operands = 0 : i64, tpu.core_type = #tpu.core_type<tc>, window_params = [{transform_indices = @transform_0, window_bounds = array<i64: 1, 3, 16, 16>}, {transform_indices = @transform_1, window_bounds = array<i64: 1, 3, 16, 16>}, {transform_indices = @transform_2, window_bounds = array<i64: 1, 1, 16, 16>}]} {
    %c0 = arith.constant 0 : index
    %c0_0 = arith.constant 0 : index
    %c0_1 = arith.constant 0 : index
    %c0_2 = arith.constant 0 : index
    %0 = vector.load %arg1[%c0, %c0_0, %c0_1, %c0_2] : memref<1x3x16x16xf32, #tpu.memory_space<vmem>>, vector<1x3x16x16xf32>
    %c0_3 = arith.constant 0 : index
    %c0_4 = arith.constant 0 : index
    %c0_5 = arith.constant 0 : index
    %c0_6 = arith.constant 0 : index
    %1 = vector.load %arg2[%c0_3, %c0_4, %c0_5, %c0_6] : memref<1x3x16x16xf32, #tpu.memory_space<vmem>>, vector<1x3x16x16xf32>
    %2 = arith.subf %0, %1 : vector<1x3x16x16xf32>
    %3 = math.absf %2 : vector<1x3x16x16xf32>
    %cst = arith.constant dense<0.000000e+00> : vector<1x16x16xf32>
    %4 = vector.multi_reduction <add>, %3, %cst [1] : vector<1x3x16x16xf32> to vector<1x16x16xf32>
    %5 = vector.shape_cast %4 : vector<1x16x16xf32> to vector<1x1x16x16xf32>
    %cst_7 = arith.constant 3.000000e+00 : f32
    %6 = vector.broadcast %cst_7 : f32 to vector<1x1x16x16xf32>
    %7 = arith.divf %5, %6 : vector<1x1x16x16xf32>
    %c0_8 = arith.constant 0 : index
    %c0_9 = arith.constant 0 : index
    %c0_10 = arith.constant 0 : index
    %c0_11 = arith.constant 0 : index
    %8 = vector.load %arg3[%c0_8, %c0_9, %c0_10, %c0_11] : memref<1x1x16x16xf32, #tpu.memory_space<vmem>>, vector<1x1x16x16xf32>
    tpu.vector_store %arg3[%c0_8, %c0_9, %c0_10, %c0_11], %7 {strides = array<i32>} : memref<1x1x16x16xf32, #tpu.memory_space<vmem>>, vector<1x1x16x16xf32>,
    return
  }
  func.func @transform_0(%arg0: i32) -> (i32, i32, i32, i32) {
    %c0_i32 = arith.constant 0 : i32
    %c0_i32_0 = arith.constant 0 : i32
    %c0_i32_1 = arith.constant 0 : i32
    %c0_i32_2 = arith.constant 0 : i32
    return %arg0, %c0_i32, %c0_i32_0, %c0_i32_1 : i32, i32, i32, i32
  }
  func.func @transform_1(%arg0: i32) -> (i32, i32, i32, i32) {
    %c0_i32 = arith.constant 0 : i32
    %c0_i32_0 = arith.constant 0 : i32
    %c0_i32_1 = arith.constant 0 : i32
    %c0_i32_2 = arith.constant 0 : i32
    return %arg0, %c0_i32, %c0_i32_0, %c0_i32_1 : i32, i32, i32, i32
  }
  func.func @transform_2(%arg0: i32) -> (i32, i32, i32, i32) {
    %c0_i32 = arith.constant 0 : i32
    %c0_i32_0 = arith.constant 0 : i32
    %c0_i32_1 = arith.constant 0 : i32
    %c0_i32_2 = arith.constant 0 : i32
    return %arg0, %c0_i32, %c0_i32_0, %c0_i32_1 : i32, i32, i32, i32
  }
}

module attributes {stable_mosaic.version = 11 : i64} {
  func.func @_denorm_kernel(%arg0: i32, %arg1: memref<1x3x16x16xf32, #tpu.memory_space<vmem>>, %arg2: memref<1x3x16x16xf32, #tpu.memory_space<vmem>>) attributes {dimension_semantics = [#tpu.dimension_semantics<parallel>], iteration_bounds = array<i64: 8>, scalar_prefetch = 0 : i64, scratch_operands = 0 : i64, tpu.core_type = #tpu.core_type<tc>, window_params = [{transform_indices = @transform_0, window_bounds = array<i64: 1, 3, 16, 16>}, {transform_indices = @transform_1, window_bounds = array<i64: 1, 3, 16, 16>}]} {
    %c0 = arith.constant 0 : index
    %c0_0 = arith.constant 0 : index
    %c0_1 = arith.constant 0 : index
    %c0_2 = arith.constant 0 : index
    %0 = vector.load %arg1[%c0, %c0_0, %c0_1, %c0_2] : memref<1x3x16x16xf32, #tpu.memory_space<vmem>>, vector<1x3x16x16xf32>
    %cst = arith.constant 5.000000e-01 : f32
    %1 = vector.broadcast %cst : f32 to vector<1x3x16x16xf32>
    %2 = arith.mulf %0, %1 : vector<1x3x16x16xf32>
    %cst_3 = arith.constant 5.000000e-01 : f32
    %3 = vector.broadcast %cst_3 : f32 to vector<1x3x16x16xf32>
    %4 = arith.addf %2, %3 : vector<1x3x16x16xf32>
    %c0_4 = arith.constant 0 : index
    %c0_5 = arith.constant 0 : index
    %c0_6 = arith.constant 0 : index
    %c0_7 = arith.constant 0 : index
    %5 = vector.load %arg2[%c0_4, %c0_5, %c0_6, %c0_7] : memref<1x3x16x16xf32, #tpu.memory_space<vmem>>, vector<1x3x16x16xf32>
    tpu.vector_store %arg2[%c0_4, %c0_5, %c0_6, %c0_7], %4 {strides = array<i32>} : memref<1x3x16x16xf32, #tpu.memory_space<vmem>>, vector<1x3x16x16xf32>,
    return
  }
  func.func @transform_0(%arg0: i32) -> (i32, i32, i32, i32) {
    %c0_i32 = arith.constant 0 : i32
    %c0_i32_0 = arith.constant 0 : i32
    %c0_i32_1 = arith.constant 0 : i32
    %c0_i32_2 = arith.constant 0 : i32
    return %arg0, %c0_i32, %c0_i32_0, %c0_i32_1 : i32, i32, i32, i32
  }
  func.func @transform_1(%arg0: i32) -> (i32, i32, i32, i32) {
    %c0_i32 = arith.constant 0 : i32
    %c0_i32_0 = arith.constant 0 : i32
    %c0_i32_1 = arith.constant 0 : i32
    %c0_i32_2 = arith.constant 0 : i32
    return %arg0, %c0_i32, %c0_i32_0, %c0_i32_1 : i32, i32, i32, i32
  }
}

module attributes {stable_mosaic.version = 11 : i64} {
  func.func @_denorm_kernel(%arg0: i32, %arg1: memref<1x3x16x16xf32, #tpu.memory_space<vmem>>, %arg2: memref<1x3x16x16xf32, #tpu.memory_space<vmem>>) attributes {dimension_semantics = [#tpu.dimension_semantics<parallel>], iteration_bounds = array<i64: 2>, scalar_prefetch = 0 : i64, scratch_operands = 0 : i64, tpu.core_type = #tpu.core_type<tc>, window_params = [{transform_indices = @transform_0, window_bounds = array<i64: 1, 3, 16, 16>}, {transform_indices = @transform_1, window_bounds = array<i64: 1, 3, 16, 16>}]} {
    %c0 = arith.constant 0 : index
    %c0_0 = arith.constant 0 : index
    %c0_1 = arith.constant 0 : index
    %c0_2 = arith.constant 0 : index
    %0 = vector.load %arg1[%c0, %c0_0, %c0_1, %c0_2] : memref<1x3x16x16xf32, #tpu.memory_space<vmem>>, vector<1x3x16x16xf32>
    %cst = arith.constant 5.000000e-01 : f32
    %1 = vector.broadcast %cst : f32 to vector<1x3x16x16xf32>
    %2 = arith.mulf %0, %1 : vector<1x3x16x16xf32>
    %cst_3 = arith.constant 5.000000e-01 : f32
    %3 = vector.broadcast %cst_3 : f32 to vector<1x3x16x16xf32>
    %4 = arith.addf %2, %3 : vector<1x3x16x16xf32>
    %c0_4 = arith.constant 0 : index
    %c0_5 = arith.constant 0 : index
    %c0_6 = arith.constant 0 : index
    %c0_7 = arith.constant 0 : index
    %5 = vector.load %arg2[%c0_4, %c0_5, %c0_6, %c0_7] : memref<1x3x16x16xf32, #tpu.memory_space<vmem>>, vector<1x3x16x16xf32>
    tpu.vector_store %arg2[%c0_4, %c0_5, %c0_6, %c0_7], %4 {strides = array<i32>} : memref<1x3x16x16xf32, #tpu.memory_space<vmem>>, vector<1x3x16x16xf32>,
    return
  }
  func.func @transform_0(%arg0: i32) -> (i32, i32, i32, i32) {
    %c0_i32 = arith.constant 0 : i32
    %c0_i32_0 = arith.constant 0 : i32
    %c0_i32_1 = arith.constant 0 : i32
    %c0_i32_2 = arith.constant 0 : i32
    return %arg0, %c0_i32, %c0_i32_0, %c0_i32_1 : i32, i32, i32, i32
  }
  func.func @transform_1(%arg0: i32) -> (i32, i32, i32, i32) {
    %c0_i32 = arith.constant 0 : i32
    %c0_i32_0 = arith.constant 0 : i32
    %c0_i32_1 = arith.constant 0 : i32
    %c0_i32_2 = arith.constant 0 : i32
    return %arg0, %c0_i32, %c0_i32_0, %c0_i32_1 : i32, i32, i32, i32
  }
}

</mosaic_0001>

<bundles_post_ra>
// kernel: _forward_impl.23
= control target key start
LH: loop header
LB: loop body
LE: loop exit
PB: predicated region body
PF: predicated region fallthrough
CT: control target
= control target key end

     0   :  { %7 = vsyncpa [#allocation3], 0  ;;  %s639_s0 = inlined_call_operand.hbm [shape: f32[2,3,16,16], index: 0, kind: input, shape index: {}]   ;;  %s640_s1 = inlined_call_operand.hbm [shape: f32[2,1,16,16], index: 1, kind: input, shape index: {}]   ;;  %s641_s2 = inlined_call_operand.vmem [shape: f32[2,3,16,16], index: 2, kind: output, shape index: {}]  }
   0x1   :  { %9 = vsyncpa [#allocation3 + $0x1], 0 }
   0x2   :  { %10 = vsyncpa [#allocation5], 0 }
   0x3   :  { %12 = vsyncpa [#allocation5 + $0x1], 0  ;;  %s507_s9 = smov 0   ;;  %s509_s10 = smov 0  }
   0x4   :  { %s511_s11 = smov 0   ;;  %s513_s12 = smov 0  }
   0x5 LB: > { %s526_s13 = sadd.s32 4294967295, %s488_s12   ;;  %s529_s14 = sadd.s32 1, %s488_s12   ;;  %s488_s12 = sphi %s513_s12, %s648_s12   ;;  %s484_s11 = sphi %s511_s11, %s647_s11   ;;  %s480_s10 = sphi %s509_s10, %s646_s10   ;;  %s476_s9 = sphi %s507_s9, %s645_s9  }
   0x6   : > { %s22_s15 = ssub.s32 %s488_s12, %s529_s14  ;;  %s25_s16 = sadd.s32 1, %s484_s11 }
   0x7   : > { %p23_p0 = scmp.eq.s32.totalorder %s22_s15, 0  ;;  %p32_p1 = scmp.ne.s32.totalorder %s484_s11, %s480_s10 }
   0x8   : > { %p33_p2 = scmp.eq.s32.totalorder %s488_s12, 0  ;;  %p38_p3 = scmp.ne.s32.totalorder %s480_s10, %s476_s9 }
   0x9   : > { %s539_s17 = scalar_select %p23_p0, %s484_s11, %s25_s16  }
   0xa   : > { %p34_p4 = por %p33_p2, %p32_p1  ;;  %p39_p5 = scmp.eq.s32.totalorder %s526_s13, 0 }
   0xb   : > { %p355_p6 = scmp.lt.s32.totalorder %s488_s12, 2  ;;  %s548_s19 = sand.u32 1, %s484_s11  }
   0xc   : > { %p543_p7 = por %p39_p5, %p38_p3  ;;  %s340_s20 = smul.u32 48, %s548_s19 }
   0xd   : > { %s341_s21 = smul.u32 48, %s488_s12  ;;  %p552_p8 = pnand %p355_p6, %p34_p4 }
   0xe   : > { %s118_s26 = scalar_lea.vmem [#allocation2], %s340_s20  ;;  %p334_p9 = scmp.ge.s32.totalorder %s488_s12, 1 }
   0xf   : > { %s123_s25 = scalar_lea.hbm %s639_s0, %s341_s21  ;;  %s126_s27 = sshll.u32 %s118_s26, 4  ;;  %s127_s27 = int_to_ptr.vmem [resolvable:$true] %s126_s27 }
  0x10   : > { %s124_s28 = sshll.u32 %s123_s25, 4  ;;  %s115_s29 = scalar_lea.sflag [#allocation3], %s548_s19  ;;  %s125_s28 = int_to_ptr.hbm [resolvable:$true] %s124_s28 }
  0x11   : > { %s390_s30 = sshra.s32 %s125_s28, 4  ;;  %p394_p11 = pneg %p552_p8  ;;  %s391_s30 = int_to_ptr.hbm [resolvable:$true] %s390_s30 }
  0x12   : > { %s392_s3 = scalar_lea.hbm %s391_s30, 48  ;;  %s397_s6 = scalar_lea.hbm %s639_s0, 96 }
  0x13   : > { %p393_p10 = scmp.ne.s32.totalorder %s391_s30, %s392_s3  ;;  %p398_p0 = scmp.lt.s32.totalorder %s391_s30, %s639_s0 }
  0x14   : > { %p399_p1 = scmp.lt.s32.totalorder %s397_s6, %s392_s3 }
  0x15   : > { %p395_p12 = pnand %p394_p11, %p393_p10 }
  0x16   : > { %p400_p2 = por %p399_p1, %p398_p0 }
  0x17   : > { %p396_p13 = pneg %p395_p12 }
  0x19   : > { %p401_p3 = pnand %p400_p2, %p396_p13 }
  0x1b   : > { %404 = shalt.err (!%p401_p3)
}
  0x1c   : > { %s490_s9 = smov 128   ;;  %s491_s15 = smov 8  }
  0x1d   : > { %351 = dma.hbm_to_vmem [thread:$0]  (!%p552_p8), %s125_s28, 768, %s127_s27, %s115_s29, %s490_s9, %s490_s9, %s491_s15  }
  0x1e   : > { %p156_p4 = scmp.lt.s32.totalorder %s488_s12, 3  ;;  %s331_s16 = sshll.u32 %s548_s19, 4 }
  0x1f   : > { %s339_s20 = sshll.u32 %s488_s12, 4  ;;  %s140_s26 = scalar_lea.vmem [#allocation4], %s331_s16 }
  0x20   : > { %p582_p5 = pnand %p334_p9, %p156_p4  ;;  %s145_s25 = scalar_lea.hbm %s640_s1, %s339_s20 }
  0x21   : > { %s148_s30 = sshll.u32 %s140_s26, 4  ;;  %s146_s3 = sshll.u32 %s145_s25, 4  ;;  %s149_s30 = int_to_ptr.vmem [resolvable:$true] %s148_s30  ;;  %s147_s3 = int_to_ptr.hbm [resolvable:$true] %s146_s3 }
  0x22   : > { %s137_s4 = scalar_lea.sflag [#allocation5], %s548_s19  ;;  %s420_s27 = sshra.s32 %s147_s3, 4  ;;  %s421_s27 = int_to_ptr.hbm [resolvable:$true] %s420_s27 }
  0x23   : > { %s422_s28 = scalar_lea.hbm %s421_s27, 16  ;;  %s427_s5 = scalar_lea.hbm %s640_s1, 32 }
  0x24   : > { %p423_p6 = scmp.ne.s32.totalorder %s421_s27, %s422_s28  ;;  %p428_p12 = scmp.lt.s32.totalorder %s421_s27, %s640_s1 }
  0x25   : > { %p429_p13 = scmp.lt.s32.totalorder %s427_s5, %s422_s28 }
  0x26   : > { %p425_p9 = pnand %p423_p6, %p394_p11 }
  0x27   : > { %p430_p0 = por %p429_p13, %p428_p12 }
  0x28   : > { %p426_p10 = pneg %p425_p9 }
  0x2a   : > { %p431_p1 = pnand %p430_p0, %p426_p10 }
  0x2c   : > { %434 = shalt.err (!%p431_p1)
}
  0x2d   : > { %354 = dma.hbm_to_vmem [thread:$0]  (!%p552_p8), %s147_s3, 256, %s149_s30, %s137_s4, %s490_s9, %s490_s9, %s491_s15  }
  0x2e   : > { %160 = sbr.rel (%p582_p5) target bundleno = 67 (0x43), region = 28  ;;  %s162_s19 = sand.u32 (!%p582_p5), 1, %s480_s10  }
  0x2f   : > { %s342_s8 = smul.u32 (!%p582_p5), 48, %s162_s19  ;;  %s163_s16 = scalar_lea.sflag (!%p582_p5), [#allocation3], %s162_s19 }
  0x31   : > { %s166_s20 = scalar_lea.vmem (!%p582_p5), [#allocation2], %s342_s8 }
  0x33   : > { %467 = dma.done.wait (%p543_p7), %s163_s16, 768  }
  0x34   : > { %469 = vsyncadd (%p543_p7), %s163_s16, 4294966528  ;;  %s335_s22 = sshll.u32 %s162_s19, 4  ;;  %s173_s23 = scalar_lea.sflag [#allocation5], %s162_s19 }
  0x35   : > { %s176_s24 = scalar_lea.vmem [#allocation4], %s335_s22 }
  0x36   : > { %471 = dma.done.wait (%p543_p7), %s173_s23, 256  }
  0x37   : > { %473 = vsyncadd (%p543_p7), %s173_s23, 4294967040  ;;  %p203_p8 = scmp.lt.s32.totalorder %s526_s13, 1  ;;  %v208_v0 = vld [vmem:[%s176_s24] sm:$0xff]  ;;  %v209_v2 = vld [vmem:[%s176_s24 + $0x8] sm:$0xff]  ;;  %vm230_vm0 = vcmask 130048  }
  0x38   : > { %v210_v1 = vld [vmem:[%s166_s20] sm:$0xff]  ;;  %v222_v4 = vsub.f32 1.0, %v208_v0  ;;  %v211_v5 = vld [vmem:[%s166_s20 + $0x8] sm:$0xff]  ;;  %v223_v6 = vsub.f32 1.0, %v209_v2  ;;  %v212_v7 = vld [vmem:[%s166_s20 + $0x10] sm:$0xff] }
  0x39   : > { %s650_s13 = smov (!%p203_p8, %s526_s13), 1  ;;  %v216_v3 = vmul.f32 %v210_v1, %v208_v0  ;;  %v213_v8 = vld [vmem:[%s166_s20 + $0x18] sm:$0xff]  ;;  %v217_v9 = vmul.f32 %v211_v5, %v209_v2  ;;  %v218_v10 = vmul.f32 %v212_v7, %v208_v0  ;;  %v214_v12 = vld [vmem:[%s166_s20 + $0x20] sm:$0xff]  ;;  %v215_v13 = vld [vmem:[%s166_s20 + $0x28] sm:$0xff] }
  0x3a   : > { %s343_s9 = smul.u32 48, %s650_s13  ;;  %v219_v11 = vmul.f32 %v213_v8, %v209_v2  ;;  %v220_v15 = vmul.f32 %v214_v12, %v208_v0  ;;  %v221_v16 = vmul.f32 %v215_v13, %v209_v2 }
  0x3b   : > { %v224_v14 = vsub.f32 %v216_v3, %v222_v4  ;;  %v225_v17 = vsub.f32 %v217_v9, %v223_v6  ;;  %v226_v18 = vsub.f32 %v218_v10, %v222_v4 }
  0x3c   : > { %s207_s25 = scalar_lea.vmem %s641_s2, %s343_s9  ;;  %v227_v19 = vsub.f32 %v219_v11, %v223_v6  ;;  %v228_v20 = vsub.f32 %v220_v15, %v222_v4  ;;  %v229_v21 = vsub.f32 %v221_v16, %v223_v6 }
  0x3d   : > { %231 = vst.msk [vmem:[%s207_s25] sm:$0xff] %vm230_vm0, %v224_v14 }
  0x3e   : > { %232 = vst.msk [vmem:[%s207_s25 + $0x8] sm:$0xff] %vm230_vm0, %v225_v17 }
  0x3f   : > { %233 = vst.msk [vmem:[%s207_s25 + $0x10] sm:$0xff] %vm230_vm0, %v226_v18 }
  0x40   : > { %234 = vst.msk [vmem:[%s207_s25 + $0x18] sm:$0xff] %vm230_vm0, %v227_v19 }
  0x41   : > { %235 = vst.msk [vmem:[%s207_s25 + $0x20] sm:$0xff] %vm230_vm0, %v228_v20 }
  0x42   : > { %236 = vst.msk [vmem:[%s207_s25 + $0x28] sm:$0xff] %vm230_vm0, %v229_v21 }
  0x43 PF: > { %p15_p7 = scmp.ge.s32.totalorder %s529_s14, 4   ;;  %s645_s9 = smov %s480_s10 }
  0x44   : > { %s646_s10 = smov %s484_s11  ;;  %s647_s11 = smov %s539_s17 }
  0x45   : > { %s648_s12 = smov %s529_s14  ;;  %17 = sbr.rel (!%p15_p7) target bundleno = 5 (0x5), region = 81 }
  0x4a   :  { %258 = vsyncpa [#allocation3], 1 }
  0x4b   :  { %260 = vsyncpa [#allocation3 + $0x1], 1 }
  0x4c   :  { %261 = vsyncpa [#allocation5], 1 }
  0x4d   :  { %263 = vsyncpa [#allocation5 + $0x1], 1 }

// kernel: _forward_impl.24
= control target key start
LH: loop header
LB: loop body
LE: loop exit
PB: predicated region body
PF: predicated region fallthrough
CT: control target
= control target key end

     0   :  { %8 = vsyncpa [#allocation3], 0  ;;  %s753_s0 = inlined_call_operand.vmem [shape: f32[12,3,16,16], index: 0, kind: input, shape index: {}]   ;;  %s754_s1 = inlined_call_operand.vmem [shape: f32[2,3,16,16], index: 1, kind: input, shape index: {}]   ;;  %s755_s2 = inlined_call_operand.hbm [shape: f32[12,16,16], index: 2, kind: input, shape index: {}]   ;;  %s756_s3 = inlined_call_operand.vmem [shape: bf16[24,3,16,16], index: 3, kind: output, shape index: {}]  }
   0x1   :  { %10 = vsyncpa [#allocation3 + $0x1], 0  ;;  %s624_s12 = smov 0   ;;  %s626_s13 = smov 0  }
   0x2   :  { %s628_s14 = smov 0   ;;  %s630_s15 = smov 0  }
   0x3   :  { %s632_s16 = smov 0   ;;  %s634_s17 = smov 0  }
   0x4   :  { %s636_s18 = smov 0   ;;  %s638_s19 = smov 0  }
   0x5 LB: > { %s410_s20 = sadd.s32 4294967295, %s600_s19   ;;  %s25_s21 = sadd.s32 1, %s592_s17  ;;  %s600_s19 = sphi %s638_s19, %s16_s19   ;;  %s596_s18 = sphi %s636_s18, %s765_s18   ;;  %s592_s17 = sphi %s634_s17, %s764_s17   ;;  %s588_s16 = sphi %s632_s16, %s763_s16   ;;  %s584_s15 = sphi %s630_s15, %s762_s15   ;;  %s580_s14 = sphi %s628_s14, %s761_s14   ;;  %s576_s13 = sphi %s626_s13, %s760_s13   ;;  %s572_s12 = sphi %s624_s12, %s759_s12  }
   0x6   : > { %p26_p0 = scmp.ge.s32.totalorder %s25_s21, 2  ;;  %s28_s22 = sadd.s32 1, %s596_s18 }
   0x7   : > { %s87_s23 = sadd.s32 1, %s580_s14  ;;  %p94_p1 = scmp.ne.s32.totalorder %s580_s14, %s576_s13 }
   0x8   : > { %s767_s21 = smov (%p26_p0, %s25_s21), 0  ;;  %s769_s22 = smov (!%p26_p0, %s28_s22), %s596_s18 }
   0x9   : > { %p95_p2 = scmp.eq.s32.totalorder %s600_s19, 0  ;;  %p100_p3 = scmp.ne.s32.totalorder %s576_s13, %s572_s12 }
   0xa   : > { %p30_p4 = scmp.ge.s32.totalorder %s769_s22, 12  ;;  %p101_p5 = scmp.eq.s32.totalorder %s410_s20, 0 }
   0xb   : > { %p673_p6 = por %p95_p2, %p94_p1  ;;  %p437_p8 = scmp.lt.s32.totalorder %s600_s19, 24 }
   0xc   : > { %s771_s22 = smov (%p30_p4, %s769_s22), 0  ;;  %p679_p7 = por %p101_p5, %p100_p3 }
   0xd   : > { %s84_s26 = ssub.s32 %s596_s18, %s771_s22  ;;  %s170_s27 = sand.u32 1, %s580_s14  }
   0xe   : > { %p85_p9 = scmp.eq.s32.totalorder %s84_s26, 0  ;;  %s416_s28 = sshll.u32 %s170_s27, 4 }
   0xf   : > { %s427_s29 = sshll.u32 %s596_s18, 4  ;;  %s174_s8 = scalar_lea.vmem [#allocation2], %s416_s28 }
  0x10   : > { %s689_s30 = scalar_select %p85_p9, %s580_s14, %s87_s23  }
  0x11   : > { %s179_s6 = scalar_lea.hbm %s755_s2, %s427_s29  ;;  %s182_s9 = sshll.u32 %s174_s8, 4  ;;  %s183_s9 = int_to_ptr.vmem [resolvable:$true] %s182_s9 }
  0x12   : > { %s180_s7 = sshll.u32 %s179_s6, 4  ;;  %p434_p10 = pnand %p437_p8, %p673_p6  ;;  %s181_s7 = int_to_ptr.hbm [resolvable:$true] %s180_s7 }
  0x13   : > { %p419_p11 = scmp.ge.s32.totalorder %s600_s19, 1  ;;  %p190_p12 = scmp.lt.s32.totalorder %s600_s19, 25 }
  0x14   : > { %s171_s10 = scalar_lea.sflag [#allocation3], %s170_s27  ;;  %s602_s11 = smov 128  }
  0x15   : > { %s603_s12 = smov 8   ;;  %p191_p13 = pnand %p419_p11, %p190_p12 }
  0x16   : > { %436 = dma.hbm_to_vmem [thread:$0]  (!%p434_p10), %s181_s7, 256, %s183_s9, %s171_s10, %s602_s11, %s602_s11, %s603_s12  }
  0x17   : > { %194 = sbr.rel (%p191_p13) target bundleno = 50 (0x32), region = 32  ;;  %s196_s20 = sand.u32 (!%p191_p13), 1, %s576_s13  }
  0x18   : > { %s420_s23 = sshll.u32 (!%p191_p13), %s196_s20, 4  ;;  %s197_s26 = scalar_lea.sflag (!%p191_p13), [#allocation3], %s196_s20 }
  0x19   : > { %s200_s28 = scalar_lea.vmem (!%p191_p13), [#allocation2], %s420_s23 }
  0x1c   : > { %567 = dma.done.wait (%p679_p7), %s197_s26, 256  }
  0x1d   : > { %569 = vsyncadd (%p679_p7), %s197_s26, 4294967040  ;;  %p236_p0 = scmp.lt.s32.totalorder %s588_s16, 11  ;;  %p241_p1 = scmp.lt.s32.totalorder %s584_s15, 1  ;;  %v261_v0 = vld [vmem:[%s200_s28] sm:$0xff]  ;;  %v262_v2 = vld [vmem:[%s200_s28 + $0x8] sm:$0xff]  ;;  %vm295_vm0 = vcmask 125952  }
  0x1e   : > { %s423_s24 = sshll.u32 %s588_s16, 1  ;;  %v275_v4 = vsub.f32 1.0, %v261_v0  ;;  %v276_v7 = vsub.f32 1.0, %v262_v2 }
  0x1f   : > { %s773_s16 = smov (!%p236_p0, %s588_s16), 11  ;;  %s247_s4 = sadd.s32 %s584_s15, %s423_s24 }
  0x20   : > { %s242_s27 = scalar_select %p241_p1, %s584_s15, 1 }
  0x21   : > { %s428_s29 = smul.u32 48, %s773_s16  ;;  %p248_p2 = scmp.lt.s32.totalorder %s247_s4, 23 }
  0x22   : > { %s429_s5 = smul.u32 48, %s242_s27 }
  0x23   : > { %s240_s25 = scalar_lea.vmem %s753_s0, %s428_s29  ;;  %s775_s4 = smov (!%p248_p2, %s247_s4), 23 }
  0x24   : > { %s245_s10 = scalar_lea.vmem %s754_s1, %s429_s5  ;;  %v269_v1 = vld [vmem:[%s240_s25] sm:$0xff]  ;;  %v270_v6 = vld [vmem:[%s240_s25 + $0x8] sm:$0xff]  ;;  %v271_v11 = vld [vmem:[%s240_s25 + $0x10] sm:$0xff]  ;;  %s430_s15 = smul.u32 24, %s775_s4 }
  0x25   : > { %v255_v3 = vld [vmem:[%s245_s10] sm:$0xff]  ;;  %v256_v5 = vld [vmem:[%s245_s10 + $0x8] sm:$0xff]  ;;  %v257_v10 = vld [vmem:[%s245_s10 + $0x10] sm:$0xff]  ;;  %v277_v13 = vmul.f32 %v275_v4, %v269_v1  ;;  %v278_v14 = vmul.f32 %v276_v7, %v270_v6  ;;  %v279_v16 = vmul.f32 %v275_v4, %v271_v11 }
  0x26   : > { %v263_v8 = vmul.f32 %v261_v0, %v255_v3  ;;  %v264_v9 = vmul.f32 %v262_v2, %v256_v5  ;;  %v258_v12 = vld [vmem:[%s245_s10 + $0x18] sm:$0xff]  ;;  %v265_v15 = vmul.f32 %v261_v0, %v257_v10  ;;  %v259_v18 = vld [vmem:[%s245_s10 + $0x20] sm:$0xff]  ;;  %v260_v24 = vld [vmem:[%s245_s10 + $0x28] sm:$0xff]  ;;  %s252_s12 = scalar_lea.vmem %s756_s3, %s430_s15 }
  0x27   : > { %v272_v17 = vld [vmem:[%s240_s25 + $0x18] sm:$0xff]  ;;  %v273_v19 = vld [vmem:[%s240_s25 + $0x20] sm:$0xff]  ;;  %v266_v20 = vmul.f32 %v262_v2, %v258_v12  ;;  %v267_v22 = vmul.f32 %v261_v0, %v259_v18  ;;  %v274_v25 = vld [vmem:[%s240_s25 + $0x28] sm:$0xff]  ;;  %v268_v29 = vmul.f32 %v262_v2, %v260_v24 }
  0x28   : > { %v280_v21 = vmul.f32 %v276_v7, %v272_v17  ;;  %v281_v23 = vmul.f32 %v275_v4, %v273_v19  ;;  %v283_v26 = vadd.f32 %v277_v13, %v263_v8  ;;  %v284_v27 = vadd.f32 %v278_v14, %v264_v9 }
  0x29   : > { %v285_v28 = vadd.f32 %v279_v16, %v265_v15  ;;  %v282_v32 = vmul.f32 %v276_v7, %v274_v25 }
  0x2a   : > { %v286_v30 = vadd.f32 %v280_v21, %v266_v20  ;;  %v287_v31 = vadd.f32 %v281_v23, %v267_v22  ;;  %v289_v33 = vpack.c.bf16 %v283_v26, %v283_v26  ;;  %v290_v34 = vpack.c.bf16 %v284_v27, %v284_v27 }
  0x2b   : > { %v291_v35 = vpack.c.bf16 %v285_v28, %v285_v28  ;;  %v288_v37 = vadd.f32 %v282_v32, %v268_v29 }
  0x2c   : > { %v292_v36 = vpack.c.bf16 %v286_v30, %v286_v30  ;;  %296 = vst.msk [vmem:[%s252_s12] sm:$0xf] %vm295_vm0, %v289_v33  ;;  %v293_v38 = vpack.c.bf16 %v287_v31, %v287_v31 }
  0x2d   : > { %297 = vst.msk [vmem:[%s252_s12 + $0x4] sm:$0xf] %vm295_vm0, %v290_v34  ;;  %v294_v39 = vpack.c.bf16 %v288_v37, %v288_v37 }
  0x2e   : > { %298 = vst.msk [vmem:[%s252_s12 + $0x8] sm:$0xf] %vm295_vm0, %v291_v35 }
  0x2f   : > { %299 = vst.msk [vmem:[%s252_s12 + $0xc] sm:$0xf] %vm295_vm0, %v292_v36 }
  0x30   : > { %300 = vst.msk [vmem:[%s252_s12 + $0x10] sm:$0xf] %vm295_vm0, %v293_v38 }
  0x31   : > { %301 = vst.msk [vmem:[%s252_s12 + $0x14] sm:$0xf] %vm295_vm0, %v294_v39 }
  0x32 PF: > { %s16_s19 = sadd.s32 1, %s600_s19   ;;  %s759_s12 = smov %s576_s13 }
  0x33   : > { %p13_p3 = scmp.ge.s32.totalorder %s16_s19, 26   ;;  %s760_s13 = smov %s580_s14 }
  0x34   : > { %s761_s14 = smov %s689_s30  ;;  %s762_s15 = smov %s592_s17 }
  0x35   : > { %s763_s16 = smov %s596_s18  ;;  %s764_s17 = smov %s767_s21 }
  0x36   : > { %s765_s18 = smov %s771_s22  ;;  %15 = sbr.rel (!%p13_p3) target bundleno = 5 (0x5), region = 78 }
  0x3b   :  { %329 = vsyncpa [#allocation3], 1 }
  0x3c   :  { %331 = vsyncpa [#allocation3 + $0x1], 1 }

// kernel: _forward_impl.25
= control target key start
LH: loop header
LB: loop body
LE: loop exit
PB: predicated region body
PF: predicated region fallthrough
CT: control target
= control target key end

     0   :  { %s994_s12 = smov 0   ;;  %s1124_s0 = inlined_call_operand.vmem [shape: bf16[24,3,326], index: 0, kind: input, shape index: {}]   ;;  %s1125_s1 = inlined_call_operand.vmem [shape: bf16[9,8,3], index: 1, kind: input, shape index: {}]   ;;  %s1126_s2 = inlined_call_operand.vmem [shape: f32[8,1], index: 2, kind: input, shape index: {}]   ;;  %s1127_s3 = inlined_call_operand.vmem [shape: bf16[24,8,288], index: 3, kind: output, shape index: {}]  }
   0x1 LB: > { %s891_s13 = sadd.s32 4294967295, %s962_s12   ;;  %p895_p0 = scmp.ge.s32.totalorder %s962_s12, 1  ;;  %s962_s12 = sphi %s994_s12, %s13_s12  }
   0x2   : > { %p137_p1 = scmp.lt.s32.totalorder %s962_s12, 25 }
   0x4   : > { %p138_p2 = pnand %p895_p0, %p137_p1 }
   0x5   : > { %p161_p3 = scmp.lt.s32.totalorder (!%p138_p2), %s891_s13, 23  ;;  %s964_s18 = smov (!%p138_p2), 127  }
   0x6   : > { %141 = sbr.rel (%p138_p2) target bundleno = 385 (0x181), region = 32  ;;  %s965_s19 = smov (!%p138_p2), 126  }
   0x7   : > { %s966_s20 = smov (!%p138_p2), 110   ;;  %s967_s21 = smov (!%p138_p2), 109  }
   0x8   : > { %s968_s22 = smov (!%p138_p2), 108   ;;  %s969_s23 = smov (!%p138_p2), 92  }
   0x9   : > { %s970_s24 = smov (!%p138_p2), 91   ;;  %s971_s25 = smov (!%p138_p2), 90  }
   0xb   : > { %s1129_s13 = smov (!%p161_p3, %s891_s13), 23  ;;  %vm197_vm0 = vcmask 1040384   ;;  %vm198_vm1 = vcmask 1041408   ;;  %v972_v34 = vmov 65535   ;;  %v173_v39 = vld [vmem:[%s1125_s1] sm:$0xf] }
   0xc   : > { %s935_s14 = smul.u32 6, %s1129_s13  ;;  %v199_v35 = vsel %vm197_vm0, 4294967295, %v972_v34  ;;  %vm193_vm2 = vcmask 23552   ;;  %vm190_vm3 = vcmask 1039360   ;;  %vm318_vm4 = vcmask 1031168  }
   0xd   : > { %v1024_v37 = vsel %vm198_vm1, %v199_v35, 0  ;;  %v898_v48 = vld [vmem:[%s1125_s1 + $0x4] sm:$0xf]  ;;  %v905_v52 = vld [vmem:[%s1125_s1 + $0x8] sm:$0xf]  ;;  %vm392_vm5 = vcmask 900096  }
   0xe   : > { %s1008_s17 = scalar_lea.vmem %s1124_s0, %s935_s14  ;;  %vm466_vm6 = vcmask 891904   ;;  %vm540_vm7 = vcmask 883712   ;;  %vm614_vm8 = vcmask 752640   ;;  %vm688_vm9 = vcmask 744448  }
   0xf   : > { %v172_v0 = vld [vmem:[%s1008_s17] sm:$0x3f]  ;;  %vm762_vm10 = vcmask 736256   ;;  %vm834_vm11 = vcmask 257024  }
  0x10   : > { %177 = vst [vmem:[#allocation1] ss:$4 sm:$0xff] %v172_v0  ;;  %v301_v4 = vld [vmem:[%s1008_s17] sm:$0x3f] }
  0x11   : > { %v375_v8 = vld [vmem:[%s1008_s17] sm:$0x3f] }
  0x12   : > { %v449_v12 = vld [vmem:[%s1008_s17] sm:$0x3f] }
  0x13   : > { %v523_v16 = vld [vmem:[%s1008_s17] sm:$0x3f] }
  0x14   : > { %v597_v20 = vld [vmem:[%s1008_s17] sm:$0x3f] }
  0x15   : > { %v671_v24 = vld [vmem:[%s1008_s17] sm:$0x3f] }
  0x16   : > { %v745_v28 = vld [vmem:[%s1008_s17] sm:$0x3f] }
  0x17   : > { %v182_v1 = vld.sshfl [vmem:[#allocation1 + $0x10] sm:$0xff pattern:$0x73625140]  ;;  %v180_v2 = vld.sshfl [vmem:[#allocation1 + $0x8] sm:$0xff pattern:$0x73625140] }
  0x18   : > { %188 = vrot.lane.b32.xlu0 %v182_v1, %s964_s18  ;;  %186 = vrot.lane.b32.xlu1 %v180_v2, %s964_s18  ;;  %v178_v3 = vld.sshfl [vmem:[#allocation1] sm:$0xff pattern:$0x73625140] }
  0x19   : > { %249 = vst [vmem:[#allocation1] ss:$4 sm:$0xff] %v172_v0 }
  0x20   : > { %184 = vrot.lane.b32.xlu0 %v178_v3, %s964_s18  ;;  %v1012_v5 = vld.sshfl [vmem:[#allocation1] sm:$0xff pattern:$0x73625140]  ;;  %v1014_v6 = vld.sshfl [vmem:[#allocation1 + $0x8] sm:$0xff pattern:$0x73625140] }
  0x21   : > { %v1016_v7 = vld.sshfl [vmem:[#allocation1 + $0x10] sm:$0xff pattern:$0x73625140]  ;;  %v256_v38 = vand.u32 %v1012_v5, %v1024_v37  ;;  %v258_v54 = vand.u32 %v1014_v6, %v1024_v37 }
  0x22   : > { %305 = vst [vmem:[#allocation1] ss:$4 sm:$0xff] %v301_v4  ;;  %v260_v45 = vand.u32 %v1016_v7, %v1024_v37  ;;  %v909_v4 = vld [vmem:[%s1125_s1 + $0xc] sm:$0xf] }
  0x23   : > { %269 = vmatpush.bf16.msra.mxu3 %v256_v38 }
  0x26   : > { %902 = vmatmul.msk.bf16.vlgmr.msra.gmra.mxu3 %vm193_vm2, %v173_v39 }
  0x29   : > { %v306_v9 = vld.sshfl [vmem:[#allocation1] sm:$0xff pattern:$0x73625140]  ;;  %v308_v10 = vld.sshfl [vmem:[#allocation1 + $0x8] sm:$0xff pattern:$0x73625140] }
  0x2a   : > { %312 = vrot.lane.b32.xlu1 %v306_v9, %s965_s19  ;;  %314 = vrot.lane.b32.xlu2 %v308_v10, %s965_s19  ;;  %v310_v11 = vld.sshfl [vmem:[#allocation1 + $0x10] sm:$0xff pattern:$0x73625140] }
  0x2b   : > { %379 = vst [vmem:[#allocation1] ss:$4 sm:$0xff] %v375_v8 }
  0x32   : > { %v384_v13 = vld.sshfl [vmem:[#allocation1 + $0x10] sm:$0xff pattern:$0x73625140]  ;;  %v380_v14 = vld.sshfl [vmem:[#allocation1] sm:$0xff pattern:$0x73625140]  ;;  %316 = vrot.lane.b32.xlu2 %v310_v11, %s965_s19 }
  0x33   : > { %390 = vrot.lane.b32.xlu1 %v384_v13, %s966_s20  ;;  %v382_v15 = vld.sshfl [vmem:[#allocation1 + $0x8] sm:$0xff pattern:$0x73625140] }
  0x34   : > { %388 = vrot.lane.b32.xlu0 %v382_v15, %s966_s20  ;;  %453 = vst [vmem:[#allocation1] ss:$4 sm:$0xff] %v449_v12 }
  0x3a   : > { %386 = vrot.lane.b32.xlu2 %v380_v14, %s966_s20 }
  0x3b   : > { %v458_v17 = vld.sshfl [vmem:[#allocation1 + $0x10] sm:$0xff pattern:$0x73625140]  ;;  %v456_v18 = vld.sshfl [vmem:[#allocation1 + $0x8] sm:$0xff pattern:$0x73625140] }
  0x3c   : > { %464 = vrot.lane.b32.xlu0 %v458_v17, %s967_s21  ;;  %v454_v19 = vld.sshfl [vmem:[#allocation1] sm:$0xff pattern:$0x73625140] }
  0x3d   : > { %460 = vrot.lane.b32.xlu1 %v454_v19, %s967_s21  ;;  %527 = vst [vmem:[#allocation1] ss:$4 sm:$0xff] %v523_v16  ;;  %v913_v19 = vld [vmem:[%s1125_s1 + $0x10] sm:$0xf] }
  0x42   : > { %462 = vrot.lane.b32.xlu2 %v456_v18, %s967_s21  ;;  %v917_v18 = vld [vmem:[%s1125_s1 + $0x14] sm:$0xf]  ;;  %s936_s21 = smul.u32 12, %s1129_s13 }
  0x44   : > { %v530_v21 = vld.sshfl [vmem:[#allocation1 + $0x8] sm:$0xff pattern:$0x73625140]  ;;  %v528_v22 = vld.sshfl [vmem:[#allocation1] sm:$0xff pattern:$0x73625140] }
  0x45   : > { %536 = vrot.lane.b32.xlu1 %v530_v21, %s968_s22  ;;  %534 = vrot.lane.b32.xlu0 %v528_v22, %s968_s22  ;;  %v532_v23 = vld.sshfl [vmem:[#allocation1 + $0x10] sm:$0xff pattern:$0x73625140] }
  0x46   : > { %601 = vst [vmem:[#allocation1] ss:$4 sm:$0xff] %v597_v20 }
  0x4d   : > { %538 = vrot.lane.b32.xlu1 %v532_v23, %s968_s22  ;;  %v606_v25 = vld.sshfl [vmem:[#allocation1 + $0x10] sm:$0xff pattern:$0x73625140]  ;;  %v604_v26 = vld.sshfl [vmem:[#allocation1 + $0x8] sm:$0xff pattern:$0x73625140] }
  0x4e   : > { %610 = vrot.lane.b32.xlu0 %v604_v26, %s969_s23  ;;  %v602_v27 = vld.sshfl [vmem:[#allocation1] sm:$0xff pattern:$0x73625140] }
  0x4f   : > { %608 = vrot.lane.b32.xlu2 %v602_v27, %s969_s23  ;;  %675 = vst [vmem:[#allocation1] ss:$4 sm:$0xff] %v671_v24 }
  0x56   : > { %v676_v29 = vld.sshfl [vmem:[#allocation1] sm:$0xff pattern:$0x73625140]  ;;  %v680_v30 = vld.sshfl [vmem:[#allocation1 + $0x10] sm:$0xff pattern:$0x73625140] }
  0x57   : > { %686 = vrot.lane.b32.xlu1 %v680_v30, %s970_s24  ;;  %v678_v31 = vld.sshfl [vmem:[#allocation1 + $0x8] sm:$0xff pattern:$0x73625140]  ;;  %612 = vrot.lane.b32.xlu2 %v606_v25, %s969_s23 }
  0x58   : > { %684 = vrot.lane.b32.xlu0 %v678_v31, %s970_s24  ;;  %749 = vst [vmem:[#allocation1] ss:$4 sm:$0xff] %v745_v28 }
  0x5f   : > { %v754_v32 = vld.sshfl [vmem:[#allocation1 + $0x10] sm:$0xff pattern:$0x73625140]  ;;  %v750_v33 = vld.sshfl [vmem:[#allocation1] sm:$0xff pattern:$0x73625140]  ;;  %682 = vrot.lane.b32.xlu2 %v676_v29, %s970_s24  ;;  %s170_s24 = scalar_lea.vmem %s1127_s3, %s936_s21 }
  0x60   : > { %760 = vrot.lane.b32.xlu0 %v754_v32, %s971_s25  ;;  %756 = vrot.lane.b32.xlu1 %v750_v33, %s971_s25  ;;  %v752_v36 = vld.sshfl [vmem:[#allocation1 + $0x8] sm:$0xff pattern:$0x73625140] }
  0x67   : > { %758 = vrot.lane.b32.xlu2 %v752_v36, %s971_s25 }
  0x84   : > { %v315_v40 = vpop.permute.xlu2 %314 }
  0x8a   : > { %v189_v41 = vpop.permute.xlu0 %188  ;;  %v187_v42 = vpop.permute.xlu1 %186 }
  0x8b   : > { %v192_v43 = vsel %vm190_vm3, %v187_v42, %v189_v41  ;;  %v208_v44 = vand.u32 %v1024_v37, %v189_v41 }
  0x8c   : > { %v205_v46 = vand.u32 %v1024_v37, %v192_v43  ;;  %v317_v47 = vpop.permute.xlu2 %316 }
  0x8d   : > { %243 = vmatpush.bf16.msra.mxu2 %v208_v44  ;;  %v320_v49 = vsel %vm318_vm4, %v315_v40, %v317_v47  ;;  %v331_v56 = vand.u32 %v317_v47, %v1024_v37 }
  0x8e   : > { %230 = vmatpush.bf16.msra.mxu1 %v205_v46  ;;  %v328_v50 = vand.u32 %v320_v49, %v1024_v37  ;;  %v819_v49 = vld [vmem:[%s1126_s2] sm:$0xff] }
  0x90   : > { %901 = vmatmul.msk.bf16.vlgmr.msra.gmra.mxu2 %vm193_vm2, %v898_v48  ;;  %353 = vmatpush.bf16.msrb.mxu3 %v328_v50  ;;  %v973_v50 = vmov 0  }
  0x91   : > { %900 = vmatmul.msk.bf16.vlgmr.msra.gmra.mxu1 %vm193_vm2, %v898_v48  ;;  %955 = vset.pattern.permute.xlu0 %v973_v50 }
  0x92   : > { %295 = vmatpush.bf16.msrb.mxu1 %v260_v45  ;;  %v185_v51 = vpop.permute.xlu0 %184  ;;  %822 = vperm.xlu0 %955, %v819_v49  }
  0x93   : > { %v191_v53 = vsel %vm190_vm3, %v185_v51, %v187_v42  ;;  %907 = vmatmul.msk.bf16.vlgmr.msrb.gmra.mxu3 %vm193_vm2, %v905_v52  ;;  %v925_v51 = vld [vmem:[%s1125_s1 + $0x1c] sm:$0xf] }
  0x94   : > { %v202_v55 = vand.u32 %v1024_v37, %v191_v53  ;;  %v387_v60 = vpop.permute.xlu2 %386 }
  0x96   : > { %217 = vmatpush.bf16.msra.mxu0 %v202_v55 }
  0x99   : > { %899 = vmatmul.msk.bf16.vlgmr.msra.gmra.mxu0 %vm193_vm2, %v898_v48 }
  0x9a   : > { %282 = vmatpush.bf16.msrb.mxu0 %v258_v54 }
  0x9c   : > { %v313_v57 = vpop.permute.xlu1 %312  ;;  %v463_v5 = vpop.permute.xlu2 %462 }
  0x9d   : > { %v319_v58 = vsel %vm318_vm4, %v313_v57, %v315_v40  ;;  %v921_v40 = vld [vmem:[%s1125_s1 + $0x18] sm:$0xf] }
  0x9e   : > { %366 = vmatpush.bf16.msra.mxu0 %v331_v56  ;;  %v325_v59 = vand.u32 %v319_v58, %v1024_v37 }
  0xa0   : > { %340 = vmatpush.bf16.msrb.mxu2 %v325_v59 }
  0xa1   : > { %904 = vmatmul.msk.bf16.vlgmr.msrb.gmra.mxu1 %vm193_vm2, %v173_v39 }
  0xa3   : > { %906 = vmatmul.msk.bf16.vlgmr.msrb.gmra.mxu2 %vm193_vm2, %v905_v52 }
  0xa5   : > { %v391_v61 = vpop.permute.xlu1 %390 }
  0xa6   : > { %v405_v62 = vand.u32 %v391_v61, %v1024_v37  ;;  %v389_v63 = vpop.permute.xlu0 %388 }
  0xa7   : > { %v394_v0 = vsel %vm392_vm5, %v389_v63, %v391_v61  ;;  %v393_v1 = vsel %vm392_vm5, %v387_v60, %v389_v63 }
  0xa8   : > { %v402_v2 = vand.u32 %v394_v0, %v1024_v37  ;;  %v399_v3 = vand.u32 %v393_v1, %v1024_v37  ;;  %440 = vmatpush.bf16.msra.mxu3 %v405_v62 }
  0xa9   : > { %903 = vmatmul.msk.bf16.vlgmr.msrb.gmra.mxu0 %vm193_vm2, %v173_v39  ;;  %v609_v13 = vpop.permute.xlu2 %608 }
  0xaa   : > { %414 = vmatpush.bf16.msra.mxu1 %v399_v3  ;;  %427 = vmatpush.bf16.msra.mxu2 %v402_v2 }
  0xab   : > { %912 = vmatmul.msk.bf16.vlgmr.msra.gmra.mxu3 %vm193_vm2, %v909_v4 }
  0xae   : > { %v465_v6 = vpop.permute.xlu0 %464 }
  0xaf   : > { %v479_v7 = vand.u32 %v465_v6, %v1024_v37  ;;  %v461_v8 = vpop.permute.xlu1 %460  ;;  %v468_v9 = vsel %vm466_vm6, %v463_v5, %v465_v6 }
  0xb0   : > { %v467_v10 = vsel %vm466_vm6, %v461_v8, %v463_v5  ;;  %v476_v11 = vand.u32 %v468_v9, %v1024_v37 }
  0xb1   : > { %910 = vmatmul.msk.bf16.vlgmr.msra.gmra.mxu1 %vm193_vm2, %v909_v4  ;;  %v473_v12 = vand.u32 %v467_v10, %v1024_v37  ;;  %514 = vmatpush.bf16.msrb.mxu2 %v479_v7  ;;  %v613_v20 = vpop.permute.xlu2 %612 }
  0xb2   : > { %501 = vmatpush.bf16.msrb.mxu1 %v476_v11  ;;  %v627_v30 = vand.u32 %v613_v20, %v1024_v37 }
  0xb3   : > { %911 = vmatmul.msk.bf16.vlgmr.msra.gmra.mxu2 %vm193_vm2, %v909_v4  ;;  %488 = vmatpush.bf16.msrb.mxu0 %v473_v12 }
  0xb7   : > { %v537_v14 = vpop.permute.xlu1 %536  ;;  %v535_v15 = vpop.permute.xlu0 %534 }
  0xb8   : > { %v541_v16 = vsel %vm540_vm7, %v535_v15, %v537_v14 }
  0xb9   : > { %908 = vmatmul.msk.bf16.vlgmr.msra.gmra.mxu0 %vm193_vm2, %v905_v52  ;;  %v547_v17 = vand.u32 %v541_v16, %v1024_v37  ;;  %v683_v31 = vpop.permute.xlu2 %682  ;;  %v271_v52 = vpop.f32.mrf.mxu3 }
  0xbb   : > { %562 = vmatpush.bf16.msrb.mxu3 %v547_v17 }
  0xbe   : > { %918 = vmatmul.msk.bf16.vlgmr.msrb.gmra.mxu3 %vm193_vm2, %v917_v18 }
  0xbf   : > { %v539_v21 = vpop.permute.xlu1 %538 }
  0xc0   : > { %v542_v22 = vsel %vm540_vm7, %v537_v14, %v539_v21  ;;  %v553_v23 = vand.u32 %v539_v21, %v1024_v37  ;;  %v611_v24 = vpop.permute.xlu0 %610 }
  0xc1   : > { %915 = vmatmul.msk.bf16.vlgmr.msrb.gmra.mxu1 %vm193_vm2, %v913_v19  ;;  %v550_v25 = vand.u32 %v542_v22, %v1024_v37  ;;  %v615_v26 = vsel %vm614_vm8, %v609_v13, %v611_v24  ;;  %v616_v27 = vsel %vm614_vm8, %v611_v24, %v613_v20  ;;  %v759_v41 = vpop.permute.xlu2 %758  ;;  %v273_v53 = vpop.f32.mrf.mxu3 }
  0xc2   : > { %v621_v28 = vand.u32 %v615_v26, %v1024_v37  ;;  %v624_v29 = vand.u32 %v616_v27, %v1024_v37  ;;  %588 = vmatpush.bf16.msra.mxu1 %v553_v23 }
  0xc3   : > { %916 = vmatmul.msk.bf16.vlgmr.msrb.gmra.mxu2 %vm193_vm2, %v913_v19  ;;  %575 = vmatpush.bf16.msra.mxu0 %v550_v25 }
  0xc4   : > { %636 = vmatpush.bf16.msra.mxu2 %v621_v28  ;;  %649 = vmatpush.bf16.msra.mxu3 %v624_v29 }
  0xc9   : > { %914 = vmatmul.msk.bf16.vlgmr.msrb.gmra.mxu0 %vm193_vm2, %v913_v19  ;;  %v687_v32 = vpop.permute.xlu1 %686 }
  0xca   : > { %v701_v33 = vand.u32 %v687_v32, %v1024_v37  ;;  %v685_v34 = vpop.permute.xlu0 %684  ;;  %662 = vmatpush.bf16.msrb.mxu0 %v627_v30 }
  0xcb   : > { %v690_v35 = vsel %vm688_vm9, %v685_v34, %v687_v32  ;;  %v689_v36 = vsel %vm688_vm9, %v683_v31, %v685_v34 }
  0xcc   : > { %v698_v38 = vand.u32 %v690_v35, %v1024_v37  ;;  %v695_v39 = vand.u32 %v689_v36, %v1024_v37  ;;  %736 = vmatpush.bf16.msrb.mxu3 %v701_v33 }
  0xce   : > { %923 = vmatmul.msk.bf16.vlgmr.msra.gmra.mxu3 %vm193_vm2, %v921_v40  ;;  %710 = vmatpush.bf16.msrb.mxu1 %v695_v39 }
  0xcf   : > { %723 = vmatpush.bf16.msrb.mxu2 %v698_v38 }
  0xd1   : > { %920 = vmatmul.msk.bf16.vlgmr.msra.gmra.mxu1 %vm193_vm2, %v917_v18 }
  0xd2   : > { %v761_v42 = vpop.permute.xlu0 %760  ;;  %v757_v43 = vpop.permute.xlu1 %756 }
  0xd3   : > { %922 = vmatmul.msk.bf16.vlgmr.msra.gmra.mxu2 %vm193_vm2, %v921_v40  ;;  %v775_v44 = vand.u32 %v761_v42, %v1024_v37  ;;  %v764_v45 = vsel %vm762_vm10, %v759_v41, %v761_v42  ;;  %v763_v46 = vsel %vm762_vm10, %v757_v43, %v759_v41 }
  0xd4   : > { %v772_v47 = vand.u32 %v764_v45, %v1024_v37  ;;  %v769_v48 = vand.u32 %v763_v46, %v1024_v37  ;;  %v929_v37 = vld [vmem:[%s1125_s1 + $0x20] sm:$0xf] }
  0xd5   : > { %810 = vmatpush.bf16.msra.mxu2 %v775_v44 }
  0xd6   : > { %797 = vmatpush.bf16.msra.mxu1 %v772_v47 }
  0xd9   : > { %919 = vmatmul.msk.bf16.vlgmr.msra.gmra.mxu0 %vm193_vm2, %v917_v18 }
  0xda   : > { %784 = vmatpush.bf16.msra.mxu0 %v769_v48 }
  0xde   : > { %928 = vmatmul.msk.bf16.vlgmr.msrb.gmra.mxu3 %vm193_vm2, %v925_v51 }
  0xe1   : > { %926 = vmatmul.msk.bf16.vlgmr.msrb.gmra.mxu1 %vm193_vm2, %v925_v51 }
  0xe3   : > { %927 = vmatmul.msk.bf16.vlgmr.msrb.gmra.mxu2 %vm193_vm2, %v925_v51 }
  0xe9   : > { %924 = vmatmul.msk.bf16.vlgmr.msrb.gmra.mxu0 %vm193_vm2, %v921_v40 }
  0xf1   : > { %931 = vmatmul.msk.bf16.vlgmr.msra.gmra.mxu1 %vm193_vm2, %v929_v37 }
  0xf3   : > { %932 = vmatmul.msk.bf16.vlgmr.msra.gmra.mxu2 %vm193_vm2, %v929_v37 }
  0xf9   : > { %930 = vmatmul.msk.bf16.vlgmr.msra.gmra.mxu0 %vm193_vm2, %v929_v37 }
 0x10e   : > { %v232_v54 = vpop.f32.mrf.mxu1 }
 0x113   : > { %v245_v55 = vpop.f32.mrf.mxu2 }
 0x116   : > { %v219_v56 = vpop.f32.mrf.mxu0  ;;  %v234_v57 = vpop.f32.mrf.mxu1 }
 0x117   : > { %v272_v58 = vadd.f32 %v271_v52, %v219_v56  ;;  %v355_v59 = vpop.f32.mrf.mxu3  ;;  %v823_v57 = vpop.permute.xlu0 %822 }
 0x11b   : > { %v247_v60 = vpop.f32.mrf.mxu2 }
 0x11e   : > { %v221_v61 = vpop.f32.mrf.mxu0  ;;  %v297_v62 = vpop.f32.mrf.mxu1 }
 0x11f   : > { %v298_v63 = vadd.f32 %v297_v62, %v245_v55  ;;  %v357_v0 = vpop.f32.mrf.mxu3 }
 0x126   : > { %v342_v1 = vpop.f32.mrf.mxu2  ;;  %v284_v2 = vpop.f32.mrf.mxu0 }
 0x127   : > { %v372_v3 = vadd.f32 %v342_v1, %v272_v58  ;;  %v285_v4 = vadd.f32 %v284_v2, %v232_v54  ;;  %v299_v5 = vpop.f32.mrf.mxu1 }
 0x129   : > { %v373_v6 = vadd.f32 %v355_v59, %v285_v4 }
 0x12e   : > { %v344_v7 = vpop.f32.mrf.mxu2  ;;  %v286_v8 = vpop.f32.mrf.mxu0 }
 0x12f   : > { %v416_v9 = vpop.f32.mrf.mxu1  ;;  %v442_v10 = vpop.f32.mrf.mxu3 }
 0x130   : > { %v446_v43 = vadd.f32 %v416_v9, %v372_v3 }
 0x136   : > { %v429_v11 = vpop.f32.mrf.mxu2  ;;  %v368_v12 = vpop.f32.mrf.mxu0 }
 0x137   : > { %v418_v13 = vpop.f32.mrf.mxu1  ;;  %v444_v14 = vpop.f32.mrf.mxu3  ;;  %v447_v38 = vadd.f32 %v429_v11, %v373_v6  ;;  %v374_v39 = vadd.f32 %v368_v12, %v298_v63 }
 0x139   : > { %v448_v44 = vadd.f32 %v442_v10, %v374_v39 }
 0x13e   : > { %v431_v15 = vpop.f32.mrf.mxu2  ;;  %v370_v16 = vpop.f32.mrf.mxu0 }
 0x13f   : > { %v503_v17 = vpop.f32.mrf.mxu1 }
 0x140   : > { %v521_v41 = vadd.f32 %v503_v17, %v447_v38 }
 0x141   : > { %v564_v18 = vpop.f32.mrf.mxu3 }
 0x146   : > { %v516_v19 = vpop.f32.mrf.mxu2  ;;  %v490_v20 = vpop.f32.mrf.mxu0 }
 0x147   : > { %v505_v21 = vpop.f32.mrf.mxu1  ;;  %v522_v46 = vadd.f32 %v516_v19, %v448_v44  ;;  %v520_v47 = vadd.f32 %v490_v20, %v446_v43 }
 0x149   : > { %v566_v22 = vpop.f32.mrf.mxu3  ;;  %v594_v52 = vadd.f32 %v564_v18, %v520_v47 }
 0x14e   : > { %v518_v23 = vpop.f32.mrf.mxu2  ;;  %v492_v24 = vpop.f32.mrf.mxu0 }
 0x14f   : > { %v590_v25 = vpop.f32.mrf.mxu1 }
 0x150   : > { %v596_v50 = vadd.f32 %v590_v25, %v522_v46 }
 0x151   : > { %v651_v26 = vpop.f32.mrf.mxu3 }
 0x156   : > { %v638_v27 = vpop.f32.mrf.mxu2  ;;  %v577_v28 = vpop.f32.mrf.mxu0 }
 0x157   : > { %v592_v29 = vpop.f32.mrf.mxu1  ;;  %v595_v45 = vadd.f32 %v577_v28, %v521_v41  ;;  %v668_v55 = vadd.f32 %v638_v27, %v594_v52 }
 0x159   : > { %v653_v30 = vpop.f32.mrf.mxu3  ;;  %v669_v51 = vadd.f32 %v651_v26, %v595_v45 }
 0x15e   : > { %v640_v31 = vpop.f32.mrf.mxu2  ;;  %v579_v32 = vpop.f32.mrf.mxu0 }
 0x15f   : > { %v712_v33 = vpop.f32.mrf.mxu1 }
 0x160   : > { %v742_v58 = vadd.f32 %v712_v33, %v668_v55 }
 0x161   : > { %v738_v34 = vpop.f32.mrf.mxu3 }
 0x166   : > { %v725_v35 = vpop.f32.mrf.mxu2  ;;  %v664_v36 = vpop.f32.mrf.mxu0 }
 0x167   : > { %v714_v40 = vpop.f32.mrf.mxu1  ;;  %v743_v53 = vadd.f32 %v725_v35, %v669_v51  ;;  %v670_v54 = vadd.f32 %v664_v36, %v596_v50 }
 0x169   : > { %v740_v42 = vpop.f32.mrf.mxu3  ;;  %v744_v59 = vadd.f32 %v738_v34, %v670_v54 }
 0x16e   : > { %v727_v48 = vpop.f32.mrf.mxu2  ;;  %v666_v49 = vpop.f32.mrf.mxu0 }
 0x16f   : > { %v799_v37 = vpop.f32.mrf.mxu1 }
 0x170   : > { %v817_v56 = vadd.f32 %v799_v37, %v743_v53 }
 0x172   : > { %v826_v62 = vadd.f32 %v823_v57, %v817_v56 }
 0x174   : > { %v829_v4 = vmax.f32 %v826_v62, 0.0 }
 0x176   : > { %v812_v60 = vpop.f32.mrf.mxu2  ;;  %v786_v61 = vpop.f32.mrf.mxu0 }
 0x177   : > { %v818_v63 = vadd.f32 %v812_v60, %v744_v59  ;;  %v816_v0 = vadd.f32 %v786_v61, %v742_v58  ;;  %v801_v1 = vpop.f32.mrf.mxu1 }
 0x179   : > { %v827_v2 = vadd.f32 %v823_v57, %v818_v63  ;;  %v825_v3 = vadd.f32 %v823_v57, %v816_v0 }
 0x17b   : > { %v830_v5 = vmax.f32 %v827_v2, 0.0  ;;  %v828_v6 = vmax.f32 %v825_v3, 0.0 }
 0x17d   : > { %v832_v7 = vpack.c.bf16 %v830_v5, %v830_v5  ;;  %v831_v8 = vpack.c.bf16 %v829_v4, %v828_v6 }
 0x17e   : > { %v788_v9 = vpop.f32.mrf.mxu0  ;;  %v814_v10 = vpop.f32.mrf.mxu2 }
 0x17f   : > { %835 = vst.msk [vmem:[%s170_s24 + $0x8] sm:$0xf] %vm834_vm11, %v832_v7 }
 0x180   : > { %833 = vst [vmem:[%s170_s24] sm:$0xff] %v831_v8 }
 0x181 PF: > { %s13_s12 = sadd.s32 1, %s962_s12  }
 0x182   : > { %p10_p4 = scmp.ge.s32.totalorder %s13_s12, 26  }
 0x184   :  { %12 = sbr.rel (!%p10_p4) target bundleno = 1 (0x1), region = 70 }

// kernel: _forward_impl.26
= control target key start
LH: loop header
LB: loop body
LE: loop exit
PB: predicated region body
PF: predicated region fallthrough
CT: control target
= control target key end

     0   :  { %s925_s12 = smov 0   ;;  %s1056_s0 = inlined_call_operand.vmem [shape: bf16[24,8,326], index: 0, kind: input, shape index: {}]   ;;  %s1057_s1 = inlined_call_operand.vmem [shape: bf16[9,8,8], index: 1, kind: input, shape index: {}]   ;;  %s1058_s2 = inlined_call_operand.vmem [shape: f32[8,1], index: 2, kind: input, shape index: {}]   ;;  %s1059_s3 = inlined_call_operand.vmem [shape: bf16[24,8,288], index: 3, kind: output, shape index: {}]  }
   0x1 LB: > { %s825_s13 = sadd.s32 4294967295, %s894_s12   ;;  %p829_p0 = scmp.ge.s32.totalorder %s894_s12, 1  ;;  %s894_s12 = sphi %s925_s12, %s13_s12  }
   0x2   : > { %p137_p1 = scmp.lt.s32.totalorder %s894_s12, 25 }
   0x4   : > { %p138_p2 = pnand %p829_p0, %p137_p1 }
   0x5   : > { %p161_p3 = scmp.lt.s32.totalorder (!%p138_p2), %s825_s13, 23  ;;  %s896_s18 = smov (!%p138_p2), 127  }
   0x6   : > { %141 = sbr.rel (%p138_p2) target bundleno = 379 (0x17b), region = 32  ;;  %s897_s19 = smov (!%p138_p2), 126  }
   0x7   : > { %s898_s20 = smov (!%p138_p2), 110   ;;  %s899_s21 = smov (!%p138_p2), 109  }
   0x8   : > { %s900_s22 = smov (!%p138_p2), 108   ;;  %s901_s23 = smov (!%p138_p2), 92  }
   0x9   : > { %s902_s24 = smov (!%p138_p2), 91   ;;  %s903_s25 = smov (!%p138_p2), 90  }
   0xb   : > { %s1061_s13 = smov (!%p161_p3, %s825_s13), 23  ;;  %vm198_vm0 = vcmask 1043456   ;;  %vm194_vm1 = vcmask 64512   ;;  %v955_v9 = vld [vmem:[%s1057_s1] sm:$0xf]  ;;  %vm306_vm2 = vcmask 1031168  }
   0xc   : > { %s869_s14 = smul.u32 12, %s1061_s13  ;;  %v964_v14 = vld [vmem:[%s1057_s1 + $0x8] sm:$0xf]  ;;  %vm191_vm3 = vcmask 1039360   ;;  %v832_v21 = vld [vmem:[%s1057_s1 + $0x4] sm:$0xf] }
   0xd   : > { %vm371_vm4 = vcmask 900096   ;;  %v843_v38 = vld [vmem:[%s1057_s1 + $0xc] sm:$0xf]  ;;  %vm436_vm5 = vcmask 891904   ;;  %vm501_vm6 = vcmask 883712   ;;  %vm566_vm7 = vcmask 752640  }
   0xe   : > { %s165_s17 = scalar_lea.vmem %s1056_s0, %s869_s14  ;;  %v851_v52 = vld [vmem:[%s1057_s1 + $0x14] sm:$0xf]  ;;  %vm631_vm8 = vcmask 744448   ;;  %vm696_vm9 = vcmask 736256   ;;  %vm768_vm10 = vcmask 257024  }
   0xf   : > { %v173_v0 = vld [vmem:[%s165_s17 + $0x8] sm:$0xf]  ;;  %v172_v1 = vld [vmem:[%s165_s17] sm:$0xff] }
  0x10   : > { %v181_v2 = vunpack.c.l.b16 %v173_v0  ;;  %v180_v3 = vunpack.c.h.b16 %v172_v1  ;;  %v179_v6 = vunpack.c.l.b16 %v172_v1 }
  0x12   : > { %v184_v4 = vpack.c.b16 %v181_v2, %v181_v2  ;;  %v941_v5 = vpack.c.b16 %v180_v3, %v180_v3  ;;  %v182_v7 = vpack.c.b16 %v179_v6, %v179_v6 }
  0x14   : > { %189 = vrot.lane.b32.xlu0 %v184_v4, %s896_s18  ;;  %187 = vrot.lane.b32.xlu1 %v941_v5, %s896_s18  ;;  %v251_v8 = vsel %vm198_vm0, %v182_v7, 0  ;;  %v257_v19 = vsel %vm198_vm0, %v184_v4, 0  ;;  %v254_v26 = vsel %vm198_vm0, %v941_v5, 0 }
  0x15   : > { %302 = vrot.lane.b32.xlu2 %v941_v5, %s897_s19  ;;  %266 = vmatpush.bf16.msra.mxu3 %v251_v8  ;;  %v855_v8 = vld [vmem:[%s1057_s1 + $0x18] sm:$0xf] }
  0x18   : > { %836 = vmatmul.msk.bf16.vlgmr.msra.gmra.mxu3 %vm194_vm1, %v955_v9 }
  0x1c   : > { %300 = vrot.lane.b32.xlu1 %v182_v7, %s897_s19  ;;  %185 = vrot.lane.b32.xlu0 %v182_v7, %s896_s18 }
  0x1d   : > { %304 = vrot.lane.b32.xlu2 %v184_v4, %s897_s19 }
  0x24   : > { %369 = vrot.lane.b32.xlu1 %v184_v4, %s898_s20  ;;  %367 = vrot.lane.b32.xlu0 %v941_v5, %s898_s20 }
  0x25   : > { %365 = vrot.lane.b32.xlu2 %v182_v7, %s898_s20 }
  0x2c   : > { %430 = vrot.lane.b32.xlu1 %v182_v7, %s899_s21  ;;  %434 = vrot.lane.b32.xlu0 %v184_v4, %s899_s21 }
  0x2d   : > { %432 = vrot.lane.b32.xlu2 %v941_v5, %s899_s21 }
  0x34   : > { %497 = vrot.lane.b32.xlu1 %v941_v5, %s900_s22  ;;  %495 = vrot.lane.b32.xlu0 %v182_v7, %s900_s22 }
  0x35   : > { %560 = vrot.lane.b32.xlu2 %v182_v7, %s901_s23 }
  0x3c   : > { %499 = vrot.lane.b32.xlu1 %v184_v4, %s900_s22  ;;  %562 = vrot.lane.b32.xlu0 %v941_v5, %s901_s23 }
  0x3d   : > { %564 = vrot.lane.b32.xlu2 %v184_v4, %s901_s23 }
  0x44   : > { %629 = vrot.lane.b32.xlu1 %v184_v4, %s902_s24  ;;  %627 = vrot.lane.b32.xlu0 %v941_v5, %s902_s24 }
  0x45   : > { %625 = vrot.lane.b32.xlu2 %v182_v7, %s902_s24  ;;  %s170_s24 = scalar_lea.vmem %s1059_s3, %s869_s14 }
  0x4c   : > { %694 = vrot.lane.b32.xlu0 %v184_v4, %s903_s25  ;;  %690 = vrot.lane.b32.xlu1 %v182_v7, %s903_s25 }
  0x4d   : > { %692 = vrot.lane.b32.xlu2 %v941_v5, %s903_s25  ;;  %v847_v5 = vld [vmem:[%s1057_s1 + $0x10] sm:$0xf] }
  0x6f   : > { %v303_v10 = vpop.permute.xlu2 %302 }
  0x77   : > { %v305_v11 = vpop.permute.xlu2 %304 }
  0x78   : > { %v308_v12 = vsel %vm306_vm2, %v303_v10, %v305_v11  ;;  %v319_v29 = vsel %vm198_vm0, %v305_v11, 0 }
  0x79   : > { %v316_v13 = vsel %vm198_vm0, %v308_v12, 0 }
  0x7a   : > { %341 = vmatpush.bf16.msrb.mxu3 %v316_v13 }
  0x7d   : > { %841 = vmatmul.msk.bf16.vlgmr.msrb.gmra.mxu3 %vm194_vm1, %v964_v14 }
  0x7f   : > { %v366_v30 = vpop.permute.xlu2 %365 }
  0x86   : > { %v190_v15 = vpop.permute.xlu0 %189  ;;  %v188_v16 = vpop.permute.xlu1 %187 }
  0x87   : > { %v206_v17 = vsel %vm198_vm0, %v190_v15, 0  ;;  %v193_v18 = vsel %vm191_vm3, %v188_v16, %v190_v15  ;;  %v433_v39 = vpop.permute.xlu2 %432  ;;  %v859_v15 = vld [vmem:[%s1057_s1 + $0x1c] sm:$0xf] }
  0x88   : > { %241 = vmatpush.bf16.msra.mxu2 %v206_v17  ;;  %v203_v20 = vsel %vm198_vm0, %v193_v18, 0 }
  0x89   : > { %228 = vmatpush.bf16.msra.mxu1 %v203_v20  ;;  %v904_v20 = vmov 0  }
  0x8a   : > { %887 = vset.pattern.permute.xlu0 %v904_v20 }
  0x8b   : > { %835 = vmatmul.msk.bf16.vlgmr.msra.gmra.mxu2 %vm194_vm1, %v832_v21 }
  0x8c   : > { %834 = vmatmul.msk.bf16.vlgmr.msra.gmra.mxu1 %vm194_vm1, %v832_v21 }
  0x8d   : > { %292 = vmatpush.bf16.msrb.mxu1 %v257_v19  ;;  %v753_v19 = vld [vmem:[%s1058_s2] sm:$0xff] }
  0x8e   : > { %v301_v22 = vpop.permute.xlu1 %300  ;;  %v186_v23 = vpop.permute.xlu0 %185  ;;  %756 = vperm.xlu0 %887, %v753_v19  }
  0x8f   : > { %v192_v24 = vsel %vm191_vm3, %v186_v23, %v188_v16  ;;  %v307_v25 = vsel %vm306_vm2, %v301_v22, %v303_v10  ;;  %v561_v47 = vpop.permute.xlu2 %560 }
  0x90   : > { %v200_v27 = vsel %vm198_vm0, %v192_v24, 0  ;;  %v313_v28 = vsel %vm198_vm0, %v307_v25, 0 }
  0x91   : > { %215 = vmatpush.bf16.msra.mxu0 %v200_v27  ;;  %328 = vmatpush.bf16.msrb.mxu2 %v313_v28 }
  0x94   : > { %833 = vmatmul.msk.bf16.vlgmr.msra.gmra.mxu0 %vm194_vm1, %v832_v21  ;;  %v863_v21 = vld [vmem:[%s1057_s1 + $0x20] sm:$0xf] }
  0x95   : > { %279 = vmatpush.bf16.msrb.mxu0 %v254_v26 }
  0x96   : > { %v370_v31 = vpop.permute.xlu1 %369  ;;  %v368_v32 = vpop.permute.xlu0 %367 }
  0x97   : > { %v384_v33 = vsel %vm198_vm0, %v370_v31, 0  ;;  %v372_v34 = vsel %vm371_vm4, %v366_v30, %v368_v32  ;;  %v373_v35 = vsel %vm371_vm4, %v368_v32, %v370_v31  ;;  %v565_v53 = vpop.permute.xlu2 %564 }
  0x98   : > { %v378_v36 = vsel %vm198_vm0, %v372_v34, 0  ;;  %v381_v37 = vsel %vm198_vm0, %v373_v35, 0  ;;  %419 = vmatpush.bf16.msra.mxu3 %v384_v33 }
  0x99   : > { %354 = vmatpush.bf16.msra.mxu0 %v319_v29  ;;  %393 = vmatpush.bf16.msra.mxu1 %v378_v36 }
  0x9a   : > { %406 = vmatpush.bf16.msra.mxu2 %v381_v37 }
  0x9b   : > { %840 = vmatmul.msk.bf16.vlgmr.msrb.gmra.mxu2 %vm194_vm1, %v964_v14  ;;  %846 = vmatmul.msk.bf16.vlgmr.msra.gmra.mxu3 %vm194_vm1, %v843_v38  ;;  %v268_v22 = vpop.f32.mrf.mxu3 }
  0x9c   : > { %838 = vmatmul.msk.bf16.vlgmr.msrb.gmra.mxu1 %vm194_vm1, %v955_v9 }
  0x9e   : > { %v431_v40 = vpop.permute.xlu1 %430  ;;  %v435_v41 = vpop.permute.xlu0 %434 }
  0x9f   : > { %v437_v42 = vsel %vm436_vm5, %v431_v40, %v433_v39  ;;  %v438_v43 = vsel %vm436_vm5, %v433_v39, %v435_v41  ;;  %v449_v44 = vsel %vm198_vm0, %v435_v41, 0  ;;  %v626_v63 = vpop.permute.xlu2 %625 }
  0xa0   : > { %v446_v45 = vsel %vm198_vm0, %v438_v43, 0  ;;  %484 = vmatpush.bf16.msrb.mxu2 %v449_v44  ;;  %v443_v46 = vsel %vm198_vm0, %v437_v42, 0 }
  0xa1   : > { %471 = vmatpush.bf16.msrb.mxu1 %v446_v45 }
  0xa3   : > { %v270_v23 = vpop.f32.mrf.mxu3 }
  0xa4   : > { %837 = vmatmul.msk.bf16.vlgmr.msrb.gmra.mxu0 %vm194_vm1, %v955_v9  ;;  %v579_v9 = vsel %vm198_vm0, %v565_v53, 0 }
  0xa5   : > { %458 = vmatpush.bf16.msrb.mxu0 %v443_v46 }
  0xa6   : > { %v498_v48 = vpop.permute.xlu1 %497  ;;  %v496_v49 = vpop.permute.xlu0 %495 }
  0xa7   : > { %v502_v50 = vsel %vm501_vm6, %v496_v49, %v498_v48  ;;  %v693_v10 = vpop.permute.xlu2 %692 }
  0xa8   : > { %v508_v51 = vsel %vm198_vm0, %v502_v50, 0 }
  0xa9   : > { %523 = vmatpush.bf16.msrb.mxu3 %v508_v51 }
  0xab   : > { %845 = vmatmul.msk.bf16.vlgmr.msra.gmra.mxu2 %vm194_vm1, %v843_v38 }
  0xac   : > { %844 = vmatmul.msk.bf16.vlgmr.msra.gmra.mxu1 %vm194_vm1, %v843_v38  ;;  %852 = vmatmul.msk.bf16.vlgmr.msrb.gmra.mxu3 %vm194_vm1, %v851_v52 }
  0xae   : > { %v500_v54 = vpop.permute.xlu1 %499  ;;  %v563_v55 = vpop.permute.xlu0 %562 }
  0xaf   : > { %v503_v56 = vsel %vm501_vm6, %v498_v48, %v500_v54  ;;  %v514_v57 = vsel %vm198_vm0, %v500_v54, 0  ;;  %v567_v58 = vsel %vm566_vm7, %v561_v47, %v563_v55  ;;  %v568_v59 = vsel %vm566_vm7, %v563_v55, %v565_v53 }
  0xb0   : > { %v573_v60 = vsel %vm198_vm0, %v567_v58, 0  ;;  %v576_v61 = vsel %vm198_vm0, %v568_v59, 0  ;;  %549 = vmatpush.bf16.msra.mxu1 %v514_v57  ;;  %v511_v62 = vsel %vm198_vm0, %v503_v56, 0 }
  0xb1   : > { %588 = vmatpush.bf16.msra.mxu2 %v573_v60  ;;  %601 = vmatpush.bf16.msra.mxu3 %v576_v61 }
  0xb4   : > { %842 = vmatmul.msk.bf16.vlgmr.msra.gmra.mxu0 %vm194_vm1, %v964_v14 }
  0xb5   : > { %536 = vmatpush.bf16.msra.mxu0 %v511_v62 }
  0xb6   : > { %v630_v0 = vpop.permute.xlu1 %629  ;;  %v628_v1 = vpop.permute.xlu0 %627 }
  0xb7   : > { %v644_v2 = vsel %vm198_vm0, %v630_v0, 0  ;;  %v632_v3 = vsel %vm631_vm8, %v626_v63, %v628_v1  ;;  %v633_v4 = vsel %vm631_vm8, %v628_v1, %v630_v0 }
  0xb8   : > { %679 = vmatpush.bf16.msrb.mxu3 %v644_v2  ;;  %v638_v6 = vsel %vm198_vm0, %v632_v3, 0  ;;  %v641_v7 = vsel %vm198_vm0, %v633_v4, 0 }
  0xbb   : > { %850 = vmatmul.msk.bf16.vlgmr.msrb.gmra.mxu2 %vm194_vm1, %v847_v5 }
  0xbc   : > { %849 = vmatmul.msk.bf16.vlgmr.msrb.gmra.mxu1 %vm194_vm1, %v847_v5  ;;  %857 = vmatmul.msk.bf16.vlgmr.msra.gmra.mxu3 %vm194_vm1, %v855_v8 }
  0xbd   : > { %653 = vmatpush.bf16.msrb.mxu1 %v638_v6  ;;  %666 = vmatpush.bf16.msrb.mxu2 %v641_v7 }
  0xbe   : > { %v695_v11 = vpop.permute.xlu0 %694  ;;  %v691_v16 = vpop.permute.xlu1 %690 }
  0xbf   : > { %v698_v12 = vsel %vm696_vm9, %v693_v10, %v695_v11  ;;  %v709_v14 = vsel %vm198_vm0, %v695_v11, 0  ;;  %v697_v17 = vsel %vm696_vm9, %v691_v16, %v693_v10 }
  0xc0   : > { %v706_v13 = vsel %vm198_vm0, %v698_v12, 0  ;;  %v703_v18 = vsel %vm198_vm0, %v697_v17, 0 }
  0xc4   : > { %848 = vmatmul.msk.bf16.vlgmr.msrb.gmra.mxu0 %vm194_vm1, %v847_v5 }
  0xc5   : > { %614 = vmatpush.bf16.msrb.mxu0 %v579_v9 }
  0xcb   : > { %856 = vmatmul.msk.bf16.vlgmr.msra.gmra.mxu2 %vm194_vm1, %v855_v8 }
  0xcc   : > { %854 = vmatmul.msk.bf16.vlgmr.msra.gmra.mxu1 %vm194_vm1, %v851_v52  ;;  %862 = vmatmul.msk.bf16.vlgmr.msrb.gmra.mxu3 %vm194_vm1, %v859_v15 }
  0xcd   : > { %744 = vmatpush.bf16.msra.mxu2 %v709_v14  ;;  %731 = vmatpush.bf16.msra.mxu1 %v706_v13 }
  0xd4   : > { %853 = vmatmul.msk.bf16.vlgmr.msra.gmra.mxu0 %vm194_vm1, %v851_v52 }
  0xd5   : > { %718 = vmatpush.bf16.msra.mxu0 %v703_v18 }
  0xdb   : > { %861 = vmatmul.msk.bf16.vlgmr.msrb.gmra.mxu2 %vm194_vm1, %v859_v15 }
  0xdc   : > { %860 = vmatmul.msk.bf16.vlgmr.msrb.gmra.mxu1 %vm194_vm1, %v859_v15 }
  0xe4   : > { %858 = vmatmul.msk.bf16.vlgmr.msrb.gmra.mxu0 %vm194_vm1, %v855_v8 }
  0xeb   : > { %866 = vmatmul.msk.bf16.vlgmr.msra.gmra.mxu2 %vm194_vm1, %v863_v21 }
  0xec   : > { %865 = vmatmul.msk.bf16.vlgmr.msra.gmra.mxu1 %vm194_vm1, %v863_v21 }
  0xf4   : > { %864 = vmatmul.msk.bf16.vlgmr.msra.gmra.mxu0 %vm194_vm1, %v863_v21 }
 0x100   : > { %v343_v24 = vpop.f32.mrf.mxu3 }
 0x108   : > { %v345_v26 = vpop.f32.mrf.mxu3 }
 0x109   : > { %v230_v25 = vpop.f32.mrf.mxu1 }
 0x10e   : > { %v243_v27 = vpop.f32.mrf.mxu2 }
 0x111   : > { %v217_v28 = vpop.f32.mrf.mxu0  ;;  %v232_v29 = vpop.f32.mrf.mxu1 }
 0x112   : > { %v269_v30 = vadd.f32 %v268_v22, %v217_v28  ;;  %v757_v29 = vpop.permute.xlu0 %756 }
 0x116   : > { %v245_v31 = vpop.f32.mrf.mxu2 }
 0x119   : > { %v219_v32 = vpop.f32.mrf.mxu0  ;;  %v294_v33 = vpop.f32.mrf.mxu1 }
 0x11a   : > { %v295_v34 = vadd.f32 %v294_v33, %v243_v27 }
 0x11e   : > { %v330_v35 = vpop.f32.mrf.mxu2  ;;  %v421_v36 = vpop.f32.mrf.mxu3 }
 0x11f   : > { %v360_v37 = vadd.f32 %v330_v35, %v269_v30 }
 0x121   : > { %v281_v38 = vpop.f32.mrf.mxu0  ;;  %v296_v39 = vpop.f32.mrf.mxu1 }
 0x122   : > { %v282_v40 = vadd.f32 %v281_v38, %v230_v25 }
 0x124   : > { %v361_v41 = vadd.f32 %v343_v24, %v282_v40 }
 0x126   : > { %v332_v42 = vpop.f32.mrf.mxu2  ;;  %v423_v43 = vpop.f32.mrf.mxu3 }
 0x129   : > { %v283_v44 = vpop.f32.mrf.mxu0  ;;  %v395_v45 = vpop.f32.mrf.mxu1 }
 0x12a   : > { %v425_v14 = vadd.f32 %v395_v45, %v360_v37 }
 0x12e   : > { %v408_v46 = vpop.f32.mrf.mxu2 }
 0x12f   : > { %v525_v47 = vpop.f32.mrf.mxu3  ;;  %v426_v11 = vadd.f32 %v408_v46, %v361_v41 }
 0x131   : > { %v356_v48 = vpop.f32.mrf.mxu0  ;;  %v397_v49 = vpop.f32.mrf.mxu1 }
 0x132   : > { %v362_v50 = vadd.f32 %v356_v48, %v295_v34 }
 0x134   : > { %v427_v51 = vadd.f32 %v421_v36, %v362_v50 }
 0x136   : > { %v410_v52 = vpop.f32.mrf.mxu2 }
 0x137   : > { %v527_v53 = vpop.f32.mrf.mxu3 }
 0x139   : > { %v358_v54 = vpop.f32.mrf.mxu0  ;;  %v473_v55 = vpop.f32.mrf.mxu1 }
 0x13a   : > { %v491_v12 = vadd.f32 %v473_v55, %v426_v11 }
 0x13e   : > { %v486_v56 = vpop.f32.mrf.mxu2 }
 0x13f   : > { %v603_v57 = vpop.f32.mrf.mxu3  ;;  %v492_v13 = vadd.f32 %v486_v56, %v427_v51 }
 0x141   : > { %v460_v58 = vpop.f32.mrf.mxu0  ;;  %v475_v59 = vpop.f32.mrf.mxu1 }
 0x142   : > { %v490_v18 = vadd.f32 %v460_v58, %v425_v14 }
 0x144   : > { %v555_v23 = vadd.f32 %v525_v47, %v490_v18 }
 0x146   : > { %v488_v60 = vpop.f32.mrf.mxu2 }
 0x147   : > { %v605_v61 = vpop.f32.mrf.mxu3 }
 0x149   : > { %v462_v62 = vpop.f32.mrf.mxu0  ;;  %v551_v63 = vpop.f32.mrf.mxu1 }
 0x14a   : > { %v557_v17 = vadd.f32 %v551_v63, %v492_v13 }
 0x14e   : > { %v590_v0 = vpop.f32.mrf.mxu2 }
 0x14f   : > { %v681_v1 = vpop.f32.mrf.mxu3  ;;  %v620_v26 = vadd.f32 %v590_v0, %v555_v23 }
 0x151   : > { %v538_v2 = vpop.f32.mrf.mxu0  ;;  %v553_v3 = vpop.f32.mrf.mxu1 }
 0x152   : > { %v556_v15 = vadd.f32 %v538_v2, %v491_v12 }
 0x154   : > { %v621_v22 = vadd.f32 %v603_v57, %v556_v15 }
 0x156   : > { %v592_v4 = vpop.f32.mrf.mxu2 }
 0x157   : > { %v683_v5 = vpop.f32.mrf.mxu3 }
 0x159   : > { %v540_v6 = vpop.f32.mrf.mxu0  ;;  %v655_v7 = vpop.f32.mrf.mxu1 }
 0x15a   : > { %v685_v31 = vadd.f32 %v655_v7, %v620_v26 }
 0x15e   : > { %v668_v8 = vpop.f32.mrf.mxu2 }
 0x15f   : > { %v686_v24 = vadd.f32 %v668_v8, %v621_v22 }
 0x161   : > { %v616_v9 = vpop.f32.mrf.mxu0  ;;  %v657_v10 = vpop.f32.mrf.mxu1 }
 0x162   : > { %v622_v19 = vadd.f32 %v616_v9, %v557_v17 }
 0x164   : > { %v687_v25 = vadd.f32 %v681_v1, %v622_v19 }
 0x166   : > { %v670_v16 = vpop.f32.mrf.mxu2 }
 0x169   : > { %v618_v20 = vpop.f32.mrf.mxu0  ;;  %v733_v21 = vpop.f32.mrf.mxu1 }
 0x16a   : > { %v751_v27 = vadd.f32 %v733_v21, %v686_v24 }
 0x16c   : > { %v760_v35 = vadd.f32 %v757_v29, %v751_v27 }
 0x16e   : > { %v746_v28 = vpop.f32.mrf.mxu2  ;;  %v763_v40 = vmax.f32 %v760_v35, 0.0 }
 0x16f   : > { %v752_v30 = vadd.f32 %v746_v28, %v687_v25 }
 0x171   : > { %v761_v32 = vadd.f32 %v757_v29, %v752_v30  ;;  %v720_v33 = vpop.f32.mrf.mxu0  ;;  %v735_v34 = vpop.f32.mrf.mxu1 }
 0x172   : > { %v750_v36 = vadd.f32 %v720_v33, %v685_v31 }
 0x173   : > { %v764_v37 = vmax.f32 %v761_v32, 0.0 }
 0x174   : > { %v759_v38 = vadd.f32 %v757_v29, %v750_v36 }
 0x175   : > { %v766_v39 = vpack.c.bf16 %v764_v37, %v764_v37 }
 0x176   : > { %v762_v41 = vmax.f32 %v759_v38, 0.0  ;;  %v748_v42 = vpop.f32.mrf.mxu2 }
 0x177   : > { %769 = vst.msk [vmem:[%s170_s24 + $0x8] sm:$0xf] %vm768_vm10, %v766_v39 }
 0x178   : > { %v765_v43 = vpack.c.bf16 %v763_v40, %v762_v41 }
 0x179   : > { %v722_v44 = vpop.f32.mrf.mxu0 }
 0x17a   : > { %767 = vst [vmem:[%s170_s24] sm:$0xff] %v765_v43 }
 0x17b PF: > { %s13_s12 = sadd.s32 1, %s894_s12  }
 0x17c   : > { %p10_p4 = scmp.ge.s32.totalorder %s13_s12, 26  }
 0x17e   :  { %12 = sbr.rel (!%p10_p4) target bundleno = 1 (0x1), region = 70 }

// kernel: _forward_impl.27
= control target key start
LH: loop header
LB: loop body
LE: loop exit
PB: predicated region body
PF: predicated region fallthrough
CT: control target
= control target key end

     0   :  { %s669_s12 = smov 0   ;;  %s741_s0 = inlined_call_operand.vmem [shape: bf16[24,8,102], index: 0, kind: input, shape index: {}]   ;;  %s742_s1 = inlined_call_operand.vmem [shape: bf16[9,16,8], index: 1, kind: input, shape index: {}]   ;;  %s743_s2 = inlined_call_operand.vmem [shape: f32[16,1], index: 2, kind: input, shape index: {}]   ;;  %s744_s3 = inlined_call_operand.vmem [shape: bf16[24,16,80], index: 3, kind: output, shape index: {}]  }
   0x1 LB: > { %s532_s13 = sadd.s32 4294967295, %s638_s12   ;;  %p536_p0 = scmp.ge.s32.totalorder %s638_s12, 1  ;;  %s638_s12 = sphi %s669_s12, %s13_s12  }
   0x2   : > { %p136_p1 = scmp.lt.s32.totalorder %s638_s12, 25 }
   0x4   : > { %p137_p2 = pnand %p536_p0, %p136_p1 }
   0x5   : > { %p159_p3 = scmp.lt.s32.totalorder (!%p137_p2), %s532_s13, 23  ;;  %s640_s18 = smov (!%p137_p2), 118  }
   0x6   : > { %140 = sbr.rel (%p137_p2) target bundleno = 315 (0x13b), region = 32  ;;  %s641_s19 = smov (!%p137_p2), 127  }
   0x7   : > { %s642_s20 = smov (!%p137_p2), 108   ;;  %s643_s21 = smov (!%p137_p2), 117  }
   0x8   : > { %s644_s22 = smov (!%p137_p2), 126   ;;  %s645_s23 = smov (!%p137_p2), 107  }
   0x9   : > { %s646_s24 = smov (!%p137_p2), 116   ;;  %s647_s25 = smov (!%p137_p2), 106  }
   0xb   : > { %s746_s13 = smov (!%p159_p3, %s532_s13), 23  ;;  %vm189_vm0 = vcmask 1043456   ;;  %vm185_vm1 = vcmask 64512   ;;  %v604_v4 = vld [vmem:[%s742_s1] sm:$0xff]  ;;  %v605_v12 = vld [vmem:[%s742_s1 + $0x8] sm:$0xff]  ;;  %v607_v13 = vld [vmem:[%s742_s1 + $0x18] sm:$0xff] }
   0xc   : > { %s537_s14 = sshll.u32 %s746_s13, 2  ;;  %v457_v14 = vld [vmem:[%s743_s2 + $0x8] sm:$0xff]  ;;  %v456_v15 = vld [vmem:[%s743_s2] sm:$0xff]  ;;  %v648_v16 = vmov 0   ;;  %v606_v22 = vld [vmem:[%s742_s1 + $0x10] sm:$0xff]  ;;  %vm474_vm2 = vcmask 650240  }
   0xd   : > { %s162_s17 = scalar_lea.vmem %s741_s0, %s537_s14  ;;  %631 = vset.pattern.permute.xlu0 %v648_v16  ;;  %630 = vset.pattern.permute.xlu2 %v648_v16  ;;  %v608_v26 = vld [vmem:[%s742_s1 + $0x20] sm:$0xff]  ;;  %v609_v28 = vld [vmem:[%s742_s1 + $0x28] sm:$0xff]  ;;  %v611_v29 = vld [vmem:[%s742_s1 + $0x38] sm:$0xff] }
   0xe   : > { %v169_v0 = vld [vmem:[%s162_s17] sm:$0xf]  ;;  %v610_v30 = vld [vmem:[%s742_s1 + $0x30] sm:$0xff] }
   0xf   : > { %v181_v1 = vunpack.c.l.b16 %v169_v0  ;;  %v216_v3 = vsel %vm189_vm0, %v169_v0, 0  ;;  %v612_v31 = vld [vmem:[%s742_s1 + $0x40] sm:$0xff] }
  0x10   : > { %225 = vmatpush.bf16.msra.mxu1 %v216_v3 }
  0x11   : > { %v182_v2 = vpack.c.b16 %v181_v1, %v181_v1 }
  0x13   : > { %272 = vrot.lane.b32.xlu1 %v182_v2, %s640_s18  ;;  %183 = vrot.lane.b32.xlu0 %v182_v2, %s641_s19 }
  0x14   : > { %368 = vrot.lane.b32.xlu2 %v182_v2, %s642_s20  ;;  %551 = vmatmul.msk.bf16.vlgmr.msra.gmra.mxu1 %vm185_vm1, %v604_v4 }
  0x1b   : > { %304 = vrot.lane.b32.xlu1 %v182_v2, %s643_s21  ;;  %240 = vrot.lane.b32.xlu0 %v182_v2, %s644_s22 }
  0x1c   : > { %400 = vrot.lane.b32.xlu2 %v182_v2, %s645_s23  ;;  %s603_s23 = sshll.u32 %s746_s13, 3 }
  0x1d   : > { %s167_s26 = scalar_lea.vmem %s744_s3, %s603_s23 }
  0x23   : > { %336 = vrot.lane.b32.xlu0 %v182_v2, %s646_s24  ;;  %432 = vrot.lane.b32.xlu1 %v182_v2, %s647_s25 }
  0x24   : > { %460 = vperm.xlu2 %630, %v456_v15  }
  0x2b   : > { %465 = vperm.xlu0 %631, %v457_v14  }
  0x6e   : > { %v369_v5 = vpop.permute.xlu2 %368 }
  0x6f   : > { %v374_v19 = vsel %vm189_vm0, %v369_v5, 0 }
  0x76   : > { %v401_v6 = vpop.permute.xlu2 %400 }
  0x77   : > { %v406_v9 = vsel %vm189_vm0, %v401_v6, 0 }
  0x7e   : > { %v461_v58 = vpop.permute.xlu2 %460 }
  0x85   : > { %v273_v7 = vpop.permute.xlu1 %272  ;;  %v184_v8 = vpop.permute.xlu0 %183 }
  0x86   : > { %v191_v10 = vsel %vm189_vm0, %v184_v8, 0  ;;  %v278_v11 = vsel %vm189_vm0, %v273_v7, 0 }
  0x87   : > { %200 = vmatpush.bf16.msra.mxu0 %v191_v10  ;;  %287 = vmatpush.bf16.msra.mxu3 %v278_v11 }
  0x8a   : > { %546 = vmatmul.msk.bf16.vlgmr.msra.gmra.mxu0 %vm185_vm1, %v605_v12  ;;  %565 = vmatmul.msk.bf16.vlgmr.msra.gmra.mxu3 %vm185_vm1, %v607_v13 }
  0x8b   : > { %415 = vmatpush.bf16.msrb.mxu3 %v406_v9 }
  0x8d   : > { %v305_v17 = vpop.permute.xlu1 %304  ;;  %v241_v18 = vpop.permute.xlu0 %240 }
  0x8e   : > { %v246_v20 = vsel %vm189_vm0, %v241_v18, 0  ;;  %v310_v21 = vsel %vm189_vm0, %v305_v17, 0 }
  0x8f   : > { %255 = vmatpush.bf16.msra.mxu2 %v246_v20  ;;  %319 = vmatpush.bf16.msrb.mxu0 %v310_v21 }
  0x91   : > { %v227_v33 = vpop.f32.mrf.mxu1 }
  0x92   : > { %558 = vmatmul.msk.bf16.vlgmr.msra.gmra.mxu2 %vm185_vm1, %v606_v22 }
  0x93   : > { %383 = vmatpush.bf16.msrb.mxu2 %v374_v19 }
  0x95   : > { %v337_v23 = vpop.permute.xlu0 %336  ;;  %v433_v24 = vpop.permute.xlu1 %432 }
  0x96   : > { %v342_v25 = vsel %vm189_vm0, %v337_v23, 0  ;;  %v438_v27 = vsel %vm189_vm0, %v433_v24, 0 }
  0x97   : > { %351 = vmatpush.bf16.msrb.mxu1 %v342_v25  ;;  %447 = vmatpush.bf16.msra.mxu0 %v438_v27 }
  0x99   : > { %v229_v38 = vpop.f32.mrf.mxu1 }
  0x9a   : > { %572 = vmatmul.msk.bf16.vlgmr.msrb.gmra.mxu0 %vm185_vm1, %v608_v26  ;;  %579 = vmatmul.msk.bf16.vlgmr.msrb.gmra.mxu1 %vm185_vm1, %v609_v28 }
  0x9b   : > { %593 = vmatmul.msk.bf16.vlgmr.msrb.gmra.mxu3 %vm185_vm1, %v611_v29 }
  0x9d   : > { %v466_v5 = vpop.permute.xlu0 %465 }
  0xa2   : > { %586 = vmatmul.msk.bf16.vlgmr.msrb.gmra.mxu2 %vm185_vm1, %v610_v30 }
  0xaa   : > { %600 = vmatmul.msk.bf16.vlgmr.msra.gmra.mxu0 %vm185_vm1, %v612_v31 }
 0x107   : > { %v202_v32 = vpop.f32.mrf.mxu0 }
 0x108   : > { %v228_v37 = vadd.f32 %v227_v33, %v202_v32 }
 0x10d   : > { %v289_v35 = vpop.f32.mrf.mxu3 }
 0x10f   : > { %v204_v34 = vpop.f32.mrf.mxu0 }
 0x110   : > { %v230_v44 = vadd.f32 %v229_v38, %v204_v34 }
 0x115   : > { %v257_v36 = vpop.f32.mrf.mxu2  ;;  %v291_v41 = vpop.f32.mrf.mxu3 }
 0x116   : > { %v262_v40 = vadd.f32 %v257_v36, %v228_v37 }
 0x117   : > { %v321_v39 = vpop.f32.mrf.mxu0  ;;  %v353_v45 = vpop.f32.mrf.mxu1 }
 0x118   : > { %v294_v42 = vadd.f32 %v289_v35, %v262_v40 }
 0x11a   : > { %v326_v47 = vadd.f32 %v321_v39, %v294_v42 }
 0x11c   : > { %v358_v49 = vadd.f32 %v353_v45, %v326_v47 }
 0x11d   : > { %v259_v43 = vpop.f32.mrf.mxu2 }
 0x11e   : > { %v263_v48 = vadd.f32 %v259_v43, %v230_v44  ;;  %v417_v51 = vpop.f32.mrf.mxu3 }
 0x11f   : > { %v323_v46 = vpop.f32.mrf.mxu0  ;;  %v355_v57 = vpop.f32.mrf.mxu1 }
 0x120   : > { %v295_v50 = vadd.f32 %v291_v41, %v263_v48 }
 0x122   : > { %v327_v55 = vadd.f32 %v323_v46, %v295_v50 }
 0x124   : > { %v359_v60 = vadd.f32 %v355_v57, %v327_v55 }
 0x125   : > { %v385_v52 = vpop.f32.mrf.mxu2 }
 0x126   : > { %v390_v53 = vadd.f32 %v385_v52, %v358_v49  ;;  %v419_v1 = vpop.f32.mrf.mxu3 }
 0x127   : > { %v449_v54 = vpop.f32.mrf.mxu0 }
 0x128   : > { %v422_v56 = vadd.f32 %v417_v51, %v390_v53 }
 0x12a   : > { %v454_v59 = vadd.f32 %v449_v54, %v422_v56 }
 0x12c   : > { %v468_v61 = vadd.f32 %v461_v58, %v454_v59 }
 0x12d   : > { %v387_v62 = vpop.f32.mrf.mxu2 }
 0x12e   : > { %v470_v63 = vmax.f32 %v468_v61, 0.0  ;;  %v391_v0 = vadd.f32 %v387_v62, %v359_v60 }
 0x12f   : > { %v451_v4 = vpop.f32.mrf.mxu0 }
 0x130   : > { %v472_v2 = vpack.c.bf16 %v470_v63, %v470_v63  ;;  %v423_v3 = vadd.f32 %v419_v1, %v391_v0 }
 0x132   : > { %475 = vst.msk [vmem:[%s167_s26] sm:$0xf] %vm474_vm2, %v472_v2  ;;  %v455_v6 = vadd.f32 %v451_v4, %v423_v3 }
 0x134   : > { %v469_v7 = vadd.f32 %v466_v5, %v455_v6 }
 0x136   : > { %v471_v8 = vmax.f32 %v469_v7, 0.0 }
 0x138   : > { %v473_v9 = vpack.c.bf16 %v471_v8, %v471_v8 }
 0x13a   : > { %476 = vst.msk [vmem:[%s167_s26 + $0x4] sm:$0xf] %vm474_vm2, %v473_v9 }
 0x13b PF: > { %s13_s12 = sadd.s32 1, %s638_s12  }
 0x13c   : > { %p10_p4 = scmp.ge.s32.totalorder %s13_s12, 26  }
 0x13e   :  { %12 = sbr.rel (!%p10_p4) target bundleno = 1 (0x1), region = 70 }

// kernel: _forward_impl.28
= control target key start
LH: loop header
LB: loop body
LE: loop exit
PB: predicated region body
PF: predicated region fallthrough
CT: control target
= control target key end

     0   :  { %s663_s12 = smov 0   ;;  %s729_s0 = inlined_call_operand.vmem [shape: bf16[24,16,102], index: 0, kind: input, shape index: {}]   ;;  %s730_s1 = inlined_call_operand.vmem [shape: bf16[9,16,16], index: 1, kind: input, shape index: {}]   ;;  %s731_s2 = inlined_call_operand.vmem [shape: f32[16,1], index: 2, kind: input, shape index: {}]   ;;  %s732_s3 = inlined_call_operand.vmem [shape: bf16[24,16,80], index: 3, kind: output, shape index: {}]  }
   0x1 LB: > { %s519_s13 = sadd.s32 4294967295, %s632_s12   ;;  %p523_p0 = scmp.ge.s32.totalorder %s632_s12, 1  ;;  %s632_s12 = sphi %s663_s12, %s13_s12  }
   0x2   : > { %p137_p1 = scmp.lt.s32.totalorder %s632_s12, 25 }
   0x4   : > { %p138_p2 = pnand %p523_p0, %p137_p1 }
   0x5   : > { %p161_p3 = scmp.lt.s32.totalorder (!%p138_p2), %s519_s13, 23  ;;  %s634_s18 = smov (!%p138_p2), 118  }
   0x6   : > { %141 = sbr.rel (%p138_p2) target bundleno = 310 (0x136), region = 32  ;;  %s635_s19 = smov (!%p138_p2), 127  }
   0x7   : > { %s636_s20 = smov (!%p138_p2), 108   ;;  %s637_s21 = smov (!%p138_p2), 117  }
   0x8   : > { %s638_s22 = smov (!%p138_p2), 126   ;;  %s639_s23 = smov (!%p138_p2), 107  }
   0x9   : > { %s640_s24 = smov (!%p138_p2), 116   ;;  %s641_s25 = smov (!%p138_p2), 106  }
   0xb   : > { %s734_s13 = smov (!%p161_p3, %s519_s13), 23  ;;  %vm192_vm0 = vcmask 130048   ;;  %v598_v1 = vld [vmem:[%s730_s1] sm:$0xff]  ;;  %v599_v6 = vld [vmem:[%s730_s1 + $0x8] sm:$0xff]  ;;  %v601_v7 = vld [vmem:[%s730_s1 + $0x18] sm:$0xff]  ;;  %v642_v10 = vmov 0  }
   0xc   : > { %s595_s14 = sshll.u32 %s734_s13, 3  ;;  %v444_v8 = vld [vmem:[%s731_s2 + $0x8] sm:$0xff]  ;;  %v443_v9 = vld [vmem:[%s731_s2] sm:$0xff]  ;;  %625 = vset.pattern.permute.xlu0 %v642_v10  ;;  %624 = vset.pattern.permute.xlu2 %v642_v10  ;;  %v600_v13 = vld [vmem:[%s730_s1 + $0x10] sm:$0xff]  ;;  %vm461_vm1 = vcmask 650240  }
   0xd   : > { %s165_s17 = scalar_lea.vmem %s729_s0, %s595_s14  ;;  %v602_v15 = vld [vmem:[%s730_s1 + $0x20] sm:$0xff]  ;;  %v603_v17 = vld [vmem:[%s730_s1 + $0x28] sm:$0xff]  ;;  %v605_v18 = vld [vmem:[%s730_s1 + $0x38] sm:$0xff]  ;;  %s170_s26 = scalar_lea.vmem %s732_s3, %s595_s14 }
   0xe   : > { %v597_v0 = vld [vmem:[%s165_s17] sm:$0xff]  ;;  %v604_v19 = vld [vmem:[%s730_s1 + $0x30] sm:$0xff] }
   0xf   : > { %271 = vrot.lane.b32.xlu1 %v597_v0, %s634_s18  ;;  %189 = vrot.lane.b32.xlu0 %v597_v0, %s635_s19  ;;  %v606_v20 = vld [vmem:[%s730_s1 + $0x40] sm:$0xff] }
  0x10   : > { %361 = vrot.lane.b32.xlu2 %v597_v0, %s636_s20  ;;  %226 = vmatpush.bf16.msra.mxu1 %v597_v0 }
  0x13   : > { %543 = vmatmul.msk.bf16.vlgmr.msra.gmra.mxu1 %vm192_vm0, %v598_v1 }
  0x17   : > { %301 = vrot.lane.b32.xlu1 %v597_v0, %s637_s21  ;;  %241 = vrot.lane.b32.xlu0 %v597_v0, %s638_s22 }
  0x18   : > { %391 = vrot.lane.b32.xlu2 %v597_v0, %s639_s23 }
  0x1f   : > { %331 = vrot.lane.b32.xlu0 %v597_v0, %s640_s24  ;;  %421 = vrot.lane.b32.xlu1 %v597_v0, %s641_s25 }
  0x20   : > { %447 = vperm.xlu2 %624, %v443_v9  }
  0x27   : > { %452 = vperm.xlu0 %625, %v444_v8  }
  0x6a   : > { %v362_v2 = vpop.permute.xlu2 %361 }
  0x72   : > { %v392_v3 = vpop.permute.xlu2 %391 }
  0x7a   : > { %v448_v47 = vpop.permute.xlu2 %447 }
  0x81   : > { %v272_v4 = vpop.permute.xlu1 %271  ;;  %v190_v5 = vpop.permute.xlu0 %189 }
  0x82   : > { %203 = vmatpush.bf16.msra.mxu0 %v190_v5  ;;  %284 = vmatpush.bf16.msra.mxu3 %v272_v4 }
  0x85   : > { %538 = vmatmul.msk.bf16.vlgmr.msra.gmra.mxu0 %vm192_vm0, %v599_v6  ;;  %557 = vmatmul.msk.bf16.vlgmr.msra.gmra.mxu3 %vm192_vm0, %v601_v7 }
  0x86   : > { %404 = vmatpush.bf16.msrb.mxu3 %v392_v3 }
  0x89   : > { %v302_v11 = vpop.permute.xlu1 %301  ;;  %v242_v12 = vpop.permute.xlu0 %241 }
  0x8a   : > { %254 = vmatpush.bf16.msra.mxu2 %v242_v12  ;;  %314 = vmatpush.bf16.msrb.mxu0 %v302_v11 }
  0x8d   : > { %550 = vmatmul.msk.bf16.vlgmr.msra.gmra.mxu2 %vm192_vm0, %v600_v13 }
  0x8e   : > { %374 = vmatpush.bf16.msrb.mxu2 %v362_v2 }
  0x90   : > { %v228_v22 = vpop.f32.mrf.mxu1 }
  0x91   : > { %v332_v14 = vpop.permute.xlu0 %331  ;;  %v422_v16 = vpop.permute.xlu1 %421 }
  0x92   : > { %344 = vmatpush.bf16.msrb.mxu1 %v332_v14  ;;  %434 = vmatpush.bf16.msra.mxu0 %v422_v16 }
  0x95   : > { %564 = vmatmul.msk.bf16.vlgmr.msrb.gmra.mxu0 %vm192_vm0, %v602_v15  ;;  %571 = vmatmul.msk.bf16.vlgmr.msrb.gmra.mxu1 %vm192_vm0, %v603_v17 }
  0x96   : > { %585 = vmatmul.msk.bf16.vlgmr.msrb.gmra.mxu3 %vm192_vm0, %v605_v18 }
  0x98   : > { %v230_v27 = vpop.f32.mrf.mxu1 }
  0x99   : > { %v453_v58 = vpop.permute.xlu0 %452 }
  0x9d   : > { %578 = vmatmul.msk.bf16.vlgmr.msrb.gmra.mxu2 %vm192_vm0, %v604_v19 }
  0xa5   : > { %592 = vmatmul.msk.bf16.vlgmr.msra.gmra.mxu0 %vm192_vm0, %v606_v20 }
 0x102   : > { %v205_v21 = vpop.f32.mrf.mxu0 }
 0x103   : > { %v229_v26 = vadd.f32 %v228_v22, %v205_v21 }
 0x108   : > { %v286_v24 = vpop.f32.mrf.mxu3 }
 0x10a   : > { %v207_v23 = vpop.f32.mrf.mxu0 }
 0x10b   : > { %v231_v33 = vadd.f32 %v230_v27, %v207_v23 }
 0x110   : > { %v256_v25 = vpop.f32.mrf.mxu2  ;;  %v288_v30 = vpop.f32.mrf.mxu3 }
 0x111   : > { %v261_v29 = vadd.f32 %v256_v25, %v229_v26 }
 0x112   : > { %v316_v28 = vpop.f32.mrf.mxu0  ;;  %v346_v34 = vpop.f32.mrf.mxu1 }
 0x113   : > { %v291_v31 = vadd.f32 %v286_v24, %v261_v29 }
 0x115   : > { %v321_v36 = vadd.f32 %v316_v28, %v291_v31 }
 0x117   : > { %v351_v38 = vadd.f32 %v346_v34, %v321_v36 }
 0x118   : > { %v258_v32 = vpop.f32.mrf.mxu2 }
 0x119   : > { %v262_v37 = vadd.f32 %v258_v32, %v231_v33  ;;  %v406_v40 = vpop.f32.mrf.mxu3 }
 0x11a   : > { %v318_v35 = vpop.f32.mrf.mxu0  ;;  %v348_v46 = vpop.f32.mrf.mxu1 }
 0x11b   : > { %v292_v39 = vadd.f32 %v288_v30, %v262_v37 }
 0x11d   : > { %v322_v44 = vadd.f32 %v318_v35, %v292_v39 }
 0x11f   : > { %v352_v49 = vadd.f32 %v348_v46, %v322_v44 }
 0x120   : > { %v376_v41 = vpop.f32.mrf.mxu2 }
 0x121   : > { %v381_v42 = vadd.f32 %v376_v41, %v351_v38  ;;  %v408_v54 = vpop.f32.mrf.mxu3 }
 0x122   : > { %v436_v43 = vpop.f32.mrf.mxu0 }
 0x123   : > { %v411_v45 = vadd.f32 %v406_v40, %v381_v42 }
 0x125   : > { %v441_v48 = vadd.f32 %v436_v43, %v411_v45 }
 0x127   : > { %v455_v50 = vadd.f32 %v448_v47, %v441_v48 }
 0x128   : > { %v378_v51 = vpop.f32.mrf.mxu2 }
 0x129   : > { %v457_v52 = vmax.f32 %v455_v50, 0.0  ;;  %v382_v53 = vadd.f32 %v378_v51, %v352_v49 }
 0x12a   : > { %v438_v57 = vpop.f32.mrf.mxu0 }
 0x12b   : > { %v459_v55 = vpack.c.bf16 %v457_v52, %v457_v52  ;;  %v412_v56 = vadd.f32 %v408_v54, %v382_v53 }
 0x12d   : > { %462 = vst.msk [vmem:[%s170_s26] sm:$0xf] %vm461_vm1, %v459_v55  ;;  %v442_v59 = vadd.f32 %v438_v57, %v412_v56 }
 0x12f   : > { %v456_v60 = vadd.f32 %v453_v58, %v442_v59 }
 0x131   : > { %v458_v61 = vmax.f32 %v456_v60, 0.0 }
 0x133   : > { %v460_v62 = vpack.c.bf16 %v458_v61, %v458_v61 }
 0x135   : > { %463 = vst.msk [vmem:[%s170_s26 + $0x4] sm:$0xf] %vm461_vm1, %v460_v62 }
 0x136 PF: > { %s13_s12 = sadd.s32 1, %s632_s12  }
 0x137   : > { %p10_p4 = scmp.ge.s32.totalorder %s13_s12, 26  }
 0x139   :  { %12 = sbr.rel (!%p10_p4) target bundleno = 1 (0x1), region = 70 }

// kernel: _forward_impl.29
= control target key start
LH: loop header
LB: loop body
LE: loop exit
PB: predicated region body
PF: predicated region fallthrough
CT: control target
= control target key end

     0   :  { %s904_s12 = smov 0   ;;  %s1019_s0 = inlined_call_operand.vmem [shape: bf16[24,16,38], index: 0, kind: input, shape index: {}]   ;;  %s1020_s1 = inlined_call_operand.vmem [shape: bf16[9,32,16], index: 1, kind: input, shape index: {}]   ;;  %s1021_s2 = inlined_call_operand.vmem [shape: f32[32,1], index: 2, kind: input, shape index: {}]   ;;  %s1022_s3 = inlined_call_operand.vmem [shape: bf16[24,32,24], index: 3, kind: output, shape index: {}]  }
   0x1 LB: > { %s688_s13 = sadd.s32 4294967295, %s873_s12   ;;  %p692_p0 = scmp.ge.s32.totalorder %s873_s12, 1  ;;  %s873_s12 = sphi %s904_s12, %s13_s12  }
   0x2   : > { %p137_p1 = scmp.lt.s32.totalorder %s873_s12, 25 }
   0x4   : > { %p138_p2 = pnand %p692_p0, %p137_p1 }
   0x5   : > { %p161_p3 = scmp.lt.s32.totalorder (!%p138_p2), %s688_s13, 23  ;;  %s875_s18 = smov (!%p138_p2), 127  }
   0x6   : > { %141 = sbr.rel (%p138_p2) target bundleno = 346 (0x15a), region = 32  ;;  %s876_s19 = smov (!%p138_p2), 122  }
   0x7   : > { %s877_s20 = smov (!%p138_p2), 116   ;;  %s878_s21 = smov (!%p138_p2), 126  }
   0x8   : > { %s879_s22 = smov (!%p138_p2), 121   ;;  %s880_s23 = smov (!%p138_p2), 115  }
   0x9   : > { %s881_s24 = smov (!%p138_p2), 120   ;;  %s882_s25 = smov (!%p138_p2), 114  }
   0xb   : > { %s1024_s13 = smov (!%p161_p3, %s688_s13), 23  ;;  %v830_v5 = vld [vmem:[%s1020_s1 + $0x10] sm:$0xff]  ;;  %v831_v6 = vld [vmem:[%s1020_s1 + $0x18] sm:$0xff]  ;;  %vm201_vm0 = vcmask 130048   ;;  %v832_v10 = vld [vmem:[%s1020_s1 + $0x20] sm:$0xff]  ;;  %v883_v22 = vmov 0  }
   0xc   : > { %s825_s14 = sshll.u32 %s1024_s13, 3  ;;  %v834_v7 = vld [vmem:[%s1020_s1 + $0x30] sm:$0xff]  ;;  %v828_v12 = vld [vmem:[%s1020_s1] sm:$0xff]  ;;  %v835_v15 = vld [vmem:[%s1020_s1 + $0x38] sm:$0xff]  ;;  %865 = vset.pattern.permute.xlu0 %v883_v22  ;;  %866 = vset.pattern.permute.xlu1 %v883_v22  ;;  %vm628_vm1 = vcmask 191488  }
   0xd   : > { %s165_s17 = scalar_lea.vmem %s1019_s0, %s825_s14  ;;  %v836_v13 = vld [vmem:[%s1020_s1 + $0x40] sm:$0xff]  ;;  %v833_v16 = vld [vmem:[%s1020_s1 + $0x28] sm:$0xff]  ;;  %v842_v19 = vld [vmem:[%s1020_s1 + $0x70] sm:$0xff]  ;;  %864 = vset.pattern.permute.xlu2 %v883_v22 }
   0xe   : > { %v827_v0 = vld [vmem:[%s165_s17] sm:$0xff]  ;;  %v829_v17 = vld [vmem:[%s1020_s1 + $0x8] sm:$0xff]  ;;  %v594_v21 = vld [vmem:[%s1021_s2 + $0x10] sm:$0xff] }
   0xf   : > { %198 = vrot.lane.b32.xlu0 %v827_v0, %s875_s18  ;;  %325 = vrot.lane.b32.xlu1 %v827_v0, %s876_s19  ;;  %v837_v18 = vld [vmem:[%s1020_s1 + $0x48] sm:$0xff]  ;;  %v592_v23 = vld [vmem:[%s1021_s2] sm:$0xff] }
  0x10   : > { %466 = vrot.lane.b32.xlu2 %v827_v0, %s877_s20  ;;  %v593_v20 = vld [vmem:[%s1021_s2 + $0x8] sm:$0xff]  ;;  %v840_v24 = vld [vmem:[%s1020_s1 + $0x60] sm:$0xff]  ;;  %v595_v25 = vld [vmem:[%s1021_s2 + $0x18] sm:$0xff]  ;;  %s826_s20 = sshll.u32 %s1024_s13, 4 }
  0x11   : > { %v838_v26 = vld [vmem:[%s1020_s1 + $0x50] sm:$0xff]  ;;  %v844_v27 = vld [vmem:[%s1020_s1 + $0x80] sm:$0xff]  ;;  %v843_v28 = vld [vmem:[%s1020_s1 + $0x78] sm:$0xff] }
  0x12   : > { %v841_v29 = vld [vmem:[%s1020_s1 + $0x68] sm:$0xff]  ;;  %v839_v30 = vld [vmem:[%s1020_s1 + $0x58] sm:$0xff] }
  0x13   : > { %v845_v31 = vld [vmem:[%s1020_s1 + $0x88] sm:$0xff] }
  0x17   : > { %278 = vrot.lane.b32.xlu0 %v827_v0, %s878_s21  ;;  %372 = vrot.lane.b32.xlu1 %v827_v0, %s879_s22 }
  0x18   : > { %513 = vrot.lane.b32.xlu2 %v827_v0, %s880_s23  ;;  %s1006_s23 = scalar_lea.vmem %s1022_s3, %s826_s20 }
  0x1f   : > { %419 = vrot.lane.b32.xlu0 %v827_v0, %s881_s24  ;;  %560 = vrot.lane.b32.xlu1 %v827_v0, %s882_s25 }
  0x20   : > { %598 = vperm.xlu2 %864, %v592_v23  }
  0x27   : > { %603 = vperm.xlu0 %865, %v593_v20   ;;  %608 = vperm.xlu1 %866, %v594_v21  }
  0x28   : > { %613 = vperm.xlu2 %864, %v595_v25  }
  0x6a   : > { %v467_v1 = vpop.permute.xlu2 %466 }
  0x72   : > { %v514_v2 = vpop.permute.xlu2 %513 }
  0x81   : > { %v199_v3 = vpop.permute.xlu0 %198  ;;  %v326_v4 = vpop.permute.xlu1 %325 }
  0x82   : > { %215 = vmatpush.bf16.msra.mxu0 %v199_v3  ;;  %846 = vmatpush.bf16.msra.mxu1 %v199_v3 }
  0x83   : > { %341 = vmatpush.bf16.msra.mxu3 %v326_v4  ;;  %v599_v4 = vpop.permute.xlu2 %598 }
  0x85   : > { %713 = vmatmul.msk.bf16.vlgmr.msra.gmra.mxu0 %vm201_vm0, %v830_v5  ;;  %714 = vmatmul.msk.bf16.vlgmr.msra.gmra.mxu1 %vm201_vm0, %v831_v6 }
  0x86   : > { %251 = vmatpush.bf16.msrb.mxu1 %v827_v0  ;;  %751 = vmatmul.msk.bf16.vlgmr.msra.gmra.mxu3 %vm201_vm0, %v834_v7 }
  0x87   : > { %529 = vmatpush.bf16.msrb.mxu3 %v514_v2 }
  0x89   : > { %v279_v8 = vpop.permute.xlu0 %278  ;;  %v373_v9 = vpop.permute.xlu1 %372 }
  0x8a   : > { %294 = vmatpush.bf16.msra.mxu2 %v279_v8  ;;  %388 = vmatpush.bf16.msrb.mxu0 %v373_v9 }
  0x8d   : > { %737 = vmatmul.msk.bf16.vlgmr.msra.gmra.mxu2 %vm201_vm0, %v832_v10 }
  0x8e   : > { %482 = vmatpush.bf16.msrb.mxu2 %v467_v1 }
  0x91   : > { %v420_v11 = vpop.permute.xlu0 %419  ;;  %v561_v14 = vpop.permute.xlu1 %560 }
  0x92   : > { %435 = vmatpush.bf16.msra.mxu1 %v420_v11  ;;  %576 = vmatpush.bf16.msra.mxu0 %v561_v14 }
  0x95   : > { %723 = vmatmul.msk.bf16.vlgmr.msrb.gmra.mxu1 %vm201_vm0, %v828_v12  ;;  %765 = vmatmul.msk.bf16.vlgmr.msrb.gmra.mxu0 %vm201_vm0, %v836_v13 }
  0x96   : > { %752 = vmatmul.msk.bf16.gmra.mxu3 %vm201_vm0, %v835_v15 }
  0x9d   : > { %738 = vmatmul.msk.bf16.gmra.mxu2 %vm201_vm0, %v833_v16 }
  0xa5   : > { %724 = vmatmul.msk.bf16.gmra.mxu1 %vm201_vm0, %v829_v17  ;;  %766 = vmatmul.msk.bf16.gmra.mxu0 %vm201_vm0, %v837_v18 }
  0xa6   : > { %807 = vmatmul.msk.bf16.vlgmr.msrb.gmra.mxu3 %vm201_vm0, %v842_v19  ;;  %v604_v19 = vpop.permute.xlu0 %603 }
  0xad   : > { %793 = vmatmul.msk.bf16.vlgmr.msrb.gmra.mxu2 %vm201_vm0, %v840_v24 }
  0xb5   : > { %779 = vmatmul.msk.bf16.vlgmr.msra.gmra.mxu1 %vm201_vm0, %v838_v26  ;;  %821 = vmatmul.msk.bf16.vlgmr.msra.gmra.mxu0 %vm201_vm0, %v844_v27 }
  0xb6   : > { %808 = vmatmul.msk.bf16.gmra.mxu3 %vm201_vm0, %v843_v28 }
  0xbd   : > { %794 = vmatmul.msk.bf16.gmra.mxu2 %vm201_vm0, %v841_v29 }
  0xc5   : > { %780 = vmatmul.msk.bf16.gmra.mxu1 %vm201_vm0, %v839_v30  ;;  %822 = vmatmul.msk.bf16.gmra.mxu0 %vm201_vm0, %v845_v31 }
 0x102   : > { %v217_v32 = vpop.f32.mrf.mxu0  ;;  %v222_v33 = vpop.f32.mrf.mxu1 }
 0x109   : > { %v343_v34 = vpop.f32.mrf.mxu3 }
 0x10a   : > { %v219_v35 = vpop.f32.mrf.mxu0  ;;  %v224_v36 = vpop.f32.mrf.mxu1 }
 0x110   : > { %v296_v37 = vpop.f32.mrf.mxu2 }
 0x111   : > { %v345_v38 = vpop.f32.mrf.mxu3 }
 0x112   : > { %v253_v39 = vpop.f32.mrf.mxu1  ;;  %v390_v40 = vpop.f32.mrf.mxu0 }
 0x113   : > { %v254_v48 = vadd.f32 %v253_v39, %v217_v32 }
 0x115   : > { %v306_v51 = vadd.f32 %v296_v37, %v254_v48  ;;  %v614_v48 = vpop.permute.xlu2 %613 }
 0x117   : > { %v353_v54 = vadd.f32 %v343_v34, %v306_v51  ;;  %v609_v34 = vpop.permute.xlu1 %608 }
 0x118   : > { %v298_v41 = vpop.f32.mrf.mxu2 }
 0x119   : > { %v348_v44 = vpop.f32.mrf.mxu3  ;;  %v400_v58 = vadd.f32 %v390_v40, %v353_v54 }
 0x11a   : > { %v255_v42 = vpop.f32.mrf.mxu1  ;;  %v392_v43 = vpop.f32.mrf.mxu0 }
 0x11b   : > { %v256_v55 = vadd.f32 %v255_v42, %v219_v35 }
 0x11d   : > { %v307_v59 = vadd.f32 %v298_v41, %v256_v55 }
 0x11f   : > { %v354_v63 = vadd.f32 %v345_v38, %v307_v59 }
 0x120   : > { %v301_v45 = vpop.f32.mrf.mxu2 }
 0x121   : > { %v350_v49 = vpop.f32.mrf.mxu3  ;;  %v401_v5 = vadd.f32 %v392_v43, %v354_v63 }
 0x122   : > { %v258_v46 = vpop.f32.mrf.mxu1  ;;  %v395_v47 = vpop.f32.mrf.mxu0 }
 0x123   : > { %v259_v0 = vadd.f32 %v258_v46, %v222_v33 }
 0x125   : > { %v308_v6 = vadd.f32 %v301_v45, %v259_v0 }
 0x127   : > { %v355_v13 = vadd.f32 %v348_v44, %v308_v6 }
 0x128   : > { %v303_v50 = vpop.f32.mrf.mxu2 }
 0x129   : > { %v531_v56 = vpop.f32.mrf.mxu3  ;;  %v402_v20 = vadd.f32 %v395_v47, %v355_v13 }
 0x12a   : > { %v260_v52 = vpop.f32.mrf.mxu1  ;;  %v397_v53 = vpop.f32.mrf.mxu0 }
 0x12b   : > { %v261_v14 = vadd.f32 %v260_v52, %v224_v36 }
 0x12d   : > { %v309_v21 = vadd.f32 %v303_v50, %v261_v14 }
 0x12f   : > { %v356_v28 = vadd.f32 %v350_v49, %v309_v21 }
 0x130   : > { %v484_v57 = vpop.f32.mrf.mxu2 }
 0x131   : > { %v533_v8 = vpop.f32.mrf.mxu3  ;;  %v403_v35 = vadd.f32 %v397_v53, %v356_v28 }
 0x132   : > { %v437_v60 = vpop.f32.mrf.mxu1  ;;  %v578_v61 = vpop.f32.mrf.mxu0 }
 0x133   : > { %v447_v62 = vadd.f32 %v437_v60, %v400_v58 }
 0x135   : > { %v494_v1 = vadd.f32 %v484_v57, %v447_v62 }
 0x137   : > { %v541_v2 = vadd.f32 %v531_v56, %v494_v1 }
 0x138   : > { %v486_v3 = vpop.f32.mrf.mxu2 }
 0x139   : > { %v588_v7 = vadd.f32 %v578_v61, %v541_v2  ;;  %v536_v27 = vpop.f32.mrf.mxu3 }
 0x13a   : > { %v439_v9 = vpop.f32.mrf.mxu1  ;;  %v580_v12 = vpop.f32.mrf.mxu0 }
 0x13b   : > { %v616_v10 = vadd.f32 %v599_v4, %v588_v7  ;;  %v448_v11 = vadd.f32 %v439_v9, %v401_v5 }
 0x13d   : > { %v620_v15 = vmax.f32 %v616_v10, 0.0  ;;  %v495_v16 = vadd.f32 %v486_v3, %v448_v11 }
 0x13f   : > { %v624_v17 = vpack.c.bf16 %v620_v15, %v620_v15  ;;  %v542_v18 = vadd.f32 %v533_v8, %v495_v16 }
 0x140   : > { %v489_v23 = vpop.f32.mrf.mxu2 }
 0x141   : > { %629 = vst.msk [vmem:[%s1006_s23] sm:$0xf] %vm628_vm1, %v624_v17  ;;  %v589_v22 = vadd.f32 %v580_v12, %v542_v18  ;;  %v538_v43 = vpop.f32.mrf.mxu3 }
 0x142   : > { %v442_v24 = vpop.f32.mrf.mxu1  ;;  %v583_v31 = vpop.f32.mrf.mxu0 }
 0x143   : > { %v449_v25 = vadd.f32 %v442_v24, %v402_v20  ;;  %v617_v26 = vadd.f32 %v604_v19, %v589_v22 }
 0x145   : > { %v496_v29 = vadd.f32 %v489_v23, %v449_v25  ;;  %v621_v30 = vmax.f32 %v617_v26, 0.0 }
 0x147   : > { %v543_v32 = vadd.f32 %v536_v27, %v496_v29  ;;  %v625_v33 = vpack.c.bf16 %v621_v30, %v621_v30 }
 0x148   : > { %v491_v40 = vpop.f32.mrf.mxu2 }
 0x149   : > { %v590_v36 = vadd.f32 %v583_v31, %v543_v32  ;;  %630 = vst.msk [vmem:[%s1006_s23 + $0x4] sm:$0xf] %vm628_vm1, %v625_v33 }
 0x14a   : > { %v444_v37 = vpop.f32.mrf.mxu1  ;;  %v585_v46 = vpop.f32.mrf.mxu0 }
 0x14b   : > { %v618_v38 = vadd.f32 %v609_v34, %v590_v36  ;;  %v450_v39 = vadd.f32 %v444_v37, %v403_v35 }
 0x14d   : > { %v622_v41 = vmax.f32 %v618_v38, 0.0  ;;  %v497_v42 = vadd.f32 %v491_v40, %v450_v39 }
 0x14f   : > { %v626_v44 = vpack.c.bf16 %v622_v41, %v622_v41  ;;  %v544_v45 = vadd.f32 %v538_v43, %v497_v42 }
 0x151   : > { %631 = vst.msk [vmem:[%s1006_s23 + $0x8] sm:$0xf] %vm628_vm1, %v626_v44  ;;  %v591_v47 = vadd.f32 %v585_v46, %v544_v45 }
 0x153   : > { %v619_v49 = vadd.f32 %v614_v48, %v591_v47 }
 0x155   : > { %v623_v50 = vmax.f32 %v619_v49, 0.0 }
 0x157   : > { %v627_v51 = vpack.c.bf16 %v623_v50, %v623_v50 }
 0x159   : > { %632 = vst.msk [vmem:[%s1006_s23 + $0xc] sm:$0xf] %vm628_vm1, %v627_v51 }
 0x15a PF: > { %s13_s12 = sadd.s32 1, %s873_s12  }
 0x15b   : > { %p10_p4 = scmp.ge.s32.totalorder %s13_s12, 26  }
 0x15d   :  { %12 = sbr.rel (!%p10_p4) target bundleno = 1 (0x1), region = 70 }

// kernel: _forward_impl.30
= control target key start
LH: loop header
LB: loop body
LE: loop exit
PB: predicated region body
PF: predicated region fallthrough
CT: control target
= control target key end

     0   :  { %s942_s12 = smov 0   ;;  %s1060_s0 = inlined_call_operand.vmem [shape: bf16[24,32,38], index: 0, kind: input, shape index: {}]   ;;  %s1061_s1 = inlined_call_operand.vmem [shape: bf16[9,32,32], index: 1, kind: input, shape index: {}]   ;;  %s1062_s2 = inlined_call_operand.vmem [shape: f32[32,1], index: 2, kind: input, shape index: {}]   ;;  %s1063_s3 = inlined_call_operand.vmem [shape: bf16[24,32,24], index: 3, kind: output, shape index: {}]  }
   0x1 LB: > { %s720_s13 = sadd.s32 4294967295, %s911_s12   ;;  %p724_p0 = scmp.ge.s32.totalorder %s911_s12, 1  ;;  %s911_s12 = sphi %s942_s12, %s13_s12  }
   0x2   : > { %p137_p1 = scmp.lt.s32.totalorder %s911_s12, 25 }
   0x4   : > { %p138_p2 = pnand %p724_p0, %p137_p1 }
   0x5   : > { %p161_p3 = scmp.lt.s32.totalorder (!%p138_p2), %s720_s13, 23  ;;  %s913_s18 = smov (!%p138_p2), 126  }
   0x6   : > { %141 = sbr.rel (%p138_p2) target bundleno = 355 (0x163), region = 32  ;;  %s914_s19 = smov (!%p138_p2), 127  }
   0x7   : > { %s915_s20 = smov (!%p138_p2), 122   ;;  %s916_s21 = smov (!%p138_p2), 121  }
   0x8   : > { %s917_s22 = smov (!%p138_p2), 116   ;;  %s918_s23 = smov (!%p138_p2), 115  }
   0x9   : > { %s919_s24 = smov (!%p138_p2), 120   ;;  %s920_s25 = smov (!%p138_p2), 114  }
   0xb   : > { %s1065_s13 = smov (!%p161_p3, %s720_s13), 23  ;;  %v869_v7 = vld [vmem:[%s1061_s1 + $0x20] sm:$0xff]  ;;  %v867_v11 = vld [vmem:[%s1061_s1 + $0x10] sm:$0xff]  ;;  %vm211_vm0 = vcmask 261120   ;;  %v868_v12 = vld [vmem:[%s1061_s1 + $0x18] sm:$0xff]  ;;  %v921_v32 = vmov 0  }
   0xc   : > { %s861_s14 = sshll.u32 %s1065_s13, 4  ;;  %v871_v13 = vld [vmem:[%s1061_s1 + $0x30] sm:$0xff]  ;;  %v870_v17 = vld [vmem:[%s1061_s1 + $0x28] sm:$0xff]  ;;  %v873_v20 = vld [vmem:[%s1061_s1 + $0x40] sm:$0xff]  ;;  %902 = vset.pattern.permute.xlu1 %v921_v32  ;;  %904 = vset.pattern.permute.xlu0 %v921_v32  ;;  %vm660_vm1 = vcmask 191488  }
   0xd   : > { %s165_s17 = scalar_lea.vmem %s1060_s0, %s861_s14  ;;  %v865_v21 = vld [vmem:[%s1061_s1] sm:$0xff]  ;;  %v872_v22 = vld [vmem:[%s1061_s1 + $0x38] sm:$0xff]  ;;  %v874_v26 = vld [vmem:[%s1061_s1 + $0x48] sm:$0xff]  ;;  %903 = vset.pattern.permute.xlu2 %v921_v32 }
   0xe   : > { %v864_v0 = vld [vmem:[%s165_s17 + $0x8] sm:$0xff]  ;;  %v863_v1 = vld [vmem:[%s165_s17] sm:$0xff]  ;;  %v879_v29 = vld [vmem:[%s1061_s1 + $0x70] sm:$0xff] }
   0xf   : > { %291 = vrot.lane.b32.xlu1 %v864_v0, %s913_s18  ;;  %207 = vrot.lane.b32.xlu0 %v864_v0, %s914_s19  ;;  %v877_v25 = vld [vmem:[%s1061_s1 + $0x60] sm:$0xff]  ;;  %v866_v28 = vld [vmem:[%s1061_s1 + $0x8] sm:$0xff] }
  0x10   : > { %289 = vrot.lane.b32.xlu2 %v863_v1, %s913_s18  ;;  %v624_v30 = vld [vmem:[%s1062_s2] sm:$0xff]  ;;  %v626_v31 = vld [vmem:[%s1062_s2 + $0x10] sm:$0xff]  ;;  %v625_v33 = vld [vmem:[%s1062_s2 + $0x8] sm:$0xff] }
  0x11   : > { %v627_v34 = vld [vmem:[%s1062_s2 + $0x18] sm:$0xff]  ;;  %v878_v35 = vld [vmem:[%s1061_s1 + $0x68] sm:$0xff]  ;;  %v881_v36 = vld [vmem:[%s1061_s1 + $0x80] sm:$0xff] }
  0x12   : > { %v875_v37 = vld [vmem:[%s1061_s1 + $0x50] sm:$0xff]  ;;  %v880_v38 = vld [vmem:[%s1061_s1 + $0x78] sm:$0xff]  ;;  %v882_v39 = vld [vmem:[%s1061_s1 + $0x88] sm:$0xff] }
  0x13   : > { %v876_v40 = vld [vmem:[%s1061_s1 + $0x58] sm:$0xff] }
  0x17   : > { %341 = vrot.lane.b32.xlu1 %v864_v0, %s915_s20  ;;  %205 = vrot.lane.b32.xlu0 %v863_v1, %s914_s19 }
  0x18   : > { %339 = vrot.lane.b32.xlu2 %v863_v1, %s915_s20 }
  0x1f   : > { %391 = vrot.lane.b32.xlu0 %v864_v0, %s916_s21  ;;  %389 = vrot.lane.b32.xlu1 %v863_v1, %s916_s21 }
  0x20   : > { %491 = vrot.lane.b32.xlu2 %v864_v0, %s917_s22 }
  0x27   : > { %541 = vrot.lane.b32.xlu0 %v864_v0, %s918_s23  ;;  %441 = vrot.lane.b32.xlu1 %v864_v0, %s919_s24 }
  0x28   : > { %489 = vrot.lane.b32.xlu2 %v863_v1, %s917_s22 }
  0x2f   : > { %539 = vrot.lane.b32.xlu0 %v863_v1, %s918_s23  ;;  %439 = vrot.lane.b32.xlu1 %v863_v1, %s919_s24  ;;  %s1047_s24 = scalar_lea.vmem %s1063_s3, %s861_s14 }
  0x30   : > { %591 = vrot.lane.b32.xlu2 %v864_v0, %s920_s25 }
  0x37   : > { %589 = vrot.lane.b32.xlu0 %v863_v1, %s920_s25  ;;  %630 = vperm.xlu1 %902, %v624_v30  }
  0x38   : > { %635 = vperm.xlu2 %903, %v625_v33  }
  0x3f   : > { %640 = vperm.xlu0 %904, %v626_v31   ;;  %645 = vperm.xlu1 %902, %v627_v34  }
  0x6a   : > { %v290_v2 = vpop.permute.xlu2 %289 }
  0x72   : > { %v340_v3 = vpop.permute.xlu2 %339 }
  0x7a   : > { %v492_v4 = vpop.permute.xlu2 %491 }
  0x81   : > { %v292_v5 = vpop.permute.xlu1 %291  ;;  %v208_v6 = vpop.permute.xlu0 %207 }
  0x82   : > { %224 = vmatpush.bf16.msra.mxu0 %v208_v6  ;;  %883 = vmatpush.bf16.msra.mxu1 %v208_v6  ;;  %v490_v8 = vpop.permute.xlu2 %489 }
  0x83   : > { %307 = vmatpush.bf16.msra.mxu2 %v292_v5 }
  0x87   : > { %308 = vmatpush.bf16.msra.mxu2 %v290_v2 }
  0x89   : > { %v342_v9 = vpop.permute.xlu1 %341  ;;  %v206_v10 = vpop.permute.xlu0 %205 }
  0x8a   : > { %357 = vmatpush.bf16.msra.mxu3 %v342_v9  ;;  %225 = vmatpush.bf16.msra.mxu0 %v206_v10  ;;  %v592_v16 = vpop.permute.xlu2 %591 }
  0x8b   : > { %507 = vmatpush.bf16.msrb.mxu2 %v492_v4  ;;  %884 = vmatpush.bf16.msra.mxu1 %v206_v10 }
  0x8c   : > { %773 = vmatmul.msk.bf16.vlgmr.msra.gmra.mxu2 %vm211_vm0, %v869_v7 }
  0x8d   : > { %749 = vmatmul.msk.bf16.vlgmr.msra.gmra.mxu0 %vm211_vm0, %v867_v11 }
  0x8e   : > { %750 = vmatmul.msk.bf16.vlgmr.msra.gmra.mxu1 %vm211_vm0, %v868_v12  ;;  %358 = vmatpush.bf16.msra.mxu3 %v340_v3 }
  0x8f   : > { %261 = vmatpush.bf16.msrb.mxu1 %v864_v0  ;;  %508 = vmatpush.bf16.msrb.mxu2 %v490_v8 }
  0x91   : > { %v392_v14 = vpop.permute.xlu0 %391  ;;  %787 = vmatmul.msk.bf16.vlgmr.msra.gmra.mxu3 %vm211_vm0, %v871_v13  ;;  %v390_v15 = vpop.permute.xlu1 %389 }
  0x92   : > { %407 = vmatpush.bf16.msrb.mxu0 %v392_v14 }
  0x93   : > { %262 = vmatpush.bf16.msrb.mxu1 %v863_v1 }
  0x96   : > { %408 = vmatpush.bf16.msrb.mxu0 %v390_v15 }
  0x99   : > { %v542_v18 = vpop.permute.xlu0 %541  ;;  %v442_v19 = vpop.permute.xlu1 %441 }
  0x9a   : > { %607 = vmatpush.bf16.msra.mxu0 %v592_v16  ;;  %557 = vmatpush.bf16.msrb.mxu3 %v542_v18 }
  0x9b   : > { %457 = vmatpush.bf16.msra.mxu1 %v442_v19 }
  0x9c   : > { %774 = vmatmul.msk.bf16.gmra.mxu2 %vm211_vm0, %v870_v17 }
  0x9d   : > { %801 = vmatmul.msk.bf16.vlgmr.msrb.gmra.mxu0 %vm211_vm0, %v873_v20 }
  0x9e   : > { %759 = vmatmul.msk.bf16.vlgmr.msrb.gmra.mxu1 %vm211_vm0, %v865_v21 }
  0xa1   : > { %788 = vmatmul.msk.bf16.gmra.mxu3 %vm211_vm0, %v872_v22  ;;  %v540_v23 = vpop.permute.xlu0 %539  ;;  %v440_v24 = vpop.permute.xlu1 %439 }
  0xa2   : > { %558 = vmatpush.bf16.msrb.mxu3 %v540_v23  ;;  %458 = vmatpush.bf16.msra.mxu1 %v440_v24 }
  0xa9   : > { %v590_v27 = vpop.permute.xlu0 %589  ;;  %v631_v13 = vpop.permute.xlu1 %630 }
  0xaa   : > { %608 = vmatpush.bf16.msra.mxu0 %v590_v27 }
  0xac   : > { %829 = vmatmul.msk.bf16.vlgmr.msrb.gmra.mxu2 %vm211_vm0, %v877_v25 }
  0xad   : > { %802 = vmatmul.msk.bf16.gmra.mxu0 %vm211_vm0, %v874_v26 }
  0xae   : > { %760 = vmatmul.msk.bf16.gmra.mxu1 %vm211_vm0, %v866_v28  ;;  %v636_v28 = vpop.permute.xlu2 %635 }
  0xb1   : > { %843 = vmatmul.msk.bf16.vlgmr.msrb.gmra.mxu3 %vm211_vm0, %v879_v29 }
  0xbc   : > { %830 = vmatmul.msk.bf16.gmra.mxu2 %vm211_vm0, %v878_v35 }
  0xbd   : > { %857 = vmatmul.msk.bf16.vlgmr.msra.gmra.mxu0 %vm211_vm0, %v881_v36 }
  0xbe   : > { %815 = vmatmul.msk.bf16.vlgmr.msra.gmra.mxu1 %vm211_vm0, %v875_v37 }
  0xc1   : > { %844 = vmatmul.msk.bf16.gmra.mxu3 %vm211_vm0, %v880_v38 }
  0xcd   : > { %858 = vmatmul.msk.bf16.gmra.mxu0 %vm211_vm0, %v882_v39 }
  0xce   : > { %816 = vmatmul.msk.bf16.gmra.mxu1 %vm211_vm0, %v876_v40 }
 0x10a   : > { %v227_v41 = vpop.f32.mrf.mxu0 }
 0x10b   : > { %v232_v42 = vpop.f32.mrf.mxu1 }
 0x10f   : > { %v310_v43 = vpop.f32.mrf.mxu2 }
 0x112   : > { %v229_v44 = vpop.f32.mrf.mxu0 }
 0x113   : > { %v234_v45 = vpop.f32.mrf.mxu1 }
 0x114   : > { %v360_v46 = vpop.f32.mrf.mxu3 }
 0x117   : > { %v312_v47 = vpop.f32.mrf.mxu2 }
 0x11a   : > { %v410_v48 = vpop.f32.mrf.mxu0 }
 0x11b   : > { %v264_v49 = vpop.f32.mrf.mxu1 }
 0x11c   : > { %v362_v50 = vpop.f32.mrf.mxu3  ;;  %v265_v58 = vadd.f32 %v264_v49, %v227_v41 }
 0x11e   : > { %v320_v60 = vadd.f32 %v310_v43, %v265_v58  ;;  %v641_v43 = vpop.permute.xlu0 %640 }
 0x11f   : > { %v315_v53 = vpop.f32.mrf.mxu2 }
 0x120   : > { %v370_v63 = vadd.f32 %v360_v46, %v320_v60 }
 0x122   : > { %v412_v51 = vpop.f32.mrf.mxu0  ;;  %v420_v3 = vadd.f32 %v410_v48, %v370_v63 }
 0x123   : > { %v266_v52 = vpop.f32.mrf.mxu1 }
 0x124   : > { %v365_v54 = vpop.f32.mrf.mxu3  ;;  %v267_v0 = vadd.f32 %v266_v52, %v229_v44 }
 0x126   : > { %v321_v4 = vadd.f32 %v312_v47, %v267_v0 }
 0x127   : > { %v317_v57 = vpop.f32.mrf.mxu2 }
 0x128   : > { %v371_v8 = vadd.f32 %v362_v50, %v321_v4 }
 0x12a   : > { %v415_v55 = vpop.f32.mrf.mxu0  ;;  %v421_v14 = vadd.f32 %v412_v51, %v371_v8 }
 0x12b   : > { %v269_v56 = vpop.f32.mrf.mxu1 }
 0x12c   : > { %v367_v59 = vpop.f32.mrf.mxu3  ;;  %v270_v9 = vadd.f32 %v269_v56, %v232_v42 }
 0x12e   : > { %v322_v15 = vadd.f32 %v315_v53, %v270_v9 }
 0x12f   : > { %v510_v1 = vpop.f32.mrf.mxu2 }
 0x130   : > { %v372_v22 = vadd.f32 %v365_v54, %v322_v15 }
 0x132   : > { %v417_v61 = vpop.f32.mrf.mxu0  ;;  %v422_v29 = vadd.f32 %v415_v55, %v372_v22 }
 0x133   : > { %v271_v62 = vpop.f32.mrf.mxu1 }
 0x134   : > { %v560_v2 = vpop.f32.mrf.mxu3  ;;  %v272_v23 = vadd.f32 %v271_v62, %v234_v45 }
 0x136   : > { %v323_v30 = vadd.f32 %v317_v57, %v272_v23  ;;  %v646_v57 = vpop.permute.xlu1 %645 }
 0x137   : > { %v512_v12 = vpop.f32.mrf.mxu2 }
 0x138   : > { %v373_v37 = vadd.f32 %v367_v59, %v323_v30 }
 0x13a   : > { %v610_v6 = vpop.f32.mrf.mxu0  ;;  %v423_v44 = vadd.f32 %v417_v61, %v373_v37 }
 0x13b   : > { %v460_v5 = vpop.f32.mrf.mxu1 }
 0x13c   : > { %v470_v7 = vadd.f32 %v460_v5, %v420_v3  ;;  %v562_v17 = vpop.f32.mrf.mxu3 }
 0x13e   : > { %v520_v10 = vadd.f32 %v510_v1, %v470_v7 }
 0x13f   : > { %v515_v32 = vpop.f32.mrf.mxu2 }
 0x140   : > { %v570_v11 = vadd.f32 %v560_v2, %v520_v10 }
 0x142   : > { %v620_v16 = vadd.f32 %v610_v6, %v570_v11  ;;  %v612_v21 = vpop.f32.mrf.mxu0 }
 0x143   : > { %v462_v18 = vpop.f32.mrf.mxu1 }
 0x144   : > { %v648_v19 = vadd.f32 %v631_v13, %v620_v16  ;;  %v471_v20 = vadd.f32 %v462_v18, %v421_v14  ;;  %v565_v36 = vpop.f32.mrf.mxu3 }
 0x146   : > { %v652_v24 = vmax.f32 %v648_v19, 0.0  ;;  %v521_v25 = vadd.f32 %v512_v12, %v471_v20 }
 0x147   : > { %v517_v49 = vpop.f32.mrf.mxu2 }
 0x148   : > { %v656_v26 = vpack.c.bf16 %v652_v24, %v652_v24  ;;  %v571_v27 = vadd.f32 %v562_v17, %v521_v25 }
 0x14a   : > { %661 = vst.msk [vmem:[%s1047_s24] sm:$0xf] %vm660_vm1, %v656_v26  ;;  %v621_v31 = vadd.f32 %v612_v21, %v571_v27  ;;  %v615_v40 = vpop.f32.mrf.mxu0 }
 0x14b   : > { %v465_v33 = vpop.f32.mrf.mxu1 }
 0x14c   : > { %v649_v34 = vadd.f32 %v636_v28, %v621_v31  ;;  %v472_v35 = vadd.f32 %v465_v33, %v422_v29  ;;  %v567_v52 = vpop.f32.mrf.mxu3 }
 0x14e   : > { %v653_v38 = vmax.f32 %v649_v34, 0.0  ;;  %v522_v39 = vadd.f32 %v515_v32, %v472_v35 }
 0x150   : > { %v657_v41 = vpack.c.bf16 %v653_v38, %v653_v38  ;;  %v572_v42 = vadd.f32 %v565_v36, %v522_v39 }
 0x152   : > { %662 = vst.msk [vmem:[%s1047_s24 + $0x4] sm:$0xf] %vm660_vm1, %v657_v41  ;;  %v622_v45 = vadd.f32 %v615_v40, %v572_v42  ;;  %v617_v55 = vpop.f32.mrf.mxu0 }
 0x153   : > { %v467_v46 = vpop.f32.mrf.mxu1 }
 0x154   : > { %v473_v47 = vadd.f32 %v467_v46, %v423_v44  ;;  %v650_v48 = vadd.f32 %v641_v43, %v622_v45 }
 0x156   : > { %v523_v50 = vadd.f32 %v517_v49, %v473_v47  ;;  %v654_v51 = vmax.f32 %v650_v48, 0.0 }
 0x158   : > { %v573_v53 = vadd.f32 %v567_v52, %v523_v50  ;;  %v658_v54 = vpack.c.bf16 %v654_v51, %v654_v51 }
 0x15a   : > { %v623_v56 = vadd.f32 %v617_v55, %v573_v53  ;;  %663 = vst.msk [vmem:[%s1047_s24 + $0x8] sm:$0xf] %vm660_vm1, %v658_v54 }
 0x15c   : > { %v651_v58 = vadd.f32 %v646_v57, %v623_v56 }
 0x15e   : > { %v655_v59 = vmax.f32 %v651_v58, 0.0 }
 0x160   : > { %v659_v60 = vpack.c.bf16 %v655_v59, %v655_v59 }
 0x162   : > { %664 = vst.msk [vmem:[%s1047_s24 + $0xc] sm:$0xf] %vm660_vm1, %v659_v60 }
 0x163 PF: > { %s13_s12 = sadd.s32 1, %s911_s12  }
 0x164   : > { %p10_p4 = scmp.ge.s32.totalorder %s13_s12, 26  }
 0x166   :  { %12 = sbr.rel (!%p10_p4) target bundleno = 1 (0x1), region = 70 }

// kernel: _forward_impl.31
= control target key start
LH: loop header
LB: loop body
LE: loop exit
PB: predicated region body
PF: predicated region fallthrough
CT: control target
= control target key end

     0   :  { %s736_s12 = smov 0   ;;  %s799_s0 = inlined_call_operand.vmem [shape: bf16[24,48,102], index: 0, kind: input, shape index: {}]   ;;  %s800_s1 = inlined_call_operand.vmem [shape: bf16[9,16,48], index: 1, kind: input, shape index: {}]   ;;  %s801_s2 = inlined_call_operand.vmem [shape: f32[16,1], index: 2, kind: input, shape index: {}]   ;;  %s802_s3 = inlined_call_operand.vmem [shape: bf16[24,16,80], index: 3, kind: output, shape index: {}]  }
   0x1 LB: > { %s583_s13 = sadd.s32 4294967295, %s705_s12   ;;  %p587_p0 = scmp.ge.s32.totalorder %s705_s12, 1  ;;  %s705_s12 = sphi %s736_s12, %s13_s12  }
   0x2   : > { %p137_p1 = scmp.lt.s32.totalorder %s705_s12, 25 }
   0x4   : > { %p138_p2 = pnand %p587_p0, %p137_p1 }
   0x5   : > { %p161_p3 = scmp.lt.s32.totalorder (!%p138_p2), %s583_s13, 23  ;;  %s707_s18 = smov (!%p138_p2), 126  }
   0x6   : > { %141 = sbr.rel (%p138_p2) target bundleno = 339 (0x153), region = 32  ;;  %s708_s19 = smov (!%p138_p2), 127  }
   0x7   : > { %s709_s20 = smov (!%p138_p2), 118   ;;  %s710_s21 = smov (!%p138_p2), 117  }
   0x8   : > { %s711_s22 = smov (!%p138_p2), 108   ;;  %s712_s23 = smov (!%p138_p2), 107  }
   0x9   : > { %s713_s24 = smov (!%p138_p2), 116   ;;  %s714_s25 = smov (!%p138_p2), 106  }
   0xb   : > { %s804_s13 = smov (!%p161_p3, %s583_s13), 23  ;;  %v670_v5 = vld [vmem:[%s800_s1] sm:$0xff]  ;;  %vm212_vm0 = vcmask 392192   ;;  %v671_v13 = vld [vmem:[%s800_s1 + $0x8] sm:$0xff]  ;;  %v672_v16 = vld [vmem:[%s800_s1 + $0x10] sm:$0xff]  ;;  %v715_v27 = vmov 0  }
   0xc   : > { %s679_s14 = smul.u32 24, %s804_s13  ;;  %v673_v18 = vld [vmem:[%s800_s1 + $0x18] sm:$0xff]  ;;  %v674_v24 = vld [vmem:[%s800_s1 + $0x20] sm:$0xff]  ;;  %v508_v26 = vld [vmem:[%s801_s2 + $0x8] sm:$0xff]  ;;  %697 = vset.pattern.permute.xlu0 %v715_v27  ;;  %698 = vset.pattern.permute.xlu1 %v715_v27  ;;  %vm525_vm1 = vcmask 650240  }
   0xd   : > { %v507_v25 = vld [vmem:[%s801_s2] sm:$0xff]  ;;  %v676_v32 = vld [vmem:[%s800_s1 + $0x30] sm:$0xff]  ;;  %v677_v33 = vld [vmem:[%s800_s1 + $0x38] sm:$0xff] }
   0xe   : > { %s165_s17 = scalar_lea.vmem %s799_s0, %s679_s14  ;;  %v675_v36 = vld [vmem:[%s800_s1 + $0x28] sm:$0xff]  ;;  %v678_v38 = vld [vmem:[%s800_s1 + $0x40] sm:$0xff] }
   0xf   : > { %v669_v0 = vld [vmem:[%s165_s17 + $0x10] sm:$0xff]  ;;  %v668_v1 = vld [vmem:[%s165_s17 + $0x8] sm:$0xff]  ;;  %v667_v2 = vld [vmem:[%s165_s17] sm:$0xff] }
  0x10   : > { %267 = vrot.lane.b32.xlu1 %v669_v0, %s707_s18  ;;  %207 = vrot.lane.b32.xlu0 %v669_v0, %s708_s19 }
  0x11   : > { %303 = vrot.lane.b32.xlu2 %v669_v0, %s709_s20  ;;  %246 = vmatpush.bf16.msra.mxu1 %v669_v0 }
  0x15   : > { %247 = vmatpush.bf16.msra.mxu1 %v668_v1 }
  0x18   : > { %205 = vrot.lane.b32.xlu0 %v668_v1, %s708_s19  ;;  %203 = vrot.lane.b32.xlu1 %v667_v2, %s708_s19 }
  0x19   : > { %265 = vrot.lane.b32.xlu2 %v668_v1, %s707_s18  ;;  %248 = vmatpush.bf16.msra.mxu1 %v667_v2 }
  0x1c   : > { %614 = vmatmul.msk.bf16.vlgmr.msra.gmra.mxu1 %vm212_vm0, %v670_v5 }
  0x20   : > { %301 = vrot.lane.b32.xlu0 %v668_v1, %s709_s20  ;;  %263 = vrot.lane.b32.xlu1 %v667_v2, %s707_s18 }
  0x21   : > { %299 = vrot.lane.b32.xlu2 %v667_v2, %s709_s20 }
  0x28   : > { %339 = vrot.lane.b32.xlu0 %v669_v0, %s710_s21  ;;  %337 = vrot.lane.b32.xlu1 %v668_v1, %s710_s21 }
  0x29   : > { %411 = vrot.lane.b32.xlu2 %v669_v0, %s711_s22 }
  0x30   : > { %335 = vrot.lane.b32.xlu0 %v667_v2, %s710_s21  ;;  %447 = vrot.lane.b32.xlu1 %v669_v0, %s712_s23 }
  0x31   : > { %375 = vrot.lane.b32.xlu2 %v669_v0, %s713_s24 }
  0x38   : > { %409 = vrot.lane.b32.xlu0 %v668_v1, %s711_s22  ;;  %445 = vrot.lane.b32.xlu1 %v668_v1, %s712_s23 }
  0x39   : > { %373 = vrot.lane.b32.xlu2 %v668_v1, %s713_s24 }
  0x40   : > { %407 = vrot.lane.b32.xlu0 %v667_v2, %s711_s22  ;;  %443 = vrot.lane.b32.xlu1 %v667_v2, %s712_s23  ;;  %s666_s23 = sshll.u32 %s804_s13, 3 }
  0x41   : > { %483 = vrot.lane.b32.xlu2 %v669_v0, %s714_s25  ;;  %s170_s26 = scalar_lea.vmem %s802_s3, %s666_s23 }
  0x48   : > { %371 = vrot.lane.b32.xlu0 %v667_v2, %s713_s24  ;;  %481 = vrot.lane.b32.xlu1 %v668_v1, %s714_s25 }
  0x49   : > { %479 = vrot.lane.b32.xlu2 %v667_v2, %s714_s25 }
  0x50   : > { %511 = vperm.xlu0 %697, %v507_v25   ;;  %516 = vperm.xlu1 %698, %v508_v26  }
  0x6b   : > { %v304_v3 = vpop.permute.xlu2 %303 }
  0x6c   : > { %316 = vmatpush.bf16.msra.mxu3 %v304_v3 }
  0x73   : > { %v266_v4 = vpop.permute.xlu2 %265 }
  0x7b   : > { %v300_v6 = vpop.permute.xlu2 %299 }
  0x82   : > { %v268_v7 = vpop.permute.xlu1 %267  ;;  %v208_v8 = vpop.permute.xlu0 %207 }
  0x83   : > { %221 = vmatpush.bf16.msra.mxu0 %v208_v8  ;;  %280 = vmatpush.bf16.msra.mxu2 %v268_v7  ;;  %v412_v9 = vpop.permute.xlu2 %411 }
  0x87   : > { %281 = vmatpush.bf16.msra.mxu2 %v266_v4 }
  0x8a   : > { %v206_v10 = vpop.permute.xlu0 %205  ;;  %v204_v11 = vpop.permute.xlu1 %203 }
  0x8b   : > { %222 = vmatpush.bf16.msra.mxu0 %v206_v10  ;;  %v376_v12 = vpop.permute.xlu2 %375 }
  0x8c   : > { %388 = vmatpush.bf16.msrb.mxu1 %v376_v12 }
  0x8f   : > { %223 = vmatpush.bf16.msra.mxu0 %v204_v11 }
  0x92   : > { %v302_v14 = vpop.permute.xlu0 %301  ;;  %v264_v15 = vpop.permute.xlu1 %263  ;;  %609 = vmatmul.msk.bf16.vlgmr.msra.gmra.mxu0 %vm212_vm0, %v671_v13 }
  0x93   : > { %317 = vmatpush.bf16.msra.mxu3 %v302_v14  ;;  %282 = vmatpush.bf16.msra.mxu2 %v264_v15  ;;  %v374_v17 = vpop.permute.xlu2 %373 }
  0x94   : > { %389 = vmatpush.bf16.msrb.mxu1 %v374_v17 }
  0x96   : > { %621 = vmatmul.msk.bf16.vlgmr.msra.gmra.mxu2 %vm212_vm0, %v672_v16 }
  0x97   : > { %424 = vmatpush.bf16.msrb.mxu2 %v412_v9  ;;  %318 = vmatpush.bf16.msra.mxu3 %v300_v6 }
  0x99   : > { %v250_v41 = vpop.f32.mrf.mxu1 }
  0x9a   : > { %v340_v19 = vpop.permute.xlu0 %339  ;;  %v338_v20 = vpop.permute.xlu1 %337  ;;  %628 = vmatmul.msk.bf16.vlgmr.msra.gmra.mxu3 %vm212_vm0, %v673_v18 }
  0x9b   : > { %352 = vmatpush.bf16.msrb.mxu0 %v340_v19  ;;  %v484_v21 = vpop.permute.xlu2 %483 }
  0x9f   : > { %353 = vmatpush.bf16.msrb.mxu0 %v338_v20 }
  0xa1   : > { %v252_v47 = vpop.f32.mrf.mxu1 }
  0xa2   : > { %v336_v22 = vpop.permute.xlu0 %335  ;;  %v448_v23 = vpop.permute.xlu1 %447 }
  0xa3   : > { %354 = vmatpush.bf16.msrb.mxu0 %v336_v22  ;;  %460 = vmatpush.bf16.msrb.mxu3 %v448_v23  ;;  %v480_v37 = vpop.permute.xlu2 %479 }
  0xa6   : > { %635 = vmatmul.msk.bf16.vlgmr.msrb.gmra.mxu0 %vm212_vm0, %v674_v24 }
  0xa7   : > { %496 = vmatpush.bf16.msra.mxu0 %v484_v21 }
  0xaa   : > { %v410_v28 = vpop.permute.xlu0 %409  ;;  %v446_v29 = vpop.permute.xlu1 %445 }
  0xab   : > { %425 = vmatpush.bf16.msrb.mxu2 %v410_v28  ;;  %461 = vmatpush.bf16.msrb.mxu3 %v446_v29 }
  0xb2   : > { %v408_v30 = vpop.permute.xlu0 %407  ;;  %v444_v31 = vpop.permute.xlu1 %443 }
  0xb3   : > { %426 = vmatpush.bf16.msrb.mxu2 %v408_v30  ;;  %462 = vmatpush.bf16.msrb.mxu3 %v444_v31 }
  0xb6   : > { %649 = vmatmul.msk.bf16.vlgmr.msrb.gmra.mxu2 %vm212_vm0, %v676_v32  ;;  %656 = vmatmul.msk.bf16.vlgmr.msrb.gmra.mxu3 %vm212_vm0, %v677_v33 }
  0xba   : > { %v372_v34 = vpop.permute.xlu0 %371  ;;  %v482_v35 = vpop.permute.xlu1 %481 }
  0xbb   : > { %390 = vmatpush.bf16.msrb.mxu1 %v372_v34  ;;  %497 = vmatpush.bf16.msra.mxu0 %v482_v35 }
  0xbe   : > { %642 = vmatmul.msk.bf16.vlgmr.msrb.gmra.mxu1 %vm212_vm0, %v675_v36 }
  0xbf   : > { %498 = vmatpush.bf16.msra.mxu0 %v480_v37 }
  0xc2   : > { %663 = vmatmul.msk.bf16.vlgmr.msra.gmra.mxu0 %vm212_vm0, %v678_v38  ;;  %v512_v63 = vpop.permute.xlu0 %511  ;;  %v517_v12 = vpop.permute.xlu1 %516 }
 0x10f   : > { %v225_v39 = vpop.f32.mrf.mxu0 }
 0x110   : > { %v251_v45 = vadd.f32 %v250_v41, %v225_v39 }
 0x117   : > { %v227_v40 = vpop.f32.mrf.mxu0 }
 0x118   : > { %v253_v52 = vadd.f32 %v252_v47, %v227_v40 }
 0x119   : > { %v284_v42 = vpop.f32.mrf.mxu2 }
 0x11a   : > { %v289_v46 = vadd.f32 %v284_v42, %v251_v45 }
 0x11d   : > { %v320_v43 = vpop.f32.mrf.mxu3 }
 0x11e   : > { %v325_v50 = vadd.f32 %v320_v43, %v289_v46 }
 0x121   : > { %v286_v48 = vpop.f32.mrf.mxu2 }
 0x122   : > { %v290_v56 = vadd.f32 %v286_v48, %v253_v52 }
 0x123   : > { %v356_v44 = vpop.f32.mrf.mxu0 }
 0x124   : > { %v361_v53 = vadd.f32 %v356_v44, %v325_v50 }
 0x125   : > { %v322_v49 = vpop.f32.mrf.mxu3 }
 0x126   : > { %v326_v61 = vadd.f32 %v322_v49, %v290_v56 }
 0x12b   : > { %v358_v51 = vpop.f32.mrf.mxu0 }
 0x12c   : > { %v362_v0 = vadd.f32 %v358_v51, %v326_v61 }
 0x139   : > { %v428_v54 = vpop.f32.mrf.mxu2  ;;  %v464_v58 = vpop.f32.mrf.mxu3 }
 0x13b   : > { %v392_v55 = vpop.f32.mrf.mxu1 }
 0x13c   : > { %v397_v57 = vadd.f32 %v392_v55, %v361_v53 }
 0x13e   : > { %v433_v59 = vadd.f32 %v428_v54, %v397_v57 }
 0x13f   : > { %v500_v60 = vpop.f32.mrf.mxu0 }
 0x140   : > { %v469_v62 = vadd.f32 %v464_v58, %v433_v59 }
 0x141   : > { %v430_v5 = vpop.f32.mrf.mxu2  ;;  %v466_v8 = vpop.f32.mrf.mxu3 }
 0x142   : > { %v505_v1 = vadd.f32 %v500_v60, %v469_v62 }
 0x143   : > { %v394_v2 = vpop.f32.mrf.mxu1 }
 0x144   : > { %v519_v3 = vadd.f32 %v512_v63, %v505_v1  ;;  %v398_v4 = vadd.f32 %v394_v2, %v362_v0 }
 0x146   : > { %v521_v6 = vmax.f32 %v519_v3, 0.0  ;;  %v434_v7 = vadd.f32 %v430_v5, %v398_v4 }
 0x147   : > { %v502_v11 = vpop.f32.mrf.mxu0 }
 0x148   : > { %v523_v9 = vpack.c.bf16 %v521_v6, %v521_v6  ;;  %v470_v10 = vadd.f32 %v466_v8, %v434_v7 }
 0x14a   : > { %526 = vst.msk [vmem:[%s170_s26] sm:$0xf] %vm525_vm1, %v523_v9  ;;  %v506_v13 = vadd.f32 %v502_v11, %v470_v10 }
 0x14c   : > { %v520_v14 = vadd.f32 %v517_v12, %v506_v13 }
 0x14e   : > { %v522_v15 = vmax.f32 %v520_v14, 0.0 }
 0x150   : > { %v524_v16 = vpack.c.bf16 %v522_v15, %v522_v15 }
 0x152   : > { %527 = vst.msk [vmem:[%s170_s26 + $0x4] sm:$0xf] %vm525_vm1, %v524_v16 }
 0x153 PF: > { %s13_s12 = sadd.s32 1, %s705_s12  }
 0x154   : > { %p10_p4 = scmp.ge.s32.totalorder %s13_s12, 26  }
 0x156   :  { %12 = sbr.rel (!%p10_p4) target bundleno = 1 (0x1), region = 70 }

// kernel: _forward_impl.33
= control target key start
LH: loop header
LB: loop body
LE: loop exit
PB: predicated region body
PF: predicated region fallthrough
CT: control target
= control target key end

     0   :  { %s1049_s12 = smov 0   ;;  %s1257_s0 = inlined_call_operand.vmem [shape: bf16[24,24,326], index: 0, kind: input, shape index: {}]   ;;  %s1258_s1 = inlined_call_operand.vmem [shape: bf16[9,8,24], index: 1, kind: input, shape index: {}]   ;;  %s1259_s2 = inlined_call_operand.vmem [shape: f32[8,1], index: 2, kind: input, shape index: {}]   ;;  %s1260_s3 = inlined_call_operand.vmem [shape: bf16[24,8,288], index: 3, kind: output, shape index: {}]  }
   0x1 LB: > { %s933_s13 = sadd.s32 4294967295, %s1018_s12   ;;  %p937_p0 = scmp.ge.s32.totalorder %s1018_s12, 1  ;;  %s1018_s12 = sphi %s1049_s12, %s13_s12  }
   0x2   : > { %p137_p1 = scmp.lt.s32.totalorder %s1018_s12, 25 }
   0x4   : > { %p138_p2 = pnand %p937_p0, %p137_p1 }
   0x5   : > { %p161_p3 = scmp.lt.s32.totalorder (!%p138_p2), %s933_s13, 23  ;;  %s1020_s18 = smov (!%p138_p2), 127  }
   0x6   : > { %141 = sbr.rel (%p138_p2) target bundleno = 400 (0x190), region = 32  ;;  %s1021_s19 = smov (!%p138_p2), 126  }
   0x7   : > { %s1022_s20 = smov (!%p138_p2), 110   ;;  %s1023_s21 = smov (!%p138_p2), 109  }
   0x8   : > { %s1024_s22 = smov (!%p138_p2), 108   ;;  %s1025_s23 = smov (!%p138_p2), 92  }
   0x9   : > { %s1026_s24 = smov (!%p138_p2), 91   ;;  %s1027_s27 = smov (!%p138_p2), 90  }
   0xb   : > { %s1262_s13 = smov (!%p161_p3, %s933_s13), 23  ;;  %vm226_vm0 = vcmask 1043456   ;;  %vm222_vm1 = vcmask 195584   ;;  %v1120_v20 = vld [vmem:[%s1258_s1] sm:$0xf]  ;;  %vm214_vm2 = vcmask 1039360  }
   0xc   : > { %s992_s14 = smul.u32 36, %s1262_s13  ;;  %v940_v33 = vld [vmem:[%s1258_s1 + $0x4] sm:$0xf]  ;;  %vm343_vm3 = vcmask 1031168   ;;  %vm419_vm4 = vcmask 900096   ;;  %vm495_vm5 = vcmask 891904  }
   0xd   : > { %v959_v50 = vld [vmem:[%s1258_s1 + $0x8] sm:$0xf]  ;;  %vm571_vm6 = vcmask 883712   ;;  %vm647_vm7 = vcmask 752640   ;;  %vm723_vm8 = vcmask 744448   ;;  %vm799_vm9 = vcmask 736256  }
   0xe   : > { %s165_s17 = scalar_lea.vmem %s1257_s0, %s992_s14  ;;  %vm876_vm10 = vcmask 257024  }
   0xf   : > { %v951_v0 = vld [vmem:[%s165_s17 + $0x8] sm:$0xf]  ;;  %v991_v1 = vld [vmem:[%s165_s17 + $0x10] sm:$0xf0]  ;;  %v176_v2 = vld [vmem:[%s165_s17 + $0x18] sm:$0xff] }
  0x10   : > { %v1063_v3 = vor.u32 %v991_v1, %v951_v0  ;;  %v193_v4 = vunpack.c.l.b16 %v176_v2  ;;  %v177_v5 = vld [vmem:[%s165_s17 + $0x20] sm:$0xf]  ;;  %v990_v7 = vld [vmem:[%s165_s17 + $0x8] sm:$0xf0]  ;;  %v194_v11 = vunpack.c.h.b16 %v176_v2  ;;  %v989_v12 = vld [vmem:[%s165_s17 + $0x4] sm:$0xf] }
  0x11   : > { %v943_v6 = vld [vmem:[%s165_s17] sm:$0xf]  ;;  %v195_v10 = vunpack.c.l.b16 %v177_v5  ;;  %v945_v13 = vld [vmem:[%s165_s17 + $0xc] sm:$0xf0]  ;;  %v963_v0 = vld [vmem:[%s1258_s1 + $0xc] sm:$0xf] }
  0x12   : > { %v1065_v8 = vor.u32 %v990_v7, %v943_v6  ;;  %206 = vrot.lane.b32.xlu0 %v1063_v3, %s1020_s18  ;;  %v1068_v9 = vpack.c.b16 %v193_v4, %v193_v4  ;;  %v1074_v15 = vor.u32 %v989_v12, %v945_v13  ;;  %v1076_v16 = vpack.c.b16 %v194_v11, %v194_v11 }
  0x13   : > { %v1072_v14 = vpack.c.b16 %v195_v10, %v195_v10 }
  0x14   : > { %202 = vrot.lane.b32.xlu2 %v1065_v8, %s1020_s18  ;;  %208 = vrot.lane.b32.xlu1 %v1068_v9, %s1020_s18  ;;  %v282_v18 = vsel %vm226_vm0, %v1068_v9, 0  ;;  %v285_v34 = vsel %vm226_vm0, %v1076_v16, 0 }
  0x15   : > { %296 = vmatpush.bf16.msra.mxu3 %v282_v18  ;;  %v288_v38 = vsel %vm226_vm0, %v1072_v14, 0 }
  0x19   : > { %297 = vmatpush.bf16.msra.mxu3 %v1065_v8 }
  0x1a   : > { %212 = vrot.lane.b32.xlu0 %v1072_v14, %s1020_s18 }
  0x1c   : > { %204 = vrot.lane.b32.xlu2 %v1074_v15, %s1020_s18  ;;  %210 = vrot.lane.b32.xlu1 %v1076_v16, %s1020_s18 }
  0x1d   : > { %956 = vmatmul.msk.bf16.vlgmr.msra.gmra.mxu3 %vm222_vm1, %v1120_v20 }
  0x22   : > { %337 = vrot.lane.b32.xlu0 %v1068_v9, %s1021_s19 }
  0x24   : > { %331 = vrot.lane.b32.xlu2 %v1065_v8, %s1021_s19  ;;  %339 = vrot.lane.b32.xlu1 %v1076_v16, %s1021_s19 }
  0x2a   : > { %333 = vrot.lane.b32.xlu0 %v1074_v15, %s1021_s19 }
  0x2c   : > { %415 = vrot.lane.b32.xlu2 %v1076_v16, %s1022_s20  ;;  %341 = vrot.lane.b32.xlu1 %v1072_v14, %s1021_s19 }
  0x32   : > { %417 = vrot.lane.b32.xlu0 %v1072_v14, %s1022_s20 }
  0x34   : > { %409 = vrot.lane.b32.xlu2 %v1074_v15, %s1022_s20  ;;  %335 = vrot.lane.b32.xlu1 %v1063_v3, %s1021_s19 }
  0x3a   : > { %411 = vrot.lane.b32.xlu0 %v1063_v3, %s1022_s20 }
  0x3c   : > { %407 = vrot.lane.b32.xlu2 %v1065_v8, %s1022_s20  ;;  %413 = vrot.lane.b32.xlu1 %v1068_v9, %s1022_s20 }
  0x42   : > { %493 = vrot.lane.b32.xlu0 %v1072_v14, %s1023_s21 }
  0x44   : > { %489 = vrot.lane.b32.xlu2 %v1068_v9, %s1023_s21  ;;  %487 = vrot.lane.b32.xlu1 %v1063_v3, %s1023_s21 }
  0x4a   : > { %491 = vrot.lane.b32.xlu0 %v1076_v16, %s1023_s21 }
  0x4c   : > { %485 = vrot.lane.b32.xlu2 %v1074_v15, %s1023_s21  ;;  %483 = vrot.lane.b32.xlu1 %v1065_v8, %s1023_s21  ;;  %s993_s21 = smul.u32 12, %s1262_s13 }
  0x52   : > { %565 = vrot.lane.b32.xlu0 %v1068_v9, %s1024_s22 }
  0x54   : > { %641 = vrot.lane.b32.xlu2 %v1068_v9, %s1025_s23  ;;  %567 = vrot.lane.b32.xlu1 %v1076_v16, %s1024_s22 }
  0x5a   : > { %643 = vrot.lane.b32.xlu0 %v1076_v16, %s1025_s23 }
  0x5c   : > { %561 = vrot.lane.b32.xlu2 %v1074_v15, %s1024_s22  ;;  %559 = vrot.lane.b32.xlu1 %v1065_v8, %s1024_s22 }
  0x62   : > { %635 = vrot.lane.b32.xlu0 %v1065_v8, %s1025_s23 }
  0x64   : > { %569 = vrot.lane.b32.xlu2 %v1072_v14, %s1024_s22  ;;  %637 = vrot.lane.b32.xlu1 %v1074_v15, %s1025_s23 }
  0x6a   : > { %563 = vrot.lane.b32.xlu0 %v1063_v3, %s1024_s22 }
  0x6c   : > { %719 = vrot.lane.b32.xlu2 %v1076_v16, %s1026_s24  ;;  %645 = vrot.lane.b32.xlu1 %v1072_v14, %s1025_s23 }
  0x6e   : > { %v203_v17 = vpop.permute.xlu2 %202 }
  0x72   : > { %721 = vrot.lane.b32.xlu0 %v1072_v14, %s1026_s24 }
  0x74   : > { %713 = vrot.lane.b32.xlu2 %v1074_v15, %s1026_s24  ;;  %639 = vrot.lane.b32.xlu1 %v1063_v3, %s1025_s23 }
  0x76   : > { %v205_v19 = vpop.permute.xlu2 %204 }
  0x77   : > { %v215_v36 = vsel %vm214_vm2, %v203_v17, %v205_v19 }
  0x7a   : > { %715 = vrot.lane.b32.xlu0 %v1063_v3, %s1026_s24 }
  0x7c   : > { %711 = vrot.lane.b32.xlu2 %v1065_v8, %s1026_s24  ;;  %717 = vrot.lane.b32.xlu1 %v1068_v9, %s1026_s24  ;;  %s170_s24 = scalar_lea.vmem %s1260_s3, %s993_s21 }
  0x7e   : > { %v332_v21 = vpop.permute.xlu2 %331 }
  0x82   : > { %797 = vrot.lane.b32.xlu0 %v1072_v14, %s1027_s27 }
  0x84   : > { %793 = vrot.lane.b32.xlu2 %v1068_v9, %s1027_s27  ;;  %v207_v22 = vpop.permute.xlu0 %206  ;;  %791 = vrot.lane.b32.xlu1 %v1063_v3, %s1027_s27 }
  0x85   : > { %v216_v37 = vsel %vm214_vm2, %v205_v19, %v207_v22 }
  0x86   : > { %v1130_v23 = vpop.permute.xlu2 %415  ;;  %v209_v24 = vpop.permute.xlu1 %208 }
  0x8a   : > { %795 = vrot.lane.b32.xlu0 %v1076_v16, %s1027_s27  ;;  %v967_v16 = vld [vmem:[%s1258_s1 + $0x10] sm:$0xf] }
  0x8c   : > { %789 = vrot.lane.b32.xlu2 %v1074_v15, %s1027_s27  ;;  %v213_v25 = vpop.permute.xlu0 %212  ;;  %787 = vrot.lane.b32.xlu1 %v1065_v8, %s1027_s27 }
  0x8d   : > { %v234_v26 = vsel %vm226_vm0, %v213_v25, 0 }
  0x8e   : > { %v1136_v27 = vpop.permute.xlu2 %409  ;;  %v211_v28 = vpop.permute.xlu1 %210  ;;  %268 = vmatpush.bf16.msra.mxu2 %v234_v26 }
  0x8f   : > { %v217_v29 = vsel %vm214_vm2, %v209_v24, %v211_v28  ;;  %v218_v30 = vsel %vm214_vm2, %v211_v28, %v213_v25  ;;  %v971_v28 = vld [vmem:[%s1258_s1 + $0x14] sm:$0xf] }
  0x90   : > { %v228_v31 = vsel %vm226_vm0, %v217_v29, 0  ;;  %v231_v32 = vsel %vm226_vm0, %v218_v30, 0 }
  0x91   : > { %242 = vmatpush.bf16.msra.mxu0 %v228_v31  ;;  %255 = vmatpush.bf16.msra.mxu1 %v231_v32 }
  0x92   : > { %269 = vmatpush.bf16.msra.mxu2 %v207_v22 }
  0x94   : > { %v338_v35 = vpop.permute.xlu0 %337 }
  0x95   : > { %243 = vmatpush.bf16.msra.mxu0 %v215_v36  ;;  %256 = vmatpush.bf16.msra.mxu1 %v216_v37 }
  0x96   : > { %v408_v39 = vpop.permute.xlu2 %407  ;;  %955 = vmatmul.msk.bf16.vlgmr.msra.gmra.mxu2 %vm222_vm1, %v940_v33  ;;  %v340_v40 = vpop.permute.xlu1 %339 }
  0x97   : > { %v346_v41 = vsel %vm343_vm3, %v338_v35, %v340_v40  ;;  %v420_v2 = vsel %vm419_vm4, %v408_v39, %v1136_v27 }
  0x98   : > { %953 = vmatmul.msk.bf16.vlgmr.msra.gmra.mxu0 %vm222_vm1, %v940_v33  ;;  %954 = vmatmul.msk.bf16.vlgmr.msra.gmra.mxu1 %vm222_vm1, %v940_v33  ;;  %v355_v42 = vsel %vm226_vm0, %v346_v41, 0  ;;  %v975_v33 = vld [vmem:[%s1258_s1 + $0x18] sm:$0xf] }
  0x99   : > { %309 = vmatpush.bf16.msrb.mxu0 %v285_v34  ;;  %322 = vmatpush.bf16.msrb.mxu1 %v288_v38 }
  0x9a   : > { %369 = vmatpush.bf16.msrb.mxu2 %v355_v42 }
  0x9c   : > { %v334_v43 = vpop.permute.xlu0 %333 }
  0x9d   : > { %310 = vmatpush.bf16.msrb.mxu0 %v1074_v15  ;;  %323 = vmatpush.bf16.msrb.mxu1 %v1063_v3  ;;  %v344_v44 = vsel %vm343_vm3, %v332_v21, %v334_v43 }
  0x9e   : > { %v490_v45 = vpop.permute.xlu2 %489  ;;  %v342_v46 = vpop.permute.xlu1 %341  ;;  %370 = vmatpush.bf16.msrb.mxu2 %v344_v44 }
  0x9f   : > { %v361_v47 = vsel %vm226_vm0, %v342_v46, 0  ;;  %v347_v48 = vsel %vm343_vm3, %v340_v40, %v342_v46 }
  0xa0   : > { %v358_v49 = vsel %vm226_vm0, %v347_v48, 0  ;;  %v1028_v48 = vmov 0  }
  0xa1   : > { %395 = vmatpush.bf16.msra.mxu0 %v361_v47  ;;  %382 = vmatpush.bf16.msrb.mxu3 %v358_v49  ;;  %v861_v47 = vld [vmem:[%s1259_s2] sm:$0xff] }
  0xa2   : > { %1011 = vset.pattern.permute.xlu0 %v1028_v48 }
  0xa3   : > { %864 = vperm.xlu0 %1011, %v861_v47  }
  0xa4   : > { %v418_v51 = vpop.permute.xlu0 %417 }
  0xa5   : > { %v423_v52 = vsel %vm419_vm4, %v1130_v23, %v418_v51  ;;  %v437_v57 = vsel %vm226_vm0, %v418_v51, 0 }
  0xa6   : > { %v486_v53 = vpop.permute.xlu2 %485  ;;  %v434_v54 = vsel %vm226_vm0, %v423_v52, 0  ;;  %960 = vmatmul.msk.bf16.vlgmr.msrb.gmra.mxu2 %vm222_vm1, %v959_v50  ;;  %v336_v55 = vpop.permute.xlu1 %335 }
  0xa7   : > { %396 = vmatpush.bf16.msra.mxu0 %v336_v55  ;;  %v345_v56 = vsel %vm343_vm3, %v334_v43, %v336_v55  ;;  %458 = vmatpush.bf16.msra.mxu2 %v434_v54  ;;  %v979_v54 = vld [vmem:[%s1258_s1 + $0x1c] sm:$0xf] }
  0xa8   : > { %957 = vmatmul.msk.bf16.vlgmr.msrb.gmra.mxu0 %vm222_vm1, %v1120_v20  ;;  %958 = vmatmul.msk.bf16.vlgmr.msrb.gmra.mxu1 %vm222_vm1, %v1120_v20 }
  0xa9   : > { %383 = vmatpush.bf16.msrb.mxu3 %v345_v56 }
  0xac   : > { %961 = vmatmul.msk.bf16.vlgmr.msrb.gmra.mxu3 %vm222_vm1, %v959_v50  ;;  %v412_v58 = vpop.permute.xlu0 %411 }
  0xad   : > { %471 = vmatpush.bf16.msra.mxu3 %v437_v57  ;;  %v421_v59 = vsel %vm419_vm4, %v1136_v27, %v412_v58 }
  0xae   : > { %v642_v60 = vpop.permute.xlu2 %641  ;;  %v414_v61 = vpop.permute.xlu1 %413  ;;  %459 = vmatpush.bf16.msra.mxu2 %v421_v59 }
  0xaf   : > { %v422_v62 = vsel %vm419_vm4, %v414_v61, %v1130_v23 }
  0xb0   : > { %v431_v63 = vsel %vm226_vm0, %v422_v62, 0 }
  0xb1   : > { %472 = vmatpush.bf16.msra.mxu3 %v412_v58  ;;  %445 = vmatpush.bf16.msra.mxu1 %v431_v63 }
  0xb4   : > { %v494_v1 = vpop.permute.xlu0 %493 }
  0xb5   : > { %v513_v3 = vsel %vm226_vm0, %v494_v1, 0  ;;  %446 = vmatpush.bf16.msra.mxu1 %v420_v2 }
  0xb6   : > { %965 = vmatmul.msk.bf16.vlgmr.msra.gmra.mxu2 %vm222_vm1, %v963_v0  ;;  %v488_v4 = vpop.permute.xlu1 %487  ;;  %v562_v5 = vpop.permute.xlu2 %561 }
  0xb7   : > { %547 = vmatpush.bf16.msrb.mxu2 %v513_v3  ;;  %v497_v15 = vsel %vm495_vm5, %v486_v53, %v488_v4 }
  0xb8   : > { %962 = vmatmul.msk.bf16.vlgmr.msra.gmra.mxu0 %vm222_vm1, %v959_v50  ;;  %964 = vmatmul.msk.bf16.vlgmr.msra.gmra.mxu1 %vm222_vm1, %v963_v0 }
  0xbb   : > { %548 = vmatpush.bf16.msrb.mxu2 %v488_v4 }
  0xbc   : > { %966 = vmatmul.msk.bf16.vlgmr.msra.gmra.mxu3 %vm222_vm1, %v963_v0  ;;  %v492_v6 = vpop.permute.xlu0 %491  ;;  %v299_v0 = vpop.f32.mrf.mxu3 }
  0xbd   : > { %v498_v7 = vsel %vm495_vm5, %v490_v45, %v492_v6  ;;  %v499_v8 = vsel %vm495_vm5, %v492_v6, %v494_v1 }
  0xbe   : > { %v507_v9 = vsel %vm226_vm0, %v498_v7, 0  ;;  %v510_v10 = vsel %vm226_vm0, %v499_v8, 0  ;;  %v484_v11 = vpop.permute.xlu1 %483  ;;  %v570_v12 = vpop.permute.xlu2 %569 }
  0xbf   : > { %521 = vmatpush.bf16.msrb.mxu0 %v507_v9  ;;  %534 = vmatpush.bf16.msrb.mxu1 %v510_v10  ;;  %v589_v13 = vsel %vm226_vm0, %v570_v12, 0  ;;  %v496_v14 = vsel %vm495_vm5, %v484_v11, %v486_v53 }
  0xc3   : > { %522 = vmatpush.bf16.msrb.mxu0 %v496_v14  ;;  %535 = vmatpush.bf16.msrb.mxu1 %v497_v15 }
  0xc4   : > { %v566_v17 = vpop.permute.xlu0 %565  ;;  %v301_v8 = vpop.f32.mrf.mxu3 }
  0xc6   : > { %970 = vmatmul.msk.bf16.vlgmr.msrb.gmra.mxu2 %vm222_vm1, %v967_v16  ;;  %v568_v18 = vpop.permute.xlu1 %567  ;;  %v720_v32 = vpop.permute.xlu2 %719 }
  0xc7   : > { %623 = vmatpush.bf16.msra.mxu1 %v589_v13  ;;  %v574_v19 = vsel %vm571_vm6, %v566_v17, %v568_v18  ;;  %v575_v20 = vsel %vm571_vm6, %v568_v18, %v570_v12 }
  0xc8   : > { %v583_v21 = vsel %vm226_vm0, %v574_v19, 0  ;;  %v586_v22 = vsel %vm226_vm0, %v575_v20, 0  ;;  %968 = vmatmul.msk.bf16.vlgmr.msrb.gmra.mxu0 %vm222_vm1, %v967_v16  ;;  %969 = vmatmul.msk.bf16.vlgmr.msrb.gmra.mxu1 %vm222_vm1, %v967_v16 }
  0xc9   : > { %597 = vmatpush.bf16.msrb.mxu3 %v583_v21  ;;  %610 = vmatpush.bf16.msra.mxu0 %v586_v22 }
  0xcc   : > { %v644_v23 = vpop.permute.xlu0 %643 }
  0xcd   : > { %v650_v24 = vsel %vm647_vm7, %v642_v60, %v644_v23 }
  0xce   : > { %v659_v25 = vsel %vm226_vm0, %v650_v24, 0  ;;  %v560_v26 = vpop.permute.xlu1 %559  ;;  %v714_v40 = vpop.permute.xlu2 %713 }
  0xcf   : > { %v572_v27 = vsel %vm571_vm6, %v560_v26, %v562_v5  ;;  %673 = vmatpush.bf16.msra.mxu2 %v659_v25 }
  0xd0   : > { %598 = vmatpush.bf16.msrb.mxu3 %v572_v27 }
  0xd3   : > { %972 = vmatmul.msk.bf16.vlgmr.msrb.gmra.mxu3 %vm222_vm1, %v971_v28 }
  0xd4   : > { %v636_v29 = vpop.permute.xlu0 %635 }
  0xd6   : > { %v638_v30 = vpop.permute.xlu1 %637  ;;  %v712_v49 = vpop.permute.xlu2 %711 }
  0xd7   : > { %v648_v31 = vsel %vm647_vm7, %v636_v29, %v638_v30  ;;  %v724_v57 = vsel %vm723_vm8, %v712_v49, %v714_v40 }
  0xd8   : > { %674 = vmatpush.bf16.msra.mxu2 %v648_v31 }
  0xdb   : > { %976 = vmatmul.msk.bf16.vlgmr.msra.gmra.mxu2 %vm222_vm1, %v975_v33 }
  0xdc   : > { %v564_v34 = vpop.permute.xlu0 %563 }
  0xdd   : > { %624 = vmatpush.bf16.msra.mxu1 %v564_v34  ;;  %v573_v35 = vsel %vm571_vm6, %v562_v5, %v564_v34  ;;  %v983_v5 = vld [vmem:[%s1258_s1 + $0x20] sm:$0xf] }
  0xde   : > { %v646_v36 = vpop.permute.xlu1 %645  ;;  %611 = vmatpush.bf16.msra.mxu0 %v573_v35  ;;  %v794_v59 = vpop.permute.xlu2 %793 }
  0xdf   : > { %v651_v37 = vsel %vm647_vm7, %v644_v23, %v646_v36  ;;  %v665_v38 = vsel %vm226_vm0, %v646_v36, 0 }
  0xe0   : > { %v662_v39 = vsel %vm226_vm0, %v651_v37, 0  ;;  %974 = vmatmul.msk.bf16.vlgmr.msra.gmra.mxu1 %vm222_vm1, %v971_v28 }
  0xe1   : > { %973 = vmatmul.msk.bf16.vlgmr.msra.gmra.mxu0 %vm222_vm1, %v971_v28  ;;  %686 = vmatpush.bf16.msra.mxu3 %v662_v39 }
  0xe2   : > { %699 = vmatpush.bf16.msrb.mxu0 %v665_v38 }
  0xe4   : > { %v722_v41 = vpop.permute.xlu0 %721 }
  0xe5   : > { %v727_v42 = vsel %vm723_vm8, %v720_v32, %v722_v41  ;;  %v741_v46 = vsel %vm226_vm0, %v722_v41, 0 }
  0xe6   : > { %v738_v43 = vsel %vm226_vm0, %v727_v42, 0  ;;  %v640_v44 = vpop.permute.xlu1 %639  ;;  %v790_v4 = vpop.permute.xlu2 %789 }
  0xe7   : > { %700 = vmatpush.bf16.msrb.mxu0 %v640_v44  ;;  %v649_v45 = vsel %vm647_vm7, %v638_v30, %v640_v44  ;;  %762 = vmatpush.bf16.msrb.mxu2 %v738_v43 }
  0xe8   : > { %687 = vmatpush.bf16.msra.mxu3 %v649_v45 }
  0xeb   : > { %977 = vmatmul.msk.bf16.vlgmr.msra.gmra.mxu3 %vm222_vm1, %v975_v33 }
  0xec   : > { %775 = vmatpush.bf16.msrb.mxu3 %v741_v46  ;;  %v716_v50 = vpop.permute.xlu0 %715 }
  0xed   : > { %v725_v51 = vsel %vm723_vm8, %v714_v40, %v716_v50 }
  0xee   : > { %v718_v52 = vpop.permute.xlu1 %717  ;;  %763 = vmatpush.bf16.msrb.mxu2 %v725_v51 }
  0xef   : > { %v726_v53 = vsel %vm723_vm8, %v718_v52, %v720_v32 }
  0xf0   : > { %776 = vmatpush.bf16.msrb.mxu3 %v716_v50  ;;  %v735_v55 = vsel %vm226_vm0, %v726_v53, 0 }
  0xf1   : > { %978 = vmatmul.msk.bf16.vlgmr.msrb.gmra.mxu0 %vm222_vm1, %v975_v33  ;;  %749 = vmatpush.bf16.msrb.mxu1 %v735_v55 }
  0xf2   : > { %981 = vmatmul.msk.bf16.vlgmr.msrb.gmra.mxu2 %vm222_vm1, %v979_v54 }
  0xf4   : > { %v798_v56 = vpop.permute.xlu0 %797 }
  0xf5   : > { %v817_v58 = vsel %vm226_vm0, %v798_v56, 0  ;;  %750 = vmatpush.bf16.msrb.mxu1 %v724_v57 }
  0xf6   : > { %851 = vmatpush.bf16.msra.mxu2 %v817_v58  ;;  %v792_v60 = vpop.permute.xlu1 %791 }
  0xf7   : > { %v801_v7 = vsel %vm799_vm9, %v790_v4, %v792_v60 }
  0xf8   : > { %980 = vmatmul.msk.bf16.vlgmr.msrb.gmra.mxu1 %vm222_vm1, %v979_v54 }
  0xfa   : > { %852 = vmatpush.bf16.msra.mxu2 %v792_v60 }
  0xfb   : > { %982 = vmatmul.msk.bf16.vlgmr.msrb.gmra.mxu3 %vm222_vm1, %v979_v54 }
  0xfc   : > { %v796_v61 = vpop.permute.xlu0 %795 }
  0xfd   : > { %v802_v62 = vsel %vm799_vm9, %v794_v59, %v796_v61  ;;  %v803_v63 = vsel %vm799_vm9, %v796_v61, %v798_v56 }
  0xfe   : > { %v811_v1 = vsel %vm226_vm0, %v802_v62, 0  ;;  %v814_v2 = vsel %vm226_vm0, %v803_v63, 0  ;;  %v788_v3 = vpop.permute.xlu1 %787 }
  0xff   : > { %825 = vmatpush.bf16.msra.mxu0 %v811_v1  ;;  %838 = vmatpush.bf16.msra.mxu1 %v814_v2  ;;  %v800_v6 = vsel %vm799_vm9, %v788_v3, %v790_v4 }
 0x102   : > { %986 = vmatmul.msk.bf16.vlgmr.msra.gmra.mxu2 %vm222_vm1, %v983_v5 }
 0x103   : > { %826 = vmatpush.bf16.msra.mxu0 %v800_v6  ;;  %839 = vmatpush.bf16.msra.mxu1 %v801_v7 }
 0x106   : > { %984 = vmatmul.msk.bf16.vlgmr.msra.gmra.mxu0 %vm222_vm1, %v983_v5 }
 0x108   : > { %985 = vmatmul.msk.bf16.vlgmr.msra.gmra.mxu1 %vm222_vm1, %v983_v5 }
 0x115   : > { %v245_v9 = vpop.f32.mrf.mxu0  ;;  %v258_v10 = vpop.f32.mrf.mxu1 }
 0x116   : > { %v300_v11 = vadd.f32 %v299_v0, %v245_v9 }
 0x119   : > { %v271_v12 = vpop.f32.mrf.mxu2 }
 0x11d   : > { %v247_v13 = vpop.f32.mrf.mxu0  ;;  %v260_v14 = vpop.f32.mrf.mxu1 }
 0x121   : > { %v273_v15 = vpop.f32.mrf.mxu2 }
 0x125   : > { %v312_v16 = vpop.f32.mrf.mxu0  ;;  %v325_v17 = vpop.f32.mrf.mxu1 }
 0x126   : > { %v313_v18 = vadd.f32 %v312_v16, %v258_v10  ;;  %v326_v19 = vadd.f32 %v325_v17, %v271_v12  ;;  %v865_v10 = vpop.permute.xlu0 %864 }
 0x129   : > { %v372_v20 = vpop.f32.mrf.mxu2 }
 0x12a   : > { %v402_v21 = vadd.f32 %v372_v20, %v300_v11 }
 0x12d   : > { %v314_v22 = vpop.f32.mrf.mxu0  ;;  %v327_v23 = vpop.f32.mrf.mxu1 }
 0x12f   : > { %v385_v24 = vpop.f32.mrf.mxu3 }
 0x130   : > { %v403_v25 = vadd.f32 %v385_v24, %v313_v18 }
 0x131   : > { %v374_v26 = vpop.f32.mrf.mxu2 }
 0x135   : > { %v398_v27 = vpop.f32.mrf.mxu0  ;;  %v448_v28 = vpop.f32.mrf.mxu1 }
 0x136   : > { %v404_v29 = vadd.f32 %v398_v27, %v326_v19  ;;  %v478_v30 = vadd.f32 %v448_v28, %v402_v21 }
 0x137   : > { %v387_v31 = vpop.f32.mrf.mxu3 }
 0x139   : > { %v461_v32 = vpop.f32.mrf.mxu2 }
 0x13a   : > { %v479_v33 = vadd.f32 %v461_v32, %v403_v25 }
 0x13d   : > { %v400_v34 = vpop.f32.mrf.mxu0  ;;  %v450_v35 = vpop.f32.mrf.mxu1 }
 0x13f   : > { %v474_v36 = vpop.f32.mrf.mxu3 }
 0x140   : > { %v480_v59 = vadd.f32 %v474_v36, %v404_v29 }
 0x141   : > { %v463_v37 = vpop.f32.mrf.mxu2 }
 0x145   : > { %v524_v38 = vpop.f32.mrf.mxu0  ;;  %v537_v39 = vpop.f32.mrf.mxu1 }
 0x146   : > { %v554_v60 = vadd.f32 %v524_v38, %v478_v30  ;;  %v555_v63 = vadd.f32 %v537_v39, %v479_v33 }
 0x147   : > { %v476_v40 = vpop.f32.mrf.mxu3 }
 0x149   : > { %v550_v41 = vpop.f32.mrf.mxu2 }
 0x14a   : > { %v556_v0 = vadd.f32 %v550_v41, %v480_v59 }
 0x14d   : > { %v539_v42 = vpop.f32.mrf.mxu1  ;;  %v526_v43 = vpop.f32.mrf.mxu0 }
 0x151   : > { %v552_v44 = vpop.f32.mrf.mxu2 }
 0x156   : > { %v600_v45 = vpop.f32.mrf.mxu3 }
 0x157   : > { %v630_v1 = vadd.f32 %v600_v45, %v554_v60 }
 0x15d   : > { %v626_v46 = vpop.f32.mrf.mxu1 }
 0x15e   : > { %v613_v47 = vpop.f32.mrf.mxu0  ;;  %v676_v48 = vpop.f32.mrf.mxu2  ;;  %v632_v3 = vadd.f32 %v626_v46, %v556_v0 }
 0x15f   : > { %v602_v49 = vpop.f32.mrf.mxu3  ;;  %v631_v4 = vadd.f32 %v613_v47, %v555_v63  ;;  %v706_v5 = vadd.f32 %v676_v48, %v630_v1 }
 0x165   : > { %v628_v50 = vpop.f32.mrf.mxu1 }
 0x166   : > { %v615_v51 = vpop.f32.mrf.mxu0  ;;  %v678_v52 = vpop.f32.mrf.mxu2 }
 0x16e   : > { %v689_v53 = vpop.f32.mrf.mxu3  ;;  %v702_v54 = vpop.f32.mrf.mxu0 }
 0x16f   : > { %v707_v6 = vadd.f32 %v689_v53, %v631_v4  ;;  %v708_v7 = vadd.f32 %v702_v54, %v632_v3 }
 0x175   : > { %v765_v55 = vpop.f32.mrf.mxu2  ;;  %v752_v56 = vpop.f32.mrf.mxu1 }
 0x176   : > { %v691_v57 = vpop.f32.mrf.mxu3  ;;  %v704_v58 = vpop.f32.mrf.mxu0  ;;  %v782_v8 = vadd.f32 %v752_v56, %v706_v5  ;;  %v783_v11 = vadd.f32 %v765_v55, %v707_v6 }
 0x17d   : > { %v767_v61 = vpop.f32.mrf.mxu2  ;;  %v754_v62 = vpop.f32.mrf.mxu1 }
 0x17e   : > { %v778_v2 = vpop.f32.mrf.mxu3 }
 0x17f   : > { %v784_v12 = vadd.f32 %v778_v2, %v708_v7 }
 0x183   : > { %v828_v9 = vpop.f32.mrf.mxu0 }
 0x184   : > { %v858_v13 = vadd.f32 %v828_v9, %v782_v8 }
 0x185   : > { %v854_v14 = vpop.f32.mrf.mxu2  ;;  %v841_v15 = vpop.f32.mrf.mxu1 }
 0x186   : > { %v860_v16 = vadd.f32 %v854_v14, %v784_v12  ;;  %v867_v17 = vadd.f32 %v865_v10, %v858_v13  ;;  %v859_v18 = vadd.f32 %v841_v15, %v783_v11  ;;  %v780_v19 = vpop.f32.mrf.mxu3 }
 0x188   : > { %v869_v20 = vadd.f32 %v865_v10, %v860_v16  ;;  %v868_v21 = vadd.f32 %v865_v10, %v859_v18  ;;  %v870_v22 = vmax.f32 %v867_v17, 0.0 }
 0x18a   : > { %v872_v23 = vmax.f32 %v869_v20, 0.0  ;;  %v871_v24 = vmax.f32 %v868_v21, 0.0 }
 0x18b   : > { %v830_v25 = vpop.f32.mrf.mxu0 }
 0x18c   : > { %v874_v26 = vpack.c.bf16 %v872_v23, %v872_v23  ;;  %v873_v27 = vpack.c.bf16 %v871_v24, %v870_v22 }
 0x18d   : > { %v843_v28 = vpop.f32.mrf.mxu1  ;;  %v856_v29 = vpop.f32.mrf.mxu2 }
 0x18e   : > { %877 = vst.msk [vmem:[%s170_s24 + $0x8] sm:$0xf] %vm876_vm10, %v874_v26 }
 0x18f   : > { %875 = vst [vmem:[%s170_s24] sm:$0xff] %v873_v27 }
 0x190 PF: > { %s13_s12 = sadd.s32 1, %s1018_s12  }
 0x191   : > { %p10_p4 = scmp.ge.s32.totalorder %s13_s12, 26  }
 0x193   :  { %12 = sbr.rel (!%p10_p4) target bundleno = 1 (0x1), region = 70 }

// kernel: _forward_impl.35
= control target key start
LH: loop header
LB: loop body
LE: loop exit
PB: predicated region body
PF: predicated region fallthrough
CT: control target
= control target key end

     0   :  { %s337_s12 = smov 0   ;;  %s363_s0 = inlined_call_operand.vmem [shape: bf16[24,8,256], index: 0, kind: input, shape index: {}]   ;;  %s364_s1 = inlined_call_operand.vmem [shape: bf16[1,3,8], index: 1, kind: input, shape index: {}]   ;;  %s365_s2 = inlined_call_operand.vmem [shape: f32[3,1], index: 2, kind: input, shape index: {}]   ;;  %s366_s3 = inlined_call_operand.vmem [shape: f32[24,3,256], index: 3, kind: output, shape index: {}]  }
   0x1 LB: > { %s283_s13 = sadd.s32 4294967295, %s314_s12   ;;  %p287_p0 = scmp.ge.s32.totalorder %s314_s12, 1  ;;  %s314_s12 = sphi %s337_s12, %s13_s12  }
   0x2   : > { %p137_p1 = scmp.lt.s32.totalorder %s314_s12, 25 }
   0x4   : > { %p138_p2 = pnand %p287_p0, %p137_p1 }
   0x5   : > { %p161_p3 = scmp.lt.s32.totalorder (!%p138_p2), %s283_s13, 23 }
   0x6   : > { %141 = sbr.rel (%p138_p2) target bundleno = 157 (0x9d), region = 32 }
   0xb   : > { %v316_v0 = vmov 0   ;;  %v174_v1 = vld [vmem:[%s365_s2] sm:$0x7]  ;;  %s368_s13 = smov (!%p161_p3, %s283_s13), 23  ;;  %vm189_vm0 = vcmask 1043456   ;;  %vm185_vm1 = vcmask 64512  }
   0xc   : > { %307 = vset.pattern.permute.xlu0 %v316_v0  ;;  %s296_s16 = sshll.u32 %s368_s13, 3  ;;  %v173_v9 = vld [vmem:[%s364_s1] sm:$0x3] }
   0xd   : > { %177 = vperm.xlu0 %307, %v174_v1   ;;  %s165_s19 = scalar_lea.vmem %s363_s0, %s296_s16  ;;  %s170_s24 = scalar_lea.vmem %s366_s3, %s296_s16 }
   0xe   : > { %v172_v2 = vld [vmem:[%s165_s19] sm:$0xff] }
   0xf   : > { %v181_v3 = vunpack.c.l.b16 %v172_v2  ;;  %v182_v4 = vunpack.c.h.b16 %v172_v2 }
  0x11   : > { %v183_v5 = vpack.c.b16 %v181_v3, %v181_v3  ;;  %v184_v6 = vpack.c.b16 %v182_v4, %v182_v4 }
  0x13   : > { %v191_v7 = vsel %vm189_vm0, %v183_v5, 0  ;;  %v194_v8 = vsel %vm189_vm0, %v184_v6, 0 }
  0x14   : > { %203 = vmatpush.bf16.msra.mxu0 %v191_v7  ;;  %216 = vmatpush.bf16.msra.mxu1 %v194_v8 }
  0x17   : > { %292 = vmatmul.msk.bf16.vlgmr.msra.gmra.mxu0 %vm185_vm1, %v173_v9  ;;  %293 = vmatmul.msk.bf16.vlgmr.msra.gmra.mxu1 %vm185_vm1, %v173_v9 }
  0x7f   : > { %v178_v10 = vpop.permute.xlu0 %177 }
  0x94   : > { %v205_v11 = vpop.f32.mrf.mxu0  ;;  %v218_v12 = vpop.f32.mrf.mxu1 }
  0x95   : > { %v219_v13 = vadd.f32 %v218_v12, %v178_v10  ;;  %v206_v14 = vadd.f32 %v205_v11, %v178_v10 }
  0x97   : > { %v224_v15 = vrot.slane %v219_v13, 4 }
  0x99   : > { %v225_v16 = vsel %vm189_vm0, %v206_v14, %v224_v15 }
  0x9a   : > { %227 = vst [vmem:[%s170_s24] sm:$0x77] %v225_v16 }
  0x9c   : > { %v207_v17 = vpop.f32.mrf.mxu0  ;;  %v220_v18 = vpop.f32.mrf.mxu1 }
  0x9d PF: > { %s13_s12 = sadd.s32 1, %s314_s12  }
  0x9e   : > { %p10_p4 = scmp.ge.s32.totalorder %s13_s12, 26  }
  0xa0   :  { %12 = sbr.rel (!%p10_p4) target bundleno = 1 (0x1), region = 62 }

// kernel: _forward_impl.36
= control target key start
LH: loop header
LB: loop body
LE: loop exit
PB: predicated region body
PF: predicated region fallthrough
CT: control target
= control target key end

     0   :  { %s624_s12 = smov 0   ;;  %s626_s13 = smov 0   ;;  %s765_s0 = inlined_call_operand.vmem [shape: f32[24,3,16,16], index: 0, kind: input, shape index: {}]   ;;  %s766_s1 = inlined_call_operand.vmem [shape: f32[12,16,16], index: 1, kind: input, shape index: {}]   ;;  %s767_s2 = inlined_call_operand.vmem [shape: f32[2,1,16,16], index: 2, kind: input, shape index: {}]   ;;  %s768_s3 = inlined_call_operand.vmem [shape: f32[8,3,16,16], index: 3, kind: output, shape index: {}]  }
   0x1   :  { %s628_s14 = smov 0   ;;  %s630_s15 = smov 0  }
   0x2   :  { %s632_s16 = smov 0   ;;  %s634_s17 = smov 0  }
   0x3   :  { %s636_s18 = smov 0  }
   0x4 LB: > { %s25_s19 = sadd.s32 1, %s590_s15  ;;  %s28_s20 = sadd.s32 1, %s594_s16  ;;  %s602_s18 = sphi %s636_s18, %s13_s18   ;;  %s598_s17 = sphi %s634_s17, %s774_s17   ;;  %s594_s16 = sphi %s632_s16, %s773_s16   ;;  %s590_s15 = sphi %s630_s15, %s772_s15   ;;  %s586_s14 = sphi %s628_s14, %s771_s14   ;;  %s582_s13 = sphi %s626_s13, %s770_s13   ;;  %s578_s12 = sphi %s624_s12, %s769_s12  }
   0x5   : > { %p26_p0 = scmp.ge.s32.totalorder %s25_s19, 3  ;;  %p474_p1 = scmp.ge.s32.totalorder %s602_s18, 1 }
   0x6   : > { %p204_p2 = scmp.lt.s32.totalorder %s602_s18, 25  ;;  %s32_s21 = sadd.s32 1, %s598_s17 }
   0x7   : > { %s776_s19 = smov (%p26_p0, %s25_s19), 0  ;;  %s778_s20 = smov (!%p26_p0, %s28_s20), %s594_s16 }
   0x8   : > { %p205_p3 = pnand %p474_p1, %p204_p2  ;;  %p30_p4 = scmp.ge.s32.totalorder %s778_s20, 2 }
   0x9   : > { %s246_s22 = smul.u32 (!%p205_p3), 6, %s586_s14  ;;  %s475_s23 = sshll.u32 (!%p205_p3), %s578_s12, 1 }
   0xa   : > { %s780_s20 = smov (%p30_p4, %s778_s20), 0  ;;  %s782_s21 = smov (!%p30_p4, %s32_s21), %s598_s17 }
   0xb   : > { %p34_p5 = scmp.ge.s32.totalorder %s782_s21, 4  ;;  %208 = sbr.rel (%p205_p3) target bundleno = 70 (0x46), region = 32 }
   0xc   : > { %s259_s24 = smul.u32 (!%p205_p3), 3, %s586_s14  ;;  %p268_p6 = scmp.lt.s32.totalorder (!%p205_p3), %s582_s13, 1 }
   0xd   : > { %s784_s21 = smov (%p34_p5, %s782_s21), 0  ;;  %s248_s25 = sadd.s32 (!%p205_p3), %s475_s23, %s246_s22 }
   0xe   : > { %s481_s26 = sshll.u32 (!%p205_p3), %s586_s14, 1  ;;  %s249_s27 = sadd.s32 (!%p205_p3), %s582_s13, %s248_s25 }
   0xf   : > { %s260_s28 = sadd.s32 (!%p205_p3), %s578_s12, %s259_s24  ;;  %p250_p7 = scmp.lt.s32.totalorder (!%p205_p3), %s249_s27, 23 }
  0x10   : > { %p261_p8 = scmp.lt.s32.totalorder %s260_s28, 11  ;;  %s274_s24 = sadd.s32 %s582_s13, %s481_s26 }
  0x11   : > { %s269_s29 = scalar_select %p268_p6, %s582_s13, 1 }
  0x12   : > { %s786_s27 = smov (!%p250_p7, %s249_s27), 23  ;;  %s788_s28 = smov (!%p261_p8, %s260_s28), 11 }
  0x13   : > { %s490_s30 = smul.u32 48, %s786_s27  ;;  %s489_s4 = sshll.u32 %s269_s29, 4 }
  0x14   : > { %s488_s5 = sshll.u32 %s788_s28, 4  ;;  %s683_s8 = scalar_lea.vmem %s767_s2, %s489_s4 }
  0x15   : > { %s254_s11 = scalar_lea.vmem %s765_s0, %s490_s30  ;;  %s265_s23 = scalar_lea.vmem %s766_s1, %s488_s5 }
  0x16   : > { %v282_v0 = vld [vmem:[%s254_s11] sm:$0xff]  ;;  %v283_v1 = vld [vmem:[%s254_s11 + $0x8] sm:$0xff]  ;;  %v284_v2 = vld [vmem:[%s254_s11 + $0x10] sm:$0xff]  ;;  %p275_p9 = scmp.lt.s32.totalorder %s274_s24, 7  ;;  %p483_p10 = scmp.ne.s32.totalorder %s578_s12, 0 }
  0x17   : > { %v285_v3 = vld [vmem:[%s254_s11 + $0x18] sm:$0xff]  ;;  %v286_v4 = vld [vmem:[%s254_s11 + $0x20] sm:$0xff]  ;;  %v287_v5 = vld [vmem:[%s254_s11 + $0x28] sm:$0xff] }
  0x18   : > { %v288_v6 = vld [vmem:[%s265_s23] sm:$0xff]  ;;  %v289_v7 = vld [vmem:[%s265_s23 + $0x8] sm:$0xff]  ;;  %s790_s24 = smov (!%p275_p9, %s274_s24), 7  ;;  %299 = sbr.rel (%p483_p10) target bundleno = 36 (0x24), region = 36 }
  0x19   : > { %v290_v8 = vmul.f32 %v288_v6, %v282_v0  ;;  %v291_v9 = vmul.f32 %v289_v7, %v283_v1  ;;  %v292_v10 = vmul.f32 %v288_v6, %v284_v2  ;;  %v293_v11 = vmul.f32 %v289_v7, %v285_v3  ;;  %s491_s25 = smul.u32 48, %s790_s24 }
  0x1a   : > { %v294_v12 = vmul.f32 %v288_v6, %v286_v4  ;;  %v295_v13 = vmul.f32 %v289_v7, %v287_v5 }
  0x1b   : > { %s695_s13 = scalar_lea.vmem %s768_s3, %s491_s25 }
  0x1d   : > { %vm300_vm0 = vcmask 130048  }
  0x1e   : > { %301 = vst.msk [vmem:[%s695_s13] sm:$0xff] %vm300_vm0, %v290_v8 }
  0x1f   : > { %302 = vst.msk [vmem:[%s695_s13 + $0x8] sm:$0xff] %vm300_vm0, %v291_v9 }
  0x20   : > { %303 = vst.msk [vmem:[%s695_s13 + $0x10] sm:$0xff] %vm300_vm0, %v292_v10 }
  0x21   : > { %304 = vst.msk [vmem:[%s695_s13 + $0x18] sm:$0xff] %vm300_vm0, %v293_v11 }
  0x22   : > { %305 = vst.msk [vmem:[%s695_s13 + $0x20] sm:$0xff] %vm300_vm0, %v294_v12 }
  0x23   : > { %306 = vst.msk [vmem:[%s695_s13 + $0x28] sm:$0xff] %vm300_vm0, %v295_v13 }
  0x24 PF: > { %p484_p11 = scmp.le.s32.totalorder %s578_s12, 0 }
  0x26   : > { %310 = sbr.rel (%p484_p11) target bundleno = 52 (0x34), region = 40 }
  0x2b   : > { %v311_v14 = vld [vmem:[%s695_s13] sm:$0xff]  ;;  %vm323_vm1 = vcmask 130048   ;;  %v312_v15 = vld [vmem:[%s695_s13 + $0x8] sm:$0xff]  ;;  %v313_v16 = vld [vmem:[%s695_s13 + $0x10] sm:$0xff] }
  0x2c   : > { %v317_v17 = vadd.f32 %v311_v14, %v290_v8  ;;  %v318_v18 = vadd.f32 %v312_v15, %v291_v9  ;;  %v319_v19 = vadd.f32 %v313_v16, %v292_v10  ;;  %v314_v20 = vld [vmem:[%s695_s13 + $0x18] sm:$0xff]  ;;  %v315_v21 = vld [vmem:[%s695_s13 + $0x20] sm:$0xff]  ;;  %v316_v22 = vld [vmem:[%s695_s13 + $0x28] sm:$0xff] }
  0x2d   : > { %v320_v23 = vadd.f32 %v314_v20, %v293_v11  ;;  %v321_v24 = vadd.f32 %v315_v21, %v294_v12  ;;  %v322_v25 = vadd.f32 %v316_v22, %v295_v13 }
  0x2e   : > { %324 = vst.msk [vmem:[%s695_s13] sm:$0xff] %vm323_vm1, %v317_v17 }
  0x2f   : > { %325 = vst.msk [vmem:[%s695_s13 + $0x8] sm:$0xff] %vm323_vm1, %v318_v18 }
  0x30   : > { %326 = vst.msk [vmem:[%s695_s13 + $0x10] sm:$0xff] %vm323_vm1, %v319_v19 }
  0x31   : > { %327 = vst.msk [vmem:[%s695_s13 + $0x18] sm:$0xff] %vm323_vm1, %v320_v23 }
  0x32   : > { %328 = vst.msk [vmem:[%s695_s13 + $0x20] sm:$0xff] %vm323_vm1, %v321_v24 }
  0x33   : > { %329 = vst.msk [vmem:[%s695_s13 + $0x28] sm:$0xff] %vm323_vm1, %v322_v25 }
  0x34 PF: > { %p485_p12 = scmp.ne.s32.totalorder %s578_s12, 2 }
  0x36   : > { %333 = sbr.rel (%p485_p12) target bundleno = 70 (0x46), region = 44 }
  0x3b   : > { %v334_v26 = vld [vmem:[%s683_s8] sm:$0xff]  ;;  %v335_v28 = vld [vmem:[%s683_s8 + $0x8] sm:$0xff]  ;;  %v338_v33 = vld [vmem:[%s695_s13 + $0x10] sm:$0xff]  ;;  %vm356_vm2 = vcmask 130048  }
  0x3c   : > { %v336_v27 = vld [vmem:[%s695_s13] sm:$0xff]  ;;  %v348_v30 = vsub.f32 1.0, %v334_v26  ;;  %v337_v31 = vld [vmem:[%s695_s13 + $0x8] sm:$0xff]  ;;  %v349_v32 = vsub.f32 1.0, %v335_v28  ;;  %v339_v34 = vld [vmem:[%s695_s13 + $0x18] sm:$0xff]  ;;  %v344_v36 = vmul.f32 %v338_v33, %v334_v26 }
  0x3d   : > { %v342_v29 = vmul.f32 %v336_v27, %v334_v26  ;;  %v343_v35 = vmul.f32 %v337_v31, %v335_v28  ;;  %v345_v37 = vmul.f32 %v339_v34, %v335_v28  ;;  %v340_v38 = vld [vmem:[%s695_s13 + $0x20] sm:$0xff]  ;;  %v341_v39 = vld [vmem:[%s695_s13 + $0x28] sm:$0xff] }
  0x3e   : > { %v346_v41 = vmul.f32 %v340_v38, %v334_v26  ;;  %v347_v42 = vmul.f32 %v341_v39, %v335_v28  ;;  %v352_v44 = vsub.f32 %v344_v36, %v348_v30 }
  0x3f   : > { %v350_v40 = vsub.f32 %v342_v29, %v348_v30  ;;  %v351_v43 = vsub.f32 %v343_v35, %v349_v32  ;;  %v353_v45 = vsub.f32 %v345_v37, %v349_v32 }
  0x40   : > { %v354_v46 = vsub.f32 %v346_v41, %v348_v30  ;;  %v355_v47 = vsub.f32 %v347_v42, %v349_v32  ;;  %359 = vst.msk [vmem:[%s695_s13 + $0x10] sm:$0xff] %vm356_vm2, %v352_v44 }
  0x41   : > { %357 = vst.msk [vmem:[%s695_s13] sm:$0xff] %vm356_vm2, %v350_v40 }
  0x42   : > { %358 = vst.msk [vmem:[%s695_s13 + $0x8] sm:$0xff] %vm356_vm2, %v351_v43 }
  0x43   : > { %360 = vst.msk [vmem:[%s695_s13 + $0x18] sm:$0xff] %vm356_vm2, %v353_v45 }
  0x44   : > { %361 = vst.msk [vmem:[%s695_s13 + $0x20] sm:$0xff] %vm356_vm2, %v354_v46 }
  0x45   : > { %362 = vst.msk [vmem:[%s695_s13 + $0x28] sm:$0xff] %vm356_vm2, %v355_v47 }
  0x46 PF: > { %s13_s18 = sadd.s32 1, %s602_s18   ;;  %s769_s12 = smov %s590_s15 }
  0x47   : > { %p10_p13 = scmp.ge.s32.totalorder %s13_s18, 26   ;;  %s770_s13 = smov %s594_s16 }
  0x48   : > { %s771_s14 = smov %s598_s17  ;;  %s772_s15 = smov %s776_s19 }
  0x49   : > { %s773_s16 = smov %s780_s20  ;;  %s774_s17 = smov %s784_s21 }
  0x4a   :  { %12 = sbr.rel (!%p10_p13) target bundleno = 4 (0x4), region = 80 }

// kernel: _forward_impl.38
= control target key start
LH: loop header
LB: loop body
LE: loop exit
PB: predicated region body
PF: predicated region fallthrough
CT: control target
= control target key end

     0   :  { %s728_s9 = smov 0   ;;  %s960_s0 = inlined_call_operand.vmem [shape: f32[8,3,10,10], index: 0, kind: input, shape index: {}]   ;;  %s961_s1 = inlined_call_operand.vmem [shape: f32[8,3,10,10], index: 1, kind: input, shape index: {}]   ;;  %s962_s2 = inlined_call_operand.vmem [shape: f32[8,3,8,8], index: 2, kind: output, shape index: {}]  }
   0x1 LB: > { %s663_s10 = sadd.s32 4294967295, %s709_s9   ;;  %p667_p0 = scmp.ge.s32.totalorder %s709_s9, 1  ;;  %s709_s9 = sphi %s728_s9, %s12_s9  }
   0x2   : > { %p122_p1 = scmp.lt.s32.totalorder %s709_s9, 9 }
   0x4   : > { %p123_p2 = pnand %p667_p0, %p122_p1 }
   0x5   : > { %p149_p3 = scmp.lt.s32.totalorder (!%p123_p2), %s663_s10, 7  ;;  %s711_s15 = smov (!%p123_p2), 127  }
   0x6   : > { %126 = sbr.rel (%p123_p2) target bundleno = 261 (0x105), region = 28  ;;  %s712_s19 = smov (!%p123_p2), 126  }
   0xb   : > { %s964_s10 = smov (!%p149_p3, %s663_s10), 7  ;;  %vm176_vm0 = vcmask 1046528   ;;  %vm192_vm1 = vcmask 1045504  }
   0xc   : > { %s673_s11 = smul.u32 48, %s964_s10 }
   0xd   : > { %s674_s20 = smul.u32 24, %s964_s10 }
   0xe   : > { %s153_s14 = scalar_lea.vmem %s960_s0, %s673_s11  ;;  %s158_s18 = scalar_lea.vmem %s961_s1, %s673_s11 }
   0xf   : > { %v742_v0 = vld [vmem:[%s153_s14 + $0x20] sm:$0xff]  ;;  %v744_v1 = vld [vmem:[%s153_s14 + $0x10] sm:$0xff]  ;;  %v751_v3 = vld [vmem:[%s153_s14 + $0x28] sm:$0x3]  ;;  %s949_s23 = scalar_lea.vmem %s962_s2, %s674_s20 }
  0x10   : > { %v746_v2 = vld [vmem:[%s153_s14] sm:$0xff]  ;;  %234 = vrot.lane.b32.xlu2 %v742_v0, %s711_s15  ;;  %230 = vrot.lane.b32.xlu1 %v744_v1, %s711_s15  ;;  %v753_v4 = vld [vmem:[%s153_s14 + $0x18] sm:$0x3]  ;;  %v180_v12 = vrot.slane %v744_v1, 1  ;;  %v183_v16 = vrot.slane %v742_v0, 1  ;;  %v184_v17 = vrot.slane %v751_v3, 1 }
  0x11   : > { %226 = vrot.lane.b32.xlu0 %v746_v2, %s711_s15  ;;  %v755_v5 = vld [vmem:[%s153_s14 + $0x8] sm:$0x3]  ;;  %v763_v6 = vld [vmem:[%s158_s18 + $0x10] sm:$0xff]  ;;  %v767_v8 = vld [vmem:[%s158_s18] sm:$0xff]  ;;  %v181_v13 = vrot.slane %v753_v4, 1  ;;  %v177_v14 = vrot.slane %v746_v2, 1 }
  0x12   : > { %v765_v7 = vld [vmem:[%s158_s18 + $0x8] sm:$0x3]  ;;  %v774_v10 = vld [vmem:[%s158_s18 + $0x20] sm:$0xff]  ;;  %v776_v11 = vld [vmem:[%s158_s18 + $0x18] sm:$0x3]  ;;  %v178_v15 = vrot.slane %v755_v5, 1  ;;  %v185_v24 = vsel %vm176_vm0, %v183_v16, %v184_v17 }
  0x13   : > { %v772_v9 = vld [vmem:[%s158_s18 + $0x28] sm:$0x3]  ;;  %v196_v18 = vrot.slane %v744_v1, 2  ;;  %v197_v19 = vrot.slane %v753_v4, 2  ;;  %v182_v20 = vsel %vm176_vm0, %v180_v12, %v181_v13  ;;  %v193_v21 = vrot.slane %v746_v2, 2 }
  0x14   : > { %v194_v22 = vrot.slane %v755_v5, 2  ;;  %v179_v23 = vsel %vm176_vm0, %v177_v14, %v178_v15  ;;  %v199_v25 = vrot.slane %v742_v0, 2  ;;  %v200_v26 = vrot.slane %v751_v3, 2 }
  0x15   : > { %v190_v27 = vadd.f32 %v182_v20, %v744_v1  ;;  %v198_v28 = vsel %vm192_vm1, %v196_v18, %v197_v19  ;;  %v189_v29 = vadd.f32 %v179_v23, %v746_v2  ;;  %v191_v31 = vadd.f32 %v185_v24, %v742_v0 }
  0x16   : > { %v195_v30 = vsel %vm192_vm1, %v193_v21, %v194_v22  ;;  %v361_v32 = vrot.slane %v763_v6, 1  ;;  %v201_v33 = vsel %vm192_vm1, %v199_v25, %v200_v26  ;;  %v362_v34 = vrot.slane %v776_v11, 1 }
  0x17   : > { %v364_v35 = vrot.slane %v774_v10, 1  ;;  %v365_v36 = vrot.slane %v772_v9, 1  ;;  %v358_v37 = vrot.slane %v767_v8, 1  ;;  %v359_v38 = vrot.slane %v765_v7, 1 }
  0x18   : > { %236 = vrot.lane.b32.xlu2 %v751_v3, %s711_s15  ;;  %232 = vrot.lane.b32.xlu1 %v753_v4, %s711_s15  ;;  %v832_v39 = vadd.f32 %v198_v28, %v190_v27  ;;  %v834_v40 = vadd.f32 %v195_v30, %v189_v29  ;;  %v207_v41 = vadd.f32 %v201_v33, %v191_v31  ;;  %v376_v42 = vrot.slane %v763_v6, 2 }
  0x19   : > { %228 = vrot.lane.b32.xlu0 %v755_v5, %s711_s15  ;;  %v377_v43 = vrot.slane %v776_v11, 2  ;;  %v363_v44 = vsel %vm176_vm0, %v361_v32, %v362_v34  ;;  %v366_v45 = vsel %vm176_vm0, %v364_v35, %v365_v36  ;;  %v379_v46 = vrot.slane %v774_v10, 2 }
  0x1a   : > { %v380_v47 = vrot.slane %v772_v9, 2  ;;  %v360_v48 = vsel %vm176_vm0, %v358_v37, %v359_v38  ;;  %v373_v49 = vrot.slane %v767_v8, 2  ;;  %v374_v50 = vrot.slane %v765_v7, 2 }
  0x1b   : > { %v371_v51 = vadd.f32 %v363_v44, %v763_v6  ;;  %v372_v52 = vadd.f32 %v366_v45, %v774_v10  ;;  %v378_v53 = vsel %vm192_vm1, %v376_v42, %v377_v43  ;;  %v370_v54 = vadd.f32 %v360_v48, %v767_v8 }
  0x1c   : > { %v381_v55 = vsel %vm192_vm1, %v379_v46, %v380_v47  ;;  %v375_v56 = vsel %vm192_vm1, %v373_v49, %v374_v50 }
  0x1d   : > { %v856_v57 = vadd.f32 %v378_v53, %v371_v51  ;;  %v858_v58 = vadd.f32 %v381_v55, %v372_v52  ;;  %v860_v59 = vadd.f32 %v375_v56, %v370_v54 }
  0x20   : > { %410 = vrot.lane.b32.xlu2 %v763_v6, %s711_s15  ;;  %408 = vrot.lane.b32.xlu1 %v765_v7, %s711_s15 }
  0x21   : > { %406 = vrot.lane.b32.xlu0 %v767_v8, %s711_s15 }
  0x28   : > { %416 = vrot.lane.b32.xlu2 %v772_v9, %s711_s15  ;;  %414 = vrot.lane.b32.xlu1 %v774_v10, %s711_s15 }
  0x29   : > { %412 = vrot.lane.b32.xlu0 %v776_v11, %s711_s15 }
  0x30   : > { %254 = vrot.lane.b32.xlu2 %v744_v1, %s712_s19  ;;  %252 = vrot.lane.b32.xlu1 %v755_v5, %s712_s19 }
  0x31   : > { %250 = vrot.lane.b32.xlu0 %v746_v2, %s712_s19 }
  0x38   : > { %260 = vrot.lane.b32.xlu2 %v751_v3, %s712_s19  ;;  %258 = vrot.lane.b32.xlu1 %v742_v0, %s712_s19 }
  0x39   : > { %256 = vrot.lane.b32.xlu0 %v753_v4, %s712_s19 }
  0x40   : > { %434 = vrot.lane.b32.xlu2 %v763_v6, %s712_s19  ;;  %432 = vrot.lane.b32.xlu1 %v765_v7, %s712_s19 }
  0x41   : > { %430 = vrot.lane.b32.xlu0 %v767_v8, %s712_s19 }
  0x48   : > { %440 = vrot.lane.b32.xlu2 %v772_v9, %s712_s19  ;;  %438 = vrot.lane.b32.xlu1 %v774_v10, %s712_s19 }
  0x49   : > { %436 = vrot.lane.b32.xlu0 %v776_v11, %s712_s19 }
  0x50   : > { %213 = vrot.lane.b32.xlu1 %v832_v39, %s712_s19  ;;  %215 = vrot.lane.b32.xlu2 %v207_v41, %s712_s19 }
  0x51   : > { %211 = vrot.lane.b32.xlu0 %v834_v40, %s712_s19 }
  0x58   : > { %393 = vrot.lane.b32.xlu1 %v856_v57, %s712_s19  ;;  %395 = vrot.lane.b32.xlu2 %v858_v58, %s712_s19 }
  0x59   : > { %391 = vrot.lane.b32.xlu0 %v860_v59, %s712_s19 }
  0x6a   : > { %v235_v60 = vpop.permute.xlu2 %234 }
  0x6b   : > { %v248_v27 = vadd.f32 %v235_v60, %v742_v0 }
  0x72   : > { %v237_v61 = vpop.permute.xlu2 %236 }
  0x73   : > { %v249_v26 = vadd.f32 %v237_v61, %v751_v3 }
  0x7a   : > { %v411_v62 = vpop.permute.xlu2 %410 }
  0x82   : > { %v417_v63 = vpop.permute.xlu2 %416  ;;  %v231_v12 = vpop.permute.xlu1 %230 }
  0x83   : > { %v227_v13 = vpop.permute.xlu0 %226  ;;  %v246_v46 = vadd.f32 %v231_v12, %v744_v1  ;;  %v429_v51 = vadd.f32 %v417_v63, %v772_v9 }
  0x84   : > { %v244_v42 = vadd.f32 %v227_v13, %v746_v2 }
  0x8a   : > { %v255_v14 = vpop.permute.xlu2 %254  ;;  %v233_v15 = vpop.permute.xlu1 %232 }
  0x8b   : > { %v229_v16 = vpop.permute.xlu0 %228  ;;  %v247_v43 = vadd.f32 %v233_v15, %v753_v4  ;;  %v270_v52 = vadd.f32 %v255_v14, %v246_v46 }
  0x8c   : > { %v245_v3 = vadd.f32 %v229_v16, %v755_v5  ;;  %v426_v16 = vadd.f32 %v411_v62, %v763_v6 }
  0x8d   : > { %v283_v61 = vrot.slane %v270_v52, 2 }
  0x92   : > { %v261_v17 = vpop.permute.xlu2 %260  ;;  %v409_v18 = vpop.permute.xlu1 %408 }
  0x93   : > { %v407_v19 = vpop.permute.xlu0 %406  ;;  %v273_v28 = vadd.f32 %v261_v17, %v249_v26  ;;  %v425_v13 = vadd.f32 %v409_v18, %v765_v7 }
  0x94   : > { %v424_v9 = vadd.f32 %v407_v19, %v767_v8 }
  0x95   : > { %v287_v34 = vrot.slane %v273_v28, 2 }
  0x9a   : > { %v435_v20 = vpop.permute.xlu2 %434  ;;  %v415_v21 = vpop.permute.xlu1 %414 }
  0x9b   : > { %v413_v22 = vpop.permute.xlu0 %412  ;;  %v428_v60 = vadd.f32 %v415_v21, %v774_v10 }
  0x9c   : > { %v427_v63 = vadd.f32 %v413_v22, %v776_v11 }
  0xa2   : > { %v441_v23 = vpop.permute.xlu2 %440  ;;  %v253_v24 = vpop.permute.xlu1 %252 }
  0xa3   : > { %v251_v25 = vpop.permute.xlu0 %250  ;;  %v269_v48 = vadd.f32 %v253_v24, %v245_v3  ;;  %v453_v54 = vadd.f32 %v441_v23, %v429_v51 }
  0xa5   : > { %v281_v55 = vrot.slane %v269_v48, 2  ;;  %v467_v17 = vrot.slane %v453_v54, 2 }
  0xaa   : > { %v259_v29 = vpop.permute.xlu1 %258  ;;  %v216_v30 = vpop.permute.xlu2 %215 }
  0xab   : > { %v272_v31 = vadd.f32 %v259_v29, %v248_v27  ;;  %v257_v32 = vpop.permute.xlu0 %256  ;;  %v222_v33 = vsub.f32 %v207_v41, %v216_v30  ;;  %v268_v41 = vadd.f32 %v251_v25, %v244_v42  ;;  %v450_v27 = vadd.f32 %v435_v20, %v426_v16 }
  0xac   : > { %v271_v50 = vadd.f32 %v257_v32, %v247_v43 }
  0xad   : > { %v286_v35 = vrot.slane %v272_v31, 2  ;;  %v225_v36 = vmul.f32 0.33333334, %v222_v33  ;;  %v280_v4 = vrot.slane %v268_v41, 2  ;;  %v463_v32 = vrot.slane %v450_v27, 2 }
  0xae   : > { %v284_v56 = vrot.slane %v271_v50, 2 }
  0xaf   : > { %v288_v37 = vsel %vm192_vm1, %v286_v35, %v287_v34  ;;  %v300_v0 = vmul.f32 %v225_v36, %v225_v36  ;;  %v282_v23 = vsel %vm192_vm1, %v280_v4, %v281_v55 }
  0xb0   : > { %v294_v38 = vsub.f32 %v272_v31, %v288_v37  ;;  %v285_v10 = vsel %vm192_vm1, %v283_v61, %v284_v56  ;;  %v292_v11 = vsub.f32 %v268_v41, %v282_v23 }
  0xb1   : > { %v293_v8 = vsub.f32 %v270_v52, %v285_v10 }
  0xb2   : > { %v297_v44 = vmul.f32 0.33333334, %v294_v38  ;;  %v433_v45 = vpop.permute.xlu1 %432  ;;  %v396_v2 = vpop.permute.xlu2 %395  ;;  %v295_v20 = vmul.f32 0.33333334, %v292_v11 }
  0xb3   : > { %v431_v47 = vpop.permute.xlu0 %430  ;;  %v402_v12 = vsub.f32 %v858_v58, %v396_v2  ;;  %v449_v21 = vadd.f32 %v433_v45, %v425_v13  ;;  %v296_v34 = vmul.f32 0.33333334, %v293_v8 }
  0xb4   : > { %v303_v49 = vmul.f32 %v297_v44, %v297_v44  ;;  %v448_v24 = vadd.f32 %v431_v47, %v424_v9 }
  0xb5   : > { %v405_v58 = vmul.f32 0.33333334, %v402_v12  ;;  %v461_v6 = vrot.slane %v449_v21, 2  ;;  %v302_v46 = vmul.f32 %v296_v34, %v296_v34 }
  0xb6   : > { %v306_v53 = vadd.f32 %v303_v49, %v300_v0  ;;  %v460_v62 = vrot.slane %v448_v24, 2  ;;  %v301_v49 = vmul.f32 %v295_v20, %v295_v20 }
  0xb7   : > { %v480_v30 = vmul.f32 %v405_v58, %v405_v58 }
  0xb8   : > { %v876_v5 = vadd.f32 1e-12, %v306_v53  ;;  %v462_v42 = vsel %vm192_vm1, %v460_v62, %v461_v6 }
  0xb9   : > { %v472_v47 = vsub.f32 %v448_v24, %v462_v42 }
  0xba   : > { %685 = vrsqrt.f32 %v876_v5  ;;  %v439_v1 = vpop.permute.xlu1 %438  ;;  %vm341_vm2 = vcmp.eq.f32.partialorder %v876_v5, inf  ;;  %v344_v62 = vand.u32 2147483648, %v876_v5  ;;  %vm343_vm3 = vcmp.eq.f32.partialorder %v876_v5, 0.0 }
  0xbb   : > { %v452_v14 = vadd.f32 %v439_v1, %v428_v60  ;;  %v437_v15 = vpop.permute.xlu0 %436  ;;  %v475_v55 = vmul.f32 0.33333334, %v472_v47 }
  0xbc   : > { %v451_v26 = vadd.f32 %v437_v15, %v427_v63 }
  0xbd   : > { %v466_v25 = vrot.slane %v452_v14, 2  ;;  %v481_v9 = vmul.f32 %v475_v55, %v475_v55 }
  0xbe   : > { %v464_v28 = vrot.slane %v451_v26, 2 }
  0xbf   : > { %v468_v7 = vsel %vm192_vm1, %v466_v25, %v467_v17 }
  0xc0   : > { %v686_v18 = vpop.eup %685  ;;  %v474_v19 = vsub.f32 %v452_v14, %v468_v7  ;;  %v465_v43 = vsel %vm192_vm1, %v463_v32, %v464_v28 }
  0xc1   : > { %v335_v22 = vmul.f32 %v686_v18, %v876_v5  ;;  %v473_v41 = vsub.f32 %v450_v27, %v465_v43 }
  0xc2   : > { %v477_v29 = vmul.f32 0.33333334, %v474_v19  ;;  %v214_v31 = vpop.permute.xlu1 %213 }
  0xc3   : > { %v221_v33 = vsub.f32 %v832_v39, %v214_v31  ;;  %v212_v35 = vpop.permute.xlu0 %211  ;;  %v336_v38 = vmul.f32 %v686_v18, %v335_v22  ;;  %v476_v4 = vmul.f32 0.33333334, %v473_v41 }
  0xc4   : > { %v483_v36 = vmul.f32 %v477_v29, %v477_v29  ;;  %v220_v37 = vsub.f32 %v834_v40, %v212_v35 }
  0xc5   : > { %v224_v3 = vmul.f32 0.33333334, %v221_v33  ;;  %v337_v50 = vmul.f32 0.5, %v336_v38  ;;  %v482_v63 = vmul.f32 %v476_v4, %v476_v4 }
  0xc6   : > { %v486_v44 = vadd.f32 %v483_v36, %v480_v30  ;;  %v223_v0 = vmul.f32 0.33333334, %v220_v37 }
  0xc7   : > { %v299_v45 = vmul.f32 %v224_v3, %v224_v3  ;;  %v338_v60 = vsub.f32 1.5, %v337_v50 }
  0xc8   : > { %v893_v48 = vadd.f32 1e-12, %v486_v44  ;;  %v298_v39 = vmul.f32 %v223_v0, %v223_v0 }
  0xc9   : > { %v305_v51 = vadd.f32 %v302_v46, %v299_v45  ;;  %v339_v14 = vmul.f32 %v686_v18, %v338_v60 }
  0xca   : > { %687 = vrsqrt.f32 %v893_v48  ;;  %v394_v40 = vpop.permute.xlu1 %393  ;;  %v304_v53 = vadd.f32 %v301_v49, %v298_v39  ;;  %vm521_vm4 = vcmp.eq.f32.partialorder %v893_v48, inf  ;;  %v524_v32 = vand.u32 2147483648, %v893_v48 }
  0xcb   : > { %v896_v52 = vadd.f32 1e-12, %v305_v51  ;;  %v401_v54 = vsub.f32 %v856_v57, %v394_v40  ;;  %v392_v2 = vpop.permute.xlu0 %391  ;;  %v340_v24 = vmul.f32 %v339_v14, %v876_v5  ;;  %vm523_vm5 = vcmp.eq.f32.partialorder %v893_v48, 0.0 }
  0xcc   : > { %v400_v56 = vsub.f32 %v860_v59, %v392_v2  ;;  %v901_v61 = vadd.f32 1e-12, %v304_v53 }
  0xcd   : > { %689 = vrsqrt.f32 %v896_v52  ;;  %v404_v1 = vmul.f32 0.33333334, %v401_v54  ;;  %v342_v19 = vsel %vm341_vm2, %v876_v5, %v340_v24  ;;  %vm329_vm6 = vcmp.eq.f32.partialorder %v896_v52, inf }
  0xce   : > { %v403_v12 = vmul.f32 0.33333334, %v400_v56  ;;  %691 = vrsqrt.f32 %v901_v61  ;;  %v345_v31 = vsel %vm343_vm3, %v344_v62, %v342_v19  ;;  %v332_v53 = vand.u32 2147483648, %v896_v52 }
  0xcf   : > { %v479_v15 = vmul.f32 %v404_v1, %v404_v1  ;;  %v537_v5 = vmul.f32 %v345_v31, %v345_v31  ;;  %vm331_vm7 = vcmp.eq.f32.partialorder %v896_v52, 0.0  ;;  %vm317_vm8 = vcmp.eq.f32.partialorder %v901_v61, inf }
  0xd0   : > { %v688_v13 = vpop.eup %687  ;;  %v478_v16 = vmul.f32 %v403_v12, %v403_v12  ;;  %v320_v60 = vand.u32 2147483648, %v901_v61  ;;  %vm319_vm11 = vcmp.eq.f32.partialorder %v901_v61, 0.0  ;;  %vm592_vm2 = vcmask 64512  }
  0xd1   : > { %v515_v57 = vmul.f32 %v688_v13, %v893_v48  ;;  %v485_v59 = vadd.f32 %v482_v63, %v479_v15 }
  0xd2   : > { %v484_v10 = vadd.f32 %v481_v9, %v478_v16  ;;  %v528_v16 = vmul.f32 2.0, %v345_v31 }
  0xd3   : > { %v690_v17 = vpop.eup %689  ;;  %v516_v23 = vmul.f32 %v688_v13, %v515_v57  ;;  %v907_v26 = vadd.f32 1e-12, %v485_v59 }
  0xd4   : > { %v323_v21 = vmul.f32 %v690_v17, %v896_v52  ;;  %v909_v58 = vadd.f32 1e-12, %v484_v10  ;;  %v692_v27 = vpop.eup %691 }
  0xd5   : > { %v517_v25 = vmul.f32 0.5, %v516_v23  ;;  %v311_v18 = vmul.f32 %v692_v27, %v901_v61  ;;  %693 = vrsqrt.f32 %v907_v26  ;;  %vm509_vm9 = vcmp.eq.f32.partialorder %v907_v26, inf }
  0xd6   : > { %v324_v7 = vmul.f32 %v690_v17, %v323_v21  ;;  %695 = vrsqrt.f32 %v909_v58  ;;  %v512_v56 = vand.u32 2147483648, %v907_v26  ;;  %vm511_vm10 = vcmp.eq.f32.partialorder %v907_v26, 0.0 }
  0xd7   : > { %v518_v8 = vsub.f32 1.5, %v517_v25  ;;  %v312_v6 = vmul.f32 %v692_v27, %v311_v18  ;;  %vm497_vm12 = vcmp.eq.f32.partialorder %v909_v58, inf  ;;  %v500_v9 = vand.u32 2147483648, %v909_v58 }
  0xd8   : > { %v325_v11 = vmul.f32 0.5, %v324_v7  ;;  %vm499_vm13 = vcmp.eq.f32.partialorder %v909_v58, 0.0 }
  0xd9   : > { %v519_v22 = vmul.f32 %v688_v13, %v518_v8  ;;  %v313_v30 = vmul.f32 0.5, %v312_v6 }
  0xda   : > { %v326_v28 = vsub.f32 1.5, %v325_v11 }
  0xdb   : > { %v520_v29 = vmul.f32 %v519_v22, %v893_v48  ;;  %v694_v33 = vpop.eup %693  ;;  %v314_v35 = vsub.f32 1.5, %v313_v30 }
  0xdc   : > { %v696_v20 = vpop.eup %695  ;;  %v327_v37 = vmul.f32 %v690_v17, %v326_v28  ;;  %v503_v38 = vmul.f32 %v694_v33, %v907_v26 }
  0xdd   : > { %v522_v34 = vsel %vm521_vm4, %v893_v48, %v520_v29  ;;  %v491_v43 = vmul.f32 %v696_v20, %v909_v58  ;;  %v315_v0 = vmul.f32 %v692_v27, %v314_v35 }
  0xde   : > { %v525_v36 = vsel %vm523_vm5, %v524_v32, %v522_v34  ;;  %v504_v3 = vmul.f32 %v694_v33, %v503_v38  ;;  %v328_v45 = vmul.f32 %v327_v37, %v896_v52 }
  0xdf   : > { %v540_v42 = vmul.f32 %v525_v36, %v525_v36  ;;  %v492_v47 = vmul.f32 %v696_v20, %v491_v43  ;;  %v316_v49 = vmul.f32 %v315_v0, %v901_v61  ;;  %v531_v21 = vmul.f32 %v528_v16, %v525_v36 }
  0xe0   : > { %v505_v46 = vmul.f32 0.5, %v504_v3  ;;  %v330_v50 = vsel %vm329_vm6, %v896_v52, %v328_v45 }
  0xe1   : > { %v543_v44 = vadd.f32 %v540_v42, %v537_v5  ;;  %v493_v48 = vmul.f32 0.5, %v492_v47  ;;  %v333_v55 = vsel %vm331_vm7, %v332_v53, %v330_v50  ;;  %v318_v4 = vsel %vm317_vm8, %v901_v61, %v316_v49 }
  0xe2   : > { %v506_v41 = vsub.f32 1.5, %v505_v46  ;;  %v536_v14 = vmul.f32 %v333_v55, %v333_v55  ;;  %v321_v57 = vsel %vm319_vm11, %v320_v60, %v318_v4  ;;  %v527_v31 = vmul.f32 2.0, %v333_v55 }
  0xe3   : > { %v546_v39 = vadd.f32 0.0026, %v543_v44  ;;  %v494_v40 = vsub.f32 1.5, %v493_v48  ;;  %v535_v24 = vmul.f32 %v321_v57, %v321_v57 }
  0xe4   : > { %v507_v51 = vmul.f32 %v694_v33, %v506_v41  ;;  %v526_v33 = vmul.f32 2.0, %v321_v57 }
  0xe5   : > { %697 = vrcp.f32 %v546_v39  ;;  %v495_v2 = vmul.f32 %v696_v20, %v494_v40  ;;  %v588_v61 = vand.u32 2147483648, %v546_v39  ;;  %v586_v27 = vand.u32 2147483647, %v546_v39 }
  0xe6   : > { %v508_v54 = vmul.f32 %v507_v51, %v907_v26  ;;  %vm582_vm15 = vweird.f32 %v546_v39 }
  0xe7   : > { %v496_v52 = vmul.f32 %v495_v2, %v909_v58  ;;  %v589_v11 = vor.u32 1.1754944e-38, %v588_v61  ;;  %vm587_vm1 = vcmp.eq.f32.partialorder %v586_v27, 8.507059e+37 }
  0xe8   : > { %v510_v1 = vsel %vm509_vm9, %v907_v26, %v508_v54 }
  0xe9   : > { %v513_v13 = vsel %vm511_vm10, %v512_v56, %v510_v1  ;;  %v498_v17 = vsel %vm497_vm12, %v909_v58, %v496_v52  ;;  %v534_v58 = vadd.f32 0.0026, %v531_v21 }
  0xea   : > { %v539_v15 = vmul.f32 %v513_v13, %v513_v13  ;;  %v501_v10 = vsel %vm499_vm13, %v500_v9, %v498_v17  ;;  %v530_v20 = vmul.f32 %v527_v31, %v513_v13 }
  0xeb   : > { %v698_v12 = vpop.eup %697  ;;  %v538_v25 = vmul.f32 %v501_v10, %v501_v10  ;;  %v529_v42 = vmul.f32 %v526_v33, %v501_v10 }
  0xec   : > { %v578_v63 = vmul.f32 %v698_v12, %v546_v39  ;;  %v542_v59 = vadd.f32 %v539_v15, %v536_v14  ;;  %vm583_vm14 = vweird.f32 %v698_v12  ;;  %v533_v45 = vadd.f32 0.0026, %v530_v20 }
  0xed   : > { %v541_v8 = vadd.f32 %v538_v25, %v535_v24  ;;  %vm584_vm0 = vmor %vm582_vm15, %vm583_vm14  ;;  %v532_v49 = vadd.f32 0.0026, %v529_v42 }
  0xee   : > { %v579_v23 = vsub.f32 1.0, %v578_v63  ;;  %v545_v7 = vadd.f32 0.0026, %v542_v59 }
  0xef   : > { %v544_v19 = vadd.f32 0.0026, %v541_v8 }
  0xf0   : > { %v580_v26 = vmul.f32 %v698_v12, %v579_v23  ;;  %699 = vrcp.f32 %v545_v7  ;;  %v573_v34 = vand.u32 2147483648, %v545_v7  ;;  %v571_v37 = vand.u32 2147483647, %v545_v7 }
  0xf1   : > { %701 = vrcp.f32 %v544_v19  ;;  %vm567_vm4 = vweird.f32 %v545_v7  ;;  %v558_v43 = vand.u32 2147483648, %v544_v19  ;;  %v556_v0 = vand.u32 2147483647, %v544_v19 }
  0xf2   : > { %v581_v18 = vadd.f32 %v698_v12, %v580_v26  ;;  %v574_v3 = vor.u32 1.1754944e-38, %v573_v34  ;;  %vm572_vm7 = vcmp.eq.f32.partialorder %v571_v37, 8.507059e+37  ;;  %vm552_vm8 = vweird.f32 %v544_v19 }
  0xf3   : > { %v559_v48 = vor.u32 1.1754944e-38, %v558_v43  ;;  %vm557_vm10 = vcmp.eq.f32.partialorder %v556_v0, 8.507059e+37 }
  0xf4   : > { %v585_v22 = vsel %vm584_vm0, %v698_v12, %v581_v18 }
  0xf5   : > { %v590_v6 = vsel %vm587_vm1, %v589_v11, %v585_v22 }
  0xf6   : > { %v591_v62 = vmul.f32 %v590_v6, %v534_v58  ;;  %v700_v28 = vpop.eup %699 }
  0xf7   : > { %v563_v29 = vmul.f32 %v700_v28, %v545_v7  ;;  %v702_v30 = vpop.eup %701  ;;  %vm568_vm3 = vweird.f32 %v700_v28 }
  0xf8   : > { %595 = vst.msk [vmem:[%s949_s23 + $0x10] sm:$0xff] %vm592_vm2, %v591_v62  ;;  %v548_v35 = vmul.f32 %v702_v30, %v544_v19  ;;  %vm569_vm5 = vmor %vm567_vm4, %vm568_vm3  ;;  %vm553_vm6 = vweird.f32 %v702_v30 }
  0xf9   : > { %v564_v32 = vsub.f32 1.0, %v563_v29  ;;  %vm554_vm9 = vmor %vm552_vm8, %vm553_vm6 }
  0xfa   : > { %v549_v38 = vsub.f32 1.0, %v548_v35 }
  0xfb   : > { %v565_v36 = vmul.f32 %v700_v28, %v564_v32 }
  0xfc   : > { %v550_v44 = vmul.f32 %v702_v30, %v549_v38 }
  0xfd   : > { %v566_v5 = vadd.f32 %v700_v28, %v565_v36 }
  0xfe   : > { %v551_v39 = vadd.f32 %v702_v30, %v550_v44 }
  0xff   : > { %v570_v46 = vsel %vm569_vm5, %v700_v28, %v566_v5 }
 0x100   : > { %v575_v47 = vsel %vm572_vm7, %v574_v3, %v570_v46  ;;  %v555_v50 = vsel %vm554_vm9, %v702_v30, %v551_v39 }
 0x101   : > { %v576_v41 = vmul.f32 %v575_v47, %v533_v45  ;;  %v560_v51 = vsel %vm557_vm10, %v559_v48, %v555_v50 }
 0x102   : > { %v561_v40 = vmul.f32 %v560_v51, %v532_v49 }
 0x103   : > { %594 = vst.msk [vmem:[%s949_s23 + $0x8] sm:$0xff] %vm592_vm2, %v576_v41 }
 0x104   : > { %593 = vst.msk [vmem:[%s949_s23] sm:$0xff] %vm592_vm2, %v561_v40 }
 0x105 PF: > { %s12_s9 = sadd.s32 1, %s709_s9  }
 0x106   : > { %p9_p4 = scmp.ge.s32.totalorder %s12_s9, 10  }
 0x108   :  { %11 = sbr.rel (!%p9_p4) target bundleno = 1 (0x1), region = 61 }

// kernel: _forward_impl.39
= control target key start
LH: loop header
LB: loop body
LE: loop exit
PB: predicated region body
PF: predicated region fallthrough
CT: control target
= control target key end

     0   :  { %s624_s9 = smov 0   ;;  %s776_s0 = inlined_call_operand.vmem [shape: f32[8,3,6,6], index: 0, kind: input, shape index: {}]   ;;  %s777_s1 = inlined_call_operand.vmem [shape: f32[8,3,6,6], index: 1, kind: input, shape index: {}]   ;;  %s778_s2 = inlined_call_operand.vmem [shape: f32[8,3,4,4], index: 2, kind: output, shape index: {}]  }
   0x1 LB: > { %s559_s10 = sadd.s32 4294967295, %s605_s9   ;;  %p563_p0 = scmp.ge.s32.totalorder %s605_s9, 1  ;;  %s605_s9 = sphi %s624_s9, %s12_s9  }
   0x2   : > { %p122_p1 = scmp.lt.s32.totalorder %s605_s9, 9 }
   0x4   : > { %p123_p2 = pnand %p563_p0, %p122_p1 }
   0x5   : > { %p149_p3 = scmp.lt.s32.totalorder (!%p123_p2), %s559_s10, 7  ;;  %s607_s18 = smov (!%p123_p2), 127  }
   0x6   : > { %126 = sbr.rel (%p123_p2) target bundleno = 229 (0xe5), region = 28  ;;  %s608_s19 = smov (!%p123_p2), 126  }
   0xb   : > { %s780_s10 = smov (!%p149_p3, %s559_s10), 7  ;;  %vm488_vm4 = vcmask 27648  }
   0xc   : > { %s569_s11 = smul.u32 24, %s780_s10 }
   0xd   : > { %s570_s20 = smul.u32 12, %s780_s10 }
   0xe   : > { %s158_s14 = scalar_lea.vmem %s777_s1, %s569_s11  ;;  %s153_s17 = scalar_lea.vmem %s776_s0, %s569_s11 }
   0xf   : > { %v641_v0 = vld [vmem:[%s158_s14 + $0x8] sm:$0x3f]  ;;  %v166_v1 = vld [vmem:[%s153_s17 + $0x10] sm:$0x3f]  ;;  %v643_v2 = vld [vmem:[%s153_s17] sm:$0x3f]  ;;  %s753_s23 = scalar_lea.vmem %s778_s2, %s570_s20 }
  0x10   : > { %337 = vrot.lane.b32.xlu2 %v641_v0, %s607_s18  ;;  %210 = vrot.lane.b32.xlu1 %v166_v1, %s607_s18  ;;  %v295_v3 = vld [vmem:[%s158_s14 + $0x10] sm:$0x3f]  ;;  %v647_v4 = vld [vmem:[%s158_s14] sm:$0x3f]  ;;  %v172_v6 = vrot.slane %v166_v1, 1  ;;  %v170_v8 = vrot.slane %v643_v2, 1 }
  0x11   : > { %206 = vrot.lane.b32.xlu0 %v643_v2, %s607_s18  ;;  %v649_v5 = vld [vmem:[%s153_s17 + $0x8] sm:$0x3f]  ;;  %v181_v10 = vrot.slane %v166_v1, 2  ;;  %v179_v14 = vrot.slane %v643_v2, 2  ;;  %v301_v17 = vrot.slane %v295_v3, 1  ;;  %v300_v18 = vrot.slane %v641_v0, 1 }
  0x12   : > { %v171_v7 = vrot.slane %v649_v5, 1  ;;  %v178_v9 = vadd.f32 %v172_v6, %v166_v1  ;;  %v180_v12 = vrot.slane %v649_v5, 2  ;;  %v176_v13 = vadd.f32 %v170_v8, %v643_v2 }
  0x13   : > { %v299_v20 = vrot.slane %v647_v4, 1  ;;  %v307_v21 = vadd.f32 %v301_v17, %v295_v3  ;;  %v310_v22 = vrot.slane %v295_v3, 2  ;;  %v306_v23 = vadd.f32 %v300_v18, %v641_v0 }
  0x14   : > { %v177_v11 = vadd.f32 %v171_v7, %v649_v5  ;;  %v187_v15 = vadd.f32 %v181_v10, %v178_v9  ;;  %v672_v19 = vadd.f32 %v179_v14, %v176_v13  ;;  %v309_v24 = vrot.slane %v641_v0, 2 }
  0x15   : > { %v305_v25 = vadd.f32 %v299_v20, %v647_v4  ;;  %v308_v26 = vrot.slane %v647_v4, 2  ;;  %v316_v27 = vadd.f32 %v310_v22, %v307_v21 }
  0x16   : > { %v669_v16 = vadd.f32 %v180_v12, %v177_v11  ;;  %v684_v28 = vadd.f32 %v309_v24, %v306_v23 }
  0x17   : > { %v686_v29 = vadd.f32 %v308_v26, %v305_v25 }
  0x18   : > { %339 = vrot.lane.b32.xlu2 %v295_v3, %s607_s18  ;;  %335 = vrot.lane.b32.xlu1 %v647_v4, %s607_s18 }
  0x19   : > { %208 = vrot.lane.b32.xlu0 %v649_v5, %s607_s18 }
  0x20   : > { %222 = vrot.lane.b32.xlu2 %v166_v1, %s608_s19  ;;  %220 = vrot.lane.b32.xlu1 %v649_v5, %s608_s19 }
  0x21   : > { %218 = vrot.lane.b32.xlu0 %v643_v2, %s608_s19 }
  0x28   : > { %351 = vrot.lane.b32.xlu2 %v295_v3, %s608_s19  ;;  %349 = vrot.lane.b32.xlu1 %v641_v0, %s608_s19 }
  0x29   : > { %347 = vrot.lane.b32.xlu0 %v647_v4, %s608_s19 }
  0x30   : > { %195 = vrot.lane.b32.xlu2 %v187_v15, %s608_s19  ;;  %193 = vrot.lane.b32.xlu1 %v669_v16, %s608_s19 }
  0x31   : > { %191 = vrot.lane.b32.xlu0 %v672_v19, %s608_s19 }
  0x38   : > { %324 = vrot.lane.b32.xlu2 %v316_v27, %s608_s19  ;;  %322 = vrot.lane.b32.xlu1 %v684_v28, %s608_s19 }
  0x39   : > { %320 = vrot.lane.b32.xlu0 %v686_v29, %s608_s19 }
  0x6a   : > { %v338_v30 = vpop.permute.xlu2 %337 }
  0x6b   : > { %v345_v14 = vadd.f32 %v338_v30, %v641_v0 }
  0x72   : > { %v340_v31 = vpop.permute.xlu2 %339 }
  0x73   : > { %v346_v37 = vadd.f32 %v340_v31, %v295_v3 }
  0x7a   : > { %v223_v32 = vpop.permute.xlu2 %222 }
  0x82   : > { %v352_v33 = vpop.permute.xlu2 %351  ;;  %v211_v34 = vpop.permute.xlu1 %210 }
  0x83   : > { %v217_v35 = vadd.f32 %v211_v34, %v166_v1  ;;  %v207_v36 = vpop.permute.xlu0 %206  ;;  %v358_v40 = vadd.f32 %v352_v33, %v346_v37 }
  0x84   : > { %v215_v60 = vadd.f32 %v207_v36, %v643_v2 }
  0x85   : > { %v229_v38 = vadd.f32 %v223_v32, %v217_v35  ;;  %v364_v47 = vrot.slane %v358_v40, 2 }
  0x87   : > { %v235_v39 = vrot.slane %v229_v38, 2  ;;  %v370_v51 = vsub.f32 %v358_v40, %v364_v47 }
  0x89   : > { %v241_v41 = vsub.f32 %v229_v38, %v235_v39  ;;  %v373_v58 = vmul.f32 0.33333334, %v370_v51 }
  0x8a   : > { %v336_v42 = vpop.permute.xlu1 %335  ;;  %v196_v43 = vpop.permute.xlu2 %195 }
  0x8b   : > { %v244_v44 = vmul.f32 0.33333334, %v241_v41  ;;  %v202_v45 = vsub.f32 %v187_v15, %v196_v43  ;;  %v209_v46 = vpop.permute.xlu0 %208  ;;  %v379_v63 = vmul.f32 %v373_v58, %v373_v58  ;;  %v344_v2 = vadd.f32 %v336_v42, %v647_v4 }
  0x8c   : > { %v216_v59 = vadd.f32 %v209_v46, %v649_v5 }
  0x8d   : > { %v205_v48 = vmul.f32 0.33333334, %v202_v45  ;;  %v250_v49 = vmul.f32 %v244_v44, %v244_v44 }
  0x8f   : > { %v247_v50 = vmul.f32 %v205_v48, %v205_v48 }
  0x91   : > { %v253_v52 = vadd.f32 %v250_v49, %v247_v50 }
  0x92   : > { %v325_v53 = vpop.permute.xlu2 %324  ;;  %v221_v54 = vpop.permute.xlu1 %220 }
  0x93   : > { %v693_v55 = vadd.f32 1e-12, %v253_v52  ;;  %v331_v56 = vsub.f32 %v316_v27, %v325_v53  ;;  %v219_v57 = vpop.permute.xlu0 %218  ;;  %v228_v62 = vadd.f32 %v221_v54, %v216_v59 }
  0x94   : > { %v227_v3 = vadd.f32 %v219_v57, %v215_v60 }
  0x95   : > { %581 = vrsqrt.f32 %v693_v55  ;;  %v334_v61 = vmul.f32 0.33333334, %v331_v56  ;;  %v234_v9 = vrot.slane %v228_v62, 2  ;;  %vm288_vm0 = vcmp.eq.f32.partialorder %v693_v55, inf }
  0x96   : > { %v233_v13 = vrot.slane %v227_v3, 2  ;;  %vm290_vm1 = vcmp.eq.f32.partialorder %v693_v55, 0.0  ;;  %v291_v57 = vand.u32 2147483648, %v693_v55 }
  0x97   : > { %v376_v1 = vmul.f32 %v334_v61, %v334_v61  ;;  %v240_v15 = vsub.f32 %v228_v62, %v234_v9 }
  0x98   : > { %v239_v18 = vsub.f32 %v227_v3, %v233_v13 }
  0x99   : > { %v382_v6 = vadd.f32 %v379_v63, %v376_v1  ;;  %v243_v24 = vmul.f32 0.33333334, %v240_v15 }
  0x9a   : > { %v350_v7 = vpop.permute.xlu1 %349  ;;  %v242_v31 = vmul.f32 0.33333334, %v239_v18 }
  0x9b   : > { %v582_v8 = vpop.eup %581  ;;  %v348_v10 = vpop.permute.xlu0 %347  ;;  %v699_v12 = vadd.f32 1e-12, %v382_v6  ;;  %v357_v20 = vadd.f32 %v350_v7, %v345_v14  ;;  %v249_v37 = vmul.f32 %v243_v24, %v243_v24 }
  0x9c   : > { %v282_v11 = vmul.f32 %v582_v8, %v693_v55  ;;  %v356_v21 = vadd.f32 %v348_v10, %v344_v2  ;;  %v248_v39 = vmul.f32 %v242_v31, %v242_v31 }
  0x9d   : > { %583 = vrsqrt.f32 %v699_v12  ;;  %v363_v32 = vrot.slane %v357_v20, 2  ;;  %vm417_vm2 = vcmp.eq.f32.partialorder %v699_v12, inf  ;;  %vm419_vm3 = vcmp.eq.f32.partialorder %v699_v12, 0.0 }
  0x9e   : > { %v283_v5 = vmul.f32 %v582_v8, %v282_v11  ;;  %v362_v4 = vrot.slane %v356_v21, 2 }
  0x9f   : > { %v369_v40 = vsub.f32 %v357_v20, %v363_v32 }
  0xa0   : > { %v284_v17 = vmul.f32 0.5, %v283_v5  ;;  %v368_v43 = vsub.f32 %v356_v21, %v362_v4 }
  0xa1   : > { %v372_v50 = vmul.f32 0.33333334, %v369_v40 }
  0xa2   : > { %v285_v22 = vsub.f32 1.5, %v284_v17  ;;  %v194_v23 = vpop.permute.xlu1 %193  ;;  %v371_v56 = vmul.f32 0.33333334, %v368_v43 }
  0xa3   : > { %v201_v25 = vsub.f32 %v669_v16, %v194_v23  ;;  %v192_v26 = vpop.permute.xlu0 %191  ;;  %v584_v27 = vpop.eup %583  ;;  %v378_v61 = vmul.f32 %v372_v50, %v372_v50 }
  0xa4   : > { %v200_v0 = vsub.f32 %v672_v19, %v192_v26  ;;  %v286_v30 = vmul.f32 %v582_v8, %v285_v22  ;;  %v411_v33 = vmul.f32 %v584_v27, %v699_v12  ;;  %v377_v63 = vmul.f32 %v371_v56, %v371_v56 }
  0xa5   : > { %v204_v34 = vmul.f32 0.33333334, %v201_v25 }
  0xa6   : > { %v203_v35 = vmul.f32 0.33333334, %v200_v0  ;;  %v412_v36 = vmul.f32 %v584_v27, %v411_v33  ;;  %v287_v16 = vmul.f32 %v286_v30, %v693_v55 }
  0xa7   : > { %v246_v38 = vmul.f32 %v204_v34, %v204_v34 }
  0xa8   : > { %v245_v41 = vmul.f32 %v203_v35, %v203_v35  ;;  %v413_v42 = vmul.f32 0.5, %v412_v36  ;;  %v289_v53 = vsel %vm288_vm0, %v693_v55, %v287_v16 }
  0xa9   : > { %v252_v44 = vadd.f32 %v249_v37, %v246_v38  ;;  %v292_v60 = vsel %vm290_vm1, %v291_v57, %v289_v53 }
  0xaa   : > { %v251_v45 = vadd.f32 %v248_v39, %v245_v41  ;;  %v323_v46 = vpop.permute.xlu1 %322  ;;  %v414_v19 = vsub.f32 1.5, %v413_v42  ;;  %v433_v7 = vmul.f32 %v292_v60, %v292_v60  ;;  %v424_v30 = vmul.f32 2.0, %v292_v60 }
  0xab   : > { %v708_v47 = vadd.f32 1e-12, %v252_v44  ;;  %v330_v48 = vsub.f32 %v684_v28, %v323_v46  ;;  %v321_v49 = vpop.permute.xlu0 %320 }
  0xac   : > { %v712_v51 = vadd.f32 1e-12, %v251_v45  ;;  %v329_v52 = vsub.f32 %v686_v29, %v321_v49  ;;  %v415_v54 = vmul.f32 %v584_v27, %v414_v19  ;;  %v420_v29 = vand.u32 2147483648, %v699_v12 }
  0xad   : > { %585 = vrsqrt.f32 %v708_v47  ;;  %v333_v58 = vmul.f32 0.33333334, %v330_v48  ;;  %vm276_vm5 = vcmp.eq.f32.partialorder %v708_v47, inf  ;;  %vm278_vm6 = vcmp.eq.f32.partialorder %v708_v47, 0.0 }
  0xae   : > { %587 = vrsqrt.f32 %v712_v51  ;;  %v416_v28 = vmul.f32 %v415_v54, %v699_v12  ;;  %v332_v59 = vmul.f32 0.33333334, %v329_v52  ;;  %v279_v38 = vand.u32 2147483648, %v708_v47 }
  0xaf   : > { %v375_v1 = vmul.f32 %v333_v58, %v333_v58  ;;  %vm264_vm8 = vcmp.eq.f32.partialorder %v712_v51, inf  ;;  %vm266_vm9 = vcmp.eq.f32.partialorder %v712_v51, 0.0  ;;  %v267_v44 = vand.u32 2147483648, %v712_v51 }
  0xb0   : > { %v418_v62 = vsel %vm417_vm2, %v699_v12, %v416_v28  ;;  %v374_v3 = vmul.f32 %v332_v59, %v332_v59 }
  0xb1   : > { %v421_v55 = vsel %vm419_vm3, %v420_v29, %v418_v62  ;;  %v381_v9 = vadd.f32 %v378_v61, %v375_v1 }
  0xb2   : > { %v436_v8 = vmul.f32 %v421_v55, %v421_v55  ;;  %v380_v10 = vadd.f32 %v377_v63, %v374_v3  ;;  %v427_v35 = vmul.f32 %v424_v30, %v421_v55 }
  0xb3   : > { %v586_v6 = vpop.eup %585  ;;  %v727_v2 = vadd.f32 1e-12, %v381_v9 }
  0xb4   : > { %v588_v11 = vpop.eup %587  ;;  %v270_v13 = vmul.f32 %v586_v6, %v708_v47  ;;  %v439_v14 = vadd.f32 %v436_v8, %v433_v7  ;;  %v729_v17 = vadd.f32 1e-12, %v380_v10  ;;  %v430_v19 = vadd.f32 0.0026, %v427_v35 }
  0xb5   : > { %v258_v5 = vmul.f32 %v588_v11, %v712_v51  ;;  %589 = vrsqrt.f32 %v727_v2  ;;  %vm405_vm13 = vcmp.eq.f32.partialorder %v727_v2, inf  ;;  %v408_v57 = vand.u32 2147483648, %v727_v2 }
  0xb6   : > { %v271_v15 = vmul.f32 %v586_v6, %v270_v13  ;;  %v442_v12 = vadd.f32 0.0026, %v439_v14  ;;  %591 = vrsqrt.f32 %v729_v17  ;;  %vm393_vm14 = vcmp.eq.f32.partialorder %v729_v17, inf }
  0xb7   : > { %v259_v18 = vmul.f32 %v588_v11, %v258_v5  ;;  %v396_v62 = vand.u32 2147483648, %v729_v17  ;;  %vm407_vm15 = vcmp.eq.f32.partialorder %v727_v2, 0.0  ;;  %vm395_vm0 = vcmp.eq.f32.partialorder %v729_v17, 0.0 }
  0xb8   : > { %v272_v20 = vmul.f32 0.5, %v271_v15  ;;  %593 = vrcp.f32 %v442_v12  ;;  %v484_v37 = vand.u32 2147483648, %v442_v12  ;;  %v482_v43 = vand.u32 2147483647, %v442_v12 }
  0xb9   : > { %v260_v21 = vmul.f32 0.5, %v259_v18  ;;  %vm478_vm10 = vweird.f32 %v442_v12 }
  0xba   : > { %v273_v22 = vsub.f32 1.5, %v272_v20  ;;  %v485_v49 = vor.u32 1.1754944e-38, %v484_v37  ;;  %vm483_vm12 = vcmp.eq.f32.partialorder %v482_v43, 8.507059e+37 }
  0xbb   : > { %v261_v23 = vsub.f32 1.5, %v260_v21  ;;  %v590_v24 = vpop.eup %589 }
  0xbc   : > { %v592_v25 = vpop.eup %591  ;;  %v399_v26 = vmul.f32 %v590_v24, %v727_v2  ;;  %v274_v31 = vmul.f32 %v586_v6, %v273_v22 }
  0xbd   : > { %v262_v32 = vmul.f32 %v588_v11, %v261_v23  ;;  %v387_v0 = vmul.f32 %v592_v25, %v729_v17 }
  0xbe   : > { %v594_v27 = vpop.eup %593  ;;  %v400_v4 = vmul.f32 %v590_v24, %v399_v26  ;;  %v275_v39 = vmul.f32 %v274_v31, %v708_v47 }
  0xbf   : > { %v474_v33 = vmul.f32 %v594_v27, %v442_v12  ;;  %v388_v34 = vmul.f32 %v592_v25, %v387_v0  ;;  %v263_v40 = vmul.f32 %v262_v32, %v712_v51  ;;  %vm479_vm7 = vweird.f32 %v594_v27 }
  0xc0   : > { %v401_v41 = vmul.f32 0.5, %v400_v4  ;;  %vm480_vm11 = vmor %vm478_vm10, %vm479_vm7  ;;  %v277_v50 = vsel %vm276_vm5, %v708_v47, %v275_v39 }
  0xc1   : > { %v475_v36 = vsub.f32 1.0, %v474_v33  ;;  %v389_v16 = vmul.f32 0.5, %v388_v34  ;;  %v265_v52 = vsel %vm264_vm8, %v712_v51, %v263_v40  ;;  %v280_v29 = vsel %vm278_vm6, %v279_v38, %v277_v50 }
  0xc2   : > { %v402_v45 = vsub.f32 1.5, %v401_v41  ;;  %v268_v61 = vsel %vm266_vm9, %v267_v44, %v265_v52  ;;  %v432_v6 = vmul.f32 %v280_v29, %v280_v29 }
  0xc3   : > { %v476_v42 = vmul.f32 %v594_v27, %v475_v36  ;;  %v390_v46 = vsub.f32 1.5, %v389_v16  ;;  %v431_v47 = vmul.f32 %v268_v61, %v268_v61  ;;  %v422_v12 = vmul.f32 2.0, %v268_v61 }
  0xc4   : > { %v403_v53 = vmul.f32 %v590_v24, %v402_v45 }
  0xc5   : > { %v477_v48 = vadd.f32 %v594_v27, %v476_v42  ;;  %v391_v54 = vmul.f32 %v592_v25, %v390_v46 }
  0xc6   : > { %v404_v58 = vmul.f32 %v403_v53, %v727_v2 }
  0xc7   : > { %v481_v56 = vsel %vm480_vm11, %v594_v27, %v477_v48  ;;  %v392_v59 = vmul.f32 %v391_v54, %v729_v17 }
  0xc8   : > { %v486_v28 = vsel %vm483_vm12, %v485_v49, %v481_v56  ;;  %v406_v63 = vsel %vm405_vm13, %v727_v2, %v404_v58  ;;  %v423_v2 = vmul.f32 2.0, %v280_v29 }
  0xc9   : > { %v487_v60 = vmul.f32 %v486_v28, %v430_v19  ;;  %v394_v1 = vsel %vm393_vm14, %v729_v17, %v392_v59  ;;  %v409_v3 = vsel %vm407_vm15, %v408_v57, %v406_v63 }
  0xca   : > { %v397_v55 = vsel %vm395_vm0, %v396_v62, %v394_v1  ;;  %v435_v7 = vmul.f32 %v409_v3, %v409_v3  ;;  %v426_v18 = vmul.f32 %v423_v2, %v409_v3 }
  0xcb   : > { %491 = vst.msk [vmem:[%s753_s23 + $0x8] sm:$0xf] %vm488_vm4, %v487_v60  ;;  %v434_v8 = vmul.f32 %v397_v55, %v397_v55  ;;  %v425_v25 = vmul.f32 %v422_v12, %v397_v55 }
  0xcc   : > { %v438_v51 = vadd.f32 %v435_v7, %v432_v6  ;;  %v429_v30 = vadd.f32 0.0026, %v426_v18 }
  0xcd   : > { %v437_v9 = vadd.f32 %v434_v8, %v431_v47  ;;  %v428_v35 = vadd.f32 0.0026, %v425_v25 }
  0xce   : > { %v441_v10 = vadd.f32 0.0026, %v438_v51 }
  0xcf   : > { %v440_v11 = vadd.f32 0.0026, %v437_v9 }
  0xd0   : > { %595 = vrcp.f32 %v441_v10  ;;  %v469_v20 = vand.u32 2147483648, %v441_v10  ;;  %v467_v23 = vand.u32 2147483647, %v441_v10  ;;  %vm463_vm3 = vweird.f32 %v441_v10 }
  0xd1   : > { %597 = vrcp.f32 %v440_v11  ;;  %v454_v24 = vand.u32 2147483648, %v440_v11  ;;  %v452_v27 = vand.u32 2147483647, %v440_v11  ;;  %vm448_vm6 = vweird.f32 %v440_v11 }
  0xd2   : > { %v470_v32 = vor.u32 1.1754944e-38, %v469_v20  ;;  %vm468_vm7 = vcmp.eq.f32.partialorder %v467_v23, 8.507059e+37 }
  0xd3   : > { %v455_v4 = vor.u32 1.1754944e-38, %v454_v24  ;;  %vm453_vm9 = vcmp.eq.f32.partialorder %v452_v27, 8.507059e+37 }
  0xd6   : > { %v596_v13 = vpop.eup %595 }
  0xd7   : > { %v598_v14 = vpop.eup %597  ;;  %v459_v5 = vmul.f32 %v596_v13, %v441_v10  ;;  %vm464_vm1 = vweird.f32 %v596_v13 }
  0xd8   : > { %v444_v15 = vmul.f32 %v598_v14, %v440_v11  ;;  %vm449_vm2 = vweird.f32 %v598_v14  ;;  %vm465_vm5 = vmor %vm463_vm3, %vm464_vm1 }
  0xd9   : > { %v460_v17 = vsub.f32 1.0, %v459_v5  ;;  %vm450_vm8 = vmor %vm448_vm6, %vm449_vm2 }
  0xda   : > { %v445_v21 = vsub.f32 1.0, %v444_v15 }
  0xdb   : > { %v461_v22 = vmul.f32 %v596_v13, %v460_v17 }
  0xdc   : > { %v446_v26 = vmul.f32 %v598_v14, %v445_v21 }
  0xdd   : > { %v462_v31 = vadd.f32 %v596_v13, %v461_v22 }
  0xde   : > { %v447_v0 = vadd.f32 %v598_v14, %v446_v26 }
  0xdf   : > { %v466_v33 = vsel %vm465_vm5, %v596_v13, %v462_v31 }
  0xe0   : > { %v471_v34 = vsel %vm468_vm7, %v470_v32, %v466_v33  ;;  %v451_v36 = vsel %vm450_vm8, %v598_v14, %v447_v0 }
  0xe1   : > { %v472_v37 = vmul.f32 %v471_v34, %v429_v30  ;;  %v456_v38 = vsel %vm453_vm9, %v455_v4, %v451_v36 }
  0xe2   : > { %v457_v39 = vmul.f32 %v456_v38, %v428_v35 }
  0xe3   : > { %490 = vst.msk [vmem:[%s753_s23 + $0x4] sm:$0xf] %vm488_vm4, %v472_v37 }
  0xe4   : > { %489 = vst.msk [vmem:[%s753_s23] sm:$0xf] %vm488_vm4, %v457_v39 }
  0xe5 PF: > { %s12_s9 = sadd.s32 1, %s605_s9  }
  0xe6   : > { %p9_p4 = scmp.ge.s32.totalorder %s12_s9, 10  }
  0xe8   :  { %11 = sbr.rel (!%p9_p4) target bundleno = 1 (0x1), region = 61 }

// kernel: _forward_impl.40
= control target key start
LH: loop header
LB: loop body
LE: loop exit
PB: predicated region body
PF: predicated region fallthrough
CT: control target
= control target key end

     0   :  { %s254_s6 = smov 0   ;;  %s283_s0 = inlined_call_operand.vmem [shape: f32[8,3,16,16], index: 0, kind: input, shape index: {}]   ;;  %s284_s1 = inlined_call_operand.vmem [shape: f32[8,1,16,16], index: 1, kind: output, shape index: {}]  }
   0x1 LB: > { %s212_s7 = sadd.s32 4294967295, %s241_s6   ;;  %p216_p0 = scmp.ge.s32.totalorder %s241_s6, 1  ;;  %s241_s6 = sphi %s254_s6, %s11_s6  }
   0x2   : > { %p87_p1 = scmp.lt.s32.totalorder %s241_s6, 9 }
   0x4   : > { %p88_p2 = pnand %p216_p0, %p87_p1 }
   0x5   : > { %p107_p3 = scmp.lt.s32.totalorder (!%p88_p2), %s212_s7, 7 }
   0x6   : > { %91 = sbr.rel (%p88_p2) target bundleno = 41 (0x29), region = 24 }
   0xb   : > { %v243_v0 = vmov 3.0   ;;  %s286_s7 = smov (!%p107_p3, %s212_s7), 7  ;;  %vm142_vm1 = vcmask 130048  }
   0xc   : > { %233 = vrcp.f32 %v243_v0  ;;  %s223_s8 = smul.u32 48, %s286_s7  ;;  %s222_s12 = sshll.u32 %s286_s7, 4 }
   0xd   : > { %s116_s15 = scalar_lea.vmem %s284_s1, %s222_s12 }
   0xe   : > { %s111_s11 = scalar_lea.vmem %s283_s0, %s223_s8 }
   0xf   : > { %v117_v5 = vld [vmem:[%s111_s11] sm:$0xff]  ;;  %v119_v6 = vld [vmem:[%s111_s11 + $0x10] sm:$0xff]  ;;  %v118_v9 = vld [vmem:[%s111_s11 + $0x8] sm:$0xff] }
  0x10   : > { %v121_v7 = vld [vmem:[%s111_s11 + $0x20] sm:$0xff]  ;;  %v120_v10 = vld [vmem:[%s111_s11 + $0x18] sm:$0xff]  ;;  %v122_v11 = vld [vmem:[%s111_s11 + $0x28] sm:$0xff] }
  0x12   : > { %v234_v1 = vpop.eup %233 }
  0x13   : > { %v124_v2 = vmul.f32 3.0, %v234_v1  ;;  %vm128_vm0 = vweird.f32 %v234_v1 }
  0x15   : > { %v125_v3 = vsub.f32 1.0, %v124_v2 }
  0x17   : > { %v126_v4 = vmul.f32 %v234_v1, %v125_v3 }
  0x19   : > { %v127_v8 = vadd.f32 %v234_v1, %v126_v4 }
  0x1b   : > { %v129_v12 = vsel %vm128_vm0, %v234_v1, %v127_v8 }
  0x1c   : > { %v130_v13 = vmul.f32 %v129_v12, %v117_v5  ;;  %v132_v14 = vmul.f32 %v129_v12, %v119_v6  ;;  %v134_v15 = vmul.f32 %v129_v12, %v121_v7  ;;  %v131_v16 = vmul.f32 %v129_v12, %v118_v9 }
  0x1d   : > { %v133_v17 = vmul.f32 %v129_v12, %v120_v10  ;;  %v135_v18 = vmul.f32 %v129_v12, %v122_v11 }
  0x1e   : > { %v136_v19 = vsub.f32 1.0, %v130_v13  ;;  %v138_v20 = vsub.f32 1.0, %v132_v14  ;;  %v140_v21 = vsub.f32 1.0, %v134_v15  ;;  %v137_v22 = vsub.f32 1.0, %v131_v16 }
  0x1f   : > { %v139_v23 = vsub.f32 1.0, %v133_v17  ;;  %v141_v24 = vsub.f32 1.0, %v135_v18 }
  0x20   : > { %v143_v25 = vsel %vm142_vm1, %v136_v19, 0.0  ;;  %v144_v26 = vsel %vm142_vm1, %v138_v20, 0.0  ;;  %v146_v27 = vsel %vm142_vm1, %v140_v21, 0.0  ;;  %v148_v28 = vsel %vm142_vm1, %v137_v22, 0.0 }
  0x21   : > { %v145_v29 = vadd.f32 %v144_v26, %v143_v25  ;;  %v149_v30 = vsel %vm142_vm1, %v139_v23, 0.0  ;;  %v151_v31 = vsel %vm142_vm1, %v141_v24, 0.0 }
  0x22   : > { %v150_v32 = vadd.f32 %v149_v30, %v148_v28 }
  0x23   : > { %v147_v33 = vadd.f32 %v146_v27, %v145_v29 }
  0x24   : > { %v152_v34 = vadd.f32 %v151_v31, %v150_v32 }
  0x25   : > { %v153_v35 = vmul.f32 %v147_v33, %v129_v12 }
  0x26   : > { %v154_v36 = vmul.f32 %v152_v34, %v129_v12 }
  0x27   : > { %155 = vst.msk [vmem:[%s116_s15] sm:$0xff] %vm142_vm1, %v153_v35 }
  0x28   : > { %156 = vst.msk [vmem:[%s116_s15 + $0x8] sm:$0xff] %vm142_vm1, %v154_v36 }
  0x29 PF: > { %s11_s6 = sadd.s32 1, %s241_s6  }
  0x2a   : > { %p8_p4 = scmp.ge.s32.totalorder %s11_s6, 10  }
  0x2c   :  { %10 = sbr.rel (!%p8_p4) target bundleno = 1 (0x1), region = 54 }

// kernel: _forward_impl.37
= control target key start
LH: loop header
LB: loop body
LE: loop exit
PB: predicated region body
PF: predicated region fallthrough
CT: control target
= control target key end

     0   :  { %s1091_s9 = smov 0   ;;  %s1732_s0 = inlined_call_operand.vmem [shape: f32[8,3,18,18], index: 0, kind: input, shape index: {}]   ;;  %s1733_s1 = inlined_call_operand.vmem [shape: f32[8,3,18,18], index: 1, kind: input, shape index: {}]   ;;  %s1734_s2 = inlined_call_operand.vmem [shape: f32[8,3,16,16], index: 2, kind: output, shape index: {}]  }
   0x1 LB: > { %s1008_s10 = sadd.s32 4294967295, %s1072_s9   ;;  %p1012_p0 = scmp.ge.s32.totalorder %s1072_s9, 1  ;;  %s1072_s9 = sphi %s1091_s9, %s12_s9  }
   0x2   : > { %p122_p1 = scmp.lt.s32.totalorder %s1072_s9, 9 }
   0x4   : > { %p123_p2 = pnand %p1012_p0, %p122_p1 }
   0x6   : > { %126 = sbr.rel (%p123_p2) target bundleno = 324 (0x144), region = 28 }
   0xb   : > { %p149_p3 = scmp.lt.s32.totalorder %s1008_s10, 7  ;;  %vm182_vm0 = vcmask 1046528   ;;  %vm210_vm1 = vcmask 1045504   ;;  %s1074_s15 = smov 126  }
   0xc   : > { %s1075_s16 = smov 127  }
   0xd   : > { %s1751_s10 = smov (!%p149_p3, %s1008_s10), 7 }
   0xe   : > { %s1018_s11 = smul.u32 72, %s1751_s10 }
   0xf   : > { %s1019_s20 = smul.u32 48, %s1751_s10 }
  0x10   : > { %s1107_s14 = scalar_lea.vmem %s1732_s0, %s1018_s11  ;;  %s158_s19 = scalar_lea.vmem %s1733_s1, %s1018_s11 }
  0x11   : > { %v1110_v0 = vld [vmem:[%s1107_s14 + $0x30] sm:$0xff]  ;;  %v1113_v1 = vld [vmem:[%s1107_s14 + $0x38] sm:$0xff]  ;;  %v1123_v7 = vld [vmem:[%s1107_s14 + $0x20] sm:$0xff]  ;;  %s1691_s23 = scalar_lea.vmem %s1734_s2, %s1019_s20 }
  0x12   : > { %v1116_v2 = vld [vmem:[%s1107_s14 + $0x18] sm:$0xff]  ;;  %v193_v3 = vrot.slane %v1110_v0, 1  ;;  %v194_v4 = vrot.slane %v1113_v1, 1  ;;  %v221_v5 = vrot.slane %v1110_v0, 2  ;;  %v222_v6 = vrot.slane %v1113_v1, 2  ;;  %v1126_v8 = vld [vmem:[%s1107_s14] sm:$0xff] }
  0x13   : > { %v188_v9 = vrot.slane %v1116_v2, 1  ;;  %v189_v10 = vrot.slane %v1123_v7, 1  ;;  %v216_v11 = vrot.slane %v1116_v2, 2  ;;  %v217_v12 = vrot.slane %v1123_v7, 2  ;;  %v1133_v13 = vld [vmem:[%s1107_s14 + $0x8] sm:$0xff]  ;;  %v1214_v53 = vld [vmem:[%s158_s19] sm:$0xff] }
  0x14   : > { %v195_v14 = vsel %vm182_vm0, %v193_v3, %v194_v4  ;;  %v223_v15 = vsel %vm210_vm1, %v221_v5, %v222_v6  ;;  %v183_v16 = vrot.slane %v1126_v8, 1  ;;  %v184_v17 = vrot.slane %v1133_v13, 1  ;;  %v1140_v18 = vld [vmem:[%s1107_s14 + $0x40] sm:$0x3]  ;;  %v1143_v19 = vld [vmem:[%s1107_s14 + $0x28] sm:$0x3] }
  0x15   : > { %v208_v20 = vadd.f32 %v195_v14, %v1110_v0  ;;  %v190_v21 = vsel %vm182_vm0, %v188_v9, %v189_v10  ;;  %v218_v22 = vsel %vm210_vm1, %v216_v11, %v217_v12  ;;  %v211_v23 = vrot.slane %v1126_v8, 2  ;;  %v1159_v32 = vld [vmem:[%s1107_s14 + $0x10] sm:$0x3]  ;;  %v1212_v52 = vld [vmem:[%s158_s19 + $0x8] sm:$0xff]  ;;  %v1221_v55 = vld [vmem:[%s158_s19 + $0x20] sm:$0xff] }
  0x16   : > { %v206_v24 = vadd.f32 %v190_v21, %v1116_v2  ;;  %v185_v25 = vsel %vm182_vm0, %v183_v16, %v184_v17  ;;  %v212_v26 = vrot.slane %v1133_v13, 2  ;;  %v196_v27 = vrot.slane %v1140_v18, 1  ;;  %v1210_v51 = vld [vmem:[%s158_s19 + $0x10] sm:$0x3]  ;;  %v1219_v54 = vld [vmem:[%s158_s19 + $0x28] sm:$0x3] }
  0x17   : > { %v1153_v28 = vadd.f32 %v223_v15, %v208_v20  ;;  %v204_v29 = vadd.f32 %v185_v25, %v1126_v8  ;;  %v224_v30 = vrot.slane %v1140_v18, 2  ;;  %v191_v31 = vrot.slane %v1143_v19, 1  ;;  %v1223_v56 = vld [vmem:[%s158_s19 + $0x18] sm:$0xff]  ;;  %v1228_v57 = vld [vmem:[%s158_s19 + $0x40] sm:$0x3]  ;;  %v1232_v59 = vld [vmem:[%s158_s19 + $0x30] sm:$0xff] }
  0x18   : > { %v1161_v33 = vadd.f32 %v218_v22, %v206_v24  ;;  %v213_v34 = vsel %vm210_vm1, %v211_v23, %v212_v26  ;;  %v197_v35 = vsel %vm182_vm0, %v194_v4, %v196_v27  ;;  %v219_v36 = vrot.slane %v1143_v19, 2  ;;  %v1230_v58 = vld [vmem:[%s158_s19 + $0x38] sm:$0xff] }
  0x19   : > { %252 = vrot.lane.b32.xlu2 %v1153_v28, %s1074_s15  ;;  %v1168_v37 = vadd.f32 %v213_v34, %v204_v29  ;;  %v209_v38 = vadd.f32 %v197_v35, %v1113_v1  ;;  %v192_v39 = vsel %vm182_vm0, %v189_v10, %v191_v31  ;;  %v225_v40 = vsel %vm210_vm1, %v222_v6, %v224_v30 }
  0x1a   : > { %248 = vrot.lane.b32.xlu1 %v1161_v33, %s1074_s15  ;;  %v207_v41 = vadd.f32 %v192_v39, %v1123_v7  ;;  %v186_v42 = vrot.slane %v1159_v32, 1  ;;  %v214_v43 = vrot.slane %v1159_v32, 2  ;;  %v220_v44 = vsel %vm210_vm1, %v217_v12, %v219_v36 }
  0x1b   : > { %244 = vrot.lane.b32.xlu0 %v1168_v37, %s1074_s15  ;;  %v1183_v47 = vadd.f32 %v225_v40, %v209_v38  ;;  %v507_v61 = vrot.slane %v1223_v56, 1  ;;  %v503_v63 = vrot.slane %v1212_v52, 1  ;;  %v505_v3 = vrot.slane %v1210_v51, 1 }
  0x1c   : > { %v187_v45 = vsel %vm182_vm0, %v184_v17, %v186_v42  ;;  %v215_v46 = vsel %vm210_vm1, %v212_v26, %v214_v43  ;;  %v1186_v49 = vadd.f32 %v220_v44, %v207_v41  ;;  %v502_v4 = vrot.slane %v1214_v53, 1 }
  0x1d   : > { %v205_v48 = vadd.f32 %v187_v45, %v1133_v13  ;;  %v508_v5 = vrot.slane %v1221_v55, 1  ;;  %v534_v9 = vrot.slane %v1223_v56, 2  ;;  %v506_v10 = vsel %vm182_vm0, %v503_v63, %v505_v3 }
  0x1e   : > { %v530_v11 = vrot.slane %v1212_v52, 2  ;;  %v532_v12 = vrot.slane %v1210_v51, 2  ;;  %v504_v14 = vsel %vm182_vm0, %v502_v4, %v503_v63  ;;  %v529_v15 = vrot.slane %v1214_v53, 2 }
  0x1f   : > { %v1188_v50 = vadd.f32 %v215_v46, %v205_v48  ;;  %v509_v6 = vsel %vm182_vm0, %v507_v61, %v508_v5  ;;  %v535_v16 = vrot.slane %v1221_v55, 2  ;;  %v524_v20 = vadd.f32 %v506_v10, %v1212_v52 }
  0x20   : > { %v525_v17 = vadd.f32 %v509_v6, %v1223_v56  ;;  %v515_v22 = vrot.slane %v1228_v57, 1  ;;  %v533_v24 = vsel %vm210_vm1, %v530_v11, %v532_v12  ;;  %v523_v25 = vadd.f32 %v504_v14, %v1214_v53 }
  0x21   : > { %254 = vrot.lane.b32.xlu2 %v1183_v47, %s1074_s15  ;;  %v536_v21 = vsel %vm210_vm1, %v534_v9, %v535_v16  ;;  %v512_v26 = vrot.slane %v1232_v59, 1  ;;  %v513_v27 = vrot.slane %v1230_v58, 1  ;;  %v531_v29 = vsel %vm210_vm1, %v529_v15, %v530_v11 }
  0x22   : > { %250 = vrot.lane.b32.xlu1 %v1186_v49, %s1074_s15  ;;  %v510_v30 = vrot.slane %v1219_v54, 1  ;;  %v1300_v31 = vadd.f32 %v536_v21, %v525_v17  ;;  %v1302_v34 = vadd.f32 %v533_v24, %v524_v20  ;;  %v542_v36 = vrot.slane %v1228_v57, 2 }
  0x23   : > { %246 = vrot.lane.b32.xlu0 %v1188_v50, %s1074_s15  ;;  %v516_v35 = vsel %vm182_vm0, %v513_v27, %v515_v22  ;;  %v1306_v38 = vadd.f32 %v531_v29, %v523_v25  ;;  %v514_v39 = vsel %vm182_vm0, %v512_v26, %v513_v27  ;;  %v539_v40 = vrot.slane %v1232_v59, 2 }
  0x24   : > { %1740 = vst [vmem:[#allocation2_spill] sm:$0xff] %v1302_v34  ;;  %v540_v41 = vrot.slane %v1230_v58, 2  ;;  %v511_v42 = vsel %vm182_vm0, %v508_v5, %v510_v30  ;;  %v537_v43 = vrot.slane %v1219_v54, 2  ;;  %v528_v44 = vadd.f32 %v516_v35, %v1230_v58 }
  0x25   : > { %1741 = vst [vmem:[#allocation3_spill] sm:$0xff] %v1306_v38  ;;  %v527_v45 = vadd.f32 %v514_v39, %v1232_v59  ;;  %v526_v63 = vadd.f32 %v511_v42, %v1221_v55 }
  0x26   : > { %v543_v46 = vsel %vm210_vm1, %v540_v41, %v542_v36  ;;  %v541_v61 = vsel %vm210_vm1, %v539_v40, %v540_v41  ;;  %v538_v4 = vsel %vm210_vm1, %v535_v16, %v537_v43 }
  0x27   : > { %v1327_v6 = vadd.f32 %v543_v46, %v528_v44  ;;  %v1329_v9 = vadd.f32 %v541_v61, %v527_v45  ;;  %v1331_v10 = vadd.f32 %v538_v4, %v526_v63 }
  0x29   : > { %278 = vrot.lane.b32.xlu2 %v1159_v32, %s1075_s16  ;;  %1742 = vst [vmem:[#allocation4_spill] sm:$0xff] %v1327_v6 }
  0x2a   : > { %276 = vrot.lane.b32.xlu1 %v1133_v13, %s1075_s16  ;;  %1743 = vst [vmem:[#allocation5_spill] sm:$0xff] %v1329_v9 }
  0x2b   : > { %274 = vrot.lane.b32.xlu0 %v1126_v8, %s1075_s16  ;;  %1744 = vst [vmem:[#allocation6_spill] sm:$0xff] %v1331_v10 }
  0x31   : > { %284 = vrot.lane.b32.xlu2 %v1143_v19, %s1075_s16 }
  0x32   : > { %282 = vrot.lane.b32.xlu1 %v1123_v7, %s1075_s16 }
  0x33   : > { %280 = vrot.lane.b32.xlu0 %v1116_v2, %s1075_s16 }
  0x39   : > { %290 = vrot.lane.b32.xlu2 %v1140_v18, %s1075_s16 }
  0x3a   : > { %288 = vrot.lane.b32.xlu1 %v1113_v1, %s1075_s16 }
  0x3b   : > { %286 = vrot.lane.b32.xlu0 %v1110_v0, %s1075_s16 }
  0x41   : > { %596 = vrot.lane.b32.xlu2 %v1210_v51, %s1075_s16 }
  0x42   : > { %594 = vrot.lane.b32.xlu1 %v1212_v52, %s1075_s16 }
  0x43   : > { %592 = vrot.lane.b32.xlu0 %v1214_v53, %s1075_s16 }
  0x49   : > { %602 = vrot.lane.b32.xlu2 %v1219_v54, %s1075_s16 }
  0x4a   : > { %600 = vrot.lane.b32.xlu1 %v1221_v55, %s1075_s16 }
  0x4b   : > { %598 = vrot.lane.b32.xlu0 %v1223_v56, %s1075_s16 }
  0x51   : > { %608 = vrot.lane.b32.xlu2 %v1228_v57, %s1075_s16 }
  0x52   : > { %606 = vrot.lane.b32.xlu1 %v1230_v58, %s1075_s16 }
  0x53   : > { %604 = vrot.lane.b32.xlu0 %v1232_v59, %s1075_s16 }
  0x59   : > { %314 = vrot.lane.b32.xlu2 %v1159_v32, %s1074_s15 }
  0x5a   : > { %312 = vrot.lane.b32.xlu1 %v1133_v13, %s1074_s15 }
  0x5b   : > { %310 = vrot.lane.b32.xlu0 %v1126_v8, %s1074_s15 }
  0x61   : > { %320 = vrot.lane.b32.xlu2 %v1143_v19, %s1074_s15 }
  0x62   : > { %318 = vrot.lane.b32.xlu1 %v1123_v7, %s1074_s15 }
  0x63   : > { %316 = vrot.lane.b32.xlu0 %v1116_v2, %s1074_s15 }
  0x69   : > { %326 = vrot.lane.b32.xlu2 %v1140_v18, %s1074_s15 }
  0x6a   : > { %324 = vrot.lane.b32.xlu1 %v1113_v1, %s1074_s15 }
  0x6b   : > { %322 = vrot.lane.b32.xlu0 %v1110_v0, %s1074_s15 }
  0x71   : > { %632 = vrot.lane.b32.xlu2 %v1210_v51, %s1074_s15 }
  0x72   : > { %630 = vrot.lane.b32.xlu1 %v1212_v52, %s1074_s15 }
  0x73   : > { %628 = vrot.lane.b32.xlu0 %v1214_v53, %s1074_s15  ;;  %v1261_v60 = vpop.permute.xlu2 %252 }
  0x79   : > { %638 = vrot.lane.b32.xlu2 %v1219_v54, %s1074_s15 }
  0x7a   : > { %636 = vrot.lane.b32.xlu1 %v1221_v55, %s1074_s15 }
  0x7b   : > { %634 = vrot.lane.b32.xlu0 %v1223_v56, %s1074_s15  ;;  %v1270_v62 = vpop.permute.xlu2 %254 }
  0x81   : > { %644 = vrot.lane.b32.xlu2 %v1228_v57, %s1074_s15 }
  0x82   : > { %642 = vrot.lane.b32.xlu1 %v1230_v58, %s1074_s15 }
  0x83   : > { %640 = vrot.lane.b32.xlu0 %v1232_v59, %s1074_s15  ;;  %v279_v23 = vpop.permute.xlu2 %278 }
  0x84   : > { %v303_v45 = vadd.f32 %v279_v23, %v1159_v32 }
  0x89   : > { %566 = vrot.lane.b32.xlu2 %v1300_v31, %s1074_s15 }
  0x8a   : > { %564 = vrot.lane.b32.xlu1 %v1302_v34, %s1074_s15 }
  0x8b   : > { %562 = vrot.lane.b32.xlu0 %v1306_v38, %s1074_s15  ;;  %v285_v48 = vpop.permute.xlu2 %284 }
  0x8c   : > { %v1324_v3 = vpop.permute.xlu1 %248  ;;  %v306_v35 = vadd.f32 %v285_v48, %v1143_v19 }
  0x8d   : > { %v245_v5 = vpop.permute.xlu0 %244 }
  0x91   : > { %572 = vrot.lane.b32.xlu2 %v1327_v6, %s1074_s15 }
  0x92   : > { %570 = vrot.lane.b32.xlu1 %v1329_v9, %s1074_s15 }
  0x93   : > { %568 = vrot.lane.b32.xlu0 %v1331_v10, %s1074_s15  ;;  %v291_v11 = vpop.permute.xlu2 %290 }
  0x94   : > { %v1339_v12 = vpop.permute.xlu1 %250 }
  0x95   : > { %v247_v14 = vpop.permute.xlu0 %246 }
  0x9b   : > { %v1341_v15 = vpop.permute.xlu2 %596 }
  0x9c   : > { %v277_v16 = vpop.permute.xlu1 %276 }
  0x9d   : > { %v275_v17 = vpop.permute.xlu0 %274  ;;  %v302_v46 = vadd.f32 %v277_v16, %v1133_v13 }
  0x9e   : > { %v301_v63 = vadd.f32 %v275_v17, %v1126_v8 }
  0xa3   : > { %v1343_v20 = vpop.permute.xlu2 %602 }
  0xa4   : > { %v283_v21 = vpop.permute.xlu1 %282 }
  0xa5   : > { %v281_v22 = vpop.permute.xlu0 %280  ;;  %v305_v17 = vadd.f32 %v283_v21, %v1123_v7 }
  0xab   : > { %v1345_v24 = vpop.permute.xlu2 %608 }
  0xac   : > { %v289_v25 = vpop.permute.xlu1 %288 }
  0xad   : > { %v1347_v26 = vpop.permute.xlu0 %286 }
  0xb3   : > { %v315_v27 = vpop.permute.xlu2 %314 }
  0xb4   : > { %v1349_v29 = vpop.permute.xlu1 %594  ;;  %v339_v61 = vadd.f32 %v315_v27, %v303_v45 }
  0xb5   : > { %v1351_v30 = vpop.permute.xlu0 %592 }
  0xb6   : > { %v358_v9 = vrot.slane %v339_v61, 2 }
  0xbb   : > { %v321_v36 = vpop.permute.xlu2 %320 }
  0xbc   : > { %v342_v39 = vadd.f32 %v321_v36, %v306_v35  ;;  %v1354_v40 = vpop.permute.xlu1 %600  ;;  %v262_v35 = vsub.f32 %v1168_v37, %v245_v5  ;;  %v263_v36 = vsub.f32 %v1188_v50, %v247_v14  ;;  %v304_v37 = vadd.f32 %v281_v22, %v1116_v2 }
  0xbd   : > { %v1356_v41 = vpop.permute.xlu0 %598  ;;  %v264_v14 = vsub.f32 %v1161_v33, %v1324_v3  ;;  %v309_v22 = vadd.f32 %v291_v11, %v1140_v18  ;;  %v267_v18 = vsub.f32 %v1183_v47, %v1270_v62  ;;  %v307_v11 = vadd.f32 %v1347_v26, %v1110_v0 }
  0xbe   : > { %v268_v23 = vmul.f32 0.33333334, %v262_v35  ;;  %v269_v13 = vmul.f32 0.33333334, %v263_v36  ;;  %v266_v47 = vsub.f32 %v1153_v28, %v1261_v60  ;;  %v621_v0 = vadd.f32 %v1341_v15, %v1210_v51 }
  0xbf   : > { %v270_v3 = vmul.f32 0.33333334, %v264_v14 }
  0xc3   : > { %v327_v44 = vpop.permute.xlu2 %326 }
  0xc4   : > { %v1358_v42 = vpop.permute.xlu1 %606 }
  0xc5   : > { %v1360_v43 = vpop.permute.xlu0 %604 }
  0xcb   : > { %v1367_v6 = vpop.permute.xlu2 %632 }
  0xcc   : > { %v313_v4 = vpop.permute.xlu1 %312 }
  0xcd   : > { %v338_v19 = vadd.f32 %v313_v4, %v302_v46  ;;  %v311_v48 = vpop.permute.xlu0 %310 }
  0xce   : > { %v337_v10 = vadd.f32 %v311_v48, %v301_v63  ;;  %v388_v63 = vmul.f32 %v268_v23, %v268_v23  ;;  %v345_v23 = vadd.f32 %v327_v44, %v309_v22 }
  0xcf   : > { %v356_v38 = vrot.slane %v338_v19, 2 }
  0xd0   : > { %v355_v34 = vrot.slane %v337_v10, 2 }
  0xd1   : > { %v359_v32 = vsel %vm210_vm1, %v356_v38, %v358_v9  ;;  %v389_v9 = vmul.f32 %v269_v13, %v269_v13 }
  0xd2   : > { %v377_v16 = vsub.f32 %v338_v19, %v359_v32  ;;  %v357_v8 = vsel %vm210_vm1, %v355_v34, %v356_v38  ;;  %v265_v34 = vsub.f32 %v1186_v49, %v1339_v12  ;;  %v363_v38 = vrot.slane %v342_v39, 2 }
  0xd3   : > { %v376_v27 = vsub.f32 %v337_v10, %v357_v8  ;;  %v1380_v13 = vpop.permute.xlu2 %638  ;;  %v308_v49 = vadd.f32 %v289_v25, %v1113_v1 }
  0xd4   : > { %v383_v5 = vmul.f32 0.33333334, %v377_v16  ;;  %v319_v50 = vpop.permute.xlu1 %318  ;;  %v271_v32 = vmul.f32 0.33333334, %v265_v34  ;;  %v273_v34 = vmul.f32 0.33333334, %v267_v18 }
  0xd5   : > { %v382_v45 = vmul.f32 0.33333334, %v376_v27  ;;  %v341_v46 = vadd.f32 %v319_v50, %v305_v17  ;;  %v317_v61 = vpop.permute.xlu0 %316  ;;  %v390_v17 = vmul.f32 %v270_v3, %v270_v3  ;;  %v368_v50 = vrot.slane %v345_v23, 2 }
  0xd6   : > { %v395_v4 = vmul.f32 %v383_v5, %v383_v5  ;;  %v340_v48 = vadd.f32 %v317_v61, %v304_v37  ;;  %v391_v44 = vmul.f32 %v271_v32, %v271_v32  ;;  %v393_v22 = vmul.f32 %v273_v34, %v273_v34 }
  0xd7   : > { %v394_v7 = vmul.f32 %v382_v45, %v382_v45  ;;  %v361_v10 = vrot.slane %v341_v46, 2 }
  0xd8   : > { %v401_v21 = vadd.f32 %v395_v4, %v389_v9  ;;  %v360_v2 = vrot.slane %v340_v48, 2  ;;  %v620_v9 = vadd.f32 %v1349_v29, %v1212_v52  ;;  %v272_v52 = vmul.f32 0.33333334, %v266_v47 }
  0xd9   : > { %v400_v19 = vadd.f32 %v394_v7, %v388_v63  ;;  %v364_v33 = vsel %vm210_vm1, %v361_v10, %v363_v38  ;;  %v657_v38 = vadd.f32 %v1367_v6, %v621_v0  ;;  %v619_v29 = vadd.f32 %v1351_v30, %v1214_v53 }
  0xda   : > { %v379_v35 = vsub.f32 %v341_v46, %v364_v33  ;;  %v362_v36 = vsel %vm210_vm1, %v360_v2, %v361_v10  ;;  %v1383_v12 = vadd.f32 1e-12, %v401_v21  ;;  %v624_v47 = vadd.f32 %v1343_v20, %v1219_v54 }
  0xdb   : > { %v378_v16 = vsub.f32 %v340_v48, %v362_v36  ;;  %v1389_v14 = vadd.f32 1e-12, %v400_v19  ;;  %v645_v7 = vpop.permute.xlu2 %644  ;;  %v676_v19 = vrot.slane %v657_v38, 2  ;;  %v622_v0 = vadd.f32 %v1356_v41, %v1223_v56 }
  0xdc   : > { %v325_v39 = vpop.permute.xlu1 %324  ;;  %v385_v27 = vmul.f32 0.33333334, %v379_v35  ;;  %1030 = vrsqrt.f32 %v1383_v12  ;;  %vm431_vm2 = vcmp.eq.f32.partialorder %v1383_v12, inf  ;;  %vm433_vm3 = vcmp.eq.f32.partialorder %v1383_v12, 0.0 }
  0xdd   : > { %v323_v8 = vpop.permute.xlu0 %322  ;;  %v384_v37 = vmul.f32 0.33333334, %v378_v16  ;;  %v344_v5 = vadd.f32 %v325_v39, %v308_v49  ;;  %1032 = vrsqrt.f32 %v1389_v14  ;;  %v392_v16 = vmul.f32 %v272_v52, %v272_v52 }
  0xde   : > { %v343_v45 = vadd.f32 %v323_v8, %v307_v11  ;;  %v397_v1 = vmul.f32 %v385_v27, %v385_v27  ;;  %vm419_vm4 = vcmp.eq.f32.partialorder %v1389_v14, inf  ;;  %vm421_vm6 = vcmp.eq.f32.partialorder %v1389_v14, 0.0 }
  0xdf   : > { %v396_v25 = vmul.f32 %v384_v37, %v384_v37  ;;  %v366_v46 = vrot.slane %v344_v5, 2 }
  0xe0   : > { %v365_v62 = vrot.slane %v343_v45, 2  ;;  %v403_v26 = vadd.f32 %v397_v1, %v391_v44 }
  0xe1   : > { %v402_v61 = vadd.f32 %v396_v25, %v390_v17  ;;  %v369_v63 = vsel %vm210_vm1, %v366_v46, %v368_v50  ;;  %v627_v25 = vadd.f32 %v1345_v24, %v1228_v57 }
  0xe2   : > { %v381_v4 = vsub.f32 %v344_v5, %v369_v63  ;;  %v367_v48 = vsel %vm210_vm1, %v365_v62, %v366_v46  ;;  %v1404_v21 = vpop.eup %1030  ;;  %v1424_v18 = vadd.f32 1e-12, %v403_v26  ;;  %v623_v62 = vadd.f32 %v1354_v40, %v1221_v55 }
  0xe3   : > { %v380_v28 = vsub.f32 %v343_v45, %v367_v48  ;;  %v1406_v2 = vadd.f32 1e-12, %v402_v61  ;;  %v1410_v3 = vpop.eup %1032  ;;  %v425_v6 = vmul.f32 %v1404_v21, %v1383_v12  ;;  %v567_v50 = vpop.permute.xlu2 %566  ;;  %v626_v26 = vadd.f32 %v1358_v42, %v1230_v58 }
  0xe4   : > { %v631_v60 = vpop.permute.xlu1 %630  ;;  %v387_v10 = vmul.f32 0.33333334, %v381_v4  ;;  %v413_v39 = vmul.f32 %v1410_v3, %v1389_v14  ;;  %v663_v63 = vadd.f32 %v645_v7, %v627_v25  ;;  %v582_v57 = vsub.f32 %v1300_v31, %v567_v50 }
  0xe5   : > { %v1402_v51 = vadd.f32 %v631_v60, %v620_v9  ;;  %v629_v15 = vpop.permute.xlu0 %628  ;;  %v386_v35 = vmul.f32 0.33333334, %v380_v28  ;;  %1034 = vrsqrt.f32 %v1406_v2  ;;  %v426_v27 = vmul.f32 %v1404_v21, %v425_v6 }
  0xe6   : > { %v399_v33 = vmul.f32 %v387_v10, %v387_v10  ;;  %v1415_v32 = vadd.f32 %v629_v15, %v619_v29  ;;  %v414_v1 = vmul.f32 %v1410_v3, %v413_v39  ;;  %v625_v48 = vadd.f32 %v1360_v43, %v1232_v59 }
  0xe7   : > { %v674_v36 = vrot.slane %v1402_v51, 2  ;;  %v398_v49 = vmul.f32 %v386_v35, %v386_v35  ;;  %v427_v46 = vmul.f32 0.5, %v426_v27  ;;  %v660_v31 = vadd.f32 %v1380_v13, %v624_v47  ;;  %v1745_v35 = vld [vmem:[#allocation4_spill] sm:$0xff] }
  0xe8   : > { %v405_v23 = vadd.f32 %v399_v33, %v393_v22  ;;  %v673_v30 = vrot.slane %v1415_v32, 2  ;;  %v415_v54 = vmul.f32 0.5, %v414_v1  ;;  %v686_v52 = vrot.slane %v663_v63, 2 }
  0xe9   : > { %v1419_v53 = vsel %vm210_vm1, %v674_v36, %v676_v19  ;;  %v404_v37 = vadd.f32 %v398_v49, %v392_v16  ;;  %v428_v41 = vsub.f32 1.5, %v427_v46  ;;  %v588_v22 = vmul.f32 0.33333334, %v582_v57 }
  0xea   : > { %v1426_v11 = vadd.f32 1e-12, %v405_v23  ;;  %v695_v8 = vsub.f32 %v1402_v51, %v1419_v53  ;;  %v1432_v5 = vsel %vm210_vm1, %v673_v30, %v674_v36  ;;  %v416_v15 = vsub.f32 1.5, %v415_v54 }
  0xeb   : > { %v1435_v45 = vpop.eup %1034  ;;  %v1451_v9 = vadd.f32 1e-12, %v404_v37  ;;  %v694_v55 = vsub.f32 %v1415_v32, %v1432_v5  ;;  %v573_v10 = vpop.permute.xlu2 %572  ;;  %v429_v59 = vmul.f32 %v1404_v21, %v428_v41  ;;  %v681_v19 = vrot.slane %v660_v31, 2 }
  0xec   : > { %v637_v17 = vpop.permute.xlu1 %636  ;;  %1036 = vrsqrt.f32 %v1426_v11  ;;  %v437_v61 = vmul.f32 %v1435_v45, %v1406_v2  ;;  %v585_v36 = vsub.f32 %v1745_v35, %v573_v10  ;;  %v434_v23 = vand.u32 2147483648, %v1383_v12 }
  0xed   : > { %v635_v44 = vpop.permute.xlu0 %634  ;;  %1038 = vrsqrt.f32 %v1424_v18  ;;  %v1458_v20 = vadd.f32 %v637_v17, %v623_v62  ;;  %v417_v30 = vmul.f32 %v1410_v3, %v416_v15  ;;  %v422_v21 = vand.u32 2147483648, %v1389_v14 }
  0xee   : > { %v658_v56 = vadd.f32 %v635_v44, %v622_v0  ;;  %v438_v28 = vmul.f32 %v1435_v45, %v437_v61  ;;  %1040 = vrsqrt.f32 %v1451_v9  ;;  %v708_v17 = vmul.f32 %v588_v22, %v588_v22  ;;  %v1746_v0 = vld [vmem:[#allocation2_spill] sm:$0xff] }
  0xef   : > { %v679_v34 = vrot.slane %v1458_v20, 2  ;;  %v430_v44 = vmul.f32 %v429_v59, %v1383_v12  ;;  %v701_v3 = vmul.f32 0.33333334, %v695_v8  ;;  %v591_v62 = vmul.f32 0.33333334, %v585_v36  ;;  %v1748_v36 = vld [vmem:[#allocation5_spill] sm:$0xff] }
  0xf0   : > { %v678_v38 = vrot.slane %v658_v56, 2  ;;  %v439_v16 = vmul.f32 0.5, %v438_v28  ;;  %v458_v51 = vand.u32 2147483648, %v1424_v18  ;;  %v446_v53 = vand.u32 2147483648, %v1406_v2 }
  0xf1   : > { %v711_v41 = vmul.f32 %v591_v62, %v591_v62  ;;  %vm443_vm5 = vcmp.eq.f32.partialorder %v1406_v2, inf  ;;  %v682_v10 = vsel %vm210_vm1, %v679_v34, %v681_v19  ;;  %vm445_vm7 = vcmp.eq.f32.partialorder %v1406_v2, 0.0 }
  0xf2   : > { %v1454_v24 = vpop.eup %1036  ;;  %v680_v29 = vsel %vm210_vm1, %v678_v38, %v679_v34  ;;  %v440_v61 = vsub.f32 1.5, %v439_v16  ;;  %v697_v19 = vsub.f32 %v1458_v20, %v682_v10  ;;  %vm479_vm8 = vcmp.eq.f32.partialorder %v1426_v11, inf }
  0xf3   : > { %v1460_v4 = vpop.eup %1038  ;;  %v473_v60 = vmul.f32 %v1454_v24, %v1426_v11  ;;  %v696_v33 = vsub.f32 %v658_v56, %v680_v29  ;;  %vm455_vm9 = vcmp.eq.f32.partialorder %v1424_v18, inf  ;;  %vm481_vm10 = vcmp.eq.f32.partialorder %v1426_v11, 0.0 }
  0xf4   : > { %v643_v40 = vpop.permute.xlu1 %642  ;;  %v449_v43 = vmul.f32 %v1460_v4, %v1424_v18  ;;  %v1481_v37 = vpop.eup %1040  ;;  %vm467_vm11 = vcmp.eq.f32.partialorder %v1451_v9, inf  ;;  %vm469_vm12 = vcmp.eq.f32.partialorder %v1451_v9, 0.0  ;;  %vm457_vm13 = vcmp.eq.f32.partialorder %v1424_v18, 0.0 }
  0xf5   : > { %v662_v58 = vadd.f32 %v643_v40, %v626_v26  ;;  %v641_v42 = vpop.permute.xlu0 %640  ;;  %v474_v49 = vmul.f32 %v1454_v24, %v473_v60  ;;  %v702_v39 = vmul.f32 0.33333334, %v696_v33  ;;  %v461_v56 = vmul.f32 %v1481_v37, %v1451_v9 }
  0xf6   : > { %v661_v13 = vadd.f32 %v641_v42, %v625_v48  ;;  %v450_v50 = vmul.f32 %v1460_v4, %v449_v43  ;;  %v418_v48 = vmul.f32 %v417_v30, %v1389_v14  ;;  %v441_v60 = vmul.f32 %v1435_v45, %v440_v61 }
  0xf7   : > { %v684_v7 = vrot.slane %v662_v58, 2  ;;  %v714_v47 = vmul.f32 %v702_v39, %v702_v39  ;;  %v475_v63 = vmul.f32 0.5, %v474_v49  ;;  %v462_v22 = vmul.f32 %v1481_v37, %v461_v56 }
  0xf8   : > { %v683_v25 = vrot.slane %v661_v13, 2  ;;  %v451_v42 = vmul.f32 0.5, %v450_v50  ;;  %v700_v45 = vmul.f32 0.33333334, %v694_v55  ;;  %v442_v39 = vmul.f32 %v441_v60, %v1406_v2 }
  0xf9   : > { %v687_v6 = vsel %vm210_vm1, %v684_v7, %v686_v52  ;;  %v720_v40 = vadd.f32 %v714_v47, %v708_v17  ;;  %v432_v52 = vsel %vm431_vm2, %v1383_v12, %v430_v44  ;;  %v476_v29 = vsub.f32 1.5, %v475_v63 }
  0xfa   : > { %v699_v1 = vsub.f32 %v662_v58, %v687_v6  ;;  %v685_v54 = vsel %vm210_vm1, %v683_v25, %v684_v7  ;;  %v713_v7 = vmul.f32 %v701_v3, %v701_v3  ;;  %v452_v43 = vsub.f32 1.5, %v451_v42  ;;  %v1747_v6 = vld [vmem:[#allocation3_spill] sm:$0xff] }
  0xfb   : > { %v1497_v31 = vadd.f32 1e-12, %v720_v40  ;;  %v698_v38 = vsub.f32 %v661_v13, %v685_v54  ;;  %v1518_v30 = vsel %vm433_vm3, %v434_v23, %v432_v52  ;;  %v477_v32 = vmul.f32 %v1454_v24, %v476_v29 }
  0xfc   : > { %v565_v27 = vpop.permute.xlu1 %564  ;;  %v705_v57 = vmul.f32 0.33333334, %v699_v1  ;;  %v463_v5 = vmul.f32 0.5, %v462_v22  ;;  %v420_v12 = vsel %vm419_vm4, %v1389_v14, %v418_v48  ;;  %v453_v23 = vmul.f32 %v1460_v4, %v452_v43 }
  0xfd   : > { %v563_v46 = vpop.permute.xlu0 %562  ;;  %v581_v26 = vsub.f32 %v1746_v0, %v565_v27  ;;  %1042 = vrsqrt.f32 %v1497_v31  ;;  %v704_v33 = vmul.f32 0.33333334, %v698_v38  ;;  %v1749_v27 = vld [vmem:[#allocation6_spill] sm:$0xff]  ;;  %v712_v1 = vmul.f32 %v700_v45, %v700_v45 }
  0xfe   : > { %v717_v8 = vmul.f32 %v705_v57, %v705_v57  ;;  %v580_v35 = vsub.f32 %v1747_v6, %v563_v46  ;;  %v703_v25 = vmul.f32 0.33333334, %v697_v19  ;;  %v444_v4 = vsel %vm443_vm5, %v1406_v2, %v442_v39 }
  0xff   : > { %v587_v58 = vmul.f32 0.33333334, %v581_v26  ;;  %v716_v46 = vmul.f32 %v704_v33, %v704_v33  ;;  %v478_v0 = vmul.f32 %v477_v32, %v1426_v11  ;;  %v482_v26 = vand.u32 2147483648, %v1426_v11 }
 0x100   : > { %v723_v15 = vadd.f32 %v717_v8, %v711_v41  ;;  %v586_v20 = vmul.f32 0.33333334, %v580_v35  ;;  %v464_v61 = vsub.f32 1.5, %v463_v5  ;;  %v1543_v41 = vmul.f32 %v1518_v30, %v1518_v30 }
 0x101   : > { %v707_v28 = vmul.f32 %v587_v58, %v587_v58  ;;  %v1549_v58 = vsel %vm421_vm6, %v422_v21, %v420_v12  ;;  %v715_v42 = vmul.f32 %v703_v25, %v703_v25  ;;  %v454_v48 = vmul.f32 %v453_v23, %v1424_v18 }
 0x102   : > { %v1511_v13 = vadd.f32 1e-12, %v723_v15  ;;  %v706_v3 = vmul.f32 %v586_v20, %v586_v20  ;;  %v1561_v10 = vsel %vm445_vm7, %v446_v53, %v444_v4  ;;  %v480_v14 = vsel %vm479_vm8, %v1426_v11, %v478_v0 }
 0x103   : > { %v719_v34 = vadd.f32 %v713_v7, %v707_v28  ;;  %v1043_v50 = vpop.eup %1042  ;;  %v465_v52 = vmul.f32 %v1481_v37, %v464_v61  ;;  %v456_v53 = vsel %vm455_vm9, %v1424_v18, %v454_v48  ;;  %v470_v37 = vand.u32 2147483648, %v1451_v9 }
 0x104   : > { %v571_v59 = vpop.permute.xlu1 %570  ;;  %1044 = vrsqrt.f32 %v1511_v13  ;;  %v755_v24 = vmul.f32 %v1043_v50, %v1497_v31  ;;  %v718_v54 = vadd.f32 %v712_v1, %v706_v3  ;;  %v483_v19 = vsel %vm481_vm10, %v482_v26, %v480_v14 }
 0x105   : > { %v584_v16 = vsub.f32 %v1748_v36, %v571_v59  ;;  %v569_v49 = vpop.permute.xlu0 %568  ;;  %v1525_v55 = vadd.f32 1e-12, %v719_v34  ;;  %v1571_v59 = vmul.f32 %v1549_v58, %v1549_v58  ;;  %v822_v34 = vmul.f32 %v1561_v10, %v1561_v10 }
 0x106   : > { %v583_v44 = vsub.f32 %v1749_v27, %v569_v49  ;;  %v756_v57 = vmul.f32 %v1043_v50, %v755_v24  ;;  %v1553_v28 = vadd.f32 1e-12, %v718_v54  ;;  %v466_v35 = vmul.f32 %v465_v52, %v1451_v9 }
 0x107   : > { %v590_v17 = vmul.f32 0.33333334, %v584_v16  ;;  %1046 = vrsqrt.f32 %v1525_v55  ;;  %v803_v49 = vmul.f32 2.0, %v1518_v30  ;;  %vm761_vm14 = vcmp.eq.f32.partialorder %v1497_v31, inf }
 0x108   : > { %v589_v62 = vmul.f32 0.33333334, %v583_v44  ;;  %v757_v38 = vmul.f32 0.5, %v756_v57  ;;  %1048 = vrsqrt.f32 %v1553_v28  ;;  %v764_v39 = vand.u32 2147483648, %v1497_v31 }
 0x109   : > { %v710_v47 = vmul.f32 %v590_v17, %v590_v17  ;;  %v825_v5 = vmul.f32 %v483_v19, %v483_v19  ;;  %vm763_vm15 = vcmp.eq.f32.partialorder %v1497_v31, 0.0  ;;  %vm797_vm0 = vcmp.eq.f32.partialorder %v1511_v13, inf }
 0x10a   : > { %v1045_v63 = vpop.eup %1044  ;;  %v709_v40 = vmul.f32 %v589_v62, %v589_v62  ;;  %v758_v29 = vsub.f32 1.5, %v757_v38  ;;  %vm799_vm1 = vcmp.eq.f32.partialorder %v1511_v13, 0.0  ;;  %vm749_vm2 = vcmp.eq.f32.partialorder %v1525_v55, inf }
 0x10b   : > { %v722_v56 = vadd.f32 %v716_v46, %v710_v47  ;;  %v791_v8 = vmul.f32 %v1045_v63, %v1511_v13  ;;  %v468_v46 = vsel %vm467_vm11, %v1451_v9, %v466_v35  ;;  %vm751_vm3 = vcmp.eq.f32.partialorder %v1525_v55, 0.0 }
 0x10c   : > { %v721_v15 = vadd.f32 %v715_v42, %v709_v40  ;;  %v759_v43 = vmul.f32 %v1043_v50, %v758_v29  ;;  %v800_v50 = vand.u32 2147483648, %v1511_v13  ;;  %v752_v26 = vand.u32 2147483648, %v1525_v55 }
 0x10d   : > { %v1555_v60 = vadd.f32 1e-12, %v722_v56  ;;  %v1047_v7 = vpop.eup %1046  ;;  %v792_v21 = vmul.f32 %v1045_v63, %v791_v8  ;;  %v1618_v56 = vsel %vm469_vm12, %v470_v37, %v468_v46  ;;  %v1624_v48 = vsel %vm457_vm13, %v458_v51, %v456_v53 }
 0x10e   : > { %v743_v22 = vmul.f32 %v1047_v7, %v1525_v55  ;;  %v1583_v6 = vadd.f32 1e-12, %v721_v15  ;;  %v760_v36 = vmul.f32 %v759_v43, %v1497_v31  ;;  %v1049_v32 = vpop.eup %1048  ;;  %v804_v38 = vmul.f32 2.0, %v1561_v10 }
 0x10f   : > { %v793_v2 = vmul.f32 0.5, %v792_v21  ;;  %1050 = vrsqrt.f32 %v1555_v60  ;;  %v731_v27 = vmul.f32 %v1049_v32, %v1553_v28  ;;  %v1634_v15 = vmul.f32 %v1618_v56, %v1618_v56 }
 0x110   : > { %v744_v45 = vmul.f32 %v1047_v7, %v743_v22  ;;  %1052 = vrsqrt.f32 %v1583_v6  ;;  %v762_v20 = vsel %vm761_vm14, %v1497_v31, %v760_v36  ;;  %v802_v52 = vmul.f32 2.0, %v1549_v58 }
 0x111   : > { %v794_v33 = vsub.f32 1.5, %v793_v2  ;;  %v765_v17 = vsel %vm763_vm15, %v764_v39, %v762_v20  ;;  %v732_v24 = vmul.f32 %v1049_v32, %v731_v27  ;;  %vm737_vm4 = vcmp.eq.f32.partialorder %v1553_v28, inf }
 0x112   : > { %v745_v16 = vmul.f32 0.5, %v744_v45  ;;  %v828_v44 = vmul.f32 %v765_v17, %v765_v17  ;;  %vm739_vm5 = vcmp.eq.f32.partialorder %v1553_v28, 0.0  ;;  %v1642_v10 = vmul.f32 2.0, %v1624_v48 }
 0x113   : > { %v795_v11 = vmul.f32 %v1045_v63, %v794_v33  ;;  %v733_v61 = vmul.f32 0.5, %v732_v24  ;;  %v810_v29 = vmul.f32 %v804_v38, %v765_v17  ;;  %v740_v58 = vand.u32 2147483648, %v1553_v28 }
 0x114   : > { %v746_v12 = vsub.f32 1.5, %v745_v16  ;;  %v834_v3 = vadd.f32 %v828_v44, %v822_v34  ;;  %vm785_vm6 = vcmp.eq.f32.partialorder %v1555_v60, inf  ;;  %vm787_vm7 = vcmp.eq.f32.partialorder %v1555_v60, 0.0 }
 0x115   : > { %v1051_v23 = vpop.eup %1050  ;;  %v796_v30 = vmul.f32 %v795_v11, %v1511_v13  ;;  %v734_v8 = vsub.f32 1.5, %v733_v61  ;;  %v788_v36 = vand.u32 2147483648, %v1555_v60  ;;  %v776_v16 = vand.u32 2147483648, %v1583_v6 }
 0x116   : > { %v747_v1 = vmul.f32 %v1047_v7, %v746_v12  ;;  %v779_v25 = vmul.f32 %v1051_v23, %v1555_v60  ;;  %v1607_v4 = vpop.eup %1052  ;;  %v1611_v63 = vadd.f32 0.0026, %v834_v3  ;;  %vm934_vm8 = vcmask 130048  }
 0x117   : > { %v798_v31 = vsel %vm797_vm0, %v1511_v13, %v796_v30  ;;  %v767_v54 = vmul.f32 %v1607_v4, %v1583_v6  ;;  %v735_v21 = vmul.f32 %v1049_v32, %v734_v8  ;;  %vm773_vm9 = vcmp.eq.f32.partialorder %v1583_v6, inf }
 0x118   : > { %v801_v47 = vsel %vm799_vm1, %v800_v50, %v798_v31  ;;  %v748_v62 = vmul.f32 %v747_v1, %v1525_v55  ;;  %v780_v13 = vmul.f32 %v1051_v23, %v779_v25  ;;  %1054 = vrcp.f32 %v1611_v63 }
 0x119   : > { %v831_v0 = vmul.f32 %v801_v47, %v801_v47  ;;  %v768_v51 = vmul.f32 %v1607_v4, %v767_v54  ;;  %v736_v2 = vmul.f32 %v735_v21, %v1553_v28  ;;  %v885_v39 = vand.u32 2147483648, %v1611_v63 }
 0x11a   : > { %v750_v57 = vsel %vm749_vm2, %v1525_v55, %v748_v62  ;;  %v807_v55 = vmul.f32 2.0, %v483_v19  ;;  %v781_v18 = vmul.f32 0.5, %v780_v13  ;;  %vm879_vm10 = vweird.f32 %v1611_v63 }
 0x11b   : > { %v837_v40 = vadd.f32 %v831_v0, %v825_v5  ;;  %v753_v42 = vsel %vm751_vm3, %v752_v26, %v750_v57  ;;  %v769_v37 = vmul.f32 0.5, %v768_v51  ;;  %v738_v19 = vsel %vm737_vm4, %v1553_v28, %v736_v2 }
 0x11c   : > { %v1630_v14 = vmul.f32 %v803_v49, %v753_v42  ;;  %v827_v9 = vmul.f32 %v753_v42, %v753_v42  ;;  %v782_v53 = vsub.f32 1.5, %v781_v18  ;;  %v813_v45 = vmul.f32 %v807_v55, %v801_v47 }
 0x11d   : > { %v1628_v7 = vadd.f32 0.0026, %v837_v40  ;;  %v816_v49 = vadd.f32 0.0026, %v810_v29  ;;  %v770_v11 = vsub.f32 1.5, %v769_v37  ;;  %vm775_vm11 = vcmp.eq.f32.partialorder %v1583_v6, 0.0 }
 0x11e   : > { %v833_v22 = vadd.f32 %v827_v9, %v1543_v41  ;;  %v1055_v43 = vpop.eup %1054  ;;  %v783_v33 = vmul.f32 %v1051_v23, %v782_v53  ;;  %v741_v41 = vsel %vm739_vm5, %v740_v58, %v738_v19  ;;  %v883_v23 = vand.u32 2147483647, %v1611_v63 }
 0x11f   : > { %1056 = vrcp.f32 %v1628_v7  ;;  %v875_v35 = vmul.f32 %v1055_v43, %v1611_v63  ;;  %v1659_v20 = vmul.f32 %v802_v52, %v741_v41  ;;  %v826_v12 = vmul.f32 %v741_v41, %v741_v41 }
 0x120   : > { %v1649_v34 = vadd.f32 0.0026, %v833_v22  ;;  %v784_v28 = vmul.f32 %v783_v33, %v1555_v60  ;;  %v819_v17 = vadd.f32 0.0026, %v813_v45  ;;  %vm880_vm12 = vweird.f32 %v1055_v43 }
 0x121   : > { %v876_v5 = vsub.f32 1.0, %v875_v35  ;;  %v832_v44 = vadd.f32 %v826_v12, %v1571_v59  ;;  %v928_v25 = vand.u32 2147483647, %v1628_v7  ;;  %v771_v31 = vmul.f32 %v1607_v4, %v770_v11  ;;  %vm881_vm13 = vmor %vm879_vm10, %vm880_vm12 }
 0x122   : > { %1058 = vrcp.f32 %v1649_v34  ;;  %v786_v50 = vsel %vm785_vm6, %v1555_v60, %v784_v28  ;;  %v886_v3 = vor.u32 1.1754944e-38, %v885_v39  ;;  %v930_v47 = vand.u32 2147483648, %v1628_v7 }
 0x123   : > { %v877_v27 = vmul.f32 %v1055_v43, %v876_v5  ;;  %v1675_v46 = vsel %vm787_vm7, %v788_v36, %v786_v50  ;;  %v1679_v62 = vadd.f32 0.0026, %v832_v44  ;;  %v772_v60 = vmul.f32 %v771_v31, %v1583_v6 }
 0x124   : > { %v830_v26 = vmul.f32 %v1675_v46, %v1675_v46  ;;  %vm884_vm15 = vcmp.eq.f32.partialorder %v883_v23, 8.507059e+37  ;;  %vm924_vm0 = vweird.f32 %v1628_v7  ;;  %vm929_vm1 = vcmp.eq.f32.partialorder %v928_v25, 8.507059e+37 }
 0x125   : > { %v1057_v32 = vpop.eup %1056  ;;  %v878_v24 = vadd.f32 %v1055_v43, %v877_v27  ;;  %1060 = vrcp.f32 %v1679_v62  ;;  %v931_v54 = vor.u32 1.1754944e-38, %v930_v47  ;;  %v868_v42 = vand.u32 2147483647, %v1649_v34 }
 0x126   : > { %v920_v30 = vmul.f32 %v1057_v32, %v1628_v7  ;;  %vm925_vm14 = vweird.f32 %v1057_v32  ;;  %v870_v38 = vand.u32 2147483648, %v1649_v34  ;;  %v836_v55 = vadd.f32 %v830_v26, %v1634_v15 }
 0x127   : > { %v882_v61 = vsel %vm881_vm13, %v1055_v43, %v878_v24  ;;  %vm926_vm2 = vmor %vm924_vm0, %vm925_vm14  ;;  %v774_v9 = vsel %vm773_vm9, %v1583_v6, %v772_v60  ;;  %vm864_vm4 = vweird.f32 %v1649_v34  ;;  %v823_v53 = vmul.f32 %v1624_v48, %v1624_v48 }
 0x128   : > { %v921_v1 = vsub.f32 1.0, %v920_v30  ;;  %v1059_v59 = vpop.eup %1058  ;;  %v887_v63 = vsel %vm884_vm15, %v886_v3, %v882_v61  ;;  %v777_v52 = vsel %vm775_vm11, %v776_v16, %v774_v9  ;;  %v842_v51 = vadd.f32 0.0026, %v836_v55 }
 0x129   : > { %v860_v4 = vmul.f32 %v1059_v59, %v1649_v34  ;;  %v888_v13 = vmul.f32 %v887_v63, %v816_v49  ;;  %vm865_vm3 = vweird.f32 %v1059_v59  ;;  %v1705_v29 = vmul.f32 %v1642_v10, %v777_v52 }
 0x12a   : > { %v922_v0 = vmul.f32 %v1057_v32, %v921_v1  ;;  %v829_v22 = vmul.f32 %v777_v52, %v777_v52  ;;  %vm866_vm5 = vmor %vm864_vm4, %vm865_vm3  ;;  %v871_v58 = vor.u32 1.1754944e-38, %v870_v38  ;;  %1062 = vrcp.f32 %v842_v51 }
 0x12b   : > { %v861_v40 = vsub.f32 1.0, %v860_v4  ;;  %937 = vst.msk [vmem:[%s1691_s23 + $0x10] sm:$0xff] %vm934_vm8, %v888_v13  ;;  %v1061_v2 = vpop.eup %1060  ;;  %v815_v37 = vadd.f32 0.0026, %v1630_v14  ;;  %vm869_vm6 = vcmp.eq.f32.partialorder %v868_v42, 8.507059e+37  ;;  %v855_v34 = vand.u32 2147483648, %v1679_v62 }
 0x12c   : > { %v923_v57 = vadd.f32 %v1057_v32, %v922_v0  ;;  %v845_v6 = vmul.f32 %v1061_v2, %v1679_v62  ;;  %v835_v19 = vadd.f32 %v829_v22, %v823_v53  ;;  %vm850_vm7 = vweird.f32 %v1061_v2 }
 0x12d   : > { %v862_v21 = vmul.f32 %v1059_v59, %v861_v40  ;;  %v853_v48 = vand.u32 2147483647, %v1679_v62  ;;  %vm849_vm9 = vweird.f32 %v1679_v62  ;;  %v856_v14 = vor.u32 1.1754944e-38, %v855_v34 }
 0x12e   : > { %v927_v8 = vsel %vm926_vm2, %v1057_v32, %v923_v57  ;;  %v846_v45 = vsub.f32 1.0, %v845_v6  ;;  %v841_v41 = vadd.f32 0.0026, %v835_v19  ;;  %vm851_vm10 = vmor %vm849_vm9, %vm850_vm7  ;;  %v814_v39 = vadd.f32 0.0026, %v1659_v20 }
 0x12f   : > { %v932_v7 = vsel %vm929_vm1, %v931_v54, %v927_v8  ;;  %v863_v15 = vadd.f32 %v1059_v59, %v862_v21  ;;  %vm854_vm11 = vcmp.eq.f32.partialorder %v853_v48, 8.507059e+37  ;;  %v806_v5 = vmul.f32 2.0, %v1618_v56 }
 0x130   : > { %v933_v18 = vmul.f32 %v932_v7, %v819_v17  ;;  %v847_v35 = vmul.f32 %v1061_v2, %v846_v45  ;;  %v1063_v36 = vpop.eup %1062  ;;  %1064 = vrcp.f32 %v841_v41  ;;  %v915_v23 = vand.u32 2147483648, %v842_v51 }
 0x131   : > { %v867_v10 = vsel %vm866_vm5, %v1059_v59, %v863_v15  ;;  %v905_v49 = vmul.f32 %v1063_v36, %v842_v51  ;;  %v812_v17 = vmul.f32 %v806_v5, %v1675_v46  ;;  %vm910_vm12 = vweird.f32 %v1063_v36 }
 0x132   : > { %940 = vst.msk [vmem:[%s1691_s23 + $0x28] sm:$0xff] %vm934_vm8, %v933_v18  ;;  %v872_v43 = vsel %vm869_vm6, %v871_v58, %v867_v10  ;;  %v848_v16 = vadd.f32 %v1061_v2, %v847_v35  ;;  %v913_v27 = vand.u32 2147483647, %v842_v51  ;;  %vm909_vm13 = vweird.f32 %v842_v51 }
 0x133   : > { %v873_v33 = vmul.f32 %v872_v43, %v815_v37  ;;  %v906_v12 = vsub.f32 1.0, %v905_v49  ;;  %vm911_vm14 = vmor %vm909_vm13, %vm910_vm12  ;;  %v916_v1 = vor.u32 1.1754944e-38, %v915_v23  ;;  %v818_v25 = vadd.f32 0.0026, %v812_v17 }
 0x134   : > { %v852_v11 = vsel %vm851_vm10, %v1061_v2, %v848_v16  ;;  %vm914_vm15 = vcmp.eq.f32.partialorder %v913_v27, 8.507059e+37  ;;  %v900_v3 = vand.u32 2147483648, %v841_v41  ;;  %v898_v62 = vand.u32 2147483647, %v841_v41 }
 0x135   : > { %936 = vst.msk [vmem:[%s1691_s23 + $0x8] sm:$0xff] %vm934_vm8, %v873_v33  ;;  %v857_v32 = vsel %vm854_vm11, %v856_v14, %v852_v11  ;;  %v907_v30 = vmul.f32 %v1063_v36, %v906_v12  ;;  %vm894_vm1 = vweird.f32 %v841_v41  ;;  %v817_v26 = vadd.f32 0.0026, %v1705_v29 }
 0x136   : > { %v858_v28 = vmul.f32 %v857_v32, %v814_v39  ;;  %v1065_v44 = vpop.eup %1064  ;;  %v901_v0 = vor.u32 1.1754944e-38, %v900_v3  ;;  %vm899_vm3 = vcmp.eq.f32.partialorder %v898_v62, 8.507059e+37 }
 0x137   : > { %v908_v50 = vadd.f32 %v1063_v36, %v907_v30  ;;  %v890_v20 = vmul.f32 %v1065_v44, %v841_v41  ;;  %vm895_vm0 = vweird.f32 %v1065_v44 }
 0x138   : > { %935 = vst.msk [vmem:[%s1691_s23] sm:$0xff] %vm934_vm8, %v858_v28  ;;  %vm896_vm2 = vmor %vm894_vm1, %vm895_vm0 }
 0x139   : > { %v912_v31 = vsel %vm911_vm14, %v1063_v36, %v908_v50  ;;  %v891_v56 = vsub.f32 1.0, %v890_v20 }
 0x13a   : > { %v917_v24 = vsel %vm914_vm15, %v916_v1, %v912_v31 }
 0x13b   : > { %v918_v46 = vmul.f32 %v917_v24, %v818_v25  ;;  %v892_v47 = vmul.f32 %v1065_v44, %v891_v56 }
 0x13d   : > { %939 = vst.msk [vmem:[%s1691_s23 + $0x20] sm:$0xff] %vm934_vm8, %v918_v46  ;;  %v893_v59 = vadd.f32 %v1065_v44, %v892_v47 }
 0x13f   : > { %v897_v60 = vsel %vm896_vm2, %v1065_v44, %v893_v59 }
 0x140   : > { %v902_v61 = vsel %vm899_vm3, %v901_v0, %v897_v60 }
 0x141   : > { %v903_v4 = vmul.f32 %v902_v61, %v817_v26 }
 0x143   : > { %938 = vst.msk [vmem:[%s1691_s23 + $0x18] sm:$0xff] %vm934_vm8, %v903_v4 }
 0x144 PF: > { %s12_s9 = sadd.s32 1, %s1072_s9  }
 0x145   : > { %p9_p4 = scmp.ge.s32.totalorder %s12_s9, 10  }
 0x147   :  { %11 = sbr.rel (!%p9_p4) target bundleno = 1 (0x1), region = 61 }

// kernel: _forward_impl.41
= control target key start
LH: loop header
LB: loop body
LE: loop exit
PB: predicated region body
PF: predicated region fallthrough
CT: control target
= control target key end

     0   :  { %s373_s12 = smov 0   ;;  %s419_s0 = inlined_call_operand.vmem [shape: f32[2,1,36,36], index: 0, kind: input, shape index: {}]   ;;  %s420_s1 = inlined_call_operand.vmem [shape: f32[16,36], index: 1, kind: input, shape index: {}]   ;;  %s421_s2 = inlined_call_operand.vmem [shape: f32[36,16], index: 2, kind: input, shape index: {}]   ;;  %s422_s3 = inlined_call_operand.vmem [shape: f32[2,1,16,16], index: 3, kind: output, shape index: {}]  }
   0x1 LB: > { %s309_s13 = sadd.s32 4294967295, %s351_s12   ;;  %p313_p0 = scmp.ge.s32.totalorder %s351_s12, 1  ;;  %s351_s12 = sphi %s373_s12, %s13_s12  }
   0x2   : > { %p137_p1 = scmp.lt.s32.totalorder %s351_s12, 3 }
   0x4   : > { %p138_p2 = pnand %p313_p0, %p137_p1 }
   0x5   : > { %p161_p3 = scmp.lt.s32.totalorder (!%p138_p2), %s309_s13, 1 }
   0x6   : > { %141 = sbr.rel (%p138_p2) target bundleno = 293 (0x125), region = 32 }
   0xb   : > { %vm185_vm0 = vcmask 1043456   ;;  %v216_v0 = vld [vmem:[%s421_s2 + $0x20] sm:$0xf]  ;;  %v215_v1 = vld [vmem:[%s421_s2 + $0x18] sm:$0xff]  ;;  %s424_s13 = smov (!%p161_p3, %s309_s13), 1  ;;  %v214_v2 = vld [vmem:[%s421_s2 + $0x10] sm:$0xff] }
   0xc   : > { %331 = vmatpush.msk.msra.mxu3 %vm185_vm0, %v216_v0  ;;  %320 = vmatpush.msk.msra.mxu1 %vm185_vm0, %v216_v0  ;;  %s336_s20 = smul.u32 40, %s424_s13  ;;  %v213_v3 = vld [vmem:[%s421_s2 + $0x8] sm:$0xff]  ;;  %vm178_vm1 = vcmask 293888   ;;  %v176_v10 = vld [vmem:[%s420_s1] sm:$0xff]  ;;  %s325_s5 = sshll.u32 %s424_s13, 4  ;;  %vm251_vm2 = vcmask 130048  }
   0xd   : > { %v177_v9 = vld [vmem:[%s420_s1 + $0x8] sm:$0xff]  ;;  %v212_v11 = vld [vmem:[%s421_s2] sm:$0xff]  ;;  %s170_s8 = scalar_lea.vmem %s422_s3, %s325_s5 }
   0xe   : > { %332 = vmatpush.msra.mxu3 %v215_v1  ;;  %238 = vmatpush.msra.mxu1 %v215_v1  ;;  %s165_s23 = scalar_lea.vmem %s419_s0, %s336_s20 }
   0xf   : > { %v175_v4 = vld [vmem:[%s165_s23 + $0x20] sm:$0xf]  ;;  %v174_v5 = vld [vmem:[%s165_s23 + $0x18] sm:$0xff]  ;;  %v173_v6 = vld [vmem:[%s165_s23 + $0x10] sm:$0xff] }
  0x10   : > { %333 = vmatpush.msra.mxu3 %v214_v2  ;;  %239 = vmatpush.msra.mxu1 %v214_v2  ;;  %v172_v7 = vld [vmem:[%s165_s23 + $0x8] sm:$0xff]  ;;  %v171_v8 = vld [vmem:[%s165_s23] sm:$0xff] }
  0x11   : > { %326 = vmatpush.msk.msra.mxu2 %vm185_vm0, %v175_v4  ;;  %317 = vmatpush.msk.msra.mxu0 %vm185_vm0, %v175_v4 }
  0x12   : > { %334 = vmatpush.msra.mxu3 %v213_v3  ;;  %240 = vmatpush.msra.mxu1 %v213_v3 }
  0x13   : > { %327 = vmatpush.msra.mxu2 %v174_v5  ;;  %201 = vmatpush.msra.mxu0 %v174_v5 }
  0x14   : > { %335 = vmatpush.msra.mxu3 %v212_v11  ;;  %241 = vmatpush.msra.mxu1 %v212_v11 }
  0x15   : > { %328 = vmatpush.msra.mxu2 %v173_v6  ;;  %202 = vmatpush.msra.mxu0 %v173_v6 }
  0x17   : > { %329 = vmatpush.msra.mxu2 %v172_v7  ;;  %203 = vmatpush.msra.mxu0 %v172_v7 }
  0x19   : > { %330 = vmatpush.msra.mxu2 %v171_v8  ;;  %204 = vmatpush.msra.mxu0 %v171_v8 }
  0x1a   : > { %319 = vmatmul.msk.f32.vlgmr.msra.gmra.mxu2 %vm178_vm1, %v177_v9  ;;  %318 = vmatmul.msk.f32.vlgmr.msra.gmra.mxu0 %vm178_vm1, %v176_v10 }
  0x97   : > { %v206_v12 = vpop.f32.mrf.mxu0 }
  0x98   : > { %321 = vmatmul.msk.f32.vlgmr.msra.gmra.mxu1 %vm178_vm1, %v206_v12 }
  0x9d   : > { %v209_v13 = vpop.f32.mrf.mxu2 }
  0x9e   : > { %322 = vmatmul.msk.f32.vlgmr.msra.gmra.mxu3 %vm178_vm1, %v209_v13 }
 0x115   : > { %v243_v14 = vpop.f32.mrf.mxu1 }
 0x116   : > { %v249_v15 = vmul.f32 0.0022675737, %v243_v14 }
 0x118   : > { %252 = vst.msk [vmem:[%s170_s8] sm:$0xff] %vm251_vm2, %v249_v15 }
 0x121   : > { %v246_v16 = vpop.f32.mrf.mxu3 }
 0x122   : > { %v250_v17 = vmul.f32 0.0022675737, %v246_v16 }
 0x124   : > { %253 = vst.msk [vmem:[%s170_s8 + $0x8] sm:$0xff] %vm251_vm2, %v250_v17 }
 0x125 PF: > { %s13_s12 = sadd.s32 1, %s351_s12  }
 0x126   : > { %p10_p4 = scmp.ge.s32.totalorder %s13_s12, 4  }
 0x128   :  { %12 = sbr.rel (!%p10_p4) target bundleno = 1 (0x1), region = 62 }

// kernel: _forward_impl.42
= control target key start
LH: loop header
LB: loop body
LE: loop exit
PB: predicated region body
PF: predicated region fallthrough
CT: control target
= control target key end

     0   :  { %s325_s9 = smov 0   ;;  %s357_s0 = inlined_call_operand.vmem [shape: f32[8,3,16,16], index: 0, kind: input, shape index: {}]   ;;  %s358_s1 = inlined_call_operand.vmem [shape: f32[8,3,16,16], index: 1, kind: input, shape index: {}]   ;;  %s359_s2 = inlined_call_operand.vmem [shape: f32[8,1,16,16], index: 2, kind: output, shape index: {}]  }
   0x1 LB: > { %s277_s10 = sadd.s32 4294967295, %s307_s9   ;;  %p281_p0 = scmp.ge.s32.totalorder %s307_s9, 1  ;;  %s307_s9 = sphi %s325_s9, %s12_s9  }
   0x2   : > { %p122_p1 = scmp.lt.s32.totalorder %s307_s9, 9 }
   0x4   : > { %p123_p2 = pnand %p281_p0, %p122_p1 }
   0x5   : > { %p149_p3 = scmp.lt.s32.totalorder (!%p123_p2), %s277_s10, 7 }
   0x6   : > { %126 = sbr.rel (%p123_p2) target bundleno = 32 (0x20), region = 28 }
   0xb   : > { %v309_v0 = vmov 3.0   ;;  %s361_s10 = smov (!%p149_p3, %s277_s10), 7  ;;  %vm188_vm0 = vcmask 130048  }
   0xc   : > { %299 = vrcp.f32 %v309_v0  ;;  %s289_s11 = smul.u32 48, %s361_s10  ;;  %s288_s18 = sshll.u32 %s361_s10, 4 }
   0xd   : > { %s163_s21 = scalar_lea.vmem %s359_s2, %s288_s18 }
   0xe   : > { %s153_s14 = scalar_lea.vmem %s357_s0, %s289_s11  ;;  %s158_s17 = scalar_lea.vmem %s358_s1, %s289_s11 }
   0xf   : > { %v164_v2 = vld [vmem:[%s153_s14] sm:$0xff]  ;;  %v166_v3 = vld [vmem:[%s153_s14 + $0x10] sm:$0xff]  ;;  %v165_v12 = vld [vmem:[%s153_s14 + $0x8] sm:$0xff] }
  0x10   : > { %v168_v4 = vld [vmem:[%s153_s14 + $0x20] sm:$0xff]  ;;  %v172_v6 = vld [vmem:[%s158_s17 + $0x10] sm:$0xff]  ;;  %v167_v13 = vld [vmem:[%s153_s14 + $0x18] sm:$0xff] }
  0x11   : > { %v170_v5 = vld [vmem:[%s158_s17] sm:$0xff]  ;;  %v178_v10 = vsub.f32 %v166_v3, %v172_v6  ;;  %v169_v14 = vld [vmem:[%s153_s14 + $0x28] sm:$0xff]  ;;  %v173_v17 = vld [vmem:[%s158_s17 + $0x18] sm:$0xff] }
  0x12   : > { %v300_v1 = vpop.eup %299  ;;  %v174_v7 = vld [vmem:[%s158_s17 + $0x20] sm:$0xff]  ;;  %v176_v9 = vsub.f32 %v164_v2, %v170_v5  ;;  %v171_v16 = vld [vmem:[%s158_s17 + $0x8] sm:$0xff]  ;;  %v179_v24 = vsub.f32 %v167_v13, %v173_v17 }
  0x13   : > { %v200_v8 = vmul.f32 3.0, %v300_v1  ;;  %v180_v11 = vsub.f32 %v168_v4, %v174_v7  ;;  %v175_v18 = vld [vmem:[%s158_s17 + $0x28] sm:$0xff]  ;;  %v184_v20 = vand.u32 2147483647, %v178_v10  ;;  %v177_v22 = vsub.f32 %v165_v12, %v171_v16 }
  0x14   : > { %v182_v19 = vand.u32 2147483647, %v176_v9  ;;  %vm204_vm1 = vweird.f32 %v300_v1  ;;  %v181_v25 = vsub.f32 %v169_v14, %v175_v18  ;;  %v185_v32 = vand.u32 2147483647, %v179_v24 }
  0x15   : > { %v201_v15 = vsub.f32 1.0, %v200_v8  ;;  %v186_v21 = vand.u32 2147483647, %v180_v11  ;;  %v190_v27 = vsel %vm188_vm0, %v184_v20, 0.0  ;;  %v183_v29 = vand.u32 2147483647, %v177_v22 }
  0x16   : > { %v189_v26 = vsel %vm188_vm0, %v182_v19, 0.0  ;;  %v187_v33 = vand.u32 2147483647, %v181_v25  ;;  %v195_v37 = vsel %vm188_vm0, %v185_v32, 0.0 }
  0x17   : > { %v202_v23 = vmul.f32 %v300_v1, %v201_v15  ;;  %v192_v28 = vsel %vm188_vm0, %v186_v21, 0.0  ;;  %v191_v30 = vadd.f32 %v190_v27, %v189_v26  ;;  %v194_v34 = vsel %vm188_vm0, %v183_v29, 0.0 }
  0x18   : > { %v197_v38 = vsel %vm188_vm0, %v187_v33, 0.0  ;;  %v196_v39 = vadd.f32 %v195_v37, %v194_v34 }
  0x19   : > { %v203_v31 = vadd.f32 %v300_v1, %v202_v23  ;;  %v193_v35 = vadd.f32 %v192_v28, %v191_v30 }
  0x1a   : > { %v198_v41 = vadd.f32 %v197_v38, %v196_v39 }
  0x1b   : > { %v205_v36 = vsel %vm204_vm1, %v300_v1, %v203_v31 }
  0x1c   : > { %v206_v40 = vmul.f32 %v205_v36, %v193_v35  ;;  %v207_v42 = vmul.f32 %v205_v36, %v198_v41 }
  0x1e   : > { %208 = vst.msk [vmem:[%s163_s21] sm:$0xff] %vm188_vm0, %v206_v40 }
  0x1f   : > { %209 = vst.msk [vmem:[%s163_s21 + $0x8] sm:$0xff] %vm188_vm0, %v207_v42 }
  0x20 PF: > { %s12_s9 = sadd.s32 1, %s307_s9  }
  0x21   : > { %p9_p4 = scmp.ge.s32.totalorder %s12_s9, 10  }
  0x23   :  { %11 = sbr.rel (!%p9_p4) target bundleno = 1 (0x1), region = 61 }

// kernel: _forward_impl.44
= control target key start
LH: loop header
LB: loop body
LE: loop exit
PB: predicated region body
PF: predicated region fallthrough
CT: control target
= control target key end

     0   :  { %s233_s6 = smov 0   ;;  %s250_s0 = inlined_call_operand.vmem [shape: f32[8,3,16,16], index: 0, kind: input, shape index: {}]   ;;  %s251_s1 = inlined_call_operand.vmem [shape: f32[8,3,16,16], index: 1, kind: output, shape index: {}]  }
   0x1 LB: > { %s197_s7 = sadd.s32 4294967295, %s221_s6   ;;  %p201_p0 = scmp.ge.s32.totalorder %s221_s6, 1  ;;  %s221_s6 = sphi %s233_s6, %s11_s6  }
   0x2   : > { %p87_p1 = scmp.lt.s32.totalorder %s221_s6, 9 }
   0x4   : > { %p88_p2 = pnand %p201_p0, %p87_p1 }
   0x5   : > { %p107_p3 = scmp.lt.s32.totalorder (!%p88_p2), %s197_s7, 7 }
   0x6   : > { %91 = sbr.rel (%p88_p2) target bundleno = 26 (0x1a), region = 24 }
   0xb   : > { %s253_s7 = smov (!%p107_p3, %s197_s7), 7  ;;  %vm135_vm0 = vcmask 130048  }
   0xc   : > { %s206_s8 = smul.u32 48, %s253_s7 }
   0xe   : > { %s111_s11 = scalar_lea.vmem %s250_s0, %s206_s8  ;;  %s116_s14 = scalar_lea.vmem %s251_s1, %s206_s8 }
   0xf   : > { %v117_v0 = vld [vmem:[%s111_s11] sm:$0xff]  ;;  %v118_v1 = vld [vmem:[%s111_s11 + $0x8] sm:$0xff]  ;;  %v119_v2 = vld [vmem:[%s111_s11 + $0x10] sm:$0xff] }
  0x10   : > { %v123_v3 = vmul.f32 0.5, %v117_v0  ;;  %v124_v4 = vmul.f32 0.5, %v118_v1  ;;  %v125_v5 = vmul.f32 0.5, %v119_v2  ;;  %v120_v6 = vld [vmem:[%s111_s11 + $0x18] sm:$0xff]  ;;  %v121_v7 = vld [vmem:[%s111_s11 + $0x20] sm:$0xff]  ;;  %v122_v8 = vld [vmem:[%s111_s11 + $0x28] sm:$0xff] }
  0x11   : > { %v126_v9 = vmul.f32 0.5, %v120_v6  ;;  %v127_v10 = vmul.f32 0.5, %v121_v7  ;;  %v128_v11 = vmul.f32 0.5, %v122_v8 }
  0x12   : > { %v129_v12 = vadd.f32 0.5, %v123_v3  ;;  %v130_v13 = vadd.f32 0.5, %v124_v4  ;;  %v131_v14 = vadd.f32 0.5, %v125_v5 }
  0x13   : > { %v132_v15 = vadd.f32 0.5, %v126_v9  ;;  %v133_v16 = vadd.f32 0.5, %v127_v10  ;;  %v134_v17 = vadd.f32 0.5, %v128_v11 }
  0x14   : > { %136 = vst.msk [vmem:[%s116_s14] sm:$0xff] %vm135_vm0, %v129_v12 }
  0x15   : > { %137 = vst.msk [vmem:[%s116_s14 + $0x8] sm:$0xff] %vm135_vm0, %v130_v13 }
  0x16   : > { %138 = vst.msk [vmem:[%s116_s14 + $0x10] sm:$0xff] %vm135_vm0, %v131_v14 }
  0x17   : > { %139 = vst.msk [vmem:[%s116_s14 + $0x18] sm:$0xff] %vm135_vm0, %v132_v15 }
  0x18   : > { %140 = vst.msk [vmem:[%s116_s14 + $0x20] sm:$0xff] %vm135_vm0, %v133_v16 }
  0x19   : > { %141 = vst.msk [vmem:[%s116_s14 + $0x28] sm:$0xff] %vm135_vm0, %v134_v17 }
  0x1a PF: > { %s11_s6 = sadd.s32 1, %s221_s6  }
  0x1b   : > { %p8_p4 = scmp.ge.s32.totalorder %s11_s6, 10  }
  0x1d   :  { %10 = sbr.rel (!%p8_p4) target bundleno = 1 (0x1), region = 54 }

// kernel: _forward_impl.45
= control target key start
LH: loop header
LB: loop body
LE: loop exit
PB: predicated region body
PF: predicated region fallthrough
CT: control target
= control target key end

     0   :  { %6 = vsyncpa [#allocation3], 0  ;;  %s441_s0 = inlined_call_operand.vmem [shape: f32[2,3,16,16], index: 0, kind: input, shape index: {}]   ;;  %s442_s1 = inlined_call_operand.hbm [shape: f32[2,3,16,16], index: 1, kind: output, shape index: {}]  }
   0x1   :  { %8 = vsyncpa [#allocation3 + $0x1], 0  ;;  %s346_s6 = smov 0   ;;  %s348_s7 = smov 0  }
   0x2   :  { %s350_s8 = smov 0   ;;  %s352_s9 = smov 0  }
   0x3 LB: > { %s367_s10 = sadd.s32 4294967295, %s332_s9   ;;  %s218_s11 = sadd.s32 4294967294, %s332_s9   ;;  %s332_s9 = sphi %s352_s9, %s448_s9   ;;  %s328_s8 = sphi %s350_s8, %s447_s8   ;;  %s324_s7 = sphi %s348_s7, %s446_s7   ;;  %s320_s6 = sphi %s346_s6, %s445_s6  }
   0x4   : > { %s371_s12 = sadd.s32 1, %s332_s9   ;;  %s47_s13 = sadd.s32 1, %s328_s8 }
   0x5   : > { %s44_s14 = ssub.s32 %s332_s9, %s371_s12  ;;  %p57_p0 = scmp.ne.s32.totalorder %s328_s8, %s324_s7 }
   0x6   : > { %p45_p1 = scmp.eq.s32.totalorder %s44_s14, 0  ;;  %p58_p2 = scmp.eq.s32.totalorder %s367_s10, 1 }
   0x7   : > { %p63_p3 = scmp.ne.s32.totalorder %s324_s7, %s320_s6  ;;  %p64_p4 = scmp.eq.s32.totalorder %s218_s11, 1 }
   0x8   : > { %s382_s15 = scalar_select %p45_p1, %s328_s8, %s47_s13  }
   0x9   : > { %p384_p5 = por %p58_p2, %p57_p0  ;;  %p388_p6 = por %p64_p4, %p63_p3 }
   0xa   : > { %p221_p7 = scmp.ge.s32.totalorder %s332_s9, 1  ;;  %p90_p8 = scmp.lt.s32.totalorder %s332_s9, 3 }
   0xc   : > { %p91_p9 = pnand %p221_p7, %p90_p8 }
   0xd   : > { %s107_s18 = sand.u32 (!%p91_p9), 1, %s324_s7   ;;  %p110_p10 = scmp.lt.s32.totalorder (!%p91_p9), %s367_s10, 1 }
   0xe   : > { %94 = sbr.rel (%p91_p9) target bundleno = 38 (0x26), region = 24  ;;  %s141_s3 = scalar_lea.sflag (!%p91_p9), [#allocation3], %s107_s18 }
   0xf   : > { %s226_s19 = smul.u32 (!%p91_p9), 48, %s107_s18  ;;  %s290_s13 = scalar_lea.hbm (!%p91_p9), %s442_s1, 96 }
  0x10   : > { %s228_s21 = smul.u32 (!%p91_p9), 48, %s367_s10 }
  0x11   : > { %s109_s29 = scalar_lea.vmem (!%p91_p9), [#allocation2], %s226_s19 }
  0x12   : > { %s152_s28 = scalar_lea.hbm (!%p91_p9), %s442_s1, %s228_s21  ;;  %s153_s30 = sshll.u32 (!%p91_p9), %s109_s29, 4  ;;  %s154_s30 = int_to_ptr.vmem [resolvable:$true] %s153_s30 }
  0x13   : > { %s111_s20 = scalar_select %p110_p10, %s367_s10, 1  ;;  %vm133_vm0 = vcmask 130048  }
  0x14   : > { %s155_s2 = sshll.u32 %s152_s28, 4  ;;  %s156_s2 = int_to_ptr.hbm [resolvable:$true] %s155_s2 }
  0x15   : > { %s227_s22 = smul.u32 48, %s111_s20  ;;  %s284_s4 = sshra.s32 %s156_s2, 4  ;;  %s285_s4 = int_to_ptr.hbm [resolvable:$true] %s284_s4 }
  0x16   : > { %s286_s5 = scalar_lea.hbm %s285_s4, 48  ;;  %p291_p0 = scmp.lt.s32.totalorder %s285_s4, %s442_s1 }
  0x17   : > { %s114_s25 = scalar_lea.vmem %s441_s0, %s227_s22  ;;  %p287_p11 = scmp.ne.s32.totalorder %s285_s4, %s286_s5 }
  0x18   : > { %v115_v0 = vld [vmem:[%s114_s25] sm:$0xff]  ;;  %v116_v1 = vld [vmem:[%s114_s25 + $0x8] sm:$0xff]  ;;  %v117_v2 = vld [vmem:[%s114_s25 + $0x10] sm:$0xff]  ;;  %p292_p1 = scmp.lt.s32.totalorder %s290_s13, %s286_s5 }
  0x19   : > { %v121_v3 = vmul.f32 0.5, %v115_v0  ;;  %v122_v4 = vmul.f32 0.5, %v116_v1  ;;  %v123_v5 = vmul.f32 0.5, %v117_v2  ;;  %v118_v6 = vld [vmem:[%s114_s25 + $0x18] sm:$0xff]  ;;  %v119_v7 = vld [vmem:[%s114_s25 + $0x20] sm:$0xff]  ;;  %v120_v8 = vld [vmem:[%s114_s25 + $0x28] sm:$0xff]  ;;  %p288_p12 = pnand %p287_p11, %p384_p5 }
  0x1a   : > { %v124_v9 = vmul.f32 0.5, %v118_v6  ;;  %v125_v10 = vmul.f32 0.5, %v119_v7  ;;  %v126_v11 = vmul.f32 0.5, %v120_v8  ;;  %p293_p2 = por %p292_p1, %p291_p0 }
  0x1b   : > { %v127_v12 = vadd.f32 0.5, %v121_v3  ;;  %v128_v13 = vadd.f32 0.5, %v122_v4  ;;  %v129_v14 = vadd.f32 0.5, %v123_v5  ;;  %p289_p13 = pneg %p288_p12 }
  0x1c   : > { %v130_v15 = vadd.f32 0.5, %v124_v9  ;;  %v131_v16 = vadd.f32 0.5, %v125_v10  ;;  %v132_v17 = vadd.f32 0.5, %v126_v11 }
  0x1d   : > { %134 = vst.msk [vmem:[%s109_s29] sm:$0xff] %vm133_vm0, %v127_v12  ;;  %p294_p3 = pnand %p293_p2, %p289_p13 }
  0x1e   : > { %135 = vst.msk [vmem:[%s109_s29 + $0x8] sm:$0xff] %vm133_vm0, %v128_v13 }
  0x1f   : > { %136 = vst.msk [vmem:[%s109_s29 + $0x10] sm:$0xff] %vm133_vm0, %v129_v14 }
  0x20   : > { %137 = vst.msk [vmem:[%s109_s29 + $0x18] sm:$0xff] %vm133_vm0, %v130_v15 }
  0x21   : > { %138 = vst.msk [vmem:[%s109_s29 + $0x20] sm:$0xff] %vm133_vm0, %v131_v16 }
  0x22   : > { %139 = vst.msk [vmem:[%s109_s29 + $0x28] sm:$0xff] %vm133_vm0, %v132_v17 }
  0x23   : > { %297 = shalt.err (!%p294_p3)
}
  0x24   : > { %s334_s18 = smov 128   ;;  %s335_s20 = smov 8  }
  0x25   : > { %229 = dma.vmem_to_hbm [thread:$0]  (%p384_p5), %s154_s30, 768, %s156_s2, %s141_s3, %s334_s18, %s334_s18, %s335_s20  }
  0x26 PF: > { %p235_p4 = scmp.ge.s32.totalorder %s332_s9, 2  ;;  %s170_s21 = sand.u32 1, %s320_s6  }
  0x27   : > { %s171_s22 = scalar_lea.sflag [#allocation3], %s170_s21 }
  0x28   : > { %p232_p7 = pnand %p235_p4, %p388_p6 }
  0x2a   : > { %p233_p8 = pneg %p232_p7 }
  0x2c   : > { %315 = dma.done.wait (%p233_p8), %s171_s22, 768  }
  0x2d   : > { %317 = vsyncadd (%p233_p8), %s171_s22, 4294966528  ;;  %p11_p9 = scmp.ge.s32.totalorder %s371_s12, 4   ;;  %s445_s6 = smov %s324_s7 }
  0x2e   : > { %s446_s7 = smov %s328_s8  ;;  %s447_s8 = smov %s382_s15 }
  0x2f   : > { %s448_s9 = smov %s371_s12  ;;  %13 = sbr.rel (!%p11_p9) target bundleno = 3 (0x3), region = 59 }
  0x34   :  { %177 = vsyncpa [#allocation3], 1 }
  0x35   :  { %179 = vsyncpa [#allocation3 + $0x1], 1 }

</bundles_post_ra>
